<compile_context>
chip_gen: v5e
topology: v5e:2x2
jax: 0.10.0
libtpu: 0.0.40
codegen_flags: <defaults>
</compile_context>

<pallas_src>
import functools

import numpy as np
import jax
import jax.numpy as jnp
from jax.experimental import pallas as pl
from jax.experimental.pallas import tpu as pltpu


_COMPUTE_DTYPE = jnp.bfloat16


def _cdiv(a, b):
    return -(-a // b)


def _round_up(a, m):
    return _cdiv(a, m) * m


def _vmem_capacity_bytes():
    try:
        info = pltpu.get_tpu_info()
        return int(getattr(info, "vmem_capacity_bytes", 64 * 1024 * 1024))
    except Exception:
        return 64 * 1024 * 1024          # conservative (v7x-sized) fallback


_VMEM_CAP = _vmem_capacity_bytes()
_VMEM_LIMIT = int(min((_VMEM_CAP * 3) // 4, 96 * 1024 * 1024))   # scoped VMEM limit
_TILE_BUDGET = int(min(_VMEM_LIMIT // 2, 12 * 1024 * 1024))      # per-call tiling budget


# ----------------------------------------------------------------------------
# Pallas kernel 1: tiled (M, K) @ (K, N) + bias, optional fused ReLU.
# bf16 operands, f32 accumulation, bf16 output.
# ----------------------------------------------------------------------------
def _matmul_bias_kernel(a_ref, b_ref, bias_ref, o_ref, *, apply_relu):
    acc = jnp.dot(a_ref[...], b_ref[...], preferred_element_type=jnp.float32)
    acc = acc + bias_ref[...]
    if apply_relu:
        acc = jnp.maximum(acc, 0.0)
    o_ref[...] = acc.astype(o_ref.dtype)


def _pick_tile_m(M, K, N):
    """M tile under a generation-aware VMEM budget.

    Accounts for: A bf16 (x2 pipeline bufs), out bf16 (x2), f32 acc temp, plus
    the resident bf16 weight (x2: Mosaic still double-buffers grid-invariant
    blocks) and the f32 bias.
    """
    fixed = 2 * K * N * 2 + 2 * N * 4
    per_row = 2 * (K * 2) + 2 * (N * 2) + N * 4
    avail = max(_TILE_BUDGET - fixed, 512 * 1024)
    cap = max(128, min(1024, avail // per_row))   # <=1024 rows: 4-8 steps, good pipelining
    if M <= cap:
        return _round_up(M, 8)                    # single block, no ragged tail
    tm = min(cap, _round_up(_cdiv(M, 4), 8))      # >=4 grid steps (2 per TC on v7x)
    return max(8, (tm // 8) * 8)


def pallas_matmul_bias(a, b, bias, *, relu):
    """a: [M, K], b: [K, N], bias: [N] -> [M, N] bfloat16."""
    M, K = a.shape
    _, N = b.shape

    # Tiny / lane-sparse problems: launch overhead dwarfs compute -> plain XLA.
    if M < 8 or N < 128:
        y = jnp.dot(a.astype(jnp.float32), b.astype(jnp.float32)) + bias
        y = jnp.maximum(y, 0.0) if relu else y
        return y.astype(_COMPUTE_DTYPE)

    a_c = a.astype(_COMPUTE_DTYPE)
    b_c = b.astype(_COMPUTE_DTYPE)
    bias2 = bias.reshape(1, N).astype(jnp.float32)

    mp = _round_up(M, 8)                          # pad rows so single-tile cases
    if mp != M:                                   # never produce a 1-7 row tail block
        a_c = jnp.pad(a_c, ((0, mp - M), (0, 0)))

    tm = _pick_tile_m(mp, K, N)
    grid_m = _cdiv(mp, tm)

    out = pl.pallas_call(
        functools.partial(_matmul_bias_kernel, apply_relu=relu),
        out_shape=jax.ShapeDtypeStruct((mp, N), _COMPUTE_DTYPE),
        grid=(grid_m,),
        in_specs=[
            pl.BlockSpec((tm, K), lambda i: (i, 0)),   # A streams over M
            # TODO(synk): single-buffer these grid-invariant operands once
            # pipeline_mode=pl.Buffered(1) / memory_space=VMEM is verified.
            pl.BlockSpec((K, N), lambda i: (0, 0)),    # weight resident
            pl.BlockSpec((1, N), lambda i: (0, 0)),    # bias resident
        ],
        out_specs=pl.BlockSpec((tm, N), lambda i: (i, 0)),
        compiler_params=pltpu.CompilerParams(
            dimension_semantics=("parallel",),
            vmem_limit_bytes=_VMEM_LIMIT),
    )(a_c, b_c, bias2)
    return out[:M] if mp != M else out


# ----------------------------------------------------------------------------
# Pallas kernel 2: fused implicit-GEMM conv (stride 1, Cin % 128 == 0).
# Flattened per-image activation resident in VMEM; kh*kw tap loop in-kernel.
# ----------------------------------------------------------------------------
def _fused_conv_kernel(x_ref, w_ref, b_ref, o_ref, *, tap_offsets, tm, apply_relu):
    cout = w_ref.shape[2]
    m0 = pl.multiple_of(pl.program_id(1) * tm, 8)
    acc = jnp.zeros((tm, cout), jnp.float32)
    # TODO(synk): accumulate >=2 taps per dot (K=2*Cin) to fill the 256-deep
    # v6e/v7x MXU contraction dimension.
    for t, off in enumerate(tap_offsets):
        shift = off % 8
        base = pl.multiple_of(m0 + (off - shift), 8)     # 8-aligned dynamic start
        win = x_ref[0, pl.ds(base, tm + 8), :]           # f32 window (tm+8, Cin)
        a = win[shift:shift + tm, :].astype(jnp.bfloat16)  # static sub-window shift
        acc = acc + jnp.dot(a, w_ref[t], preferred_element_type=jnp.float32)
    acc = acc + b_ref[...]
    if apply_relu:
        acc = jnp.maximum(acc, 0.0)
    o_ref[0] = acc.astype(o_ref.dtype)


def conv2d_fused(x, w, b, *, relu):
    """x: [N, Hp, Wp, Cin] (already spatially padded), w: [KH, KW, Cin, Cout]."""
    kh, kw, cin, cout = w.shape
    n, hp, wp, _ = x.shape
    oh, ow = hp - kh + 1, wp - kw + 1
    m_img = oh * wp                       # over-computed rows (full width; valid cols < ow)

    tm_cap = 256
    nb = _cdiv(m_img, tm_cap)
    tm = _round_up(_cdiv(m_img, nb), 8)

    halo = (kh - 1) * wp + (kw - 1)
    r_pad = _round_up(nb * tm + halo + 16, 8)   # rows so every in-kernel slice is in-bounds

    # TODO(synk): keep this slab bf16 once 16-aligned dynamic packed-row slices
    # are verified (halves its HBM read + VMEM footprint).
    x_flat = x.astype(jnp.float32).reshape(n, hp * wp, cin)
    x_flat = jnp.pad(x_flat, ((0, 0), (0, r_pad - hp * wp), (0, 0)))

    w_taps = w.reshape(kh * kw, cin, cout).astype(_COMPUTE_DTYPE)
    bias2 = b.reshape(1, cout).astype(jnp.float32)
    tap_offsets = tuple(i * wp + j for i in range(kh) for j in range(kw))

    out = pl.pallas_call(
        functools.partial(_fused_conv_kernel, tap_offsets=tap_offsets, tm=tm,
                          apply_relu=relu),
        out_shape=jax.ShapeDtypeStruct((n, nb * tm, cout), _COMPUTE_DTYPE),
        grid=(n, nb),
        in_specs=[
            pl.BlockSpec((1, r_pad, cin), lambda b_, m_: (b_, 0, 0)),    # image resident
            pl.BlockSpec((kh * kw, cin, cout), lambda b_, m_: (0, 0, 0)),  # weight resident
            pl.BlockSpec((1, cout), lambda b_, m_: (0, 0)),              # bias resident
        ],
        out_specs=pl.BlockSpec((1, tm, cout), lambda b_, m_: (b_, m_, 0)),
        compiler_params=pltpu.CompilerParams(
            dimension_semantics=("parallel", "parallel"),
            vmem_limit_bytes=_VMEM_LIMIT),
    )(x_flat, w_taps, bias2)

    out = out[:, :m_img, :].reshape(n, oh, wp, cout)[:, :, :ow, :]
    return out


# ----------------------------------------------------------------------------
# Conv2d dispatcher: 1x1 -> direct GEMM; k>1 with wide Cin -> fused kernel;
# otherwise (conv1, Cin=3) -> tiny im2col + GEMM.
# ----------------------------------------------------------------------------
def conv2d_im2col(x, w, b, *, pad, relu):
    kh, kw, cin, cout = w.shape
    xp = jnp.pad(x, ((0, 0), (pad, pad), (pad, pad), (0, 0))) if pad else x
    xp = xp.astype(_COMPUTE_DTYPE)
    n, hp, wp, _ = xp.shape
    oh = hp - kh + 1
    ow = wp - kw + 1
    cols = []
    for i in range(kh):
        for j in range(kw):
            cols.append(xp[:, i:i + oh, j:j + ow, :])
    patches = jnp.stack(cols, axis=3)               # [N, oh, ow, kh*kw, Cin]
    a = patches.reshape(n * oh * ow, kh * kw * cin)
    wm = w.reshape(kh * kw * cin, cout)
    y = pallas_matmul_bias(a, wm, b, relu=relu)
    return y.reshape(n, oh, ow, cout)


def conv2d(x, w, b, *, pad, relu):
    kh, kw, cin, cout = w.shape
    if kh == 1 and kw == 1 and pad == 0:
        n, h, wd, _ = x.shape
        y = pallas_matmul_bias(x.reshape(n * h * wd, cin), w.reshape(cin, cout),
                               b, relu=relu)
        return y.reshape(n, h, wd, cout)
    if cin % 128 == 0:
        xp = jnp.pad(x, ((0, 0), (pad, pad), (pad, pad), (0, 0))) if pad else x
        return conv2d_fused(xp, w, b, relu=relu)
    return conv2d_im2col(x, w, b, pad=pad, relu=relu)


# ----------------------------------------------------------------------------
# AvgPool2d(kernel=2, stride=2, padding=p) -- count_include_pad=True semantics.
# Tiny memory-bound op: plain jnp (fused by XLA).
# ----------------------------------------------------------------------------
def avg_pool2x2(x, *, pad):
    if pad:
        x = jnp.pad(x, ((0, 0), (pad, pad), (pad, pad), (0, 0)))
    n, h, w, c = x.shape
    oh, ow = h // 2, w // 2
    xr = x[:, :2 * oh, :2 * ow, :].reshape(n, oh, 2, ow, 2, c)
    return xr.astype(jnp.float32).mean(axis=(2, 4)).astype(x.dtype)


# ----------------------------------------------------------------------------
# Bilinear interpolation (align_corners=False) as two separable 1-D
# contractions (tiny K -> plain jnp, upcasts to f32 at the end).
# ----------------------------------------------------------------------------
def _interp_matrix(out_size, in_size):
    if in_size == 1:
        return np.ones((out_size, 1), dtype=np.float32)
    scale = in_size / out_size
    idx = np.arange(out_size, dtype=np.float64)
    src = (idx + 0.5) * scale - 0.5
    src = np.maximum(src, 0.0)
    i0 = np.minimum(np.floor(src).astype(np.int64), in_size - 1)
    i1 = np.minimum(i0 + 1, in_size - 1)
    l1 = (src - i0).astype(np.float32)
    m = np.zeros((out_size, in_size), dtype=np.float32)
    m[np.arange(out_size), i0] += 1.0 - l1
    m[np.arange(out_size), i1] += l1
    return m


def bilinear_resize(x, out_h, out_w):
    _, h, w, _ = x.shape
    mh = jnp.asarray(_interp_matrix(out_h, h))
    mw = jnp.asarray(_interp_matrix(out_w, w))
    y = jnp.einsum('oh,nhwc->nowc', mh, x.astype(jnp.float32))
    y = jnp.einsum('pw,nowc->nopc', mw, y)
    return y


# ----------------------------------------------------------------------------
# PDN_M_Multi forward (matches the PyTorch module, eval mode).
# ----------------------------------------------------------------------------
def pdn_m_multi_forward(params, x_nchw, *, feat_size, padding=False):
    p = 1 if padding else 0
    x = jnp.transpose(x_nchw, (0, 2, 3, 1))      # NCHW -> NHWC
    x = conv2d(x, *params["conv1"], pad=3 * p, relu=True)
    x = avg_pool2x2(x, pad=p)
    x = conv2d(x, *params["conv2"], pad=3 * p, relu=True)
    x = avg_pool2x2(x, pad=p)
    x = conv2d(x, *params["conv3"], pad=0, relu=True)
    x = conv2d(x, *params["conv4"], pad=1 * p, relu=True)
    x = conv2d(x, *params["conv5"], pad=0, relu=True)

    st = conv2d(x, *params["conv_st"], pad=0, relu=False)
    ae = conv2d(x, *params["conv_ae"], pad=0, relu=False)
    st = bilinear_resize(st, feat_size, feat_size)
    ae = bilinear_resize(ae, feat_size, feat_size)

    st = jnp.transpose(st, (0, 3, 1, 2))         # NHWC -> NCHW
    ae = jnp.transpose(ae, (0, 3, 1, 2))
    return st, ae


def _conv_param(key, k, cin, cout):
    kw_key, kb_key = jax.random.split(key)
    fan_in = k * k * cin
    w = jax.random.normal(kw_key, (k, k, cin, cout), jnp.float32) / np.sqrt(fan_in)
    b = 0.01 * jax.random.normal(kb_key, (cout,), jnp.float32)
    return w, b


def prepare_params(params):
    """Pre-cast weights to bf16 once (perf review) -- no per-forward cast."""
    return {k: (w.astype(_COMPUTE_DTYPE), b.astype(jnp.float32))
            for k, (w, b) in params.items()}


if __name__ == "__main__":
    # Small config consistent with the module: channel widths scaled down but
    # kept at 128 (lane-dense GEMM outputs), input spatial 64 so the k=4 valid
    # conv5 still has an 8x8 output, feat_size=16.
    batch, input_size, feat_size = 2, 64, 16
    c1, c2, out_dim = 128, 128, 128

    key = jax.random.PRNGKey(0)
    keys = jax.random.split(key, 8)
    layer_defs = [
        ("conv1", 4, 3, c1),
        ("conv2", 4, c1, c2),
        ("conv3", 1, c2, c2),
        ("conv4", 3, c2, c2),
        ("conv5", 4, c2, out_dim),
        ("conv_st", 1, out_dim, out_dim),
        ("conv_ae", 1, out_dim, out_dim),
    ]
    params = {name: _conv_param(kk, k, cin, cout)
              for (name, k, cin, cout), kk in zip(layer_defs, keys[:7])}
    params = prepare_params(params)

    x = jax.random.normal(keys[7], (batch, 3, input_size, input_size), jnp.float32)

    fwd = jax.jit(functools.partial(
        pdn_m_multi_forward, feat_size=feat_size, padding=False))
    st, ae = jax.block_until_ready(fwd(params, x))

    assert st.shape == (batch, out_dim, feat_size, feat_size), st.shape
    assert ae.shape == (batch, out_dim, feat_size, feat_size), ae.shape
    assert bool(jnp.all(jnp.isfinite(st)))
    assert bool(jnp.all(jnp.isfinite(ae)))
    print("KERNEL_OK")
</pallas_src>

<mosaic_0001>
module attributes {stable_mosaic.version = 11 : i64} {
  func.func @_matmul_bias_kernel(%arg0: i32, %arg1: memref<1024x48xbf16, #tpu.memory_space<vmem>>, %arg2: memref<48x128xbf16, #tpu.memory_space<vmem>>, %arg3: memref<1x128xf32, #tpu.memory_space<vmem>>, %arg4: memref<1024x128xbf16, #tpu.memory_space<vmem>>) attributes {dimension_semantics = [#tpu.dimension_semantics<parallel>], iteration_bounds = array<i64: 8>, scalar_prefetch = 0 : i64, scratch_operands = 0 : i64, tpu.core_type = #tpu.core_type<tc>, window_params = [{transform_indices = @transform_0, window_bounds = array<i64: 1024, 48>}, {pipeline_mode = #tpu.pipeline_mode<synchronous>, transform_indices = @transform_1, window_bounds = array<i64: 48, 128>}, {pipeline_mode = #tpu.pipeline_mode<synchronous>, transform_indices = @transform_2, window_bounds = array<i64: 1, 128>}, {transform_indices = @transform_3, window_bounds = array<i64: 1024, 128>}]} {
    %c0 = arith.constant 0 : index
    %c0_0 = arith.constant 0 : index
    %0 = vector.load %arg1[%c0, %c0_0] : memref<1024x48xbf16, #tpu.memory_space<vmem>>, vector<1024x48xbf16>
    %c0_1 = arith.constant 0 : index
    %c0_2 = arith.constant 0 : index
    %1 = vector.load %arg2[%c0_1, %c0_2] : memref<48x128xbf16, #tpu.memory_space<vmem>>, vector<48x128xbf16>
    %cst = arith.constant dense<0.000000e+00> : vector<1024x128xf32>
    %2 = tpu.matmul %0, %1, %cst {dimension_numbers = #tpu.dot_dimension_numbers<[1], [0], [0], [1], [0, 0, 1, 1], [], []>} : vector<1024x48xbf16>, vector<48x128xbf16>, vector<1024x128xf32> -> vector<1024x128xf32>
    %c0_3 = arith.constant 0 : index
    %c0_4 = arith.constant 0 : index
    %3 = vector.load %arg3[%c0_3, %c0_4] : memref<1x128xf32, #tpu.memory_space<vmem>>, vector<1x128xf32>
    %4 = vector.broadcast %3 : vector<1x128xf32> to vector<1024x128xf32>
    %5 = arith.addf %2, %4 : vector<1024x128xf32>
    %cst_5 = arith.constant 0.000000e+00 : f32
    %6 = vector.broadcast %cst_5 : f32 to vector<1024x128xf32>
    %7 = arith.maximumf %5, %6 : vector<1024x128xf32>
    %8 = arith.truncf %7 : vector<1024x128xf32> to vector<1024x128xbf16>
    %c0_6 = arith.constant 0 : index
    %c0_7 = arith.constant 0 : index
    %9 = vector.load %arg4[%c0_6, %c0_7] : memref<1024x128xbf16, #tpu.memory_space<vmem>>, vector<1024x128xbf16>
    tpu.vector_store %arg4[%c0_6, %c0_7], %8 {strides = array<i32>} : memref<1024x128xbf16, #tpu.memory_space<vmem>>, vector<1024x128xbf16>,
    return
  }
  func.func @transform_0(%arg0: i32) -> (i32, i32) {
    %c0_i32 = arith.constant 0 : i32
    %c0_i32_0 = arith.constant 0 : i32
    return %arg0, %c0_i32 : i32, i32
  }
  func.func @transform_1(%arg0: i32) -> (i32, i32) {
    %c0_i32 = arith.constant 0 : i32
    %c0_i32_0 = arith.constant 0 : i32
    %c0_i32_1 = arith.constant 0 : i32
    return %c0_i32, %c0_i32_0 : i32, i32
  }
  func.func @transform_2(%arg0: i32) -> (i32, i32) {
    %c0_i32 = arith.constant 0 : i32
    %c0_i32_0 = arith.constant 0 : i32
    %c0_i32_1 = arith.constant 0 : i32
    return %c0_i32, %c0_i32_0 : i32, i32
  }
  func.func @transform_3(%arg0: i32) -> (i32, i32) {
    %c0_i32 = arith.constant 0 : i32
    %c0_i32_0 = arith.constant 0 : i32
    return %arg0, %c0_i32 : i32, i32
  }
}

module attributes {stable_mosaic.version = 11 : i64} {
  func.func @_fused_conv_kernel(%arg0: i32, %arg1: i32, %arg2: memref<1x944x128xf32, #tpu.memory_space<vmem>>, %arg3: memref<16x128x128xbf16, #tpu.memory_space<vmem>>, %arg4: memref<1x128xf32, #tpu.memory_space<vmem>>, %arg5: memref<1x208x128xbf16, #tpu.memory_space<vmem>>) attributes {dimension_semantics = [#tpu.dimension_semantics<parallel>, #tpu.dimension_semantics<parallel>], iteration_bounds = array<i64: 2, 4>, scalar_prefetch = 0 : i64, scratch_operands = 0 : i64, tpu.core_type = #tpu.core_type<tc>, window_params = [{transform_indices = @transform_0, window_bounds = array<i64: 1, 944, 128>}, {pipeline_mode = #tpu.pipeline_mode<synchronous>, transform_indices = @transform_1, window_bounds = array<i64: 16, 128, 128>}, {pipeline_mode = #tpu.pipeline_mode<synchronous>, transform_indices = @transform_2, window_bounds = array<i64: 1, 128>}, {transform_indices = @transform_3, window_bounds = array<i64: 1, 208, 128>}]} {
    %c208_i32 = arith.constant 208 : i32
    %0 = arith.muli %arg1, %c208_i32 : i32
    %1 = tpu.assume_multiple %0, 8 : i32
    %cst = arith.constant 0.000000e+00 : f32
    %2 = vector.broadcast %cst : f32 to vector<208x128xf32>
    %c0_i32 = arith.constant 0 : i32
    %3 = arith.addi %1, %c0_i32 : i32
    %4 = tpu.assume_multiple %3, 8 : i32
    %c0 = arith.constant 0 : index
    %5 = arith.index_cast %4 : i32 to index
    %c0_0 = arith.constant 0 : index
    %6 = vector.load %arg2[%c0, %5, %c0_0] : memref<1x944x128xf32, #tpu.memory_space<vmem>>, vector<1x216x128xf32>
    %7 = vector.shape_cast %6 : vector<1x216x128xf32> to vector<216x128xf32>
    %8 = vector.extract_strided_slice %7 {offsets = [0, 0], sizes = [208, 128], strides = [1, 1]} : vector<216x128xf32> to vector<208x128xf32>
    %9 = arith.truncf %8 : vector<208x128xf32> to vector<208x128xbf16>
    %c0_1 = arith.constant 0 : index
    %c0_2 = arith.constant 0 : index
    %c0_3 = arith.constant 0 : index
    %10 = vector.load %arg3[%c0_1, %c0_2, %c0_3] : memref<16x128x128xbf16, #tpu.memory_space<vmem>>, vector<1x128x128xbf16>
    %11 = vector.shape_cast %10 : vector<1x128x128xbf16> to vector<128x128xbf16>
    %cst_4 = arith.constant dense<0.000000e+00> : vector<208x128xf32>
    %12 = tpu.matmul %9, %11, %cst_4 {dimension_numbers = #tpu.dot_dimension_numbers<[1], [0], [0], [1], [0, 0, 1, 1], [], []>} : vector<208x128xbf16>, vector<128x128xbf16>, vector<208x128xf32> -> vector<208x128xf32>
    %13 = arith.addf %2, %12 : vector<208x128xf32>
    %c0_i32_5 = arith.constant 0 : i32
    %14 = arith.addi %1, %c0_i32_5 : i32
    %15 = tpu.assume_multiple %14, 8 : i32
    %c0_6 = arith.constant 0 : index
    %16 = arith.index_cast %15 : i32 to index
    %c0_7 = arith.constant 0 : index
    %17 = vector.load %arg2[%c0_6, %16, %c0_7] : memref<1x944x128xf32, #tpu.memory_space<vmem>>, vector<1x216x128xf32>
    %18 = vector.shape_cast %17 : vector<1x216x128xf32> to vector<216x128xf32>
    %19 = vector.extract_strided_slice %18 {offsets = [1, 0], sizes = [208, 128], strides = [1, 1]} : vector<216x128xf32> to vector<208x128xf32>
    %20 = arith.truncf %19 : vector<208x128xf32> to vector<208x128xbf16>
    %c1 = arith.constant 1 : index
    %c0_8 = arith.constant 0 : index
    %c0_9 = arith.constant 0 : index
    %21 = vector.load %arg3[%c1, %c0_8, %c0_9] : memref<16x128x128xbf16, #tpu.memory_space<vmem>>, vector<1x128x128xbf16>
    %22 = vector.shape_cast %21 : vector<1x128x128xbf16> to vector<128x128xbf16>
    %cst_10 = arith.constant dense<0.000000e+00> : vector<208x128xf32>
    %23 = tpu.matmul %20, %22, %cst_10 {dimension_numbers = #tpu.dot_dimension_numbers<[1], [0], [0], [1], [0, 0, 1, 1], [], []>} : vector<208x128xbf16>, vector<128x128xbf16>, vector<208x128xf32> -> vector<208x128xf32>
    %24 = arith.addf %13, %23 : vector<208x128xf32>
    %c0_i32_11 = arith.constant 0 : i32
    %25 = arith.addi %1, %c0_i32_11 : i32
    %26 = tpu.assume_multiple %25, 8 : i32
    %c0_12 = arith.constant 0 : index
    %27 = arith.index_cast %26 : i32 to index
    %c0_13 = arith.constant 0 : index
    %28 = vector.load %arg2[%c0_12, %27, %c0_13] : memref<1x944x128xf32, #tpu.memory_space<vmem>>, vector<1x216x128xf32>
    %29 = vector.shape_cast %28 : vector<1x216x128xf32> to vector<216x128xf32>
    %30 = vector.extract_strided_slice %29 {offsets = [2, 0], sizes = [208, 128], strides = [1, 1]} : vector<216x128xf32> to vector<208x128xf32>
    %31 = arith.truncf %30 : vector<208x128xf32> to vector<208x128xbf16>
    %c2 = arith.constant 2 : index
    %c0_14 = arith.constant 0 : index
    %c0_15 = arith.constant 0 : index
    %32 = vector.load %arg3[%c2, %c0_14, %c0_15] : memref<16x128x128xbf16, #tpu.memory_space<vmem>>, vector<1x128x128xbf16>
    %33 = vector.shape_cast %32 : vector<1x128x128xbf16> to vector<128x128xbf16>
    %cst_16 = arith.constant dense<0.000000e+00> : vector<208x128xf32>
    %34 = tpu.matmul %31, %33, %cst_16 {dimension_numbers = #tpu.dot_dimension_numbers<[1], [0], [0], [1], [0, 0, 1, 1], [], []>} : vector<208x128xbf16>, vector<128x128xbf16>, vector<208x128xf32> -> vector<208x128xf32>
    %35 = arith.addf %24, %34 : vector<208x128xf32>
    %c0_i32_17 = arith.constant 0 : i32
    %36 = arith.addi %1, %c0_i32_17 : i32
    %37 = tpu.assume_multiple %36, 8 : i32
    %c0_18 = arith.constant 0 : index
    %38 = arith.index_cast %37 : i32 to index
    %c0_19 = arith.constant 0 : index
    %39 = vector.load %arg2[%c0_18, %38, %c0_19] : memref<1x944x128xf32, #tpu.memory_space<vmem>>, vector<1x216x128xf32>
    %40 = vector.shape_cast %39 : vector<1x216x128xf32> to vector<216x128xf32>
    %41 = vector.extract_strided_slice %40 {offsets = [3, 0], sizes = [208, 128], strides = [1, 1]} : vector<216x128xf32> to vector<208x128xf32>
    %42 = arith.truncf %41 : vector<208x128xf32> to vector<208x128xbf16>
    %c3 = arith.constant 3 : index
    %c0_20 = arith.constant 0 : index
    %c0_21 = arith.constant 0 : index
    %43 = vector.load %arg3[%c3, %c0_20, %c0_21] : memref<16x128x128xbf16, #tpu.memory_space<vmem>>, vector<1x128x128xbf16>
    %44 = vector.shape_cast %43 : vector<1x128x128xbf16> to vector<128x128xbf16>
    %cst_22 = arith.constant dense<0.000000e+00> : vector<208x128xf32>
    %45 = tpu.matmul %42, %44, %cst_22 {dimension_numbers = #tpu.dot_dimension_numbers<[1], [0], [0], [1], [0, 0, 1, 1], [], []>} : vector<208x128xbf16>, vector<128x128xbf16>, vector<208x128xf32> -> vector<208x128xf32>
    %46 = arith.addf %35, %45 : vector<208x128xf32>
    %c24_i32 = arith.constant 24 : i32
    %47 = arith.addi %1, %c24_i32 : i32
    %48 = tpu.assume_multiple %47, 8 : i32
    %c0_23 = arith.constant 0 : index
    %49 = arith.index_cast %48 : i32 to index
    %c0_24 = arith.constant 0 : index
    %50 = vector.load %arg2[%c0_23, %49, %c0_24] : memref<1x944x128xf32, #tpu.memory_space<vmem>>, vector<1x216x128xf32>
    %51 = vector.shape_cast %50 : vector<1x216x128xf32> to vector<216x128xf32>
    %52 = vector.extract_strided_slice %51 {offsets = [6, 0], sizes = [208, 128], strides = [1, 1]} : vector<216x128xf32> to vector<208x128xf32>
    %53 = arith.truncf %52 : vector<208x128xf32> to vector<208x128xbf16>
    %c4 = arith.constant 4 : index
    %c0_25 = arith.constant 0 : index
    %c0_26 = arith.constant 0 : index
    %54 = vector.load %arg3[%c4, %c0_25, %c0_26] : memref<16x128x128xbf16, #tpu.memory_space<vmem>>, vector<1x128x128xbf16>
    %55 = vector.shape_cast %54 : vector<1x128x128xbf16> to vector<128x128xbf16>
    %cst_27 = arith.constant dense<0.000000e+00> : vector<208x128xf32>
    %56 = tpu.matmul %53, %55, %cst_27 {dimension_numbers = #tpu.dot_dimension_numbers<[1], [0], [0], [1], [0, 0, 1, 1], [], []>} : vector<208x128xbf16>, vector<128x128xbf16>, vector<208x128xf32> -> vector<208x128xf32>
    %57 = arith.addf %46, %56 : vector<208x128xf32>
    %c24_i32_28 = arith.constant 24 : i32
    %58 = arith.addi %1, %c24_i32_28 : i32
    %59 = tpu.assume_multiple %58, 8 : i32
    %c0_29 = arith.constant 0 : index
    %60 = arith.index_cast %59 : i32 to index
    %c0_30 = arith.constant 0 : index
    %61 = vector.load %arg2[%c0_29, %60, %c0_30] : memref<1x944x128xf32, #tpu.memory_space<vmem>>, vector<1x216x128xf32>
    %62 = vector.shape_cast %61 : vector<1x216x128xf32> to vector<216x128xf32>
    %63 = vector.extract_strided_slice %62 {offsets = [7, 0], sizes = [208, 128], strides = [1, 1]} : vector<216x128xf32> to vector<208x128xf32>
    %64 = arith.truncf %63 : vector<208x128xf32> to vector<208x128xbf16>
    %c5 = arith.constant 5 : index
    %c0_31 = arith.constant 0 : index
    %c0_32 = arith.constant 0 : index
    %65 = vector.load %arg3[%c5, %c0_31, %c0_32] : memref<16x128x128xbf16, #tpu.memory_space<vmem>>, vector<1x128x128xbf16>
    %66 = vector.shape_cast %65 : vector<1x128x128xbf16> to vector<128x128xbf16>
    %cst_33 = arith.constant dense<0.000000e+00> : vector<208x128xf32>
    %67 = tpu.matmul %64, %66, %cst_33 {dimension_numbers = #tpu.dot_dimension_numbers<[1], [0], [0], [1], [0, 0, 1, 1], [], []>} : vector<208x128xbf16>, vector<128x128xbf16>, vector<208x128xf32> -> vector<208x128xf32>
    %68 = arith.addf %57, %67 : vector<208x128xf32>
    %c32_i32 = arith.constant 32 : i32
    %69 = arith.addi %1, %c32_i32 : i32
    %70 = tpu.assume_multiple %69, 8 : i32
    %c0_34 = arith.constant 0 : index
    %71 = arith.index_cast %70 : i32 to index
    %c0_35 = arith.constant 0 : index
    %72 = vector.load %arg2[%c0_34, %71, %c0_35] : memref<1x944x128xf32, #tpu.memory_space<vmem>>, vector<1x216x128xf32>
    %73 = vector.shape_cast %72 : vector<1x216x128xf32> to vector<216x128xf32>
    %74 = vector.extract_strided_slice %73 {offsets = [0, 0], sizes = [208, 128], strides = [1, 1]} : vector<216x128xf32> to vector<208x128xf32>
    %75 = arith.truncf %74 : vector<208x128xf32> to vector<208x128xbf16>
    %c6 = arith.constant 6 : index
    %c0_36 = arith.constant 0 : index
    %c0_37 = arith.constant 0 : index
    %76 = vector.load %arg3[%c6, %c0_36, %c0_37] : memref<16x128x128xbf16, #tpu.memory_space<vmem>>, vector<1x128x128xbf16>
    %77 = vector.shape_cast %76 : vector<1x128x128xbf16> to vector<128x128xbf16>
    %cst_38 = arith.constant dense<0.000000e+00> : vector<208x128xf32>
    %78 = tpu.matmul %75, %77, %cst_38 {dimension_numbers = #tpu.dot_dimension_numbers<[1], [0], [0], [1], [0, 0, 1, 1], [], []>} : vector<208x128xbf16>, vector<128x128xbf16>, vector<208x128xf32> -> vector<208x128xf32>
    %79 = arith.addf %68, %78 : vector<208x128xf32>
    %c32_i32_39 = arith.constant 32 : i32
    %80 = arith.addi %1, %c32_i32_39 : i32
    %81 = tpu.assume_multiple %80, 8 : i32
    %c0_40 = arith.constant 0 : index
    %82 = arith.index_cast %81 : i32 to index
    %c0_41 = arith.constant 0 : index
    %83 = vector.load %arg2[%c0_40, %82, %c0_41] : memref<1x944x128xf32, #tpu.memory_space<vmem>>, vector<1x216x128xf32>
    %84 = vector.shape_cast %83 : vector<1x216x128xf32> to vector<216x128xf32>
    %85 = vector.extract_strided_slice %84 {offsets = [1, 0], sizes = [208, 128], strides = [1, 1]} : vector<216x128xf32> to vector<208x128xf32>
    %86 = arith.truncf %85 : vector<208x128xf32> to vector<208x128xbf16>
    %c7 = arith.constant 7 : index
    %c0_42 = arith.constant 0 : index
    %c0_43 = arith.constant 0 : index
    %87 = vector.load %arg3[%c7, %c0_42, %c0_43] : memref<16x128x128xbf16, #tpu.memory_space<vmem>>, vector<1x128x128xbf16>
    %88 = vector.shape_cast %87 : vector<1x128x128xbf16> to vector<128x128xbf16>
    %cst_44 = arith.constant dense<0.000000e+00> : vector<208x128xf32>
    %89 = tpu.matmul %86, %88, %cst_44 {dimension_numbers = #tpu.dot_dimension_numbers<[1], [0], [0], [1], [0, 0, 1, 1], [], []>} : vector<208x128xbf16>, vector<128x128xbf16>, vector<208x128xf32> -> vector<208x128xf32>
    %90 = arith.addf %79, %89 : vector<208x128xf32>
    %c56_i32 = arith.constant 56 : i32
    %91 = arith.addi %1, %c56_i32 : i32
    %92 = tpu.assume_multiple %91, 8 : i32
    %c0_45 = arith.constant 0 : index
    %93 = arith.index_cast %92 : i32 to index
    %c0_46 = arith.constant 0 : index
    %94 = vector.load %arg2[%c0_45, %93, %c0_46] : memref<1x944x128xf32, #tpu.memory_space<vmem>>, vector<1x216x128xf32>
    %95 = vector.shape_cast %94 : vector<1x216x128xf32> to vector<216x128xf32>
    %96 = vector.extract_strided_slice %95 {offsets = [4, 0], sizes = [208, 128], strides = [1, 1]} : vector<216x128xf32> to vector<208x128xf32>
    %97 = arith.truncf %96 : vector<208x128xf32> to vector<208x128xbf16>
    %c8 = arith.constant 8 : index
    %c0_47 = arith.constant 0 : index
    %c0_48 = arith.constant 0 : index
    %98 = vector.load %arg3[%c8, %c0_47, %c0_48] : memref<16x128x128xbf16, #tpu.memory_space<vmem>>, vector<1x128x128xbf16>
    %99 = vector.shape_cast %98 : vector<1x128x128xbf16> to vector<128x128xbf16>
    %cst_49 = arith.constant dense<0.000000e+00> : vector<208x128xf32>
    %100 = tpu.matmul %97, %99, %cst_49 {dimension_numbers = #tpu.dot_dimension_numbers<[1], [0], [0], [1], [0, 0, 1, 1], [], []>} : vector<208x128xbf16>, vector<128x128xbf16>, vector<208x128xf32> -> vector<208x128xf32>
    %101 = arith.addf %90, %100 : vector<208x128xf32>
    %c56_i32_50 = arith.constant 56 : i32
    %102 = arith.addi %1, %c56_i32_50 : i32
    %103 = tpu.assume_multiple %102, 8 : i32
    %c0_51 = arith.constant 0 : index
    %104 = arith.index_cast %103 : i32 to index
    %c0_52 = arith.constant 0 : index
    %105 = vector.load %arg2[%c0_51, %104, %c0_52] : memref<1x944x128xf32, #tpu.memory_space<vmem>>, vector<1x216x128xf32>
    %106 = vector.shape_cast %105 : vector<1x216x128xf32> to vector<216x128xf32>
    %107 = vector.extract_strided_slice %106 {offsets = [5, 0], sizes = [208, 128], strides = [1, 1]} : vector<216x128xf32> to vector<208x128xf32>
    %108 = arith.truncf %107 : vector<208x128xf32> to vector<208x128xbf16>
    %c9 = arith.constant 9 : index
    %c0_53 = arith.constant 0 : index
    %c0_54 = arith.constant 0 : index
    %109 = vector.load %arg3[%c9, %c0_53, %c0_54] : memref<16x128x128xbf16, #tpu.memory_space<vmem>>, vector<1x128x128xbf16>
    %110 = vector.shape_cast %109 : vector<1x128x128xbf16> to vector<128x128xbf16>
    %cst_55 = arith.constant dense<0.000000e+00> : vector<208x128xf32>
    %111 = tpu.matmul %108, %110, %cst_55 {dimension_numbers = #tpu.dot_dimension_numbers<[1], [0], [0], [1], [0, 0, 1, 1], [], []>} : vector<208x128xbf16>, vector<128x128xbf16>, vector<208x128xf32> -> vector<208x128xf32>
    %112 = arith.addf %101, %111 : vector<208x128xf32>
    %c56_i32_56 = arith.constant 56 : i32
    %113 = arith.addi %1, %c56_i32_56 : i32
    %114 = tpu.assume_multiple %113, 8 : i32
    %c0_57 = arith.constant 0 : index
    %115 = arith.index_cast %114 : i32 to index
    %c0_58 = arith.constant 0 : index
    %116 = vector.load %arg2[%c0_57, %115, %c0_58] : memref<1x944x128xf32, #tpu.memory_space<vmem>>, vector<1x216x128xf32>
    %117 = vector.shape_cast %116 : vector<1x216x128xf32> to vector<216x128xf32>
    %118 = vector.extract_strided_slice %117 {offsets = [6, 0], sizes = [208, 128], strides = [1, 1]} : vector<216x128xf32> to vector<208x128xf32>
    %119 = arith.truncf %118 : vector<208x128xf32> to vector<208x128xbf16>
    %c10 = arith.constant 10 : index
    %c0_59 = arith.constant 0 : index
    %c0_60 = arith.constant 0 : index
    %120 = vector.load %arg3[%c10, %c0_59, %c0_60] : memref<16x128x128xbf16, #tpu.memory_space<vmem>>, vector<1x128x128xbf16>
    %121 = vector.shape_cast %120 : vector<1x128x128xbf16> to vector<128x128xbf16>
    %cst_61 = arith.constant dense<0.000000e+00> : vector<208x128xf32>
    %122 = tpu.matmul %119, %121, %cst_61 {dimension_numbers = #tpu.dot_dimension_numbers<[1], [0], [0], [1], [0, 0, 1, 1], [], []>} : vector<208x128xbf16>, vector<128x128xbf16>, vector<208x128xf32> -> vector<208x128xf32>
    %123 = arith.addf %112, %122 : vector<208x128xf32>
    %c56_i32_62 = arith.constant 56 : i32
    %124 = arith.addi %1, %c56_i32_62 : i32
    %125 = tpu.assume_multiple %124, 8 : i32
    %c0_63 = arith.constant 0 : index
    %126 = arith.index_cast %125 : i32 to index
    %c0_64 = arith.constant 0 : index
    %127 = vector.load %arg2[%c0_63, %126, %c0_64] : memref<1x944x128xf32, #tpu.memory_space<vmem>>, vector<1x216x128xf32>
    %128 = vector.shape_cast %127 : vector<1x216x128xf32> to vector<216x128xf32>
    %129 = vector.extract_strided_slice %128 {offsets = [7, 0], sizes = [208, 128], strides = [1, 1]} : vector<216x128xf32> to vector<208x128xf32>
    %130 = arith.truncf %129 : vector<208x128xf32> to vector<208x128xbf16>
    %c11 = arith.constant 11 : index
    %c0_65 = arith.constant 0 : index
    %c0_66 = arith.constant 0 : index
    %131 = vector.load %arg3[%c11, %c0_65, %c0_66] : memref<16x128x128xbf16, #tpu.memory_space<vmem>>, vector<1x128x128xbf16>
    %132 = vector.shape_cast %131 : vector<1x128x128xbf16> to vector<128x128xbf16>
    %cst_67 = arith.constant dense<0.000000e+00> : vector<208x128xf32>
    %133 = tpu.matmul %130, %132, %cst_67 {dimension_numbers = #tpu.dot_dimension_numbers<[1], [0], [0], [1], [0, 0, 1, 1], [], []>} : vector<208x128xbf16>, vector<128x128xbf16>, vector<208x128xf32> -> vector<208x128xf32>
    %134 = arith.addf %123, %133 : vector<208x128xf32>
    %c88_i32 = arith.constant 88 : i32
    %135 = arith.addi %1, %c88_i32 : i32
    %136 = tpu.assume_multiple %135, 8 : i32
    %c0_68 = arith.constant 0 : index
    %137 = arith.index_cast %136 : i32 to index
    %c0_69 = arith.constant 0 : index
    %138 = vector.load %arg2[%c0_68, %137, %c0_69] : memref<1x944x128xf32, #tpu.memory_space<vmem>>, vector<1x216x128xf32>
    %139 = vector.shape_cast %138 : vector<1x216x128xf32> to vector<216x128xf32>
    %140 = vector.extract_strided_slice %139 {offsets = [2, 0], sizes = [208, 128], strides = [1, 1]} : vector<216x128xf32> to vector<208x128xf32>
    %141 = arith.truncf %140 : vector<208x128xf32> to vector<208x128xbf16>
    %c12 = arith.constant 12 : index
    %c0_70 = arith.constant 0 : index
    %c0_71 = arith.constant 0 : index
    %142 = vector.load %arg3[%c12, %c0_70, %c0_71] : memref<16x128x128xbf16, #tpu.memory_space<vmem>>, vector<1x128x128xbf16>
    %143 = vector.shape_cast %142 : vector<1x128x128xbf16> to vector<128x128xbf16>
    %cst_72 = arith.constant dense<0.000000e+00> : vector<208x128xf32>
    %144 = tpu.matmul %141, %143, %cst_72 {dimension_numbers = #tpu.dot_dimension_numbers<[1], [0], [0], [1], [0, 0, 1, 1], [], []>} : vector<208x128xbf16>, vector<128x128xbf16>, vector<208x128xf32> -> vector<208x128xf32>
    %145 = arith.addf %134, %144 : vector<208x128xf32>
    %c88_i32_73 = arith.constant 88 : i32
    %146 = arith.addi %1, %c88_i32_73 : i32
    %147 = tpu.assume_multiple %146, 8 : i32
    %c0_74 = arith.constant 0 : index
    %148 = arith.index_cast %147 : i32 to index
    %c0_75 = arith.constant 0 : index
    %149 = vector.load %arg2[%c0_74, %148, %c0_75] : memref<1x944x128xf32, #tpu.memory_space<vmem>>, vector<1x216x128xf32>
    %150 = vector.shape_cast %149 : vector<1x216x128xf32> to vector<216x128xf32>
    %151 = vector.extract_strided_slice %150 {offsets = [3, 0], sizes = [208, 128], strides = [1, 1]} : vector<216x128xf32> to vector<208x128xf32>
    %152 = arith.truncf %151 : vector<208x128xf32> to vector<208x128xbf16>
    %c13 = arith.constant 13 : index
    %c0_76 = arith.constant 0 : index
    %c0_77 = arith.constant 0 : index
    %153 = vector.load %arg3[%c13, %c0_76, %c0_77] : memref<16x128x128xbf16, #tpu.memory_space<vmem>>, vector<1x128x128xbf16>
    %154 = vector.shape_cast %153 : vector<1x128x128xbf16> to vector<128x128xbf16>
    %cst_78 = arith.constant dense<0.000000e+00> : vector<208x128xf32>
    %155 = tpu.matmul %152, %154, %cst_78 {dimension_numbers = #tpu.dot_dimension_numbers<[1], [0], [0], [1], [0, 0, 1, 1], [], []>} : vector<208x128xbf16>, vector<128x128xbf16>, vector<208x128xf32> -> vector<208x128xf32>
    %156 = arith.addf %145, %155 : vector<208x128xf32>
    %c88_i32_79 = arith.constant 88 : i32
    %157 = arith.addi %1, %c88_i32_79 : i32
    %158 = tpu.assume_multiple %157, 8 : i32
    %c0_80 = arith.constant 0 : index
    %159 = arith.index_cast %158 : i32 to index
    %c0_81 = arith.constant 0 : index
    %160 = vector.load %arg2[%c0_80, %159, %c0_81] : memref<1x944x128xf32, #tpu.memory_space<vmem>>, vector<1x216x128xf32>
    %161 = vector.shape_cast %160 : vector<1x216x128xf32> to vector<216x128xf32>
    %162 = vector.extract_strided_slice %161 {offsets = [4, 0], sizes = [208, 128], strides = [1, 1]} : vector<216x128xf32> to vector<208x128xf32>
    %163 = arith.truncf %162 : vector<208x128xf32> to vector<208x128xbf16>
    %c14 = arith.constant 14 : index
    %c0_82 = arith.constant 0 : index
    %c0_83 = arith.constant 0 : index
    %164 = vector.load %arg3[%c14, %c0_82, %c0_83] : memref<16x128x128xbf16, #tpu.memory_space<vmem>>, vector<1x128x128xbf16>
    %165 = vector.shape_cast %164 : vector<1x128x128xbf16> to vector<128x128xbf16>
    %cst_84 = arith.constant dense<0.000000e+00> : vector<208x128xf32>
    %166 = tpu.matmul %163, %165, %cst_84 {dimension_numbers = #tpu.dot_dimension_numbers<[1], [0], [0], [1], [0, 0, 1, 1], [], []>} : vector<208x128xbf16>, vector<128x128xbf16>, vector<208x128xf32> -> vector<208x128xf32>
    %167 = arith.addf %156, %166 : vector<208x128xf32>
    %c88_i32_85 = arith.constant 88 : i32
    %168 = arith.addi %1, %c88_i32_85 : i32
    %169 = tpu.assume_multiple %168, 8 : i32
    %c0_86 = arith.constant 0 : index
    %170 = arith.index_cast %169 : i32 to index
    %c0_87 = arith.constant 0 : index
    %171 = vector.load %arg2[%c0_86, %170, %c0_87] : memref<1x944x128xf32, #tpu.memory_space<vmem>>, vector<1x216x128xf32>
    %172 = vector.shape_cast %171 : vector<1x216x128xf32> to vector<216x128xf32>
    %173 = vector.extract_strided_slice %172 {offsets = [5, 0], sizes = [208, 128], strides = [1, 1]} : vector<216x128xf32> to vector<208x128xf32>
    %174 = arith.truncf %173 : vector<208x128xf32> to vector<208x128xbf16>
    %c15 = arith.constant 15 : index
    %c0_88 = arith.constant 0 : index
    %c0_89 = arith.constant 0 : index
    %175 = vector.load %arg3[%c15, %c0_88, %c0_89] : memref<16x128x128xbf16, #tpu.memory_space<vmem>>, vector<1x128x128xbf16>
    %176 = vector.shape_cast %175 : vector<1x128x128xbf16> to vector<128x128xbf16>
    %cst_90 = arith.constant dense<0.000000e+00> : vector<208x128xf32>
    %177 = tpu.matmul %174, %176, %cst_90 {dimension_numbers = #tpu.dot_dimension_numbers<[1], [0], [0], [1], [0, 0, 1, 1], [], []>} : vector<208x128xbf16>, vector<128x128xbf16>, vector<208x128xf32> -> vector<208x128xf32>
    %178 = arith.addf %167, %177 : vector<208x128xf32>
    %c0_91 = arith.constant 0 : index
    %c0_92 = arith.constant 0 : index
    %179 = vector.load %arg4[%c0_91, %c0_92] : memref<1x128xf32, #tpu.memory_space<vmem>>, vector<1x128xf32>
    %180 = vector.broadcast %179 : vector<1x128xf32> to vector<208x128xf32>
    %181 = arith.addf %178, %180 : vector<208x128xf32>
    %cst_93 = arith.constant 0.000000e+00 : f32
    %182 = vector.broadcast %cst_93 : f32 to vector<208x128xf32>
    %183 = arith.maximumf %181, %182 : vector<208x128xf32>
    %184 = arith.truncf %183 : vector<208x128xf32> to vector<208x128xbf16>
    %c0_94 = arith.constant 0 : index
    %c0_95 = arith.constant 0 : index
    %c0_96 = arith.constant 0 : index
    %185 = vector.load %arg5[%c0_94, %c0_95, %c0_96] : memref<1x208x128xbf16, #tpu.memory_space<vmem>>, vector<1x208x128xbf16>
    %186 = vector.shape_cast %185 : vector<1x208x128xbf16> to vector<208x128xbf16>
    %187 = vector.shape_cast %184 : vector<208x128xbf16> to vector<1x208x128xbf16>
    tpu.vector_store %arg5[%c0_94, %c0_95, %c0_96], %187 {strides = array<i32>} : memref<1x208x128xbf16, #tpu.memory_space<vmem>>, vector<1x208x128xbf16>,
    return
  }
  func.func @transform_0(%arg0: i32, %arg1: i32) -> (i32, i32, i32) {
    %c0_i32 = arith.constant 0 : i32
    %c0_i32_0 = arith.constant 0 : i32
    %c0_i32_1 = arith.constant 0 : i32
    return %arg0, %c0_i32, %c0_i32_0 : i32, i32, i32
  }
  func.func @transform_1(%arg0: i32, %arg1: i32) -> (i32, i32, i32) {
    %c0_i32 = arith.constant 0 : i32
    %c0_i32_0 = arith.constant 0 : i32
    %c0_i32_1 = arith.constant 0 : i32
    %c0_i32_2 = arith.constant 0 : i32
    return %c0_i32, %c0_i32_0, %c0_i32_1 : i32, i32, i32
  }
  func.func @transform_2(%arg0: i32, %arg1: i32) -> (i32, i32) {
    %c0_i32 = arith.constant 0 : i32
    %c0_i32_0 = arith.constant 0 : i32
    %c0_i32_1 = arith.constant 0 : i32
    return %c0_i32, %c0_i32_0 : i32, i32
  }
  func.func @transform_3(%arg0: i32, %arg1: i32) -> (i32, i32, i32) {
    %c0_i32 = arith.constant 0 : i32
    %c0_i32_0 = arith.constant 0 : i32
    return %arg0, %arg1, %c0_i32 : i32, i32, i32
  }
}

module attributes {stable_mosaic.version = 11 : i64} {
  func.func @_fused_conv_kernel(%arg0: i32, %arg1: i32, %arg2: memref<1x192x128xf32, #tpu.memory_space<vmem>>, %arg3: memref<9x128x128xbf16, #tpu.memory_space<vmem>>, %arg4: memref<1x128xf32, #tpu.memory_space<vmem>>, %arg5: memref<1x144x128xbf16, #tpu.memory_space<vmem>>) attributes {dimension_semantics = [#tpu.dimension_semantics<parallel>, #tpu.dimension_semantics<parallel>], iteration_bounds = array<i64: 2, 1>, scalar_prefetch = 0 : i64, scratch_operands = 0 : i64, tpu.core_type = #tpu.core_type<tc>, window_params = [{transform_indices = @transform_0, window_bounds = array<i64: 1, 192, 128>}, {pipeline_mode = #tpu.pipeline_mode<synchronous>, transform_indices = @transform_1, window_bounds = array<i64: 9, 128, 128>}, {pipeline_mode = #tpu.pipeline_mode<synchronous>, transform_indices = @transform_2, window_bounds = array<i64: 1, 128>}, {transform_indices = @transform_3, window_bounds = array<i64: 1, 144, 128>}]} {
    %c144_i32 = arith.constant 144 : i32
    %0 = arith.muli %arg1, %c144_i32 : i32
    %1 = tpu.assume_multiple %0, 8 : i32
    %cst = arith.constant 0.000000e+00 : f32
    %2 = vector.broadcast %cst : f32 to vector<144x128xf32>
    %c0_i32 = arith.constant 0 : i32
    %3 = arith.addi %1, %c0_i32 : i32
    %4 = tpu.assume_multiple %3, 8 : i32
    %c0 = arith.constant 0 : index
    %5 = arith.index_cast %4 : i32 to index
    %c0_0 = arith.constant 0 : index
    %6 = vector.load %arg2[%c0, %5, %c0_0] : memref<1x192x128xf32, #tpu.memory_space<vmem>>, vector<1x152x128xf32>
    %7 = vector.shape_cast %6 : vector<1x152x128xf32> to vector<152x128xf32>
    %8 = vector.extract_strided_slice %7 {offsets = [0, 0], sizes = [144, 128], strides = [1, 1]} : vector<152x128xf32> to vector<144x128xf32>
    %9 = arith.truncf %8 : vector<144x128xf32> to vector<144x128xbf16>
    %c0_1 = arith.constant 0 : index
    %c0_2 = arith.constant 0 : index
    %c0_3 = arith.constant 0 : index
    %10 = vector.load %arg3[%c0_1, %c0_2, %c0_3] : memref<9x128x128xbf16, #tpu.memory_space<vmem>>, vector<1x128x128xbf16>
    %11 = vector.shape_cast %10 : vector<1x128x128xbf16> to vector<128x128xbf16>
    %cst_4 = arith.constant dense<0.000000e+00> : vector<144x128xf32>
    %12 = tpu.matmul %9, %11, %cst_4 {dimension_numbers = #tpu.dot_dimension_numbers<[1], [0], [0], [1], [0, 0, 1, 1], [], []>} : vector<144x128xbf16>, vector<128x128xbf16>, vector<144x128xf32> -> vector<144x128xf32>
    %13 = arith.addf %2, %12 : vector<144x128xf32>
    %c0_i32_5 = arith.constant 0 : i32
    %14 = arith.addi %1, %c0_i32_5 : i32
    %15 = tpu.assume_multiple %14, 8 : i32
    %c0_6 = arith.constant 0 : index
    %16 = arith.index_cast %15 : i32 to index
    %c0_7 = arith.constant 0 : index
    %17 = vector.load %arg2[%c0_6, %16, %c0_7] : memref<1x192x128xf32, #tpu.memory_space<vmem>>, vector<1x152x128xf32>
    %18 = vector.shape_cast %17 : vector<1x152x128xf32> to vector<152x128xf32>
    %19 = vector.extract_strided_slice %18 {offsets = [1, 0], sizes = [144, 128], strides = [1, 1]} : vector<152x128xf32> to vector<144x128xf32>
    %20 = arith.truncf %19 : vector<144x128xf32> to vector<144x128xbf16>
    %c1 = arith.constant 1 : index
    %c0_8 = arith.constant 0 : index
    %c0_9 = arith.constant 0 : index
    %21 = vector.load %arg3[%c1, %c0_8, %c0_9] : memref<9x128x128xbf16, #tpu.memory_space<vmem>>, vector<1x128x128xbf16>
    %22 = vector.shape_cast %21 : vector<1x128x128xbf16> to vector<128x128xbf16>
    %cst_10 = arith.constant dense<0.000000e+00> : vector<144x128xf32>
    %23 = tpu.matmul %20, %22, %cst_10 {dimension_numbers = #tpu.dot_dimension_numbers<[1], [0], [0], [1], [0, 0, 1, 1], [], []>} : vector<144x128xbf16>, vector<128x128xbf16>, vector<144x128xf32> -> vector<144x128xf32>
    %24 = arith.addf %13, %23 : vector<144x128xf32>
    %c0_i32_11 = arith.constant 0 : i32
    %25 = arith.addi %1, %c0_i32_11 : i32
    %26 = tpu.assume_multiple %25, 8 : i32
    %c0_12 = arith.constant 0 : index
    %27 = arith.index_cast %26 : i32 to index
    %c0_13 = arith.constant 0 : index
    %28 = vector.load %arg2[%c0_12, %27, %c0_13] : memref<1x192x128xf32, #tpu.memory_space<vmem>>, vector<1x152x128xf32>
    %29 = vector.shape_cast %28 : vector<1x152x128xf32> to vector<152x128xf32>
    %30 = vector.extract_strided_slice %29 {offsets = [2, 0], sizes = [144, 128], strides = [1, 1]} : vector<152x128xf32> to vector<144x128xf32>
    %31 = arith.truncf %30 : vector<144x128xf32> to vector<144x128xbf16>
    %c2 = arith.constant 2 : index
    %c0_14 = arith.constant 0 : index
    %c0_15 = arith.constant 0 : index
    %32 = vector.load %arg3[%c2, %c0_14, %c0_15] : memref<9x128x128xbf16, #tpu.memory_space<vmem>>, vector<1x128x128xbf16>
    %33 = vector.shape_cast %32 : vector<1x128x128xbf16> to vector<128x128xbf16>
    %cst_16 = arith.constant dense<0.000000e+00> : vector<144x128xf32>
    %34 = tpu.matmul %31, %33, %cst_16 {dimension_numbers = #tpu.dot_dimension_numbers<[1], [0], [0], [1], [0, 0, 1, 1], [], []>} : vector<144x128xbf16>, vector<128x128xbf16>, vector<144x128xf32> -> vector<144x128xf32>
    %35 = arith.addf %24, %34 : vector<144x128xf32>
    %c8_i32 = arith.constant 8 : i32
    %36 = arith.addi %1, %c8_i32 : i32
    %37 = tpu.assume_multiple %36, 8 : i32
    %c0_17 = arith.constant 0 : index
    %38 = arith.index_cast %37 : i32 to index
    %c0_18 = arith.constant 0 : index
    %39 = vector.load %arg2[%c0_17, %38, %c0_18] : memref<1x192x128xf32, #tpu.memory_space<vmem>>, vector<1x152x128xf32>
    %40 = vector.shape_cast %39 : vector<1x152x128xf32> to vector<152x128xf32>
    %41 = vector.extract_strided_slice %40 {offsets = [5, 0], sizes = [144, 128], strides = [1, 1]} : vector<152x128xf32> to vector<144x128xf32>
    %42 = arith.truncf %41 : vector<144x128xf32> to vector<144x128xbf16>
    %c3 = arith.constant 3 : index
    %c0_19 = arith.constant 0 : index
    %c0_20 = arith.constant 0 : index
    %43 = vector.load %arg3[%c3, %c0_19, %c0_20] : memref<9x128x128xbf16, #tpu.memory_space<vmem>>, vector<1x128x128xbf16>
    %44 = vector.shape_cast %43 : vector<1x128x128xbf16> to vector<128x128xbf16>
    %cst_21 = arith.constant dense<0.000000e+00> : vector<144x128xf32>
    %45 = tpu.matmul %42, %44, %cst_21 {dimension_numbers = #tpu.dot_dimension_numbers<[1], [0], [0], [1], [0, 0, 1, 1], [], []>} : vector<144x128xbf16>, vector<128x128xbf16>, vector<144x128xf32> -> vector<144x128xf32>
    %46 = arith.addf %35, %45 : vector<144x128xf32>
    %c8_i32_22 = arith.constant 8 : i32
    %47 = arith.addi %1, %c8_i32_22 : i32
    %48 = tpu.assume_multiple %47, 8 : i32
    %c0_23 = arith.constant 0 : index
    %49 = arith.index_cast %48 : i32 to index
    %c0_24 = arith.constant 0 : index
    %50 = vector.load %arg2[%c0_23, %49, %c0_24] : memref<1x192x128xf32, #tpu.memory_space<vmem>>, vector<1x152x128xf32>
    %51 = vector.shape_cast %50 : vector<1x152x128xf32> to vector<152x128xf32>
    %52 = vector.extract_strided_slice %51 {offsets = [6, 0], sizes = [144, 128], strides = [1, 1]} : vector<152x128xf32> to vector<144x128xf32>
    %53 = arith.truncf %52 : vector<144x128xf32> to vector<144x128xbf16>
    %c4 = arith.constant 4 : index
    %c0_25 = arith.constant 0 : index
    %c0_26 = arith.constant 0 : index
    %54 = vector.load %arg3[%c4, %c0_25, %c0_26] : memref<9x128x128xbf16, #tpu.memory_space<vmem>>, vector<1x128x128xbf16>
    %55 = vector.shape_cast %54 : vector<1x128x128xbf16> to vector<128x128xbf16>
    %cst_27 = arith.constant dense<0.000000e+00> : vector<144x128xf32>
    %56 = tpu.matmul %53, %55, %cst_27 {dimension_numbers = #tpu.dot_dimension_numbers<[1], [0], [0], [1], [0, 0, 1, 1], [], []>} : vector<144x128xbf16>, vector<128x128xbf16>, vector<144x128xf32> -> vector<144x128xf32>
    %57 = arith.addf %46, %56 : vector<144x128xf32>
    %c8_i32_28 = arith.constant 8 : i32
    %58 = arith.addi %1, %c8_i32_28 : i32
    %59 = tpu.assume_multiple %58, 8 : i32
    %c0_29 = arith.constant 0 : index
    %60 = arith.index_cast %59 : i32 to index
    %c0_30 = arith.constant 0 : index
    %61 = vector.load %arg2[%c0_29, %60, %c0_30] : memref<1x192x128xf32, #tpu.memory_space<vmem>>, vector<1x152x128xf32>
    %62 = vector.shape_cast %61 : vector<1x152x128xf32> to vector<152x128xf32>
    %63 = vector.extract_strided_slice %62 {offsets = [7, 0], sizes = [144, 128], strides = [1, 1]} : vector<152x128xf32> to vector<144x128xf32>
    %64 = arith.truncf %63 : vector<144x128xf32> to vector<144x128xbf16>
    %c5 = arith.constant 5 : index
    %c0_31 = arith.constant 0 : index
    %c0_32 = arith.constant 0 : index
    %65 = vector.load %arg3[%c5, %c0_31, %c0_32] : memref<9x128x128xbf16, #tpu.memory_space<vmem>>, vector<1x128x128xbf16>
    %66 = vector.shape_cast %65 : vector<1x128x128xbf16> to vector<128x128xbf16>
    %cst_33 = arith.constant dense<0.000000e+00> : vector<144x128xf32>
    %67 = tpu.matmul %64, %66, %cst_33 {dimension_numbers = #tpu.dot_dimension_numbers<[1], [0], [0], [1], [0, 0, 1, 1], [], []>} : vector<144x128xbf16>, vector<128x128xbf16>, vector<144x128xf32> -> vector<144x128xf32>
    %68 = arith.addf %57, %67 : vector<144x128xf32>
    %c24_i32 = arith.constant 24 : i32
    %69 = arith.addi %1, %c24_i32 : i32
    %70 = tpu.assume_multiple %69, 8 : i32
    %c0_34 = arith.constant 0 : index
    %71 = arith.index_cast %70 : i32 to index
    %c0_35 = arith.constant 0 : index
    %72 = vector.load %arg2[%c0_34, %71, %c0_35] : memref<1x192x128xf32, #tpu.memory_space<vmem>>, vector<1x152x128xf32>
    %73 = vector.shape_cast %72 : vector<1x152x128xf32> to vector<152x128xf32>
    %74 = vector.extract_strided_slice %73 {offsets = [2, 0], sizes = [144, 128], strides = [1, 1]} : vector<152x128xf32> to vector<144x128xf32>
    %75 = arith.truncf %74 : vector<144x128xf32> to vector<144x128xbf16>
    %c6 = arith.constant 6 : index
    %c0_36 = arith.constant 0 : index
    %c0_37 = arith.constant 0 : index
    %76 = vector.load %arg3[%c6, %c0_36, %c0_37] : memref<9x128x128xbf16, #tpu.memory_space<vmem>>, vector<1x128x128xbf16>
    %77 = vector.shape_cast %76 : vector<1x128x128xbf16> to vector<128x128xbf16>
    %cst_38 = arith.constant dense<0.000000e+00> : vector<144x128xf32>
    %78 = tpu.matmul %75, %77, %cst_38 {dimension_numbers = #tpu.dot_dimension_numbers<[1], [0], [0], [1], [0, 0, 1, 1], [], []>} : vector<144x128xbf16>, vector<128x128xbf16>, vector<144x128xf32> -> vector<144x128xf32>
    %79 = arith.addf %68, %78 : vector<144x128xf32>
    %c24_i32_39 = arith.constant 24 : i32
    %80 = arith.addi %1, %c24_i32_39 : i32
    %81 = tpu.assume_multiple %80, 8 : i32
    %c0_40 = arith.constant 0 : index
    %82 = arith.index_cast %81 : i32 to index
    %c0_41 = arith.constant 0 : index
    %83 = vector.load %arg2[%c0_40, %82, %c0_41] : memref<1x192x128xf32, #tpu.memory_space<vmem>>, vector<1x152x128xf32>
    %84 = vector.shape_cast %83 : vector<1x152x128xf32> to vector<152x128xf32>
    %85 = vector.extract_strided_slice %84 {offsets = [3, 0], sizes = [144, 128], strides = [1, 1]} : vector<152x128xf32> to vector<144x128xf32>
    %86 = arith.truncf %85 : vector<144x128xf32> to vector<144x128xbf16>
    %c7 = arith.constant 7 : index
    %c0_42 = arith.constant 0 : index
    %c0_43 = arith.constant 0 : index
    %87 = vector.load %arg3[%c7, %c0_42, %c0_43] : memref<9x128x128xbf16, #tpu.memory_space<vmem>>, vector<1x128x128xbf16>
    %88 = vector.shape_cast %87 : vector<1x128x128xbf16> to vector<128x128xbf16>
    %cst_44 = arith.constant dense<0.000000e+00> : vector<144x128xf32>
    %89 = tpu.matmul %86, %88, %cst_44 {dimension_numbers = #tpu.dot_dimension_numbers<[1], [0], [0], [1], [0, 0, 1, 1], [], []>} : vector<144x128xbf16>, vector<128x128xbf16>, vector<144x128xf32> -> vector<144x128xf32>
    %90 = arith.addf %79, %89 : vector<144x128xf32>
    %c24_i32_45 = arith.constant 24 : i32
    %91 = arith.addi %1, %c24_i32_45 : i32
    %92 = tpu.assume_multiple %91, 8 : i32
    %c0_46 = arith.constant 0 : index
    %93 = arith.index_cast %92 : i32 to index
    %c0_47 = arith.constant 0 : index
    %94 = vector.load %arg2[%c0_46, %93, %c0_47] : memref<1x192x128xf32, #tpu.memory_space<vmem>>, vector<1x152x128xf32>
    %95 = vector.shape_cast %94 : vector<1x152x128xf32> to vector<152x128xf32>
    %96 = vector.extract_strided_slice %95 {offsets = [4, 0], sizes = [144, 128], strides = [1, 1]} : vector<152x128xf32> to vector<144x128xf32>
    %97 = arith.truncf %96 : vector<144x128xf32> to vector<144x128xbf16>
    %c8 = arith.constant 8 : index
    %c0_48 = arith.constant 0 : index
    %c0_49 = arith.constant 0 : index
    %98 = vector.load %arg3[%c8, %c0_48, %c0_49] : memref<9x128x128xbf16, #tpu.memory_space<vmem>>, vector<1x128x128xbf16>
    %99 = vector.shape_cast %98 : vector<1x128x128xbf16> to vector<128x128xbf16>
    %cst_50 = arith.constant dense<0.000000e+00> : vector<144x128xf32>
    %100 = tpu.matmul %97, %99, %cst_50 {dimension_numbers = #tpu.dot_dimension_numbers<[1], [0], [0], [1], [0, 0, 1, 1], [], []>} : vector<144x128xbf16>, vector<128x128xbf16>, vector<144x128xf32> -> vector<144x128xf32>
    %101 = arith.addf %90, %100 : vector<144x128xf32>
    %c0_51 = arith.constant 0 : index
    %c0_52 = arith.constant 0 : index
    %102 = vector.load %arg4[%c0_51, %c0_52] : memref<1x128xf32, #tpu.memory_space<vmem>>, vector<1x128xf32>
    %103 = vector.broadcast %102 : vector<1x128xf32> to vector<144x128xf32>
    %104 = arith.addf %101, %103 : vector<144x128xf32>
    %cst_53 = arith.constant 0.000000e+00 : f32
    %105 = vector.broadcast %cst_53 : f32 to vector<144x128xf32>
    %106 = arith.maximumf %104, %105 : vector<144x128xf32>
    %107 = arith.truncf %106 : vector<144x128xf32> to vector<144x128xbf16>
    %c0_54 = arith.constant 0 : index
    %c0_55 = arith.constant 0 : index
    %c0_56 = arith.constant 0 : index
    %108 = vector.load %arg5[%c0_54, %c0_55, %c0_56] : memref<1x144x128xbf16, #tpu.memory_space<vmem>>, vector<1x144x128xbf16>
    %109 = vector.shape_cast %108 : vector<1x144x128xbf16> to vector<144x128xbf16>
    %110 = vector.shape_cast %107 : vector<144x128xbf16> to vector<1x144x128xbf16>
    tpu.vector_store %arg5[%c0_54, %c0_55, %c0_56], %110 {strides = array<i32>} : memref<1x144x128xbf16, #tpu.memory_space<vmem>>, vector<1x144x128xbf16>,
    return
  }
  func.func @transform_0(%arg0: i32, %arg1: i32) -> (i32, i32, i32) {
    %c0_i32 = arith.constant 0 : i32
    %c0_i32_0 = arith.constant 0 : i32
    %c0_i32_1 = arith.constant 0 : i32
    return %arg0, %c0_i32, %c0_i32_0 : i32, i32, i32
  }
  func.func @transform_1(%arg0: i32, %arg1: i32) -> (i32, i32, i32) {
    %c0_i32 = arith.constant 0 : i32
    %c0_i32_0 = arith.constant 0 : i32
    %c0_i32_1 = arith.constant 0 : i32
    %c0_i32_2 = arith.constant 0 : i32
    return %c0_i32, %c0_i32_0, %c0_i32_1 : i32, i32, i32
  }
  func.func @transform_2(%arg0: i32, %arg1: i32) -> (i32, i32) {
    %c0_i32 = arith.constant 0 : i32
    %c0_i32_0 = arith.constant 0 : i32
    %c0_i32_1 = arith.constant 0 : i32
    return %c0_i32, %c0_i32_0 : i32, i32
  }
  func.func @transform_3(%arg0: i32, %arg1: i32) -> (i32, i32, i32) {
    %c0_i32 = arith.constant 0 : i32
    %c0_i32_0 = arith.constant 0 : i32
    return %arg0, %arg1, %c0_i32 : i32, i32, i32
  }
}

module attributes {stable_mosaic.version = 11 : i64} {
  func.func @_matmul_bias_kernel(%arg0: i32, %arg1: memref<344x128xbf16, #tpu.memory_space<vmem>>, %arg2: memref<128x128xbf16, #tpu.memory_space<vmem>>, %arg3: memref<1x128xf32, #tpu.memory_space<vmem>>, %arg4: memref<344x128xbf16, #tpu.memory_space<vmem>>) attributes {dimension_semantics = [#tpu.dimension_semantics<parallel>], iteration_bounds = array<i64: 1>, scalar_prefetch = 0 : i64, scratch_operands = 0 : i64, tpu.core_type = #tpu.core_type<tc>, window_params = [{transform_indices = @transform_0, window_bounds = array<i64: 344, 128>}, {pipeline_mode = #tpu.pipeline_mode<synchronous>, transform_indices = @transform_1, window_bounds = array<i64: 128, 128>}, {pipeline_mode = #tpu.pipeline_mode<synchronous>, transform_indices = @transform_2, window_bounds = array<i64: 1, 128>}, {transform_indices = @transform_3, window_bounds = array<i64: 344, 128>}]} {
    %c0 = arith.constant 0 : index
    %c0_0 = arith.constant 0 : index
    %0 = vector.load %arg1[%c0, %c0_0] : memref<344x128xbf16, #tpu.memory_space<vmem>>, vector<344x128xbf16>
    %c0_1 = arith.constant 0 : index
    %c0_2 = arith.constant 0 : index
    %1 = vector.load %arg2[%c0_1, %c0_2] : memref<128x128xbf16, #tpu.memory_space<vmem>>, vector<128x128xbf16>
    %cst = arith.constant dense<0.000000e+00> : vector<344x128xf32>
    %2 = tpu.matmul %0, %1, %cst {dimension_numbers = #tpu.dot_dimension_numbers<[1], [0], [0], [1], [0, 0, 1, 1], [], []>} : vector<344x128xbf16>, vector<128x128xbf16>, vector<344x128xf32> -> vector<344x128xf32>
    %c0_3 = arith.constant 0 : index
    %c0_4 = arith.constant 0 : index
    %3 = vector.load %arg3[%c0_3, %c0_4] : memref<1x128xf32, #tpu.memory_space<vmem>>, vector<1x128xf32>
    %4 = vector.broadcast %3 : vector<1x128xf32> to vector<344x128xf32>
    %5 = arith.addf %2, %4 : vector<344x128xf32>
    %cst_5 = arith.constant 0.000000e+00 : f32
    %6 = vector.broadcast %cst_5 : f32 to vector<344x128xf32>
    %7 = arith.maximumf %5, %6 : vector<344x128xf32>
    %8 = arith.truncf %7 : vector<344x128xf32> to vector<344x128xbf16>
    %c0_6 = arith.constant 0 : index
    %c0_7 = arith.constant 0 : index
    %9 = vector.load %arg4[%c0_6, %c0_7] : memref<344x128xbf16, #tpu.memory_space<vmem>>, vector<344x128xbf16>
    tpu.vector_store %arg4[%c0_6, %c0_7], %8 {strides = array<i32>} : memref<344x128xbf16, #tpu.memory_space<vmem>>, vector<344x128xbf16>,
    return
  }
  func.func @transform_0(%arg0: i32) -> (i32, i32) {
    %c0_i32 = arith.constant 0 : i32
    %c0_i32_0 = arith.constant 0 : i32
    return %arg0, %c0_i32 : i32, i32
  }
  func.func @transform_1(%arg0: i32) -> (i32, i32) {
    %c0_i32 = arith.constant 0 : i32
    %c0_i32_0 = arith.constant 0 : i32
    %c0_i32_1 = arith.constant 0 : i32
    return %c0_i32, %c0_i32_0 : i32, i32
  }
  func.func @transform_2(%arg0: i32) -> (i32, i32) {
    %c0_i32 = arith.constant 0 : i32
    %c0_i32_0 = arith.constant 0 : i32
    %c0_i32_1 = arith.constant 0 : i32
    return %c0_i32, %c0_i32_0 : i32, i32
  }
  func.func @transform_3(%arg0: i32) -> (i32, i32) {
    %c0_i32 = arith.constant 0 : i32
    %c0_i32_0 = arith.constant 0 : i32
    return %arg0, %c0_i32 : i32, i32
  }
}

module attributes {stable_mosaic.version = 11 : i64} {
  func.func @_fused_conv_kernel(%arg0: i32, %arg1: i32, %arg2: memref<1x144x128xf32, #tpu.memory_space<vmem>>, %arg3: memref<16x128x128xbf16, #tpu.memory_space<vmem>>, %arg4: memref<1x128xf32, #tpu.memory_space<vmem>>, %arg5: memref<1x88x128xbf16, #tpu.memory_space<vmem>>) attributes {dimension_semantics = [#tpu.dimension_semantics<parallel>, #tpu.dimension_semantics<parallel>], iteration_bounds = array<i64: 2, 1>, scalar_prefetch = 0 : i64, scratch_operands = 0 : i64, tpu.core_type = #tpu.core_type<tc>, window_params = [{transform_indices = @transform_0, window_bounds = array<i64: 1, 144, 128>}, {pipeline_mode = #tpu.pipeline_mode<synchronous>, transform_indices = @transform_1, window_bounds = array<i64: 16, 128, 128>}, {pipeline_mode = #tpu.pipeline_mode<synchronous>, transform_indices = @transform_2, window_bounds = array<i64: 1, 128>}, {transform_indices = @transform_3, window_bounds = array<i64: 1, 88, 128>}]} {
    %c88_i32 = arith.constant 88 : i32
    %0 = arith.muli %arg1, %c88_i32 : i32
    %1 = tpu.assume_multiple %0, 8 : i32
    %cst = arith.constant 0.000000e+00 : f32
    %2 = vector.broadcast %cst : f32 to vector<88x128xf32>
    %c0_i32 = arith.constant 0 : i32
    %3 = arith.addi %1, %c0_i32 : i32
    %4 = tpu.assume_multiple %3, 8 : i32
    %c0 = arith.constant 0 : index
    %5 = arith.index_cast %4 : i32 to index
    %c0_0 = arith.constant 0 : index
    %6 = vector.load %arg2[%c0, %5, %c0_0] : memref<1x144x128xf32, #tpu.memory_space<vmem>>, vector<1x96x128xf32>
    %7 = vector.shape_cast %6 : vector<1x96x128xf32> to vector<96x128xf32>
    %8 = vector.extract_strided_slice %7 {offsets = [0, 0], sizes = [88, 128], strides = [1, 1]} : vector<96x128xf32> to vector<88x128xf32>
    %9 = arith.truncf %8 : vector<88x128xf32> to vector<88x128xbf16>
    %c0_1 = arith.constant 0 : index
    %c0_2 = arith.constant 0 : index
    %c0_3 = arith.constant 0 : index
    %10 = vector.load %arg3[%c0_1, %c0_2, %c0_3] : memref<16x128x128xbf16, #tpu.memory_space<vmem>>, vector<1x128x128xbf16>
    %11 = vector.shape_cast %10 : vector<1x128x128xbf16> to vector<128x128xbf16>
    %cst_4 = arith.constant dense<0.000000e+00> : vector<88x128xf32>
    %12 = tpu.matmul %9, %11, %cst_4 {dimension_numbers = #tpu.dot_dimension_numbers<[1], [0], [0], [1], [0, 0, 1, 1], [], []>} : vector<88x128xbf16>, vector<128x128xbf16>, vector<88x128xf32> -> vector<88x128xf32>
    %13 = arith.addf %2, %12 : vector<88x128xf32>
    %c0_i32_5 = arith.constant 0 : i32
    %14 = arith.addi %1, %c0_i32_5 : i32
    %15 = tpu.assume_multiple %14, 8 : i32
    %c0_6 = arith.constant 0 : index
    %16 = arith.index_cast %15 : i32 to index
    %c0_7 = arith.constant 0 : index
    %17 = vector.load %arg2[%c0_6, %16, %c0_7] : memref<1x144x128xf32, #tpu.memory_space<vmem>>, vector<1x96x128xf32>
    %18 = vector.shape_cast %17 : vector<1x96x128xf32> to vector<96x128xf32>
    %19 = vector.extract_strided_slice %18 {offsets = [1, 0], sizes = [88, 128], strides = [1, 1]} : vector<96x128xf32> to vector<88x128xf32>
    %20 = arith.truncf %19 : vector<88x128xf32> to vector<88x128xbf16>
    %c1 = arith.constant 1 : index
    %c0_8 = arith.constant 0 : index
    %c0_9 = arith.constant 0 : index
    %21 = vector.load %arg3[%c1, %c0_8, %c0_9] : memref<16x128x128xbf16, #tpu.memory_space<vmem>>, vector<1x128x128xbf16>
    %22 = vector.shape_cast %21 : vector<1x128x128xbf16> to vector<128x128xbf16>
    %cst_10 = arith.constant dense<0.000000e+00> : vector<88x128xf32>
    %23 = tpu.matmul %20, %22, %cst_10 {dimension_numbers = #tpu.dot_dimension_numbers<[1], [0], [0], [1], [0, 0, 1, 1], [], []>} : vector<88x128xbf16>, vector<128x128xbf16>, vector<88x128xf32> -> vector<88x128xf32>
    %24 = arith.addf %13, %23 : vector<88x128xf32>
    %c0_i32_11 = arith.constant 0 : i32
    %25 = arith.addi %1, %c0_i32_11 : i32
    %26 = tpu.assume_multiple %25, 8 : i32
    %c0_12 = arith.constant 0 : index
    %27 = arith.index_cast %26 : i32 to index
    %c0_13 = arith.constant 0 : index
    %28 = vector.load %arg2[%c0_12, %27, %c0_13] : memref<1x144x128xf32, #tpu.memory_space<vmem>>, vector<1x96x128xf32>
    %29 = vector.shape_cast %28 : vector<1x96x128xf32> to vector<96x128xf32>
    %30 = vector.extract_strided_slice %29 {offsets = [2, 0], sizes = [88, 128], strides = [1, 1]} : vector<96x128xf32> to vector<88x128xf32>
    %31 = arith.truncf %30 : vector<88x128xf32> to vector<88x128xbf16>
    %c2 = arith.constant 2 : index
    %c0_14 = arith.constant 0 : index
    %c0_15 = arith.constant 0 : index
    %32 = vector.load %arg3[%c2, %c0_14, %c0_15] : memref<16x128x128xbf16, #tpu.memory_space<vmem>>, vector<1x128x128xbf16>
    %33 = vector.shape_cast %32 : vector<1x128x128xbf16> to vector<128x128xbf16>
    %cst_16 = arith.constant dense<0.000000e+00> : vector<88x128xf32>
    %34 = tpu.matmul %31, %33, %cst_16 {dimension_numbers = #tpu.dot_dimension_numbers<[1], [0], [0], [1], [0, 0, 1, 1], [], []>} : vector<88x128xbf16>, vector<128x128xbf16>, vector<88x128xf32> -> vector<88x128xf32>
    %35 = arith.addf %24, %34 : vector<88x128xf32>
    %c0_i32_17 = arith.constant 0 : i32
    %36 = arith.addi %1, %c0_i32_17 : i32
    %37 = tpu.assume_multiple %36, 8 : i32
    %c0_18 = arith.constant 0 : index
    %38 = arith.index_cast %37 : i32 to index
    %c0_19 = arith.constant 0 : index
    %39 = vector.load %arg2[%c0_18, %38, %c0_19] : memref<1x144x128xf32, #tpu.memory_space<vmem>>, vector<1x96x128xf32>
    %40 = vector.shape_cast %39 : vector<1x96x128xf32> to vector<96x128xf32>
    %41 = vector.extract_strided_slice %40 {offsets = [3, 0], sizes = [88, 128], strides = [1, 1]} : vector<96x128xf32> to vector<88x128xf32>
    %42 = arith.truncf %41 : vector<88x128xf32> to vector<88x128xbf16>
    %c3 = arith.constant 3 : index
    %c0_20 = arith.constant 0 : index
    %c0_21 = arith.constant 0 : index
    %43 = vector.load %arg3[%c3, %c0_20, %c0_21] : memref<16x128x128xbf16, #tpu.memory_space<vmem>>, vector<1x128x128xbf16>
    %44 = vector.shape_cast %43 : vector<1x128x128xbf16> to vector<128x128xbf16>
    %cst_22 = arith.constant dense<0.000000e+00> : vector<88x128xf32>
    %45 = tpu.matmul %42, %44, %cst_22 {dimension_numbers = #tpu.dot_dimension_numbers<[1], [0], [0], [1], [0, 0, 1, 1], [], []>} : vector<88x128xbf16>, vector<128x128xbf16>, vector<88x128xf32> -> vector<88x128xf32>
    %46 = arith.addf %35, %45 : vector<88x128xf32>
    %c8_i32 = arith.constant 8 : i32
    %47 = arith.addi %1, %c8_i32 : i32
    %48 = tpu.assume_multiple %47, 8 : i32
    %c0_23 = arith.constant 0 : index
    %49 = arith.index_cast %48 : i32 to index
    %c0_24 = arith.constant 0 : index
    %50 = vector.load %arg2[%c0_23, %49, %c0_24] : memref<1x144x128xf32, #tpu.memory_space<vmem>>, vector<1x96x128xf32>
    %51 = vector.shape_cast %50 : vector<1x96x128xf32> to vector<96x128xf32>
    %52 = vector.extract_strided_slice %51 {offsets = [3, 0], sizes = [88, 128], strides = [1, 1]} : vector<96x128xf32> to vector<88x128xf32>
    %53 = arith.truncf %52 : vector<88x128xf32> to vector<88x128xbf16>
    %c4 = arith.constant 4 : index
    %c0_25 = arith.constant 0 : index
    %c0_26 = arith.constant 0 : index
    %54 = vector.load %arg3[%c4, %c0_25, %c0_26] : memref<16x128x128xbf16, #tpu.memory_space<vmem>>, vector<1x128x128xbf16>
    %55 = vector.shape_cast %54 : vector<1x128x128xbf16> to vector<128x128xbf16>
    %cst_27 = arith.constant dense<0.000000e+00> : vector<88x128xf32>
    %56 = tpu.matmul %53, %55, %cst_27 {dimension_numbers = #tpu.dot_dimension_numbers<[1], [0], [0], [1], [0, 0, 1, 1], [], []>} : vector<88x128xbf16>, vector<128x128xbf16>, vector<88x128xf32> -> vector<88x128xf32>
    %57 = arith.addf %46, %56 : vector<88x128xf32>
    %c8_i32_28 = arith.constant 8 : i32
    %58 = arith.addi %1, %c8_i32_28 : i32
    %59 = tpu.assume_multiple %58, 8 : i32
    %c0_29 = arith.constant 0 : index
    %60 = arith.index_cast %59 : i32 to index
    %c0_30 = arith.constant 0 : index
    %61 = vector.load %arg2[%c0_29, %60, %c0_30] : memref<1x144x128xf32, #tpu.memory_space<vmem>>, vector<1x96x128xf32>
    %62 = vector.shape_cast %61 : vector<1x96x128xf32> to vector<96x128xf32>
    %63 = vector.extract_strided_slice %62 {offsets = [4, 0], sizes = [88, 128], strides = [1, 1]} : vector<96x128xf32> to vector<88x128xf32>
    %64 = arith.truncf %63 : vector<88x128xf32> to vector<88x128xbf16>
    %c5 = arith.constant 5 : index
    %c0_31 = arith.constant 0 : index
    %c0_32 = arith.constant 0 : index
    %65 = vector.load %arg3[%c5, %c0_31, %c0_32] : memref<16x128x128xbf16, #tpu.memory_space<vmem>>, vector<1x128x128xbf16>
    %66 = vector.shape_cast %65 : vector<1x128x128xbf16> to vector<128x128xbf16>
    %cst_33 = arith.constant dense<0.000000e+00> : vector<88x128xf32>
    %67 = tpu.matmul %64, %66, %cst_33 {dimension_numbers = #tpu.dot_dimension_numbers<[1], [0], [0], [1], [0, 0, 1, 1], [], []>} : vector<88x128xbf16>, vector<128x128xbf16>, vector<88x128xf32> -> vector<88x128xf32>
    %68 = arith.addf %57, %67 : vector<88x128xf32>
    %c8_i32_34 = arith.constant 8 : i32
    %69 = arith.addi %1, %c8_i32_34 : i32
    %70 = tpu.assume_multiple %69, 8 : i32
    %c0_35 = arith.constant 0 : index
    %71 = arith.index_cast %70 : i32 to index
    %c0_36 = arith.constant 0 : index
    %72 = vector.load %arg2[%c0_35, %71, %c0_36] : memref<1x144x128xf32, #tpu.memory_space<vmem>>, vector<1x96x128xf32>
    %73 = vector.shape_cast %72 : vector<1x96x128xf32> to vector<96x128xf32>
    %74 = vector.extract_strided_slice %73 {offsets = [5, 0], sizes = [88, 128], strides = [1, 1]} : vector<96x128xf32> to vector<88x128xf32>
    %75 = arith.truncf %74 : vector<88x128xf32> to vector<88x128xbf16>
    %c6 = arith.constant 6 : index
    %c0_37 = arith.constant 0 : index
    %c0_38 = arith.constant 0 : index
    %76 = vector.load %arg3[%c6, %c0_37, %c0_38] : memref<16x128x128xbf16, #tpu.memory_space<vmem>>, vector<1x128x128xbf16>
    %77 = vector.shape_cast %76 : vector<1x128x128xbf16> to vector<128x128xbf16>
    %cst_39 = arith.constant dense<0.000000e+00> : vector<88x128xf32>
    %78 = tpu.matmul %75, %77, %cst_39 {dimension_numbers = #tpu.dot_dimension_numbers<[1], [0], [0], [1], [0, 0, 1, 1], [], []>} : vector<88x128xbf16>, vector<128x128xbf16>, vector<88x128xf32> -> vector<88x128xf32>
    %79 = arith.addf %68, %78 : vector<88x128xf32>
    %c8_i32_40 = arith.constant 8 : i32
    %80 = arith.addi %1, %c8_i32_40 : i32
    %81 = tpu.assume_multiple %80, 8 : i32
    %c0_41 = arith.constant 0 : index
    %82 = arith.index_cast %81 : i32 to index
    %c0_42 = arith.constant 0 : index
    %83 = vector.load %arg2[%c0_41, %82, %c0_42] : memref<1x144x128xf32, #tpu.memory_space<vmem>>, vector<1x96x128xf32>
    %84 = vector.shape_cast %83 : vector<1x96x128xf32> to vector<96x128xf32>
    %85 = vector.extract_strided_slice %84 {offsets = [6, 0], sizes = [88, 128], strides = [1, 1]} : vector<96x128xf32> to vector<88x128xf32>
    %86 = arith.truncf %85 : vector<88x128xf32> to vector<88x128xbf16>
    %c7 = arith.constant 7 : index
    %c0_43 = arith.constant 0 : index
    %c0_44 = arith.constant 0 : index
    %87 = vector.load %arg3[%c7, %c0_43, %c0_44] : memref<16x128x128xbf16, #tpu.memory_space<vmem>>, vector<1x128x128xbf16>
    %88 = vector.shape_cast %87 : vector<1x128x128xbf16> to vector<128x128xbf16>
    %cst_45 = arith.constant dense<0.000000e+00> : vector<88x128xf32>
    %89 = tpu.matmul %86, %88, %cst_45 {dimension_numbers = #tpu.dot_dimension_numbers<[1], [0], [0], [1], [0, 0, 1, 1], [], []>} : vector<88x128xbf16>, vector<128x128xbf16>, vector<88x128xf32> -> vector<88x128xf32>
    %90 = arith.addf %79, %89 : vector<88x128xf32>
    %c16_i32 = arith.constant 16 : i32
    %91 = arith.addi %1, %c16_i32 : i32
    %92 = tpu.assume_multiple %91, 8 : i32
    %c0_46 = arith.constant 0 : index
    %93 = arith.index_cast %92 : i32 to index
    %c0_47 = arith.constant 0 : index
    %94 = vector.load %arg2[%c0_46, %93, %c0_47] : memref<1x144x128xf32, #tpu.memory_space<vmem>>, vector<1x96x128xf32>
    %95 = vector.shape_cast %94 : vector<1x96x128xf32> to vector<96x128xf32>
    %96 = vector.extract_strided_slice %95 {offsets = [6, 0], sizes = [88, 128], strides = [1, 1]} : vector<96x128xf32> to vector<88x128xf32>
    %97 = arith.truncf %96 : vector<88x128xf32> to vector<88x128xbf16>
    %c8 = arith.constant 8 : index
    %c0_48 = arith.constant 0 : index
    %c0_49 = arith.constant 0 : index
    %98 = vector.load %arg3[%c8, %c0_48, %c0_49] : memref<16x128x128xbf16, #tpu.memory_space<vmem>>, vector<1x128x128xbf16>
    %99 = vector.shape_cast %98 : vector<1x128x128xbf16> to vector<128x128xbf16>
    %cst_50 = arith.constant dense<0.000000e+00> : vector<88x128xf32>
    %100 = tpu.matmul %97, %99, %cst_50 {dimension_numbers = #tpu.dot_dimension_numbers<[1], [0], [0], [1], [0, 0, 1, 1], [], []>} : vector<88x128xbf16>, vector<128x128xbf16>, vector<88x128xf32> -> vector<88x128xf32>
    %101 = arith.addf %90, %100 : vector<88x128xf32>
    %c16_i32_51 = arith.constant 16 : i32
    %102 = arith.addi %1, %c16_i32_51 : i32
    %103 = tpu.assume_multiple %102, 8 : i32
    %c0_52 = arith.constant 0 : index
    %104 = arith.index_cast %103 : i32 to index
    %c0_53 = arith.constant 0 : index
    %105 = vector.load %arg2[%c0_52, %104, %c0_53] : memref<1x144x128xf32, #tpu.memory_space<vmem>>, vector<1x96x128xf32>
    %106 = vector.shape_cast %105 : vector<1x96x128xf32> to vector<96x128xf32>
    %107 = vector.extract_strided_slice %106 {offsets = [7, 0], sizes = [88, 128], strides = [1, 1]} : vector<96x128xf32> to vector<88x128xf32>
    %108 = arith.truncf %107 : vector<88x128xf32> to vector<88x128xbf16>
    %c9 = arith.constant 9 : index
    %c0_54 = arith.constant 0 : index
    %c0_55 = arith.constant 0 : index
    %109 = vector.load %arg3[%c9, %c0_54, %c0_55] : memref<16x128x128xbf16, #tpu.memory_space<vmem>>, vector<1x128x128xbf16>
    %110 = vector.shape_cast %109 : vector<1x128x128xbf16> to vector<128x128xbf16>
    %cst_56 = arith.constant dense<0.000000e+00> : vector<88x128xf32>
    %111 = tpu.matmul %108, %110, %cst_56 {dimension_numbers = #tpu.dot_dimension_numbers<[1], [0], [0], [1], [0, 0, 1, 1], [], []>} : vector<88x128xbf16>, vector<128x128xbf16>, vector<88x128xf32> -> vector<88x128xf32>
    %112 = arith.addf %101, %111 : vector<88x128xf32>
    %c24_i32 = arith.constant 24 : i32
    %113 = arith.addi %1, %c24_i32 : i32
    %114 = tpu.assume_multiple %113, 8 : i32
    %c0_57 = arith.constant 0 : index
    %115 = arith.index_cast %114 : i32 to index
    %c0_58 = arith.constant 0 : index
    %116 = vector.load %arg2[%c0_57, %115, %c0_58] : memref<1x144x128xf32, #tpu.memory_space<vmem>>, vector<1x96x128xf32>
    %117 = vector.shape_cast %116 : vector<1x96x128xf32> to vector<96x128xf32>
    %118 = vector.extract_strided_slice %117 {offsets = [0, 0], sizes = [88, 128], strides = [1, 1]} : vector<96x128xf32> to vector<88x128xf32>
    %119 = arith.truncf %118 : vector<88x128xf32> to vector<88x128xbf16>
    %c10 = arith.constant 10 : index
    %c0_59 = arith.constant 0 : index
    %c0_60 = arith.constant 0 : index
    %120 = vector.load %arg3[%c10, %c0_59, %c0_60] : memref<16x128x128xbf16, #tpu.memory_space<vmem>>, vector<1x128x128xbf16>
    %121 = vector.shape_cast %120 : vector<1x128x128xbf16> to vector<128x128xbf16>
    %cst_61 = arith.constant dense<0.000000e+00> : vector<88x128xf32>
    %122 = tpu.matmul %119, %121, %cst_61 {dimension_numbers = #tpu.dot_dimension_numbers<[1], [0], [0], [1], [0, 0, 1, 1], [], []>} : vector<88x128xbf16>, vector<128x128xbf16>, vector<88x128xf32> -> vector<88x128xf32>
    %123 = arith.addf %112, %122 : vector<88x128xf32>
    %c24_i32_62 = arith.constant 24 : i32
    %124 = arith.addi %1, %c24_i32_62 : i32
    %125 = tpu.assume_multiple %124, 8 : i32
    %c0_63 = arith.constant 0 : index
    %126 = arith.index_cast %125 : i32 to index
    %c0_64 = arith.constant 0 : index
    %127 = vector.load %arg2[%c0_63, %126, %c0_64] : memref<1x144x128xf32, #tpu.memory_space<vmem>>, vector<1x96x128xf32>
    %128 = vector.shape_cast %127 : vector<1x96x128xf32> to vector<96x128xf32>
    %129 = vector.extract_strided_slice %128 {offsets = [1, 0], sizes = [88, 128], strides = [1, 1]} : vector<96x128xf32> to vector<88x128xf32>
    %130 = arith.truncf %129 : vector<88x128xf32> to vector<88x128xbf16>
    %c11 = arith.constant 11 : index
    %c0_65 = arith.constant 0 : index
    %c0_66 = arith.constant 0 : index
    %131 = vector.load %arg3[%c11, %c0_65, %c0_66] : memref<16x128x128xbf16, #tpu.memory_space<vmem>>, vector<1x128x128xbf16>
    %132 = vector.shape_cast %131 : vector<1x128x128xbf16> to vector<128x128xbf16>
    %cst_67 = arith.constant dense<0.000000e+00> : vector<88x128xf32>
    %133 = tpu.matmul %130, %132, %cst_67 {dimension_numbers = #tpu.dot_dimension_numbers<[1], [0], [0], [1], [0, 0, 1, 1], [], []>} : vector<88x128xbf16>, vector<128x128xbf16>, vector<88x128xf32> -> vector<88x128xf32>
    %134 = arith.addf %123, %133 : vector<88x128xf32>
    %c32_i32 = arith.constant 32 : i32
    %135 = arith.addi %1, %c32_i32 : i32
    %136 = tpu.assume_multiple %135, 8 : i32
    %c0_68 = arith.constant 0 : index
    %137 = arith.index_cast %136 : i32 to index
    %c0_69 = arith.constant 0 : index
    %138 = vector.load %arg2[%c0_68, %137, %c0_69] : memref<1x144x128xf32, #tpu.memory_space<vmem>>, vector<1x96x128xf32>
    %139 = vector.shape_cast %138 : vector<1x96x128xf32> to vector<96x128xf32>
    %140 = vector.extract_strided_slice %139 {offsets = [1, 0], sizes = [88, 128], strides = [1, 1]} : vector<96x128xf32> to vector<88x128xf32>
    %141 = arith.truncf %140 : vector<88x128xf32> to vector<88x128xbf16>
    %c12 = arith.constant 12 : index
    %c0_70 = arith.constant 0 : index
    %c0_71 = arith.constant 0 : index
    %142 = vector.load %arg3[%c12, %c0_70, %c0_71] : memref<16x128x128xbf16, #tpu.memory_space<vmem>>, vector<1x128x128xbf16>
    %143 = vector.shape_cast %142 : vector<1x128x128xbf16> to vector<128x128xbf16>
    %cst_72 = arith.constant dense<0.000000e+00> : vector<88x128xf32>
    %144 = tpu.matmul %141, %143, %cst_72 {dimension_numbers = #tpu.dot_dimension_numbers<[1], [0], [0], [1], [0, 0, 1, 1], [], []>} : vector<88x128xbf16>, vector<128x128xbf16>, vector<88x128xf32> -> vector<88x128xf32>
    %145 = arith.addf %134, %144 : vector<88x128xf32>
    %c32_i32_73 = arith.constant 32 : i32
    %146 = arith.addi %1, %c32_i32_73 : i32
    %147 = tpu.assume_multiple %146, 8 : i32
    %c0_74 = arith.constant 0 : index
    %148 = arith.index_cast %147 : i32 to index
    %c0_75 = arith.constant 0 : index
    %149 = vector.load %arg2[%c0_74, %148, %c0_75] : memref<1x144x128xf32, #tpu.memory_space<vmem>>, vector<1x96x128xf32>
    %150 = vector.shape_cast %149 : vector<1x96x128xf32> to vector<96x128xf32>
    %151 = vector.extract_strided_slice %150 {offsets = [2, 0], sizes = [88, 128], strides = [1, 1]} : vector<96x128xf32> to vector<88x128xf32>
    %152 = arith.truncf %151 : vector<88x128xf32> to vector<88x128xbf16>
    %c13 = arith.constant 13 : index
    %c0_76 = arith.constant 0 : index
    %c0_77 = arith.constant 0 : index
    %153 = vector.load %arg3[%c13, %c0_76, %c0_77] : memref<16x128x128xbf16, #tpu.memory_space<vmem>>, vector<1x128x128xbf16>
    %154 = vector.shape_cast %153 : vector<1x128x128xbf16> to vector<128x128xbf16>
    %cst_78 = arith.constant dense<0.000000e+00> : vector<88x128xf32>
    %155 = tpu.matmul %152, %154, %cst_78 {dimension_numbers = #tpu.dot_dimension_numbers<[1], [0], [0], [1], [0, 0, 1, 1], [], []>} : vector<88x128xbf16>, vector<128x128xbf16>, vector<88x128xf32> -> vector<88x128xf32>
    %156 = arith.addf %145, %155 : vector<88x128xf32>
    %c32_i32_79 = arith.constant 32 : i32
    %157 = arith.addi %1, %c32_i32_79 : i32
    %158 = tpu.assume_multiple %157, 8 : i32
    %c0_80 = arith.constant 0 : index
    %159 = arith.index_cast %158 : i32 to index
    %c0_81 = arith.constant 0 : index
    %160 = vector.load %arg2[%c0_80, %159, %c0_81] : memref<1x144x128xf32, #tpu.memory_space<vmem>>, vector<1x96x128xf32>
    %161 = vector.shape_cast %160 : vector<1x96x128xf32> to vector<96x128xf32>
    %162 = vector.extract_strided_slice %161 {offsets = [3, 0], sizes = [88, 128], strides = [1, 1]} : vector<96x128xf32> to vector<88x128xf32>
    %163 = arith.truncf %162 : vector<88x128xf32> to vector<88x128xbf16>
    %c14 = arith.constant 14 : index
    %c0_82 = arith.constant 0 : index
    %c0_83 = arith.constant 0 : index
    %164 = vector.load %arg3[%c14, %c0_82, %c0_83] : memref<16x128x128xbf16, #tpu.memory_space<vmem>>, vector<1x128x128xbf16>
    %165 = vector.shape_cast %164 : vector<1x128x128xbf16> to vector<128x128xbf16>
    %cst_84 = arith.constant dense<0.000000e+00> : vector<88x128xf32>
    %166 = tpu.matmul %163, %165, %cst_84 {dimension_numbers = #tpu.dot_dimension_numbers<[1], [0], [0], [1], [0, 0, 1, 1], [], []>} : vector<88x128xbf16>, vector<128x128xbf16>, vector<88x128xf32> -> vector<88x128xf32>
    %167 = arith.addf %156, %166 : vector<88x128xf32>
    %c32_i32_85 = arith.constant 32 : i32
    %168 = arith.addi %1, %c32_i32_85 : i32
    %169 = tpu.assume_multiple %168, 8 : i32
    %c0_86 = arith.constant 0 : index
    %170 = arith.index_cast %169 : i32 to index
    %c0_87 = arith.constant 0 : index
    %171 = vector.load %arg2[%c0_86, %170, %c0_87] : memref<1x144x128xf32, #tpu.memory_space<vmem>>, vector<1x96x128xf32>
    %172 = vector.shape_cast %171 : vector<1x96x128xf32> to vector<96x128xf32>
    %173 = vector.extract_strided_slice %172 {offsets = [4, 0], sizes = [88, 128], strides = [1, 1]} : vector<96x128xf32> to vector<88x128xf32>
    %174 = arith.truncf %173 : vector<88x128xf32> to vector<88x128xbf16>
    %c15 = arith.constant 15 : index
    %c0_88 = arith.constant 0 : index
    %c0_89 = arith.constant 0 : index
    %175 = vector.load %arg3[%c15, %c0_88, %c0_89] : memref<16x128x128xbf16, #tpu.memory_space<vmem>>, vector<1x128x128xbf16>
    %176 = vector.shape_cast %175 : vector<1x128x128xbf16> to vector<128x128xbf16>
    %cst_90 = arith.constant dense<0.000000e+00> : vector<88x128xf32>
    %177 = tpu.matmul %174, %176, %cst_90 {dimension_numbers = #tpu.dot_dimension_numbers<[1], [0], [0], [1], [0, 0, 1, 1], [], []>} : vector<88x128xbf16>, vector<128x128xbf16>, vector<88x128xf32> -> vector<88x128xf32>
    %178 = arith.addf %167, %177 : vector<88x128xf32>
    %c0_91 = arith.constant 0 : index
    %c0_92 = arith.constant 0 : index
    %179 = vector.load %arg4[%c0_91, %c0_92] : memref<1x128xf32, #tpu.memory_space<vmem>>, vector<1x128xf32>
    %180 = vector.broadcast %179 : vector<1x128xf32> to vector<88x128xf32>
    %181 = arith.addf %178, %180 : vector<88x128xf32>
    %cst_93 = arith.constant 0.000000e+00 : f32
    %182 = vector.broadcast %cst_93 : f32 to vector<88x128xf32>
    %183 = arith.maximumf %181, %182 : vector<88x128xf32>
    %184 = arith.truncf %183 : vector<88x128xf32> to vector<88x128xbf16>
    %c0_94 = arith.constant 0 : index
    %c0_95 = arith.constant 0 : index
    %c0_96 = arith.constant 0 : index
    %185 = vector.load %arg5[%c0_94, %c0_95, %c0_96] : memref<1x88x128xbf16, #tpu.memory_space<vmem>>, vector<1x88x128xbf16>
    %186 = vector.shape_cast %185 : vector<1x88x128xbf16> to vector<88x128xbf16>
    %187 = vector.shape_cast %184 : vector<88x128xbf16> to vector<1x88x128xbf16>
    tpu.vector_store %arg5[%c0_94, %c0_95, %c0_96], %187 {strides = array<i32>} : memref<1x88x128xbf16, #tpu.memory_space<vmem>>, vector<1x88x128xbf16>,
    return
  }
  func.func @transform_0(%arg0: i32, %arg1: i32) -> (i32, i32, i32) {
    %c0_i32 = arith.constant 0 : i32
    %c0_i32_0 = arith.constant 0 : i32
    %c0_i32_1 = arith.constant 0 : i32
    return %arg0, %c0_i32, %c0_i32_0 : i32, i32, i32
  }
  func.func @transform_1(%arg0: i32, %arg1: i32) -> (i32, i32, i32) {
    %c0_i32 = arith.constant 0 : i32
    %c0_i32_0 = arith.constant 0 : i32
    %c0_i32_1 = arith.constant 0 : i32
    %c0_i32_2 = arith.constant 0 : i32
    return %c0_i32, %c0_i32_0, %c0_i32_1 : i32, i32, i32
  }
  func.func @transform_2(%arg0: i32, %arg1: i32) -> (i32, i32) {
    %c0_i32 = arith.constant 0 : i32
    %c0_i32_0 = arith.constant 0 : i32
    %c0_i32_1 = arith.constant 0 : i32
    return %c0_i32, %c0_i32_0 : i32, i32
  }
  func.func @transform_3(%arg0: i32, %arg1: i32) -> (i32, i32, i32) {
    %c0_i32 = arith.constant 0 : i32
    %c0_i32_0 = arith.constant 0 : i32
    return %arg0, %arg1, %c0_i32 : i32, i32, i32
  }
}

module attributes {stable_mosaic.version = 11 : i64} {
  func.func @_matmul_bias_kernel(%arg0: i32, %arg1: memref<128x128xbf16, #tpu.memory_space<vmem>>, %arg2: memref<128x128xbf16, #tpu.memory_space<vmem>>, %arg3: memref<1x128xf32, #tpu.memory_space<vmem>>, %arg4: memref<128x128xbf16, #tpu.memory_space<vmem>>) attributes {dimension_semantics = [#tpu.dimension_semantics<parallel>], iteration_bounds = array<i64: 1>, scalar_prefetch = 0 : i64, scratch_operands = 0 : i64, tpu.core_type = #tpu.core_type<tc>, window_params = [{transform_indices = @transform_0, window_bounds = array<i64: 128, 128>}, {pipeline_mode = #tpu.pipeline_mode<synchronous>, transform_indices = @transform_1, window_bounds = array<i64: 128, 128>}, {pipeline_mode = #tpu.pipeline_mode<synchronous>, transform_indices = @transform_2, window_bounds = array<i64: 1, 128>}, {transform_indices = @transform_3, window_bounds = array<i64: 128, 128>}]} {
    %c0 = arith.constant 0 : index
    %c0_0 = arith.constant 0 : index
    %0 = vector.load %arg1[%c0, %c0_0] : memref<128x128xbf16, #tpu.memory_space<vmem>>, vector<128x128xbf16>
    %c0_1 = arith.constant 0 : index
    %c0_2 = arith.constant 0 : index
    %1 = vector.load %arg2[%c0_1, %c0_2] : memref<128x128xbf16, #tpu.memory_space<vmem>>, vector<128x128xbf16>
    %cst = arith.constant dense<0.000000e+00> : vector<128x128xf32>
    %2 = tpu.matmul %0, %1, %cst {dimension_numbers = #tpu.dot_dimension_numbers<[1], [0], [0], [1], [0, 0, 1, 1], [], []>} : vector<128x128xbf16>, vector<128x128xbf16>, vector<128x128xf32> -> vector<128x128xf32>
    %c0_3 = arith.constant 0 : index
    %c0_4 = arith.constant 0 : index
    %3 = vector.load %arg3[%c0_3, %c0_4] : memref<1x128xf32, #tpu.memory_space<vmem>>, vector<1x128xf32>
    %4 = vector.broadcast %3 : vector<1x128xf32> to vector<128x128xf32>
    %5 = arith.addf %2, %4 : vector<128x128xf32>
    %6 = arith.truncf %5 : vector<128x128xf32> to vector<128x128xbf16>
    %c0_5 = arith.constant 0 : index
    %c0_6 = arith.constant 0 : index
    %7 = vector.load %arg4[%c0_5, %c0_6] : memref<128x128xbf16, #tpu.memory_space<vmem>>, vector<128x128xbf16>
    tpu.vector_store %arg4[%c0_5, %c0_6], %6 {strides = array<i32>} : memref<128x128xbf16, #tpu.memory_space<vmem>>, vector<128x128xbf16>,
    return
  }
  func.func @transform_0(%arg0: i32) -> (i32, i32) {
    %c0_i32 = arith.constant 0 : i32
    %c0_i32_0 = arith.constant 0 : i32
    return %arg0, %c0_i32 : i32, i32
  }
  func.func @transform_1(%arg0: i32) -> (i32, i32) {
    %c0_i32 = arith.constant 0 : i32
    %c0_i32_0 = arith.constant 0 : i32
    %c0_i32_1 = arith.constant 0 : i32
    return %c0_i32, %c0_i32_0 : i32, i32
  }
  func.func @transform_2(%arg0: i32) -> (i32, i32) {
    %c0_i32 = arith.constant 0 : i32
    %c0_i32_0 = arith.constant 0 : i32
    %c0_i32_1 = arith.constant 0 : i32
    return %c0_i32, %c0_i32_0 : i32, i32
  }
  func.func @transform_3(%arg0: i32) -> (i32, i32) {
    %c0_i32 = arith.constant 0 : i32
    %c0_i32_0 = arith.constant 0 : i32
    return %arg0, %c0_i32 : i32, i32
  }
}

</mosaic_0001>

<bundles_post_ra>
// kernel: pdn_m_multi_forward.7
= control target key start
LH: loop header
LB: loop body
LE: loop exit
PB: predicated region body
PF: predicated region fallthrough
CT: control target
= control target key end

     0   :  { %s2931_s12 = smov 0   ;;  %s2933_s13 = smov 0   ;;  %s3436_s0 = inlined_call_operand.vmem [shape: bf16[7448,48], index: 0, kind: input, shape index: {}]   ;;  %s3437_s1 = inlined_call_operand.vmem [shape: bf16[48,128], index: 1, kind: input, shape index: {}]   ;;  %s3438_s2 = inlined_call_operand.vmem [shape: f32[1,128], index: 2, kind: input, shape index: {}]   ;;  %s3439_s3 = inlined_call_operand.vmem [shape: bf16[7448,128], index: 3, kind: output, shape index: {}]  }
   0x1   :  { %s2935_s14 = smov 0  }
   0x2 LB: > { %s2944_s15 = sadd.s32 4294967295, %s2877_s14   ;;  %s2946_s16 = sadd.s32 1, %s2877_s14   ;;  %s2877_s14 = sphi %s2935_s14, %s3448_s14   ;;  %s2873_s13 = sphi %s2933_s13, %s3447_s13   ;;  %s2869_s12 = sphi %s2931_s12, %s3446_s12  }
   0x3   : > { %s85_s17 = ssub.s32 %s2877_s14, %s2946_s16  ;;  %s88_s18 = sadd.s32 1, %s2873_s13 }
   0x4   : > { %p86_p0 = scmp.eq.s32.totalorder %s85_s17, 0  ;;  %p98_p1 = scmp.ne.s32.totalorder %s2873_s13, %s2869_s12 }
   0x5   : > { %p99_p2 = scmp.eq.s32.totalorder %s2944_s15, 7  ;;  %p1918_p3 = scmp.ge.s32.totalorder %s2877_s14, 1 }
   0x6   : > { %s2954_s19 = scalar_select %p86_p0, %s2873_s13, %s88_s18  }
   0x7   : > { %p2956_p4 = por %p99_p2, %p98_p1  ;;  %p146_p5 = scmp.lt.s32.totalorder %s2877_s14, 9 }
   0x9   : > { %p147_p6 = pnand %p1918_p3, %p146_p5 }
   0xa   : > { %s2964_s23 = sshll.u32 (!%p147_p6), %s2944_s15, 7  ;;  %s170_s8 = sand.u32 (!%p147_p6), 1, %s2869_s12  }
   0xb   : > { %150 = sbr.rel (%p147_p6) target bundleno = 481 (0x1e1), region = 32  ;;  %p178_p7 = scmp.lt.s32.totalorder (!%p147_p6), %s2964_s23, 930 }
   0xc   : > { %s1919_s9 = sshll.u32 (!%p147_p6), %s170_s8, 9 }
   0xd   : > { %s3063_s10 = scalar_lea.vmem (!%p147_p6), [#allocation2], %s1919_s9  }
  0x10   : > { %v2337_v0 = vld [vmem:[%s3437_s1 + $0x10] sm:$0xff]  ;;  %v2336_v1 = vld [vmem:[%s3437_s1 + $0x8] sm:$0xff]  ;;  %s179_s26 = scalar_select %p178_p7, %s2964_s23, 930  ;;  %v2335_v2 = vld [vmem:[%s3437_s1] sm:$0xff]  ;;  %vm669_vm0 = vcmask 392192  }
  0x11   : > { %867 = vmatpush.bf16.msra.mxu0 %v2337_v0  ;;  %2724 = vmatpush.bf16.msra.mxu1 %v2337_v0  ;;  %v3050_v41 = vld [vmem:[%s3438_s2] ss:$0 sm:$0xff]  ;;  %s1583_s14 = ssub.s32 (%p2956_p4), 931, %s2964_s23  ;;  %s2338_s17 = sshll.u32 (%p2956_p4), %s2944_s15, 9 }
  0x12   : > { %2725 = vmatpush.bf16.msra.mxu2 %v2337_v0  ;;  %2726 = vmatpush.bf16.msra.mxu3 %v2337_v0  ;;  %s1921_s27 = sshll.u32 %s179_s26, 2  ;;  %p1584_p8 = scmp.lt.s32.totalorder (%p2956_p4), %s1583_s14, 128 }
  0x13   : > { %s2977_s5 = scalar_lea.vmem %s3436_s0, %s1921_s27  ;;  %s3301_s22 = scalar_lea.vmem (%p2956_p4), %s3439_s3, %s2338_s17  }
  0x14   : > { %v2271_v3 = vld [vmem:[%s2977_s5] sm:$0xff]  ;;  %v2272_v7 = vld [vmem:[%s2977_s5 + $0x8] sm:$0xff]  ;;  %v2273_v11 = vld [vmem:[%s2977_s5 + $0x10] sm:$0xff] }
  0x15   : > { %868 = vmatpush.bf16.msra.mxu0 %v2336_v1  ;;  %2727 = vmatpush.bf16.msra.mxu1 %v2336_v1  ;;  %v2287_v4 = vld [vmem:[%s2977_s5 + $0x80] sm:$0xff]  ;;  %v2288_v8 = vld [vmem:[%s2977_s5 + $0x88] sm:$0xff]  ;;  %v2289_v12 = vld [vmem:[%s2977_s5 + $0x90] sm:$0xff] }
  0x16   : > { %2728 = vmatpush.bf16.msra.mxu2 %v2336_v1  ;;  %2729 = vmatpush.bf16.msra.mxu3 %v2336_v1  ;;  %v2303_v5 = vld [vmem:[%s2977_s5 + $0x100] sm:$0xff]  ;;  %v2304_v9 = vld [vmem:[%s2977_s5 + $0x108] sm:$0xff]  ;;  %v2305_v13 = vld [vmem:[%s2977_s5 + $0x110] sm:$0xff] }
  0x17   : > { %v2319_v6 = vld [vmem:[%s2977_s5 + $0x180] sm:$0xff]  ;;  %v2320_v10 = vld [vmem:[%s2977_s5 + $0x188] sm:$0xff]  ;;  %v2321_v14 = vld [vmem:[%s2977_s5 + $0x190] sm:$0xff] }
  0x18   : > { %v2274_v15 = vld [vmem:[%s2977_s5 + $0x18] sm:$0xff]  ;;  %v2275_v19 = vld [vmem:[%s2977_s5 + $0x20] sm:$0xff]  ;;  %v2276_v23 = vld [vmem:[%s2977_s5 + $0x28] sm:$0xff] }
  0x19   : > { %869 = vmatpush.bf16.msra.mxu0 %v2335_v2  ;;  %2730 = vmatpush.bf16.msra.mxu1 %v2335_v2  ;;  %v2290_v16 = vld [vmem:[%s2977_s5 + $0x98] sm:$0xff]  ;;  %v2291_v20 = vld [vmem:[%s2977_s5 + $0xa0] sm:$0xff]  ;;  %v2292_v24 = vld [vmem:[%s2977_s5 + $0xa8] sm:$0xff] }
  0x1a   : > { %2731 = vmatpush.bf16.msra.mxu2 %v2335_v2  ;;  %2732 = vmatpush.bf16.msra.mxu3 %v2335_v2  ;;  %v2306_v17 = vld [vmem:[%s2977_s5 + $0x118] sm:$0xff]  ;;  %v2307_v21 = vld [vmem:[%s2977_s5 + $0x120] sm:$0xff]  ;;  %v2308_v25 = vld [vmem:[%s2977_s5 + $0x128] sm:$0xff] }
  0x1b   : > { %v2322_v18 = vld [vmem:[%s2977_s5 + $0x198] sm:$0xff]  ;;  %v2323_v22 = vld [vmem:[%s2977_s5 + $0x1a0] sm:$0xff]  ;;  %v2324_v26 = vld [vmem:[%s2977_s5 + $0x1a8] sm:$0xff] }
  0x1c   : > { %2190 = vmatmul.msk.bf16.vlgmr.msra.gmra.mxu0 %vm669_vm0, %v2271_v3  ;;  %2206 = vmatmul.msk.bf16.vlgmr.msra.gmra.mxu1 %vm669_vm0, %v2287_v4  ;;  %v2277_v27 = vld [vmem:[%s2977_s5 + $0x30] sm:$0xff]  ;;  %v2278_v31 = vld [vmem:[%s2977_s5 + $0x38] sm:$0xff]  ;;  %v2279_v35 = vld [vmem:[%s2977_s5 + $0x40] sm:$0xff] }
  0x1d   : > { %2222 = vmatmul.msk.bf16.vlgmr.msra.gmra.mxu2 %vm669_vm0, %v2303_v5  ;;  %2238 = vmatmul.msk.bf16.vlgmr.msra.gmra.mxu3 %vm669_vm0, %v2319_v6  ;;  %v2293_v28 = vld [vmem:[%s2977_s5 + $0xb0] sm:$0xff]  ;;  %v2294_v32 = vld [vmem:[%s2977_s5 + $0xb8] sm:$0xff]  ;;  %v2295_v36 = vld [vmem:[%s2977_s5 + $0xc0] sm:$0xff] }
  0x1e   : > { %v2309_v29 = vld [vmem:[%s2977_s5 + $0x130] sm:$0xff]  ;;  %v2310_v33 = vld [vmem:[%s2977_s5 + $0x138] sm:$0xff]  ;;  %v2311_v39 = vld [vmem:[%s2977_s5 + $0x140] sm:$0xff] }
  0x1f   : > { %v2325_v30 = vld [vmem:[%s2977_s5 + $0x1b0] sm:$0xff]  ;;  %v2326_v34 = vld [vmem:[%s2977_s5 + $0x1b8] sm:$0xff]  ;;  %v2327_v40 = vld [vmem:[%s2977_s5 + $0x1c0] sm:$0xff] }
  0x20   : > { %v2280_v60 = vld [vmem:[%s2977_s5 + $0x48] sm:$0xff] }
  0x21   : > { %v2296_v61 = vld [vmem:[%s2977_s5 + $0xc8] sm:$0xff] }
  0x22   : > { %v2312_v2 = vld [vmem:[%s2977_s5 + $0x148] sm:$0xff] }
  0x23   : > { %v2328_v3 = vld [vmem:[%s2977_s5 + $0x1c8] sm:$0xff] }
  0x2c   : > { %2191 = vmatmul.msk.bf16.gmra.mxu0 %vm669_vm0, %v2272_v7  ;;  %2207 = vmatmul.msk.bf16.gmra.mxu1 %vm669_vm0, %v2288_v8 }
  0x2d   : > { %2223 = vmatmul.msk.bf16.gmra.mxu2 %vm669_vm0, %v2304_v9  ;;  %2239 = vmatmul.msk.bf16.gmra.mxu3 %vm669_vm0, %v2320_v10 }
  0x3c   : > { %2192 = vmatmul.msk.bf16.gmra.mxu0 %vm669_vm0, %v2273_v11  ;;  %2208 = vmatmul.msk.bf16.gmra.mxu1 %vm669_vm0, %v2289_v12 }
  0x3d   : > { %2224 = vmatmul.msk.bf16.gmra.mxu2 %vm669_vm0, %v2305_v13  ;;  %2240 = vmatmul.msk.bf16.gmra.mxu3 %vm669_vm0, %v2321_v14 }
  0x4c   : > { %2193 = vmatmul.msk.bf16.gmra.mxu0 %vm669_vm0, %v2274_v15  ;;  %2209 = vmatmul.msk.bf16.gmra.mxu1 %vm669_vm0, %v2290_v16 }
  0x4d   : > { %2225 = vmatmul.msk.bf16.gmra.mxu2 %vm669_vm0, %v2306_v17  ;;  %2241 = vmatmul.msk.bf16.gmra.mxu3 %vm669_vm0, %v2322_v18 }
  0x5c   : > { %2194 = vmatmul.msk.bf16.gmra.mxu0 %vm669_vm0, %v2275_v19  ;;  %2210 = vmatmul.msk.bf16.gmra.mxu1 %vm669_vm0, %v2291_v20 }
  0x5d   : > { %2226 = vmatmul.msk.bf16.gmra.mxu2 %vm669_vm0, %v2307_v21  ;;  %2242 = vmatmul.msk.bf16.gmra.mxu3 %vm669_vm0, %v2323_v22 }
  0x6c   : > { %2195 = vmatmul.msk.bf16.gmra.mxu0 %vm669_vm0, %v2276_v23  ;;  %2211 = vmatmul.msk.bf16.gmra.mxu1 %vm669_vm0, %v2292_v24 }
  0x6d   : > { %2227 = vmatmul.msk.bf16.gmra.mxu2 %vm669_vm0, %v2308_v25  ;;  %2243 = vmatmul.msk.bf16.gmra.mxu3 %vm669_vm0, %v2324_v26 }
  0x7c   : > { %2196 = vmatmul.msk.bf16.gmra.mxu0 %vm669_vm0, %v2277_v27  ;;  %2212 = vmatmul.msk.bf16.gmra.mxu1 %vm669_vm0, %v2293_v28  ;;  %v2281_v28 = vld [vmem:[%s2977_s5 + $0x50] sm:$0xff] }
  0x7d   : > { %2228 = vmatmul.msk.bf16.gmra.mxu2 %vm669_vm0, %v2309_v29  ;;  %2244 = vmatmul.msk.bf16.gmra.mxu3 %vm669_vm0, %v2325_v30  ;;  %v2297_v29 = vld [vmem:[%s2977_s5 + $0xd0] sm:$0xff] }
  0x8c   : > { %2197 = vmatmul.msk.bf16.gmra.mxu0 %vm669_vm0, %v2278_v31  ;;  %2213 = vmatmul.msk.bf16.gmra.mxu1 %vm669_vm0, %v2294_v32 }
  0x8d   : > { %2229 = vmatmul.msk.bf16.gmra.mxu2 %vm669_vm0, %v2310_v33  ;;  %2245 = vmatmul.msk.bf16.gmra.mxu3 %vm669_vm0, %v2326_v34  ;;  %v2313_v34 = vld [vmem:[%s2977_s5 + $0x150] sm:$0xff] }
  0x99   : > { %v871_v37 = vpop.f32.mrf.mxu0  ;;  %v951_v38 = vpop.f32.mrf.mxu1 }
  0x9a   : > { %v872_v42 = vadd.f32 %v3050_v41, %v871_v37  ;;  %v952_v43 = vadd.f32 %v3050_v41, %v951_v38 }
  0x9c   : > { %2198 = vmatmul.msk.bf16.gmra.mxu0 %vm669_vm0, %v2279_v35  ;;  %2214 = vmatmul.msk.bf16.gmra.mxu1 %vm669_vm0, %v2295_v36  ;;  %v1191_v50 = vmax.f32 %v872_v42, 0.0  ;;  %v1223_v51 = vmax.f32 %v952_v43, 0.0  ;;  %v2329_v35 = vld [vmem:[%s2977_s5 + $0x1d0] sm:$0xff] }
  0x9d   : > { %2230 = vmatmul.msk.bf16.gmra.mxu2 %vm669_vm0, %v2311_v39  ;;  %2246 = vmatmul.msk.bf16.gmra.mxu3 %vm669_vm0, %v2327_v40 }
  0xa0   : > { %v1031_v44 = vpop.f32.mrf.mxu2  ;;  %v1111_v45 = vpop.f32.mrf.mxu3 }
  0xa1   : > { %v873_v46 = vpop.f32.mrf.mxu0  ;;  %v953_v47 = vpop.f32.mrf.mxu1  ;;  %v1032_v56 = vadd.f32 %v3050_v41, %v1031_v44  ;;  %v1112_v57 = vadd.f32 %v3050_v41, %v1111_v45 }
  0xa2   : > { %v874_v48 = vadd.f32 %v3050_v41, %v873_v46  ;;  %v954_v49 = vadd.f32 %v3050_v41, %v953_v47 }
  0xa3   : > { %v1255_v4 = vmax.f32 %v1032_v56, 0.0  ;;  %v1287_v5 = vmax.f32 %v1112_v57, 0.0 }
  0xa4   : > { %v1192_v52 = vmax.f32 %v874_v48, 0.0  ;;  %v1224_v53 = vmax.f32 %v954_v49, 0.0 }
  0xa6   : > { %v2344_v54 = vpack.c.bf16 %v1192_v52, %v1191_v50  ;;  %v2424_v55 = vpack.c.bf16 %v1224_v53, %v1223_v51 }
  0xa8   : > { %2345 = vst [vmem:[%s3063_s10] sm:$0xff] %v2344_v54   ;;  %v1033_v58 = vpop.f32.mrf.mxu2  ;;  %v1113_v59 = vpop.f32.mrf.mxu3 }
  0xa9   : > { %2676 = vst [vmem:[%s3063_s10 + $0x80] sm:$0xff] %v2424_v55   ;;  %v1034_v62 = vadd.f32 %v3050_v41, %v1033_v58  ;;  %v1114_v63 = vadd.f32 %v3050_v41, %v1113_v59  ;;  %v876_v0 = vpop.f32.mrf.mxu0  ;;  %v956_v1 = vpop.f32.mrf.mxu1 }
  0xaa   : > { %v877_v10 = vadd.f32 %v3050_v41, %v876_v0  ;;  %v957_v11 = vadd.f32 %v3050_v41, %v956_v1 }
  0xab   : > { %v1256_v6 = vmax.f32 %v1034_v62, 0.0  ;;  %v1288_v7 = vmax.f32 %v1114_v63, 0.0  ;;  %v2298_v62 = vld [vmem:[%s2977_s5 + $0xd8] sm:$0xff] }
  0xac   : > { %2199 = vmatmul.msk.bf16.gmra.mxu0 %vm669_vm0, %v2280_v60  ;;  %2215 = vmatmul.msk.bf16.gmra.mxu1 %vm669_vm0, %v2296_v61  ;;  %v1193_v18 = vmax.f32 %v877_v10, 0.0  ;;  %v1225_v19 = vmax.f32 %v957_v11, 0.0  ;;  %v2282_v61 = vld [vmem:[%s2977_s5 + $0x58] sm:$0xff] }
  0xad   : > { %v2504_v8 = vpack.c.bf16 %v1256_v6, %v1255_v4  ;;  %v2584_v9 = vpack.c.bf16 %v1288_v7, %v1287_v5  ;;  %2231 = vmatmul.msk.bf16.gmra.mxu2 %vm669_vm0, %v2312_v2  ;;  %2247 = vmatmul.msk.bf16.gmra.mxu3 %vm669_vm0, %v2328_v3  ;;  %v2314_v3 = vld [vmem:[%s2977_s5 + $0x158] sm:$0xff] }
  0xae   : > { %v2330_v4 = vld [vmem:[%s2977_s5 + $0x1d8] sm:$0xff] }
  0xaf   : > { %2692 = vst [vmem:[%s3063_s10 + $0x100] sm:$0xff] %v2504_v8  }
  0xb0   : > { %2708 = vst [vmem:[%s3063_s10 + $0x180] sm:$0xff] %v2584_v9   ;;  %v1036_v12 = vpop.f32.mrf.mxu2  ;;  %v1116_v13 = vpop.f32.mrf.mxu3 }
  0xb1   : > { %v878_v14 = vpop.f32.mrf.mxu0  ;;  %v958_v15 = vpop.f32.mrf.mxu1  ;;  %v1037_v24 = vadd.f32 %v3050_v41, %v1036_v12  ;;  %v1117_v25 = vadd.f32 %v3050_v41, %v1116_v13 }
  0xb2   : > { %v879_v16 = vadd.f32 %v3050_v41, %v878_v14  ;;  %v959_v17 = vadd.f32 %v3050_v41, %v958_v15 }
  0xb3   : > { %v1257_v36 = vmax.f32 %v1037_v24, 0.0  ;;  %v1289_v37 = vmax.f32 %v1117_v25, 0.0 }
  0xb4   : > { %v1194_v20 = vmax.f32 %v879_v16, 0.0  ;;  %v1226_v21 = vmax.f32 %v959_v17, 0.0 }
  0xb6   : > { %v2349_v22 = vpack.c.bf16 %v1194_v20, %v1193_v18  ;;  %v2429_v23 = vpack.c.bf16 %v1226_v21, %v1225_v19 }
  0xb8   : > { %2661 = vst [vmem:[%s3063_s10 + $0x8] sm:$0xff] %v2349_v22   ;;  %v1038_v26 = vpop.f32.mrf.mxu2  ;;  %v1118_v27 = vpop.f32.mrf.mxu3 }
  0xb9   : > { %2677 = vst [vmem:[%s3063_s10 + $0x88] sm:$0xff] %v2429_v23   ;;  %v1039_v30 = vadd.f32 %v3050_v41, %v1038_v26  ;;  %v1119_v31 = vadd.f32 %v3050_v41, %v1118_v27  ;;  %v881_v32 = vpop.f32.mrf.mxu0  ;;  %v961_v33 = vpop.f32.mrf.mxu1 }
  0xba   : > { %v882_v43 = vadd.f32 %v3050_v41, %v881_v32  ;;  %v962_v44 = vadd.f32 %v3050_v41, %v961_v33 }
  0xbb   : > { %v1258_v38 = vmax.f32 %v1039_v30, 0.0  ;;  %v1290_v39 = vmax.f32 %v1119_v31, 0.0  ;;  %v2299_v30 = vld [vmem:[%s2977_s5 + $0xe0] sm:$0xff] }
  0xbc   : > { %2200 = vmatmul.msk.bf16.gmra.mxu0 %vm669_vm0, %v2281_v28  ;;  %2216 = vmatmul.msk.bf16.gmra.mxu1 %vm669_vm0, %v2297_v29  ;;  %v1195_v51 = vmax.f32 %v882_v43, 0.0  ;;  %v1227_v52 = vmax.f32 %v962_v44, 0.0  ;;  %v2283_v29 = vld [vmem:[%s2977_s5 + $0x60] sm:$0xff] }
  0xbd   : > { %v2509_v40 = vpack.c.bf16 %v1258_v38, %v1257_v36  ;;  %v2589_v42 = vpack.c.bf16 %v1290_v39, %v1289_v37  ;;  %2232 = vmatmul.msk.bf16.gmra.mxu2 %vm669_vm0, %v2313_v34  ;;  %2248 = vmatmul.msk.bf16.gmra.mxu3 %vm669_vm0, %v2329_v35  ;;  %v2315_v35 = vld [vmem:[%s2977_s5 + $0x160] sm:$0xff] }
  0xbe   : > { %v2331_v36 = vld [vmem:[%s2977_s5 + $0x1e0] sm:$0xff] }
  0xbf   : > { %2693 = vst [vmem:[%s3063_s10 + $0x108] sm:$0xff] %v2509_v40  }
  0xc0   : > { %2709 = vst [vmem:[%s3063_s10 + $0x188] sm:$0xff] %v2589_v42   ;;  %v1041_v45 = vpop.f32.mrf.mxu2  ;;  %v1121_v46 = vpop.f32.mrf.mxu3 }
  0xc1   : > { %v883_v47 = vpop.f32.mrf.mxu0  ;;  %v963_v48 = vpop.f32.mrf.mxu1  ;;  %v1042_v57 = vadd.f32 %v3050_v41, %v1041_v45  ;;  %v1122_v58 = vadd.f32 %v3050_v41, %v1121_v46 }
  0xc2   : > { %v884_v49 = vadd.f32 %v3050_v41, %v883_v47  ;;  %v964_v50 = vadd.f32 %v3050_v41, %v963_v48 }
  0xc3   : > { %v1259_v5 = vmax.f32 %v1042_v57, 0.0  ;;  %v1291_v6 = vmax.f32 %v1122_v58, 0.0 }
  0xc4   : > { %v1196_v53 = vmax.f32 %v884_v49, 0.0  ;;  %v1228_v54 = vmax.f32 %v964_v50, 0.0 }
  0xc6   : > { %v2354_v55 = vpack.c.bf16 %v1196_v53, %v1195_v51  ;;  %v2434_v56 = vpack.c.bf16 %v1228_v54, %v1227_v52 }
  0xc8   : > { %2662 = vst [vmem:[%s3063_s10 + $0x10] sm:$0xff] %v2354_v55   ;;  %v1043_v59 = vpop.f32.mrf.mxu2  ;;  %v1123_v60 = vpop.f32.mrf.mxu3 }
  0xc9   : > { %2678 = vst [vmem:[%s3063_s10 + $0x90] sm:$0xff] %v2434_v56   ;;  %v1044_v63 = vadd.f32 %v3050_v41, %v1043_v59  ;;  %v1124_v0 = vadd.f32 %v3050_v41, %v1123_v60  ;;  %v886_v1 = vpop.f32.mrf.mxu0  ;;  %v966_v2 = vpop.f32.mrf.mxu1 }
  0xca   : > { %v887_v11 = vadd.f32 %v3050_v41, %v886_v1  ;;  %v967_v12 = vadd.f32 %v3050_v41, %v966_v2 }
  0xcb   : > { %v1260_v7 = vmax.f32 %v1044_v63, 0.0  ;;  %v1292_v8 = vmax.f32 %v1124_v0, 0.0  ;;  %v2300_v63 = vld [vmem:[%s2977_s5 + $0xe8] sm:$0xff] }
  0xcc   : > { %2201 = vmatmul.msk.bf16.gmra.mxu0 %vm669_vm0, %v2282_v61  ;;  %2217 = vmatmul.msk.bf16.gmra.mxu1 %vm669_vm0, %v2298_v62  ;;  %v1197_v19 = vmax.f32 %v887_v11, 0.0  ;;  %v1229_v20 = vmax.f32 %v967_v12, 0.0  ;;  %v2284_v62 = vld [vmem:[%s2977_s5 + $0x68] sm:$0xff] }
  0xcd   : > { %v2514_v9 = vpack.c.bf16 %v1260_v7, %v1259_v5  ;;  %v2594_v10 = vpack.c.bf16 %v1292_v8, %v1291_v6  ;;  %2233 = vmatmul.msk.bf16.gmra.mxu2 %vm669_vm0, %v2314_v3  ;;  %2249 = vmatmul.msk.bf16.gmra.mxu3 %vm669_vm0, %v2330_v4  ;;  %v2316_v4 = vld [vmem:[%s2977_s5 + $0x168] sm:$0xff] }
  0xce   : > { %v2332_v5 = vld [vmem:[%s2977_s5 + $0x1e8] sm:$0xff] }
  0xcf   : > { %2694 = vst [vmem:[%s3063_s10 + $0x110] sm:$0xff] %v2514_v9  }
  0xd0   : > { %2710 = vst [vmem:[%s3063_s10 + $0x190] sm:$0xff] %v2594_v10   ;;  %v1046_v13 = vpop.f32.mrf.mxu2  ;;  %v1126_v14 = vpop.f32.mrf.mxu3 }
  0xd1   : > { %v888_v15 = vpop.f32.mrf.mxu0  ;;  %v968_v16 = vpop.f32.mrf.mxu1  ;;  %v1047_v25 = vadd.f32 %v3050_v41, %v1046_v13  ;;  %v1127_v26 = vadd.f32 %v3050_v41, %v1126_v14 }
  0xd2   : > { %v889_v17 = vadd.f32 %v3050_v41, %v888_v15  ;;  %v969_v18 = vadd.f32 %v3050_v41, %v968_v16 }
  0xd3   : > { %v1261_v37 = vmax.f32 %v1047_v25, 0.0  ;;  %v1293_v38 = vmax.f32 %v1127_v26, 0.0 }
  0xd4   : > { %v1198_v21 = vmax.f32 %v889_v17, 0.0  ;;  %v1230_v22 = vmax.f32 %v969_v18, 0.0 }
  0xd6   : > { %v2359_v23 = vpack.c.bf16 %v1198_v21, %v1197_v19  ;;  %v2439_v24 = vpack.c.bf16 %v1230_v22, %v1229_v20 }
  0xd8   : > { %2663 = vst [vmem:[%s3063_s10 + $0x18] sm:$0xff] %v2359_v23   ;;  %v1048_v27 = vpop.f32.mrf.mxu2  ;;  %v1128_v28 = vpop.f32.mrf.mxu3 }
  0xd9   : > { %2679 = vst [vmem:[%s3063_s10 + $0x98] sm:$0xff] %v2439_v24   ;;  %v1049_v31 = vadd.f32 %v3050_v41, %v1048_v27  ;;  %v1129_v32 = vadd.f32 %v3050_v41, %v1128_v28  ;;  %v891_v33 = vpop.f32.mrf.mxu0  ;;  %v971_v34 = vpop.f32.mrf.mxu1 }
  0xda   : > { %v892_v44 = vadd.f32 %v3050_v41, %v891_v33  ;;  %v972_v45 = vadd.f32 %v3050_v41, %v971_v34 }
  0xdb   : > { %v1262_v39 = vmax.f32 %v1049_v31, 0.0  ;;  %v1294_v40 = vmax.f32 %v1129_v32, 0.0  ;;  %v2301_v31 = vld [vmem:[%s2977_s5 + $0xf0] sm:$0xff] }
  0xdc   : > { %2202 = vmatmul.msk.bf16.gmra.mxu0 %vm669_vm0, %v2283_v29  ;;  %2218 = vmatmul.msk.bf16.gmra.mxu1 %vm669_vm0, %v2299_v30  ;;  %v1199_v52 = vmax.f32 %v892_v44, 0.0  ;;  %v1231_v53 = vmax.f32 %v972_v45, 0.0  ;;  %v2285_v30 = vld [vmem:[%s2977_s5 + $0x70] sm:$0xff] }
  0xdd   : > { %v2519_v42 = vpack.c.bf16 %v1262_v39, %v1261_v37  ;;  %v2599_v43 = vpack.c.bf16 %v1294_v40, %v1293_v38  ;;  %2234 = vmatmul.msk.bf16.gmra.mxu2 %vm669_vm0, %v2315_v35  ;;  %2250 = vmatmul.msk.bf16.gmra.mxu3 %vm669_vm0, %v2331_v36  ;;  %v2317_v36 = vld [vmem:[%s2977_s5 + $0x170] sm:$0xff] }
  0xde   : > { %v2333_v37 = vld [vmem:[%s2977_s5 + $0x1f0] sm:$0xff] }
  0xdf   : > { %2695 = vst [vmem:[%s3063_s10 + $0x118] sm:$0xff] %v2519_v42  }
  0xe0   : > { %2711 = vst [vmem:[%s3063_s10 + $0x198] sm:$0xff] %v2599_v43   ;;  %v1051_v46 = vpop.f32.mrf.mxu2  ;;  %v1131_v47 = vpop.f32.mrf.mxu3 }
  0xe1   : > { %v893_v48 = vpop.f32.mrf.mxu0  ;;  %v973_v49 = vpop.f32.mrf.mxu1  ;;  %v1052_v58 = vadd.f32 %v3050_v41, %v1051_v46  ;;  %v1132_v59 = vadd.f32 %v3050_v41, %v1131_v47 }
  0xe2   : > { %v894_v50 = vadd.f32 %v3050_v41, %v893_v48  ;;  %v974_v51 = vadd.f32 %v3050_v41, %v973_v49 }
  0xe3   : > { %v1263_v6 = vmax.f32 %v1052_v58, 0.0  ;;  %v1295_v7 = vmax.f32 %v1132_v59, 0.0 }
  0xe4   : > { %v1200_v54 = vmax.f32 %v894_v50, 0.0  ;;  %v1232_v55 = vmax.f32 %v974_v51, 0.0 }
  0xe6   : > { %v2364_v56 = vpack.c.bf16 %v1200_v54, %v1199_v52  ;;  %v2444_v57 = vpack.c.bf16 %v1232_v55, %v1231_v53 }
  0xe8   : > { %2664 = vst [vmem:[%s3063_s10 + $0x20] sm:$0xff] %v2364_v56   ;;  %v1053_v60 = vpop.f32.mrf.mxu2  ;;  %v1133_v61 = vpop.f32.mrf.mxu3 }
  0xe9   : > { %2680 = vst [vmem:[%s3063_s10 + $0xa0] sm:$0xff] %v2444_v57   ;;  %v1054_v0 = vadd.f32 %v3050_v41, %v1053_v60  ;;  %v1134_v1 = vadd.f32 %v3050_v41, %v1133_v61  ;;  %v896_v2 = vpop.f32.mrf.mxu0  ;;  %v976_v3 = vpop.f32.mrf.mxu1 }
  0xea   : > { %v897_v12 = vadd.f32 %v3050_v41, %v896_v2  ;;  %v977_v13 = vadd.f32 %v3050_v41, %v976_v3 }
  0xeb   : > { %v1264_v8 = vmax.f32 %v1054_v0, 0.0  ;;  %v1296_v9 = vmax.f32 %v1134_v1, 0.0  ;;  %v2302_v0 = vld [vmem:[%s2977_s5 + $0xf8] sm:$0xff] }
  0xec   : > { %2203 = vmatmul.msk.bf16.gmra.mxu0 %vm669_vm0, %v2284_v62  ;;  %2219 = vmatmul.msk.bf16.gmra.mxu1 %vm669_vm0, %v2300_v63  ;;  %v1201_v20 = vmax.f32 %v897_v12, 0.0  ;;  %v1233_v21 = vmax.f32 %v977_v13, 0.0  ;;  %v2286_v63 = vld [vmem:[%s2977_s5 + $0x78] sm:$0xff] }
  0xed   : > { %v2524_v10 = vpack.c.bf16 %v1264_v8, %v1263_v6  ;;  %v2604_v11 = vpack.c.bf16 %v1296_v9, %v1295_v7  ;;  %2235 = vmatmul.msk.bf16.gmra.mxu2 %vm669_vm0, %v2316_v4  ;;  %2251 = vmatmul.msk.bf16.gmra.mxu3 %vm669_vm0, %v2332_v5  ;;  %v2318_v5 = vld [vmem:[%s2977_s5 + $0x178] sm:$0xff] }
  0xee   : > { %v2334_v6 = vld [vmem:[%s2977_s5 + $0x1f8] sm:$0xff] }
  0xef   : > { %2696 = vst [vmem:[%s3063_s10 + $0x120] sm:$0xff] %v2524_v10  }
  0xf0   : > { %2712 = vst [vmem:[%s3063_s10 + $0x1a0] sm:$0xff] %v2604_v11   ;;  %v1056_v14 = vpop.f32.mrf.mxu2  ;;  %v1136_v15 = vpop.f32.mrf.mxu3 }
  0xf1   : > { %v898_v16 = vpop.f32.mrf.mxu0  ;;  %v978_v17 = vpop.f32.mrf.mxu1  ;;  %v1057_v26 = vadd.f32 %v3050_v41, %v1056_v14  ;;  %v1137_v27 = vadd.f32 %v3050_v41, %v1136_v15 }
  0xf2   : > { %v899_v18 = vadd.f32 %v3050_v41, %v898_v16  ;;  %v979_v19 = vadd.f32 %v3050_v41, %v978_v17 }
  0xf3   : > { %v1265_v38 = vmax.f32 %v1057_v26, 0.0  ;;  %v1297_v39 = vmax.f32 %v1137_v27, 0.0 }
  0xf4   : > { %v1202_v22 = vmax.f32 %v899_v18, 0.0  ;;  %v1234_v23 = vmax.f32 %v979_v19, 0.0 }
  0xf6   : > { %v2369_v24 = vpack.c.bf16 %v1202_v22, %v1201_v20  ;;  %v2449_v25 = vpack.c.bf16 %v1234_v23, %v1233_v21 }
  0xf8   : > { %2665 = vst [vmem:[%s3063_s10 + $0x28] sm:$0xff] %v2369_v24   ;;  %v1058_v28 = vpop.f32.mrf.mxu2  ;;  %v1138_v29 = vpop.f32.mrf.mxu3 }
  0xf9   : > { %2681 = vst [vmem:[%s3063_s10 + $0xa8] sm:$0xff] %v2449_v25   ;;  %v1059_v32 = vadd.f32 %v3050_v41, %v1058_v28  ;;  %v1139_v33 = vadd.f32 %v3050_v41, %v1138_v29  ;;  %v901_v34 = vpop.f32.mrf.mxu0  ;;  %v981_v35 = vpop.f32.mrf.mxu1 }
  0xfa   : > { %v902_v45 = vadd.f32 %v3050_v41, %v901_v34  ;;  %v982_v46 = vadd.f32 %v3050_v41, %v981_v35 }
  0xfb   : > { %v1266_v40 = vmax.f32 %v1059_v32, 0.0  ;;  %v1298_v42 = vmax.f32 %v1139_v33, 0.0 }
  0xfc   : > { %2204 = vmatmul.msk.bf16.gmra.mxu0 %vm669_vm0, %v2285_v30  ;;  %2220 = vmatmul.msk.bf16.gmra.mxu1 %vm669_vm0, %v2301_v31  ;;  %v1203_v53 = vmax.f32 %v902_v45, 0.0  ;;  %v1235_v54 = vmax.f32 %v982_v46, 0.0 }
  0xfd   : > { %v2529_v43 = vpack.c.bf16 %v1266_v40, %v1265_v38  ;;  %v2609_v44 = vpack.c.bf16 %v1298_v42, %v1297_v39  ;;  %2236 = vmatmul.msk.bf16.gmra.mxu2 %vm669_vm0, %v2317_v36  ;;  %2252 = vmatmul.msk.bf16.gmra.mxu3 %vm669_vm0, %v2333_v37 }
  0xff   : > { %2697 = vst [vmem:[%s3063_s10 + $0x128] sm:$0xff] %v2529_v43  }
 0x100   : > { %2713 = vst [vmem:[%s3063_s10 + $0x1a8] sm:$0xff] %v2609_v44   ;;  %v1061_v47 = vpop.f32.mrf.mxu2  ;;  %v1141_v48 = vpop.f32.mrf.mxu3 }
 0x101   : > { %v903_v49 = vpop.f32.mrf.mxu0  ;;  %v983_v50 = vpop.f32.mrf.mxu1  ;;  %v1062_v59 = vadd.f32 %v3050_v41, %v1061_v47  ;;  %v1142_v60 = vadd.f32 %v3050_v41, %v1141_v48 }
 0x102   : > { %v904_v51 = vadd.f32 %v3050_v41, %v903_v49  ;;  %v984_v52 = vadd.f32 %v3050_v41, %v983_v50 }
 0x103   : > { %v1267_v7 = vmax.f32 %v1062_v59, 0.0  ;;  %v1299_v8 = vmax.f32 %v1142_v60, 0.0 }
 0x104   : > { %v1204_v55 = vmax.f32 %v904_v51, 0.0  ;;  %v1236_v56 = vmax.f32 %v984_v52, 0.0 }
 0x106   : > { %v2374_v57 = vpack.c.bf16 %v1204_v55, %v1203_v53  ;;  %v2454_v58 = vpack.c.bf16 %v1236_v56, %v1235_v54 }
 0x108   : > { %2666 = vst [vmem:[%s3063_s10 + $0x30] sm:$0xff] %v2374_v57   ;;  %v1063_v61 = vpop.f32.mrf.mxu2  ;;  %v1143_v62 = vpop.f32.mrf.mxu3 }
 0x109   : > { %2682 = vst [vmem:[%s3063_s10 + $0xb0] sm:$0xff] %v2454_v58   ;;  %v1064_v1 = vadd.f32 %v3050_v41, %v1063_v61  ;;  %v1144_v2 = vadd.f32 %v3050_v41, %v1143_v62  ;;  %v906_v3 = vpop.f32.mrf.mxu0  ;;  %v986_v4 = vpop.f32.mrf.mxu1 }
 0x10a   : > { %v907_v13 = vadd.f32 %v3050_v41, %v906_v3  ;;  %v987_v14 = vadd.f32 %v3050_v41, %v986_v4 }
 0x10b   : > { %v1268_v9 = vmax.f32 %v1064_v1, 0.0  ;;  %v1300_v10 = vmax.f32 %v1144_v2, 0.0 }
 0x10c   : > { %2205 = vmatmul.msk.bf16.gmra.mxu0 %vm669_vm0, %v2286_v63  ;;  %2221 = vmatmul.msk.bf16.gmra.mxu1 %vm669_vm0, %v2302_v0  ;;  %v1205_v21 = vmax.f32 %v907_v13, 0.0  ;;  %v1237_v22 = vmax.f32 %v987_v14, 0.0 }
 0x10d   : > { %v2534_v11 = vpack.c.bf16 %v1268_v9, %v1267_v7  ;;  %v2614_v12 = vpack.c.bf16 %v1300_v10, %v1299_v8  ;;  %2237 = vmatmul.msk.bf16.gmra.mxu2 %vm669_vm0, %v2318_v5  ;;  %2253 = vmatmul.msk.bf16.gmra.mxu3 %vm669_vm0, %v2334_v6 }
 0x10f   : > { %2698 = vst [vmem:[%s3063_s10 + $0x130] sm:$0xff] %v2534_v11  }
 0x110   : > { %2714 = vst [vmem:[%s3063_s10 + $0x1b0] sm:$0xff] %v2614_v12   ;;  %v1066_v15 = vpop.f32.mrf.mxu2  ;;  %v1146_v16 = vpop.f32.mrf.mxu3 }
 0x111   : > { %v908_v17 = vpop.f32.mrf.mxu0  ;;  %v988_v18 = vpop.f32.mrf.mxu1  ;;  %v1067_v27 = vadd.f32 %v3050_v41, %v1066_v15  ;;  %v1147_v28 = vadd.f32 %v3050_v41, %v1146_v16 }
 0x112   : > { %v909_v19 = vadd.f32 %v3050_v41, %v908_v17  ;;  %v989_v20 = vadd.f32 %v3050_v41, %v988_v18 }
 0x113   : > { %v1269_v35 = vmax.f32 %v1067_v27, 0.0  ;;  %v1301_v36 = vmax.f32 %v1147_v28, 0.0 }
 0x114   : > { %v1206_v23 = vmax.f32 %v909_v19, 0.0  ;;  %v1238_v24 = vmax.f32 %v989_v20, 0.0 }
 0x116   : > { %v2379_v25 = vpack.c.bf16 %v1206_v23, %v1205_v21  ;;  %v2459_v26 = vpack.c.bf16 %v1238_v24, %v1237_v22 }
 0x118   : > { %2667 = vst [vmem:[%s3063_s10 + $0x38] sm:$0xff] %v2379_v25   ;;  %v1068_v29 = vpop.f32.mrf.mxu2  ;;  %v1148_v30 = vpop.f32.mrf.mxu3 }
 0x119   : > { %2683 = vst [vmem:[%s3063_s10 + $0xb8] sm:$0xff] %v2459_v26   ;;  %v1069_v31 = vadd.f32 %v3050_v41, %v1068_v29  ;;  %v1149_v32 = vadd.f32 %v3050_v41, %v1148_v30  ;;  %v911_v33 = vpop.f32.mrf.mxu0  ;;  %v991_v34 = vpop.f32.mrf.mxu1 }
 0x11a   : > { %v912_v42 = vadd.f32 %v3050_v41, %v911_v33  ;;  %v992_v43 = vadd.f32 %v3050_v41, %v991_v34 }
 0x11b   : > { %v1270_v37 = vmax.f32 %v1069_v31, 0.0  ;;  %v1302_v38 = vmax.f32 %v1149_v32, 0.0 }
 0x11c   : > { %v1207_v50 = vmax.f32 %v912_v42, 0.0  ;;  %v1239_v51 = vmax.f32 %v992_v43, 0.0 }
 0x11d   : > { %v2539_v39 = vpack.c.bf16 %v1270_v37, %v1269_v35  ;;  %v2619_v40 = vpack.c.bf16 %v1302_v38, %v1301_v36 }
 0x11f   : > { %2699 = vst [vmem:[%s3063_s10 + $0x138] sm:$0xff] %v2539_v39  }
 0x120   : > { %2715 = vst [vmem:[%s3063_s10 + $0x1b8] sm:$0xff] %v2619_v40   ;;  %v1071_v44 = vpop.f32.mrf.mxu2  ;;  %v1151_v45 = vpop.f32.mrf.mxu3 }
 0x121   : > { %v913_v46 = vpop.f32.mrf.mxu0  ;;  %v993_v47 = vpop.f32.mrf.mxu1  ;;  %v1072_v56 = vadd.f32 %v3050_v41, %v1071_v44  ;;  %v1152_v57 = vadd.f32 %v3050_v41, %v1151_v45 }
 0x122   : > { %v914_v48 = vadd.f32 %v3050_v41, %v913_v46  ;;  %v994_v49 = vadd.f32 %v3050_v41, %v993_v47 }
 0x123   : > { %v1271_v0 = vmax.f32 %v1072_v56, 0.0  ;;  %v1303_v1 = vmax.f32 %v1152_v57, 0.0 }
 0x124   : > { %v1208_v52 = vmax.f32 %v914_v48, 0.0  ;;  %v1240_v53 = vmax.f32 %v994_v49, 0.0 }
 0x126   : > { %v2384_v54 = vpack.c.bf16 %v1208_v52, %v1207_v50  ;;  %v2464_v55 = vpack.c.bf16 %v1240_v53, %v1239_v51 }
 0x128   : > { %2668 = vst [vmem:[%s3063_s10 + $0x40] sm:$0xff] %v2384_v54   ;;  %v1073_v58 = vpop.f32.mrf.mxu2  ;;  %v1153_v59 = vpop.f32.mrf.mxu3 }
 0x129   : > { %2684 = vst [vmem:[%s3063_s10 + $0xc0] sm:$0xff] %v2464_v55   ;;  %v1074_v60 = vadd.f32 %v3050_v41, %v1073_v58  ;;  %v1154_v61 = vadd.f32 %v3050_v41, %v1153_v59  ;;  %v916_v62 = vpop.f32.mrf.mxu0  ;;  %v996_v63 = vpop.f32.mrf.mxu1 }
 0x12a   : > { %v917_v6 = vadd.f32 %v3050_v41, %v916_v62  ;;  %v997_v7 = vadd.f32 %v3050_v41, %v996_v63 }
 0x12b   : > { %v1272_v2 = vmax.f32 %v1074_v60, 0.0  ;;  %v1304_v3 = vmax.f32 %v1154_v61, 0.0 }
 0x12c   : > { %v1209_v14 = vmax.f32 %v917_v6, 0.0  ;;  %v1241_v15 = vmax.f32 %v997_v7, 0.0 }
 0x12d   : > { %v2544_v4 = vpack.c.bf16 %v1272_v2, %v1271_v0  ;;  %v2624_v5 = vpack.c.bf16 %v1304_v3, %v1303_v1 }
 0x12f   : > { %2700 = vst [vmem:[%s3063_s10 + $0x140] sm:$0xff] %v2544_v4  }
 0x130   : > { %2716 = vst [vmem:[%s3063_s10 + $0x1c0] sm:$0xff] %v2624_v5   ;;  %v1076_v8 = vpop.f32.mrf.mxu2  ;;  %v1156_v9 = vpop.f32.mrf.mxu3 }
 0x131   : > { %v918_v10 = vpop.f32.mrf.mxu0  ;;  %v998_v11 = vpop.f32.mrf.mxu1  ;;  %v1077_v20 = vadd.f32 %v3050_v41, %v1076_v8  ;;  %v1157_v21 = vadd.f32 %v3050_v41, %v1156_v9 }
 0x132   : > { %v919_v12 = vadd.f32 %v3050_v41, %v918_v10  ;;  %v999_v13 = vadd.f32 %v3050_v41, %v998_v11 }
 0x133   : > { %v1273_v28 = vmax.f32 %v1077_v20, 0.0  ;;  %v1305_v29 = vmax.f32 %v1157_v21, 0.0 }
 0x134   : > { %v1210_v16 = vmax.f32 %v919_v12, 0.0  ;;  %v1242_v17 = vmax.f32 %v999_v13, 0.0 }
 0x136   : > { %v2389_v18 = vpack.c.bf16 %v1210_v16, %v1209_v14  ;;  %v2469_v19 = vpack.c.bf16 %v1242_v17, %v1241_v15 }
 0x138   : > { %2669 = vst [vmem:[%s3063_s10 + $0x48] sm:$0xff] %v2389_v18   ;;  %v1078_v22 = vpop.f32.mrf.mxu2  ;;  %v1158_v23 = vpop.f32.mrf.mxu3 }
 0x139   : > { %2685 = vst [vmem:[%s3063_s10 + $0xc8] sm:$0xff] %v2469_v19   ;;  %v1079_v24 = vadd.f32 %v3050_v41, %v1078_v22  ;;  %v1159_v25 = vadd.f32 %v3050_v41, %v1158_v23  ;;  %v921_v26 = vpop.f32.mrf.mxu0  ;;  %v1001_v27 = vpop.f32.mrf.mxu1 }
 0x13a   : > { %v922_v34 = vadd.f32 %v3050_v41, %v921_v26  ;;  %v1002_v35 = vadd.f32 %v3050_v41, %v1001_v27 }
 0x13b   : > { %v1274_v30 = vmax.f32 %v1079_v24, 0.0  ;;  %v1306_v31 = vmax.f32 %v1159_v25, 0.0 }
 0x13c   : > { %v1211_v43 = vmax.f32 %v922_v34, 0.0  ;;  %v1243_v44 = vmax.f32 %v1002_v35, 0.0 }
 0x13d   : > { %v2549_v32 = vpack.c.bf16 %v1274_v30, %v1273_v28  ;;  %v2629_v33 = vpack.c.bf16 %v1306_v31, %v1305_v29 }
 0x13f   : > { %2701 = vst [vmem:[%s3063_s10 + $0x148] sm:$0xff] %v2549_v32  }
 0x140   : > { %2717 = vst [vmem:[%s3063_s10 + $0x1c8] sm:$0xff] %v2629_v33   ;;  %v1081_v36 = vpop.f32.mrf.mxu2  ;;  %v1161_v37 = vpop.f32.mrf.mxu3 }
 0x141   : > { %v923_v38 = vpop.f32.mrf.mxu0  ;;  %v1003_v39 = vpop.f32.mrf.mxu1  ;;  %v1082_v49 = vadd.f32 %v3050_v41, %v1081_v36  ;;  %v1162_v50 = vadd.f32 %v3050_v41, %v1161_v37 }
 0x142   : > { %v924_v40 = vadd.f32 %v3050_v41, %v923_v38  ;;  %v1004_v42 = vadd.f32 %v3050_v41, %v1003_v39 }
 0x143   : > { %v1275_v57 = vmax.f32 %v1082_v49, 0.0  ;;  %v1307_v58 = vmax.f32 %v1162_v50, 0.0 }
 0x144   : > { %v1212_v45 = vmax.f32 %v924_v40, 0.0  ;;  %v1244_v46 = vmax.f32 %v1004_v42, 0.0 }
 0x146   : > { %v2394_v47 = vpack.c.bf16 %v1212_v45, %v1211_v43  ;;  %v2474_v48 = vpack.c.bf16 %v1244_v46, %v1243_v44 }
 0x148   : > { %2670 = vst [vmem:[%s3063_s10 + $0x50] sm:$0xff] %v2394_v47   ;;  %v1083_v51 = vpop.f32.mrf.mxu2  ;;  %v1163_v52 = vpop.f32.mrf.mxu3 }
 0x149   : > { %2686 = vst [vmem:[%s3063_s10 + $0xd0] sm:$0xff] %v2474_v48   ;;  %v1084_v53 = vadd.f32 %v3050_v41, %v1083_v51  ;;  %v1164_v54 = vadd.f32 %v3050_v41, %v1163_v52  ;;  %v926_v55 = vpop.f32.mrf.mxu0  ;;  %v1006_v56 = vpop.f32.mrf.mxu1 }
 0x14a   : > { %v927_v63 = vadd.f32 %v3050_v41, %v926_v55  ;;  %v1007_v0 = vadd.f32 %v3050_v41, %v1006_v56 }
 0x14b   : > { %v1276_v59 = vmax.f32 %v1084_v53, 0.0  ;;  %v1308_v60 = vmax.f32 %v1164_v54, 0.0 }
 0x14c   : > { %v1213_v7 = vmax.f32 %v927_v63, 0.0  ;;  %v1245_v8 = vmax.f32 %v1007_v0, 0.0 }
 0x14d   : > { %v2554_v61 = vpack.c.bf16 %v1276_v59, %v1275_v57  ;;  %v2634_v62 = vpack.c.bf16 %v1308_v60, %v1307_v58 }
 0x14f   : > { %2702 = vst [vmem:[%s3063_s10 + $0x150] sm:$0xff] %v2554_v61  }
 0x150   : > { %2718 = vst [vmem:[%s3063_s10 + $0x1d0] sm:$0xff] %v2634_v62   ;;  %v1086_v1 = vpop.f32.mrf.mxu2  ;;  %v1166_v2 = vpop.f32.mrf.mxu3 }
 0x151   : > { %v928_v3 = vpop.f32.mrf.mxu0  ;;  %v1008_v4 = vpop.f32.mrf.mxu1  ;;  %v1087_v13 = vadd.f32 %v3050_v41, %v1086_v1  ;;  %v1167_v14 = vadd.f32 %v3050_v41, %v1166_v2 }
 0x152   : > { %v929_v5 = vadd.f32 %v3050_v41, %v928_v3  ;;  %v1009_v6 = vadd.f32 %v3050_v41, %v1008_v4 }
 0x153   : > { %v1277_v21 = vmax.f32 %v1087_v13, 0.0  ;;  %v1309_v22 = vmax.f32 %v1167_v14, 0.0 }
 0x154   : > { %v1214_v9 = vmax.f32 %v929_v5, 0.0  ;;  %v1246_v10 = vmax.f32 %v1009_v6, 0.0 }
 0x156   : > { %v2399_v11 = vpack.c.bf16 %v1214_v9, %v1213_v7  ;;  %v2479_v12 = vpack.c.bf16 %v1246_v10, %v1245_v8 }
 0x158   : > { %2671 = vst [vmem:[%s3063_s10 + $0x58] sm:$0xff] %v2399_v11   ;;  %v1088_v15 = vpop.f32.mrf.mxu2  ;;  %v1168_v16 = vpop.f32.mrf.mxu3 }
 0x159   : > { %2687 = vst [vmem:[%s3063_s10 + $0xd8] sm:$0xff] %v2479_v12   ;;  %v1089_v17 = vadd.f32 %v3050_v41, %v1088_v15  ;;  %v1169_v18 = vadd.f32 %v3050_v41, %v1168_v16  ;;  %v931_v19 = vpop.f32.mrf.mxu0  ;;  %v1011_v20 = vpop.f32.mrf.mxu1 }
 0x15a   : > { %v932_v27 = vadd.f32 %v3050_v41, %v931_v19  ;;  %v1012_v28 = vadd.f32 %v3050_v41, %v1011_v20  ;;  %v2822_v20 = vld [vmem:[%s3438_s2] ss:$0 sm:$0xff] }
 0x15b   : > { %v1278_v23 = vmax.f32 %v1089_v17, 0.0  ;;  %v1310_v24 = vmax.f32 %v1169_v18, 0.0 }
 0x15c   : > { %v1215_v35 = vmax.f32 %v932_v27, 0.0  ;;  %v1247_v36 = vmax.f32 %v1012_v28, 0.0 }
 0x15d   : > { %v2559_v25 = vpack.c.bf16 %v1278_v23, %v1277_v21  ;;  %v2639_v26 = vpack.c.bf16 %v1310_v24, %v1309_v22 }
 0x15f   : > { %2703 = vst [vmem:[%s3063_s10 + $0x158] sm:$0xff] %v2559_v25  }
 0x160   : > { %2719 = vst [vmem:[%s3063_s10 + $0x1d8] sm:$0xff] %v2639_v26   ;;  %v1091_v29 = vpop.f32.mrf.mxu2  ;;  %v1171_v30 = vpop.f32.mrf.mxu3 }
 0x161   : > { %v933_v31 = vpop.f32.mrf.mxu0  ;;  %v1013_v32 = vpop.f32.mrf.mxu1  ;;  %v1092_v42 = vadd.f32 %v3050_v41, %v1091_v29  ;;  %v1172_v43 = vadd.f32 %v3050_v41, %v1171_v30 }
 0x162   : > { %v934_v33 = vadd.f32 %v3050_v41, %v933_v31  ;;  %v1014_v34 = vadd.f32 %v3050_v41, %v1013_v32 }
 0x163   : > { %v1279_v50 = vmax.f32 %v1092_v42, 0.0  ;;  %v1311_v51 = vmax.f32 %v1172_v43, 0.0 }
 0x164   : > { %v1216_v37 = vmax.f32 %v934_v33, 0.0  ;;  %v1248_v38 = vmax.f32 %v1014_v34, 0.0 }
 0x166   : > { %v2404_v39 = vpack.c.bf16 %v1216_v37, %v1215_v35  ;;  %v2484_v40 = vpack.c.bf16 %v1248_v38, %v1247_v36 }
 0x168   : > { %2672 = vst [vmem:[%s3063_s10 + $0x60] sm:$0xff] %v2404_v39   ;;  %v1093_v44 = vpop.f32.mrf.mxu2  ;;  %v1173_v45 = vpop.f32.mrf.mxu3 }
 0x169   : > { %2688 = vst [vmem:[%s3063_s10 + $0xe0] sm:$0xff] %v2484_v40   ;;  %v1094_v46 = vadd.f32 %v3050_v41, %v1093_v44  ;;  %v1174_v47 = vadd.f32 %v3050_v41, %v1173_v45  ;;  %v936_v48 = vpop.f32.mrf.mxu0  ;;  %v1016_v49 = vpop.f32.mrf.mxu1 }
 0x16a   : > { %v937_v56 = vadd.f32 %v3050_v41, %v936_v48  ;;  %v1017_v57 = vadd.f32 %v3050_v41, %v1016_v49 }
 0x16b   : > { %v1280_v52 = vmax.f32 %v1094_v46, 0.0  ;;  %v1312_v53 = vmax.f32 %v1174_v47, 0.0 }
 0x16c   : > { %v1217_v0 = vmax.f32 %v937_v56, 0.0  ;;  %v1249_v1 = vmax.f32 %v1017_v57, 0.0 }
 0x16d   : > { %v2564_v54 = vpack.c.bf16 %v1280_v52, %v1279_v50  ;;  %v2644_v55 = vpack.c.bf16 %v1312_v53, %v1311_v51 }
 0x16f   : > { %2704 = vst [vmem:[%s3063_s10 + $0x160] sm:$0xff] %v2564_v54  }
 0x170   : > { %2720 = vst [vmem:[%s3063_s10 + $0x1e0] sm:$0xff] %v2644_v55   ;;  %v1096_v58 = vpop.f32.mrf.mxu2  ;;  %v1176_v59 = vpop.f32.mrf.mxu3 }
 0x171   : > { %v938_v60 = vpop.f32.mrf.mxu0  ;;  %v1018_v61 = vpop.f32.mrf.mxu1  ;;  %v1097_v6 = vadd.f32 %v3050_v41, %v1096_v58  ;;  %v1177_v7 = vadd.f32 %v3050_v41, %v1176_v59 }
 0x172   : > { %v939_v62 = vadd.f32 %v3050_v41, %v938_v60  ;;  %v1019_v63 = vadd.f32 %v3050_v41, %v1018_v61 }
 0x173   : > { %v1281_v14 = vmax.f32 %v1097_v6, 0.0  ;;  %v1313_v15 = vmax.f32 %v1177_v7, 0.0 }
 0x174   : > { %v1218_v2 = vmax.f32 %v939_v62, 0.0  ;;  %v1250_v3 = vmax.f32 %v1019_v63, 0.0 }
 0x176   : > { %v2409_v4 = vpack.c.bf16 %v1218_v2, %v1217_v0  ;;  %v2489_v5 = vpack.c.bf16 %v1250_v3, %v1249_v1 }
 0x178   : > { %2673 = vst [vmem:[%s3063_s10 + $0x68] sm:$0xff] %v2409_v4   ;;  %v1098_v8 = vpop.f32.mrf.mxu2  ;;  %v1178_v9 = vpop.f32.mrf.mxu3 }
 0x179   : > { %2689 = vst [vmem:[%s3063_s10 + $0xe8] sm:$0xff] %v2489_v5   ;;  %v1099_v10 = vadd.f32 %v3050_v41, %v1098_v8  ;;  %v1179_v11 = vadd.f32 %v3050_v41, %v1178_v9  ;;  %v941_v12 = vpop.f32.mrf.mxu0  ;;  %v1021_v13 = vpop.f32.mrf.mxu1 }
 0x17a   : > { %v942_v21 = vadd.f32 %v2822_v20, %v941_v12  ;;  %v1022_v22 = vadd.f32 %v2822_v20, %v1021_v13 }
 0x17b   : > { %v1282_v16 = vmax.f32 %v1099_v10, 0.0  ;;  %v1314_v17 = vmax.f32 %v1179_v11, 0.0 }
 0x17c   : > { %v1219_v28 = vmax.f32 %v942_v21, 0.0  ;;  %v1251_v29 = vmax.f32 %v1022_v22, 0.0 }
 0x17d   : > { %v2569_v18 = vpack.c.bf16 %v1282_v16, %v1281_v14  ;;  %v2649_v19 = vpack.c.bf16 %v1314_v17, %v1313_v15 }
 0x17f   : > { %2705 = vst [vmem:[%s3063_s10 + $0x168] sm:$0xff] %v2569_v18  }
 0x180   : > { %2721 = vst [vmem:[%s3063_s10 + $0x1e8] sm:$0xff] %v2649_v19   ;;  %v1101_v23 = vpop.f32.mrf.mxu2  ;;  %v1181_v24 = vpop.f32.mrf.mxu3 }
 0x181   : > { %v943_v41 = vpop.f32.mrf.mxu0  ;;  %v1023_v25 = vpop.f32.mrf.mxu1  ;;  %v1102_v34 = vadd.f32 %v2822_v20, %v1101_v23  ;;  %v1182_v35 = vadd.f32 %v2822_v20, %v1181_v24 }
 0x182   : > { %v944_v26 = vadd.f32 %v2822_v20, %v943_v41  ;;  %v1024_v27 = vadd.f32 %v2822_v20, %v1023_v25 }
 0x183   : > { %v1283_v43 = vmax.f32 %v1102_v34, 0.0  ;;  %v1315_v44 = vmax.f32 %v1182_v35, 0.0 }
 0x184   : > { %v1220_v30 = vmax.f32 %v944_v26, 0.0  ;;  %v1252_v31 = vmax.f32 %v1024_v27, 0.0 }
 0x186   : > { %v2414_v32 = vpack.c.bf16 %v1220_v30, %v1219_v28  ;;  %v2494_v33 = vpack.c.bf16 %v1252_v31, %v1251_v29 }
 0x188   : > { %2674 = vst [vmem:[%s3063_s10 + $0x70] sm:$0xff] %v2414_v32   ;;  %v1103_v36 = vpop.f32.mrf.mxu2  ;;  %v1183_v37 = vpop.f32.mrf.mxu3 }
 0x189   : > { %2690 = vst [vmem:[%s3063_s10 + $0xf0] sm:$0xff] %v2494_v33   ;;  %v1104_v38 = vadd.f32 %v2822_v20, %v1103_v36  ;;  %v1184_v39 = vadd.f32 %v2822_v20, %v1183_v37  ;;  %v946_v40 = vpop.f32.mrf.mxu0  ;;  %v1026_v42 = vpop.f32.mrf.mxu1 }
 0x18a   : > { %v947_v49 = vadd.f32 %v2822_v20, %v946_v40  ;;  %v1027_v50 = vadd.f32 %v2822_v20, %v1026_v42 }
 0x18b   : > { %v1284_v45 = vmax.f32 %v1104_v38, 0.0  ;;  %v1316_v46 = vmax.f32 %v1184_v39, 0.0 }
 0x18c   : > { %v1221_v57 = vmax.f32 %v947_v49, 0.0  ;;  %v1253_v58 = vmax.f32 %v1027_v50, 0.0 }
 0x18d   : > { %v2574_v47 = vpack.c.bf16 %v1284_v45, %v1283_v43  ;;  %v2654_v48 = vpack.c.bf16 %v1316_v46, %v1315_v44 }
 0x18f   : > { %2706 = vst [vmem:[%s3063_s10 + $0x170] sm:$0xff] %v2574_v47  }
 0x190   : > { %2722 = vst [vmem:[%s3063_s10 + $0x1f0] sm:$0xff] %v2654_v48   ;;  %v1106_v51 = vpop.f32.mrf.mxu2  ;;  %v1186_v52 = vpop.f32.mrf.mxu3 }
 0x191   : > { %v948_v53 = vpop.f32.mrf.mxu0  ;;  %v1028_v54 = vpop.f32.mrf.mxu1  ;;  %v1107_v63 = vadd.f32 %v2822_v20, %v1106_v51  ;;  %v1187_v0 = vadd.f32 %v2822_v20, %v1186_v52 }
 0x192   : > { %v949_v55 = vadd.f32 %v2822_v20, %v948_v53  ;;  %v1029_v56 = vadd.f32 %v2822_v20, %v1028_v54 }
 0x193   : > { %v1285_v5 = vmax.f32 %v1107_v63, 0.0  ;;  %v1317_v6 = vmax.f32 %v1187_v0, 0.0 }
 0x194   : > { %v1222_v59 = vmax.f32 %v949_v55, 0.0  ;;  %v1254_v60 = vmax.f32 %v1029_v56, 0.0 }
 0x196   : > { %v2419_v61 = vpack.c.bf16 %v1222_v59, %v1221_v57  ;;  %v2499_v62 = vpack.c.bf16 %v1254_v60, %v1253_v58 }
 0x198   : > { %2675 = vst [vmem:[%s3063_s10 + $0x78] sm:$0xff] %v2419_v61   ;;  %v1108_v1 = vpop.f32.mrf.mxu2  ;;  %v1188_v2 = vpop.f32.mrf.mxu3 }
 0x199   : > { %2691 = vst [vmem:[%s3063_s10 + $0xf8] sm:$0xff] %v2499_v62   ;;  %v1109_v3 = vadd.f32 %v2822_v20, %v1108_v1  ;;  %v1189_v4 = vadd.f32 %v2822_v20, %v1188_v2 }
 0x19b   : > { %v1286_v7 = vmax.f32 %v1109_v3, 0.0  ;;  %v1318_v8 = vmax.f32 %v1189_v4, 0.0 }
 0x19c   : > { %1581 = sbr.rel (!%p2956_p4) target bundleno = 481 (0x1e1), region = 36 }
 0x19d   : > { %v2579_v9 = vpack.c.bf16 %v1286_v7, %v1285_v5  ;;  %v2659_v10 = vpack.c.bf16 %v1318_v8, %v1317_v6 }
 0x19f   : > { %2707 = vst [vmem:[%s3063_s10 + $0x178] sm:$0xff] %v2579_v9  }
 0x1a0   : > { %2723 = vst [vmem:[%s3063_s10 + $0x1f8] sm:$0xff] %v2659_v10  }
 0x1a1   : > { %s3450_s14 = smov (!%p1584_p8, %s1583_s14), 128 }
 0x1a2   : > { %s2256_s24 = sshll.u32 %s3450_s14, 2 }
 0x1a3   : > { %p2259_p9 = scmp.eq.s32.totalorder %s2256_s24, 0 }
 0x1a4   : > { %s3307_s25 = sshrl.u32 (!%p2259_p9), %s3450_s14, 5 }
 0x1a5   : > { %1592 = sbr.rel (%p2259_p9) target bundleno = 481 (0x1e1), region = 40  ;;  %p2260_p10 = scmp.le.s32.totalorder (!%p2259_p9), %s3307_s25, 0 }
 0x1aa   : > { %1871 = sbr.rel (%p2260_p10) target bundleno = 464 (0x1d0), region = 112  ;;  %s3441_s15 = smov (!%p2260_p10), %s3301_s22 }
 0x1ab   : > { %s3442_s20 = smov (!%p2260_p10), %s3063_s10  ;;  %s3316_s23 = smov (!%p2260_p10), 0  }
 0x1ac   : > { %s3318_s26 = smov (!%p2260_p10), 0  }
 0x1af LB: >> { %v1609_v11 = vld [vmem:[%s2885_s20] sm:$0xf]  ;;  %v1611_v12 = vld [vmem:[%s2885_s20 + $0x4] sm:$0xf]  ;;  %v1613_v13 = vld [vmem:[%s2885_s20 + $0x8] sm:$0xf]  ;;  %s2893_s26 = sphi %s3318_s26, %s1603_s26   ;;  %s2889_s23 = sphi %s3316_s23, %s3445_s23   ;;  %s2885_s20 = sphi %s3442_s20, %s3444_s20   ;;  %s2881_s15 = sphi %s3441_s15, %s3443_s15  }
 0x1b0   : >> { %1610 = vst [vmem:[%s2881_s15] sm:$0xf] %v1609_v11  ;;  %v1615_v14 = vld [vmem:[%s2885_s20 + $0xc] sm:$0xf]  ;;  %v1617_v15 = vld [vmem:[%s2885_s20 + $0x10] sm:$0xf]  ;;  %s1673_s27 = sadd.s32 1, %s2889_s23 }
 0x1b1   : >> { %1612 = vst [vmem:[%s2881_s15 + $0x4] sm:$0xf] %v1611_v12  ;;  %v1619_v16 = vld [vmem:[%s2885_s20 + $0x14] sm:$0xf]  ;;  %v1621_v17 = vld [vmem:[%s2885_s20 + $0x18] sm:$0xf]  ;;  %p1674_p11 = scmp.ge.s32.totalorder %s1673_s27, %s3307_s25 }
 0x1b2   : >> { %1614 = vst [vmem:[%s2881_s15 + $0x8] sm:$0xf] %v1613_v13  ;;  %v1623_v18 = vld [vmem:[%s2885_s20 + $0x1c] sm:$0xf]  ;;  %v1625_v19 = vld [vmem:[%s2885_s20 + $0x20] sm:$0xf] }
 0x1b3   : >> { %1616 = vst [vmem:[%s2881_s15 + $0xc] sm:$0xf] %v1615_v14  ;;  %v1627_v20 = vld [vmem:[%s2885_s20 + $0x24] sm:$0xf]  ;;  %v1629_v21 = vld [vmem:[%s2885_s20 + $0x28] sm:$0xf] }
 0x1b4   : >> { %1618 = vst [vmem:[%s2881_s15 + $0x10] sm:$0xf] %v1617_v15  ;;  %v1631_v22 = vld [vmem:[%s2885_s20 + $0x2c] sm:$0xf]  ;;  %v1633_v23 = vld [vmem:[%s2885_s20 + $0x30] sm:$0xf] }
 0x1b5   : >> { %1620 = vst [vmem:[%s2881_s15 + $0x14] sm:$0xf] %v1619_v16  ;;  %v1635_v24 = vld [vmem:[%s2885_s20 + $0x34] sm:$0xf]  ;;  %v1637_v41 = vld [vmem:[%s2885_s20 + $0x38] sm:$0xf] }
 0x1b6   : >> { %1622 = vst [vmem:[%s2881_s15 + $0x18] sm:$0xf] %v1621_v17  ;;  %v1639_v25 = vld [vmem:[%s2885_s20 + $0x3c] sm:$0xf]  ;;  %v1641_v26 = vld [vmem:[%s2885_s20 + $0x40] sm:$0xf] }
 0x1b7   : >> { %1624 = vst [vmem:[%s2881_s15 + $0x1c] sm:$0xf] %v1623_v18  ;;  %v1643_v27 = vld [vmem:[%s2885_s20 + $0x44] sm:$0xf]  ;;  %s3452_s27 = smov (%p1674_p11, %s1673_s27), 0  ;;  %s1603_s26 = sadd.s32 1, %s2893_s26  }
 0x1b8   : >> { %1626 = vst [vmem:[%s2881_s15 + $0x20] sm:$0xf] %v1625_v19  ;;  %v1645_v28 = vld [vmem:[%s2885_s20 + $0x48] sm:$0xf]  ;;  %v1647_v29 = vld [vmem:[%s2885_s20 + $0x4c] sm:$0xf]  ;;  %p1602_p12 = scmp.ge.s32.totalorder %s1603_s26, %s3307_s25  ;;  %s3445_s23 = smov %s3452_s27 }
 0x1b9   : >> { %1628 = vst [vmem:[%s2881_s15 + $0x24] sm:$0xf] %v1627_v20  ;;  %s2261_s28 = sshll.u32 %s3452_s27, 7  ;;  %v1649_v30 = vld [vmem:[%s2885_s20 + $0x50] sm:$0xf] }
 0x1ba   : >> { %1630 = vst [vmem:[%s2881_s15 + $0x28] sm:$0xf] %v1629_v21  ;;  %s3377_s29 = scalar_lea.vmem %s3063_s10, %s2261_s28 [#allocation2]   ;;  %s1679_s30 = scalar_lea.vmem %s3301_s22, %s2261_s28   ;;  %v1651_v31 = vld [vmem:[%s2885_s20 + $0x54] sm:$0xf]  ;;  %v1653_v32 = vld [vmem:[%s2885_s20 + $0x58] sm:$0xf] }
 0x1bb   : >> { %1632 = vst [vmem:[%s2881_s15 + $0x2c] sm:$0xf] %v1631_v22  ;;  %v1655_v33 = vld [vmem:[%s2885_s20 + $0x5c] sm:$0xf]  ;;  %v1657_v34 = vld [vmem:[%s2885_s20 + $0x60] sm:$0xf] }
 0x1bc   : >> { %1634 = vst [vmem:[%s2881_s15 + $0x30] sm:$0xf] %v1633_v23  ;;  %v1659_v35 = vld [vmem:[%s2885_s20 + $0x64] sm:$0xf]  ;;  %v1661_v36 = vld [vmem:[%s2885_s20 + $0x68] sm:$0xf] }
 0x1bd   : >> { %1636 = vst [vmem:[%s2881_s15 + $0x34] sm:$0xf] %v1635_v24  ;;  %v1663_v37 = vld [vmem:[%s2885_s20 + $0x6c] sm:$0xf]  ;;  %v1665_v38 = vld [vmem:[%s2885_s20 + $0x70] sm:$0xf] }
 0x1be   : >> { %1638 = vst [vmem:[%s2881_s15 + $0x38] sm:$0xf] %v1637_v41  ;;  %v1667_v39 = vld [vmem:[%s2885_s20 + $0x74] sm:$0xf]  ;;  %v1669_v40 = vld [vmem:[%s2885_s20 + $0x78] sm:$0xf] }
 0x1bf   : >> { %1640 = vst [vmem:[%s2881_s15 + $0x3c] sm:$0xf] %v1639_v25  ;;  %v1671_v42 = vld [vmem:[%s2885_s20 + $0x7c] sm:$0xf]  ;;  %s3444_s20 = smov %s3377_s29 }
 0x1c0   : >> { %1642 = vst [vmem:[%s2881_s15 + $0x40] sm:$0xf] %v1641_v26 }
 0x1c1   : >> { %1644 = vst [vmem:[%s2881_s15 + $0x44] sm:$0xf] %v1643_v27 }
 0x1c2   : >> { %1646 = vst [vmem:[%s2881_s15 + $0x48] sm:$0xf] %v1645_v28 }
 0x1c3   : >> { %1648 = vst [vmem:[%s2881_s15 + $0x4c] sm:$0xf] %v1647_v29 }
 0x1c4   : >> { %1650 = vst [vmem:[%s2881_s15 + $0x50] sm:$0xf] %v1649_v30 }
 0x1c5   : >> { %1652 = vst [vmem:[%s2881_s15 + $0x54] sm:$0xf] %v1651_v31 }
 0x1c6   : >> { %1654 = vst [vmem:[%s2881_s15 + $0x58] sm:$0xf] %v1653_v32 }
 0x1c7   : >> { %1656 = vst [vmem:[%s2881_s15 + $0x5c] sm:$0xf] %v1655_v33 }
 0x1c8   : >> { %1658 = vst [vmem:[%s2881_s15 + $0x60] sm:$0xf] %v1657_v34 }
 0x1c9   : >> { %1660 = vst [vmem:[%s2881_s15 + $0x64] sm:$0xf] %v1659_v35 }
 0x1ca   : >> { %1662 = vst [vmem:[%s2881_s15 + $0x68] sm:$0xf] %v1661_v36 }
 0x1cb   : >> { %1664 = vst [vmem:[%s2881_s15 + $0x6c] sm:$0xf] %v1663_v37  ;;  %1605 = sbr.rel (!%p1602_p12) target bundleno = 431 (0x1af), region = 118 }
 0x1cc   : >> { %1666 = vst [vmem:[%s2881_s15 + $0x70] sm:$0xf] %v1665_v38 }
 0x1cd   : >> { %1668 = vst [vmem:[%s2881_s15 + $0x74] sm:$0xf] %v1667_v39 }
 0x1ce   : >> { %1670 = vst [vmem:[%s2881_s15 + $0x78] sm:$0xf] %v1669_v40 }
 0x1cf   : >> { %1672 = vst [vmem:[%s2881_s15 + $0x7c] sm:$0xf] %v1671_v42  ;;  %s3443_s15 = smov %s1679_s30 }
 0x1d0 PF: > { %s3418_s4 = sand.u32 31, %s3450_s14   ;;  %s2339_s5 = sshll.u32 %s3307_s25, 7 }
 0x1d1   : > { %s1684_s6 = scalar_lea.vmem %s3063_s10, %s2339_s5 [#allocation2]   ;;  %s1686_s7 = scalar_lea.vmem %s3301_s22, %s2339_s5  }
 0x1d2   : > { %p2266_p13 = scmp.le.s32.totalorder %s3418_s4, 0 }
 0x1d3   : > { %s2895_s8 = smov (!%p2266_p13), %s1686_s7   ;;  %s2899_s9 = smov (!%p2266_p13), %s1684_s6  }
 0x1d4   : > { %1885 = sbr.rel (%p2266_p13) target bundleno = 481 (0x1e1), region = 123  ;;  %s2903_s11 = smov (!%p2266_p13), 0  }
 0x1d5   : > { %s2907_s12 = smov (!%p2266_p13), 0  }
 0x1d9 LB: >> { %v1696_v43 = vld [vmem:[%s2901_s9] sm:$0xf]  ;;  %s1698_s14 = sadd.s32 1, %s2905_s11  ;;  %s1690_s12 = sadd.s32 1, %s2909_s12   ;;  %s2909_s12 = sphi %s2907_s12, %s1690_s12   ;;  %s2905_s11 = sphi %s2903_s11, %s2904_s11   ;;  %s2901_s9 = sphi %s2899_s9, %s1703_s9   ;;  %s2897_s8 = sphi %s2895_s8, %s1704_s8  }
 0x1da   : >> { %1697 = vst [vmem:[%s2897_s8] sm:$0xf] %v1696_v43  ;;  %p1699_p0 = scmp.ge.s32.totalorder %s1698_s14, %s3418_s4  ;;  %p1689_p1 = scmp.ge.s32.totalorder %s1690_s12, %s3418_s4 }
 0x1dc   : >> { %s3454_s14 = smov (%p1699_p0, %s1698_s14), 0  ;;  %1692 = sbr.rel (!%p1689_p1) target bundleno = 473 (0x1d9), region = 129 }
 0x1dd   : >> { %s2267_s10 = sshll.u32 %s3454_s14, 2  ;;  %s2904_s11 = smov %s3454_s14  }
 0x1de   : >> { %s1703_s9 = scalar_lea.vmem %s1684_s6, %s2267_s10 [#allocation2]   ;;  %s1704_s8 = scalar_lea.vmem %s1686_s7, %s2267_s10  }
 0x1e1 PF: > { %p10_p2 = scmp.ge.s32.totalorder %s2946_s16, 10   ;;  %s3446_s12 = smov %s2873_s13 }
 0x1e2   : > { %s3447_s13 = smov %s2954_s19  ;;  %s3448_s14 = smov %s2946_s16 }
 0x1e3   :  { %12 = sbr.rel (!%p10_p2) target bundleno = 2 (0x2), region = 140 }

// kernel: pdn_m_multi_forward.8
= control target key start
LH: loop header
LB: loop body
LE: loop exit
PB: predicated region body
PF: predicated region fallthrough
CT: control target
= control target key end

     0   :  { %s5544_s12 = smov 0   ;;  %s5546_s13 = smov 0   ;;  %s7046_s0 = inlined_call_operand.vmem [shape: f32[2,944,128], index: 0, kind: input, shape index: {}]   ;;  %s7047_s1 = inlined_call_operand.vmem [shape: bf16[16,128,128], index: 1, kind: input, shape index: {}]   ;;  %s7048_s2 = inlined_call_operand.vmem [shape: f32[1,128], index: 2, kind: input, shape index: {}]   ;;  %s7049_s3 = inlined_call_operand.vmem [shape: bf16[2,832,128], index: 3, kind: output, shape index: {}]  }
   0x1   :  { %s5548_s14 = smov 0   ;;  %s5550_s15 = smov 0  }
   0x2   :  { %s5552_s16 = smov 0  }
   0x3 LB: > { %s22_s17 = sadd.s32 1, %s5514_s14  ;;  %s25_s18 = sadd.s32 1, %s5518_s15  ;;  %s5522_s16 = sphi %s5552_s16, %s13_s16   ;;  %s5518_s15 = sphi %s5550_s15, %s7149_s15   ;;  %s5514_s14 = sphi %s5548_s14, %s7148_s14   ;;  %s5510_s13 = sphi %s5546_s13, %s7147_s13   ;;  %s5506_s12 = sphi %s5544_s12, %s7146_s12  }
   0x4   : > { %p23_p0 = scmp.ge.s32.totalorder %s22_s17, 4  ;;  %p4371_p1 = scmp.ge.s32.totalorder %s5522_s16, 1 }
   0x5   : > { %p151_p2 = scmp.lt.s32.totalorder %s5522_s16, 9 }
   0x6   : > { %s7151_s17 = smov (%p23_p0, %s22_s17), 0  ;;  %s7153_s18 = smov (!%p23_p0, %s25_s18), %s5518_s15 }
   0x7   : > { %p152_p3 = pnand %p4371_p1, %p151_p2  ;;  %p27_p4 = scmp.ge.s32.totalorder %s7153_s18, 2 }
   0x9   : > { %s7155_s18 = smov (%p27_p4, %s7153_s18), 0  ;;  %155 = sbr.rel (%p152_p3) target bundleno = 1015 (0x3f7), region = 32 }
   0xe   : > { %v5251_v0 = vld [vmem:[%s7047_s1 + $0x78] sm:$0xff]  ;;  %p179_p5 = scmp.lt.s32.totalorder %s5510_s13, 1  ;;  %v5250_v4 = vld [vmem:[%s7047_s1 + $0x70] sm:$0xff]  ;;  %s194_s8 = smul.u32 208, %s5506_s12  ;;  %v5249_v8 = vld [vmem:[%s7047_s1 + $0x68] sm:$0xff]  ;;  %vm667_vm1 = vcmask 1046528  }
   0xf   : > { %v5243_v1 = vld [vmem:[%s7047_s1 + $0x38] sm:$0xff]  ;;  %440 = vmatpush.bf16.msra.mxu0 %v5251_v0  ;;  %v5242_v5 = vld [vmem:[%s7047_s1 + $0x30] sm:$0xff]  ;;  %v5241_v9 = vld [vmem:[%s7047_s1 + $0x28] sm:$0xff]  ;;  %vm270_vm0 = vsmask.f32 7424  ;;  %vm1166_vm3 = vcmask 1044480  }
  0x10   : > { %v5259_v2 = vld [vmem:[%s7047_s1 + $0xb8] sm:$0xff]  ;;  %562 = vmatpush.bf16.msra.mxu1 %v5243_v1  ;;  %s7157_s13 = smov (!%p179_p5, %s5510_s13), 1  ;;  %v5258_v6 = vld [vmem:[%s7047_s1 + $0xb0] sm:$0xff]  ;;  %v5257_v10 = vld [vmem:[%s7047_s1 + $0xa8] sm:$0xff]  ;;  %vm873_vm2 = vsmask.f32 6400 }
  0x11   : > { %v5267_v3 = vld [vmem:[%s7047_s1 + $0xf8] sm:$0xff]  ;;  %756 = vmatpush.bf16.msra.mxu2 %v5259_v2  ;;  %v5266_v7 = vld [vmem:[%s7047_s1 + $0xf0] sm:$0xff]  ;;  %s5441_s9 = smul.u32 944, %s7157_s13  ;;  %v5265_v11 = vld [vmem:[%s7047_s1 + $0xe8] sm:$0xff]  ;;  %vm1372_vm4 = vsmask.f32 4352 }
  0x12   : > { %992 = vmatpush.bf16.msra.mxu3 %v5267_v3  ;;  %v5248_v12 = vld [vmem:[%s7047_s1 + $0x60] sm:$0xff]  ;;  %v5247_v20 = vld [vmem:[%s7047_s1 + $0x58] sm:$0xff]  ;;  %v5246_v26 = vld [vmem:[%s7047_s1 + $0x50] sm:$0xff]  ;;  %vm2227_vm5 = vcmask 1045504   ;;  %vm2433_vm6 = vsmask.f32 5376 }
  0x13   : > { %441 = vmatpush.bf16.msra.mxu0 %v5250_v4  ;;  %s183_s23 = scalar_lea.vmem %s7046_s0, %s5441_s9  ;;  %v5240_v13 = vld [vmem:[%s7047_s1 + $0x20] sm:$0xff]  ;;  %v5239_v21 = vld [vmem:[%s7047_s1 + $0x18] sm:$0xff]  ;;  %v5238_v27 = vld [vmem:[%s7047_s1 + $0x10] sm:$0xff]  ;;  %s184_s6 = smul.u32 26, %s5506_s12 }
  0x14   : > { %563 = vmatpush.bf16.msra.mxu1 %v5242_v5  ;;  %s5619_s28 = scalar_lea.vmem %s183_s23, %s194_s8  ;;  %v5256_v14 = vld [vmem:[%s7047_s1 + $0xa0] sm:$0xff]  ;;  %v5255_v23 = vld [vmem:[%s7047_s1 + $0x98] sm:$0xff]  ;;  %v5254_v29 = vld [vmem:[%s7047_s1 + $0x90] sm:$0xff]  ;;  %s5442_s7 = smul.u32 104, %s7157_s13 }
  0x15   : > { %757 = vmatpush.bf16.msra.mxu2 %v5258_v6  ;;  %v5264_v15 = vld [vmem:[%s7047_s1 + $0xe0] sm:$0xff]  ;;  %v197_v17 = vld [vmem:[%s5619_s28 + $0x8] sm:$0xff]  ;;  %v198_v18 = vld [vmem:[%s5619_s28 + $0x10] sm:$0xff]  ;;  %p187_p6 = scmp.lt.s32.totalorder %s184_s6, 103 }
  0x16   : > { %993 = vmatpush.bf16.msra.mxu3 %v5266_v7  ;;  %v196_v16 = vld [vmem:[%s5619_s28] sm:$0xff]  ;;  %v5637_v19 = vld [vmem:[%s5619_s28 + $0x18] sm:$0xff]  ;;  %v5262_v30 = vld [vmem:[%s7047_s1 + $0xd0] sm:$0xff] }
  0x17   : > { %442 = vmatpush.bf16.msra.mxu0 %v5249_v8  ;;  %v5645_v22 = vpack.c.bf16 %v197_v17, %v196_v16  ;;  %v5263_v24 = vld [vmem:[%s7047_s1 + $0xd8] sm:$0xff]  ;;  %v5654_v25 = vpack.c.bf16 %v5637_v19, %v198_v18  ;;  %v5245_v34 = vld [vmem:[%s7047_s1 + $0x48] sm:$0xff]  ;;  %v5244_v43 = vld [vmem:[%s7047_s1 + $0x40] sm:$0xff]  ;;  %s7159_s6 = smov (!%p187_p6, %s184_s6), 103 }
  0x18   : > { %564 = vmatpush.bf16.msra.mxu1 %v5241_v9  ;;  %v5237_v35 = vld [vmem:[%s7047_s1 + $0x8] sm:$0xff]  ;;  %v5236_v44 = vld [vmem:[%s7047_s1] sm:$0xff]  ;;  %v5291_v53 = vld [vmem:[%s7047_s1 + $0x1b8] sm:$0xff]  ;;  %s190_s13 = sadd.s32 %s5442_s7, %s7159_s6 }
  0x19   : > { %758 = vmatpush.bf16.msra.mxu2 %v5257_v10  ;;  %v274_v28 = vshll.u32 %v5645_v22, 16  ;;  %v272_v31 = vshrl.u32 %v5645_v22, 16  ;;  %v279_v32 = vshll.u32 %v5654_v25, 16  ;;  %v283_v33 = vshrl.u32 %v5654_v25, 16  ;;  %v5253_v37 = vld [vmem:[%s7047_s1 + $0x88] sm:$0xff]  ;;  %v5252_v47 = vld [vmem:[%s7047_s1 + $0x80] sm:$0xff] }
  0x1a   : > { %994 = vmatpush.bf16.msra.mxu3 %v5265_v11  ;;  %v5261_v38 = vld [vmem:[%s7047_s1 + $0xc8] sm:$0xff]  ;;  %v5260_v48 = vld [vmem:[%s7047_s1 + $0xc0] sm:$0xff]  ;;  %v668_v49 = vrot.slane %v5645_v22, 1  ;;  %v669_v50 = vrot.slane %v5654_v25, 1  ;;  %v5275_v54 = vld [vmem:[%s7047_s1 + $0x138] sm:$0xff]  ;;  %s4373_s9 = sshll.u32 %s190_s13, 2 }
  0x1b   : > { %443 = vmatpush.bf16.msra.mxu0 %v5248_v12  ;;  %v276_v36 = vrot.slane %v274_v28, 1  ;;  %v874_v39 = vrot.slane %v272_v31, 1  ;;  %v875_v40 = vrot.slane %v274_v28, 2  ;;  %v877_v41 = vrot.slane %v283_v33, 1  ;;  %v5707_v55 = vld [vmem:[%s5619_s28 + $0x20] sm:$0xff]  ;;  %v5710_v56 = vld [vmem:[%s5619_s28 + $0x28] sm:$0xff]  ;;  %s6944_s19 = scalar_lea.vmem %s7049_s3, %s4373_s9 }
  0x1c   : > { %565 = vmatpush.bf16.msra.mxu1 %v5240_v13  ;;  %v878_v42 = vrot.slane %v279_v32, 2  ;;  %v281_v46 = vrot.slane %v279_v32, 1  ;;  %v670_v58 = vsel %vm667_vm1, %v668_v49, %v669_v50  ;;  %v5299_v60 = vld [vmem:[%s7047_s1 + $0x1f8] sm:$0xff]  ;;  %v5723_v62 = vpack.c.bf16 %v5710_v56, %v5707_v55  ;;  %v5290_v63 = vld [vmem:[%s7047_s1 + $0x1b0] sm:$0xff]  ;;  %v5289_v17 = vld [vmem:[%s7047_s1 + $0x1a8] sm:$0xff] }
  0x1d   : > { %759 = vmatpush.bf16.msra.mxu2 %v5256_v14  ;;  %v277_v45 = vor.u32 %v276_v36, %v272_v31  ;;  %v876_v51 = vor.u32 %v875_v40, %v874_v39  ;;  %v5283_v61 = vld [vmem:[%s7047_s1 + $0x178] sm:$0xff]  ;;  %v5274_v0 = vld [vmem:[%s7047_s1 + $0x130] sm:$0xff]  ;;  %v5273_v18 = vld [vmem:[%s7047_s1 + $0x128] sm:$0xff] }
  0x1e   : > { %995 = vmatpush.bf16.msra.mxu3 %v5264_v15  ;;  %v879_v52 = vor.u32 %v878_v42, %v877_v41  ;;  %v287_v1 = vshll.u32 %v5723_v62, 16  ;;  %v291_v2 = vshrl.u32 %v5723_v62, 16  ;;  %v5298_v3 = vld [vmem:[%s7047_s1 + $0x1f0] sm:$0xff]  ;;  %v285_v7 = vor.u32 %v283_v33, %v281_v46  ;;  %v5747_v12 = vld [vmem:[%s5619_s28 + $0x38] sm:$0xff]  ;;  %v5776_v31 = vld [vmem:[%s5619_s28 + $0x48] sm:$0xff] }
  0x1f   : > { %444 = vmatpush.bf16.msra.mxu0 %v5247_v20  ;;  %v282_v57 = vsel %vm270_vm0, %v277_v45, %v281_v46  ;;  %v5282_v4 = vld [vmem:[%s7047_s1 + $0x170] sm:$0xff]  ;;  %v671_v9 = vrot.slane %v5723_v62, 1  ;;  %v5297_v20 = vld [vmem:[%s7047_s1 + $0x1e8] sm:$0xff]  ;;  %v5288_v36 = vld [vmem:[%s7047_s1 + $0x1a0] sm:$0xff] }
  0x20   : > { %566 = vmatpush.bf16.msra.mxu1 %v5239_v21  ;;  %v880_v59 = vsel %vm873_vm2, %v876_v51, %v879_v52  ;;  %v881_v5 = vrot.slane %v291_v2, 1  ;;  %v882_v6 = vrot.slane %v287_v1, 2  ;;  %v289_v8 = vrot.slane %v287_v1, 1  ;;  %v5744_v11 = vld [vmem:[%s5619_s28 + $0x30] sm:$0xff]  ;;  %v5799_v46 = vld [vmem:[%s5619_s28 + $0x58] sm:$0xff]  ;;  %v5272_v51 = vld [vmem:[%s7047_s1 + $0x120] sm:$0xff] }
  0x21   : > { %760 = vmatpush.bf16.msra.mxu2 %v5255_v23  ;;  %v672_v14 = vsel %vm667_vm1, %v669_v50, %v671_v9  ;;  %v5754_v16 = vpack.c.bf16 %v5747_v12, %v5744_v11  ;;  %v5281_v23 = vld [vmem:[%s7047_s1 + $0x168] sm:$0xff]  ;;  %v5796_v45 = vld [vmem:[%s5619_s28 + $0x50] sm:$0xff]  ;;  %v5825_v1 = vld [vmem:[%s5619_s28 + $0x60] sm:$0xff] }
  0x22   : > { %996 = vmatpush.bf16.msra.mxu3 %v5263_v24  ;;  %v883_v10 = vor.u32 %v882_v6, %v881_v5  ;;  %v290_v13 = vsel %vm270_vm0, %v285_v7, %v289_v8  ;;  %v5808_v50 = vpack.c.bf16 %v5799_v46, %v5796_v45  ;;  %v5287_v7 = vld [vmem:[%s7047_s1 + $0x198] sm:$0xff] }
  0x23   : > { %445 = vmatpush.bf16.msra.mxu0 %v5246_v26  ;;  %v295_v21 = vshll.u32 %v5754_v16, 16  ;;  %v293_v26 = vor.u32 %v291_v2, %v289_v8  ;;  %v673_v28 = vrot.slane %v5754_v16, 1  ;;  %v5828_v2 = vld [vmem:[%s5619_s28 + $0x68] sm:$0xff]  ;;  %v5271_v8 = vld [vmem:[%s7047_s1 + $0x118] sm:$0xff] }
  0x24   : > { %567 = vmatpush.bf16.msra.mxu1 %v5238_v27  ;;  %v884_v15 = vsel %vm873_vm2, %v879_v52, %v883_v10  ;;  %v5296_v52 = vld [vmem:[%s7047_s1 + $0x1e0] sm:$0xff]  ;;  %v5837_v6 = vpack.c.bf16 %v5828_v2, %v5825_v1 }
  0x25   : > { %761 = vmatpush.bf16.msra.mxu2 %v5254_v29  ;;  %v297_v27 = vrot.slane %v295_v21, 1  ;;  %v674_v33 = vsel %vm667_vm1, %v671_v9, %v673_v28  ;;  %v5295_v9 = vld [vmem:[%s7047_s1 + $0x1d8] sm:$0xff] }
  0x26   : > { %997 = vmatpush.bf16.msra.mxu3 %v5262_v30  ;;  %v5773_v30 = vld [vmem:[%s5619_s28 + $0x40] sm:$0xff] }
  0x27   : > { %446 = vmatpush.bf16.msra.mxu0 %v5245_v34  ;;  %v5779_v32 = vsel %vm270_vm0, %v293_v26, %v297_v27 }
  0x28   : > { %568 = vmatpush.bf16.msra.mxu1 %v5237_v35  ;;  %v5785_v35 = vpack.c.bf16 %v5776_v31, %v5773_v30 }
  0x29   : > { %762 = vmatpush.bf16.msra.mxu2 %v5253_v37 }
  0x2a   : > { %998 = vmatpush.bf16.msra.mxu3 %v5261_v38  ;;  %v303_v37 = vshll.u32 %v5785_v35, 16  ;;  %v307_v38 = vshrl.u32 %v5785_v35, 16 }
  0x2b   : > { %447 = vmatpush.bf16.msra.mxu0 %v5244_v43  ;;  %v675_v43 = vrot.slane %v5785_v35, 1 }
  0x2c   : > { %569 = vmatpush.bf16.msra.mxu1 %v5236_v44  ;;  %v889_v39 = vrot.slane %v307_v38, 1  ;;  %v890_v40 = vrot.slane %v303_v37, 2  ;;  %v305_v42 = vrot.slane %v303_v37, 1 }
  0x2d   : > { %763 = vmatpush.bf16.msra.mxu2 %v5252_v47 }
  0x2e   : > { %999 = vmatpush.bf16.msra.mxu3 %v5260_v48  ;;  %448 = vmatmul.bf16.vlgmr.msra.gmra.mxu0 %v282_v57  ;;  %v891_v44 = vor.u32 %v890_v40, %v889_v39  ;;  %v676_v48 = vsel %vm667_vm1, %v673_v28, %v675_v43  ;;  %v315_v57 = vshrl.u32 %v5808_v50, 16 }
  0x2f   : > { %1255 = vmatpush.bf16.msrb.mxu0 %v5275_v54  ;;  %570 = vmatmul.bf16.vlgmr.msra.gmra.mxu1 %v5645_v22  ;;  %v299_v22 = vshrl.u32 %v5754_v16, 16  ;;  %v311_v54 = vshll.u32 %v5808_v50, 16 }
  0x30   : > { %764 = vmatmul.bf16.vlgmr.msra.gmra.mxu2 %v670_v58  ;;  %1559 = vmatpush.bf16.msrb.mxu1 %v5283_v61  ;;  %v893_v58 = vrot.slane %v315_v57, 1 }
  0x31   : > { %1766 = vmatpush.bf16.msrb.mxu2 %v5291_v53  ;;  %1000 = vmatmul.bf16.vlgmr.msra.gmra.mxu3 %v880_v59  ;;  %v885_v24 = vrot.slane %v299_v22, 1  ;;  %v301_v41 = vor.u32 %v299_v22, %v297_v27  ;;  %v5280_v53 = vld [vmem:[%s7047_s1 + $0x160] sm:$0xff]  ;;  %v894_v59 = vrot.slane %v311_v54, 2  ;;  %v313_v61 = vrot.slane %v311_v54, 1 }
  0x32   : > { %2053 = vmatpush.bf16.msrb.mxu3 %v5299_v60  ;;  %v309_v60 = vor.u32 %v307_v38, %v305_v42 }
  0x33   : > { %1256 = vmatpush.bf16.msrb.mxu0 %v5274_v0  ;;  %v5802_v47 = vsel %vm270_vm0, %v301_v41, %v305_v42  ;;  %v895_v0 = vor.u32 %v894_v59, %v893_v58  ;;  %v5874_v41 = vld [vmem:[%s5619_s28 + $0x80] sm:$0xff]  ;;  %v213_v42 = vld [vmem:[%s5619_s28 + $0x88] sm:$0xff]  ;;  %v5270_v58 = vld [vmem:[%s7047_s1 + $0x110] sm:$0xff] }
  0x34   : > { %1560 = vmatpush.bf16.msrb.mxu1 %v5282_v4  ;;  %v5294_v59 = vld [vmem:[%s7047_s1 + $0x1d0] sm:$0xff] }
  0x35   : > { %1767 = vmatpush.bf16.msrb.mxu2 %v5290_v63  ;;  %v677_v63 = vrot.slane %v5808_v50, 1  ;;  %v896_v5 = vsel %vm873_vm2, %v891_v44, %v895_v0 }
  0x36   : > { %2054 = vmatpush.bf16.msrb.mxu3 %v5298_v3  ;;  %v5831_v3 = vsel %vm270_vm0, %v309_v60, %v313_v61  ;;  %v5278_v60 = vld [vmem:[%s7047_s1 + $0x150] sm:$0xff] }
  0x37   : > { %1257 = vmatpush.bf16.msrb.mxu0 %v5273_v18  ;;  %v678_v4 = vsel %vm667_vm1, %v675_v43, %v677_v63  ;;  %v317_v18 = vor.u32 %v315_v57, %v313_v61 }
  0x38   : > { %1561 = vmatpush.bf16.msrb.mxu1 %v5281_v23  ;;  %v5857_v23 = vld [vmem:[%s5619_s28 + $0x70] sm:$0xff] }
  0x39   : > { %1768 = vmatpush.bf16.msrb.mxu2 %v5289_v17 }
  0x3a   : > { %2055 = vmatpush.bf16.msrb.mxu3 %v5297_v20 }
  0x3b   : > { %1258 = vmatpush.bf16.msrb.mxu0 %v5272_v51  ;;  %v5286_v51 = vld [vmem:[%s7047_s1 + $0x190] sm:$0xff] }
  0x3c   : > { %1562 = vmatpush.bf16.msrb.mxu1 %v5280_v53 }
  0x3d   : > { %1769 = vmatpush.bf16.msrb.mxu2 %v5288_v36 }
  0x3e   : > { %453 = vmatmul.bf16.gmra.mxu0 %v290_v13  ;;  %2056 = vmatpush.bf16.msrb.mxu3 %v5296_v52  ;;  %v323_v13 = vshrl.u32 %v5837_v6, 16 }
  0x3f   : > { %575 = vmatmul.bf16.gmra.mxu1 %v5654_v25  ;;  %v886_v25 = vrot.slane %v295_v21, 2  ;;  %1259 = vmatpush.bf16.msrb.mxu0 %v5271_v8  ;;  %v679_v21 = vrot.slane %v5837_v6, 1 }
  0x40   : > { %769 = vmatmul.bf16.gmra.mxu2 %v672_v14  ;;  %v5279_v14 = vld [vmem:[%s7047_s1 + $0x158] sm:$0xff] }
  0x41   : > { %1005 = vmatmul.bf16.gmra.mxu3 %v884_v15  ;;  %v887_v29 = vor.u32 %v886_v25, %v885_v24  ;;  %1770 = vmatpush.bf16.msrb.mxu2 %v5287_v7  ;;  %v897_v15 = vrot.slane %v323_v13, 1  ;;  %v211_v24 = vld [vmem:[%s5619_s28 + $0x78] sm:$0xff]  ;;  %v680_v26 = vsel %vm667_vm1, %v677_v63, %v679_v21 }
  0x42   : > { %2057 = vmatpush.bf16.msrb.mxu3 %v5295_v9  ;;  %1563 = vmatpush.bf16.msrb.mxu1 %v5279_v14  ;;  %v5866_v28 = vpack.c.bf16 %v211_v24, %v5857_v23  ;;  %v215_v7 = vld [vmem:[%s5619_s28 + $0x98] sm:$0xff] }
  0x43   : > { %v888_v34 = vsel %vm873_vm2, %v883_v10, %v887_v29  ;;  %v892_v49 = vsel %vm873_vm2, %v887_v29, %v891_v44  ;;  %v319_v10 = vshll.u32 %v5837_v6, 16  ;;  %1260 = vmatpush.bf16.msrb.mxu0 %v5270_v58 }
  0x44   : > { %v327_v29 = vshll.u32 %v5866_v28, 16  ;;  %v681_v39 = vrot.slane %v5866_v28, 1 }
  0x45   : > { %v898_v17 = vrot.slane %v319_v10, 2  ;;  %v321_v20 = vrot.slane %v319_v10, 1  ;;  %1771 = vmatpush.bf16.msrb.mxu2 %v5286_v51 }
  0x46   : > { %v902_v36 = vrot.slane %v327_v29, 2  ;;  %v329_v38 = vrot.slane %v327_v29, 1  ;;  %v682_v44 = vsel %vm667_vm1, %v679_v21, %v681_v39  ;;  %2058 = vmatpush.bf16.msrb.mxu3 %v5294_v59  ;;  %1564 = vmatpush.bf16.msrb.mxu1 %v5278_v60 }
  0x47   : > { %v899_v22 = vor.u32 %v898_v17, %v897_v15  ;;  %v5861_v25 = vsel %vm270_vm0, %v317_v18, %v321_v20  ;;  %v325_v37 = vor.u32 %v323_v13, %v321_v20 }
  0x49   : > { %v900_v27 = vsel %vm873_vm2, %v895_v0, %v899_v22  ;;  %v5878_v43 = vsel %vm270_vm0, %v325_v37, %v329_v38 }
  0x4e   : > { %458 = vmatmul.bf16.gmra.mxu0 %v5779_v32 }
  0x4f   : > { %580 = vmatmul.bf16.gmra.mxu1 %v5723_v62 }
  0x50   : > { %774 = vmatmul.bf16.gmra.mxu2 %v674_v33  ;;  %v331_v33 = vshrl.u32 %v5866_v28, 16 }
  0x51   : > { %1010 = vmatmul.bf16.gmra.mxu3 %v888_v34 }
  0x52   : > { %v901_v34 = vrot.slane %v331_v33, 1  ;;  %v333_v61 = vor.u32 %v331_v33, %v329_v38 }
  0x54   : > { %v903_v40 = vor.u32 %v902_v36, %v901_v34 }
  0x5e   : > { %463 = vmatmul.bf16.gmra.mxu0 %v5802_v47 }
  0x5f   : > { %585 = vmatmul.bf16.gmra.mxu1 %v5754_v16 }
  0x60   : > { %779 = vmatmul.bf16.gmra.mxu2 %v676_v48  ;;  %v904_v48 = vsel %vm873_vm2, %v899_v22, %v903_v40 }
  0x61   : > { %1015 = vmatmul.bf16.gmra.mxu3 %v892_v49  ;;  %v5883_v49 = vpack.c.bf16 %v213_v42, %v5874_v41  ;;  %v5269_v42 = vld [vmem:[%s7047_s1 + $0x108] sm:$0xff] }
  0x62   : > { %1261 = vmatpush.bf16.msrb.mxu0 %v5269_v42 }
  0x63   : > { %v335_v52 = vshll.u32 %v5883_v49, 16  ;;  %v339_v53 = vshrl.u32 %v5883_v49, 16  ;;  %v683_v0 = vrot.slane %v5883_v49, 1 }
  0x65   : > { %v905_v54 = vrot.slane %v339_v53, 1  ;;  %v906_v57 = vrot.slane %v335_v52, 2  ;;  %v337_v63 = vrot.slane %v335_v52, 1  ;;  %v684_v9 = vsel %vm667_vm1, %v681_v39, %v683_v0 }
  0x67   : > { %v5907_v8 = vsel %vm270_vm0, %v333_v61, %v337_v63  ;;  %v5914_v20 = vor.u32 %v339_v53, %v337_v63 }
  0x6e   : > { %468 = vmatmul.bf16.gmra.mxu0 %v5831_v3 }
  0x6f   : > { %590 = vmatmul.bf16.gmra.mxu1 %v5785_v35 }
  0x70   : > { %784 = vmatmul.bf16.gmra.mxu2 %v678_v4  ;;  %v907_v4 = vor.u32 %v906_v57, %v905_v54 }
  0x71   : > { %1020 = vmatmul.bf16.gmra.mxu3 %v896_v5  ;;  %v5903_v5 = vld [vmem:[%s5619_s28 + $0x90] sm:$0xff] }
  0x72   : > { %v908_v10 = vsel %vm873_vm2, %v903_v40, %v907_v4  ;;  %v232_v13 = vpack.c.bf16 %v215_v7, %v5903_v5  ;;  %v5285_v40 = vld [vmem:[%s7047_s1 + $0x188] sm:$0xff] }
  0x73   : > { %1772 = vmatpush.bf16.msrb.mxu2 %v5285_v40 }
  0x74   : > { %v343_v14 = vshll.u32 %v232_v13, 16  ;;  %v347_v15 = vshrl.u32 %v232_v13, 16  ;;  %v685_v22 = vrot.slane %v232_v13, 1 }
  0x76   : > { %v909_v17 = vrot.slane %v347_v15, 1  ;;  %v910_v18 = vrot.slane %v343_v14, 2  ;;  %v345_v21 = vrot.slane %v343_v14, 1  ;;  %v686_v37 = vsel %vm667_vm1, %v683_v0, %v685_v22  ;;  %v5943_v14 = vld [vmem:[%s5619_s28 + $0xb0] sm:$0xff] }
  0x78   : > { %v911_v24 = vor.u32 %v910_v18, %v909_v17  ;;  %v346_v34 = vsel %vm270_vm0, %v5914_v20, %v345_v21  ;;  %v219_v17 = vld [vmem:[%s5619_s28 + $0xb8] sm:$0xff] }
  0x7a   : > { %v912_v38 = vsel %vm873_vm2, %v907_v4, %v911_v24  ;;  %v349_v4 = vor.u32 %v347_v15, %v345_v21  ;;  %v5950_v15 = vpack.c.bf16 %v219_v17, %v5943_v14 }
  0x7c   : > { %v359_v40 = vshll.u32 %v5950_v15, 16  ;;  %v363_v42 = vshrl.u32 %v5950_v15, 16  ;;  %v689_v17 = vrot.slane %v5950_v15, 1 }
  0x7e   : > { %473 = vmatmul.bf16.gmra.mxu0 %v5861_v25 }
  0x7f   : > { %595 = vmatmul.bf16.gmra.mxu1 %v5808_v50 }
  0x80   : > { %789 = vmatmul.bf16.gmra.mxu2 %v680_v26  ;;  %v216_v26 = vld [vmem:[%s5619_s28 + $0xa0] sm:$0xff] }
  0x81   : > { %1025 = vmatmul.bf16.gmra.mxu3 %v900_v27  ;;  %v217_v27 = vld [vmem:[%s5619_s28 + $0xa8] sm:$0xff] }
  0x82   : > { %v5922_v39 = vpack.c.bf16 %v217_v27, %v216_v26 }
  0x84   : > { %v351_v51 = vshll.u32 %v5922_v39, 16  ;;  %v355_v52 = vshrl.u32 %v5922_v39, 16 }
  0x86   : > { %v913_v61 = vrot.slane %v355_v52, 1  ;;  %v914_v63 = vrot.slane %v351_v51, 2  ;;  %v353_v7 = vrot.slane %v351_v51, 1 }
  0x8e   : > { %478 = vmatmul.bf16.gmra.mxu0 %v5878_v43 }
  0x8f   : > { %600 = vmatmul.bf16.gmra.mxu1 %v5837_v6 }
  0x90   : > { %794 = vmatmul.bf16.gmra.mxu2 %v682_v44  ;;  %v5293_v44 = vld [vmem:[%s7047_s1 + $0x1c8] sm:$0xff] }
  0x91   : > { %1030 = vmatmul.bf16.gmra.mxu3 %v904_v48  ;;  %v5277_v48 = vld [vmem:[%s7047_s1 + $0x148] sm:$0xff] }
  0x92   : > { %2059 = vmatpush.bf16.msrb.mxu3 %v5293_v44  ;;  %1565 = vmatpush.bf16.msrb.mxu1 %v5277_v48 }
  0x9e   : > { %483 = vmatmul.bf16.gmra.mxu0 %v5907_v8 }
  0x9f   : > { %605 = vmatmul.bf16.gmra.mxu1 %v5866_v28 }
  0xa0   : > { %799 = vmatmul.bf16.gmra.mxu2 %v684_v9  ;;  %v687_v9 = vrot.slane %v5922_v39, 1 }
  0xa1   : > { %1035 = vmatmul.bf16.gmra.mxu3 %v908_v10  ;;  %v915_v10 = vor.u32 %v914_v63, %v913_v61  ;;  %v5276_v61 = vld [vmem:[%s7047_s1 + $0x140] sm:$0xff]  ;;  %v357_v63 = vor.u32 %v355_v52, %v353_v7 }
  0xa2   : > { %1566 = vmatpush.bf16.msrb.mxu1 %v5276_v61  ;;  %v690_v52 = vsel %vm667_vm1, %v687_v9, %v689_v17 }
  0xab   : > { %v449_v29 = vpop.f32.mrf.mxu0 }
  0xac   : > { %v571_v33 = vpop.f32.mrf.mxu1 }
  0xad   : > { %v572_v36 = vadd.f32 %v571_v33, %v449_v29 }
  0xae   : > { %488 = vmatmul.bf16.gmra.mxu0 %v346_v34  ;;  %v354_v34 = vsel %vm270_vm0, %v349_v4, %v353_v7  ;;  %v361_v4 = vrot.slane %v359_v40, 1 }
  0xaf   : > { %610 = vmatmul.bf16.gmra.mxu1 %v5883_v49 }
  0xb0   : > { %804 = vmatmul.bf16.gmra.mxu2 %v686_v37  ;;  %v688_v37 = vsel %vm667_vm1, %v685_v22, %v687_v9  ;;  %v365_v61 = vor.u32 %v363_v42, %v361_v4 }
  0xb1   : > { %1040 = vmatmul.bf16.gmra.mxu3 %v912_v38  ;;  %v916_v38 = vsel %vm873_vm2, %v911_v24, %v915_v10  ;;  %v917_v24 = vrot.slane %v363_v42, 1  ;;  %v5323_v42 = vld [vmem:[%s7047_s1 + $0x2b8] sm:$0xff] }
  0xb3   : > { %v765_v53 = vpop.f32.mrf.mxu2  ;;  %v451_v58 = vpop.f32.mrf.mxu0 }
  0xb4   : > { %v1001_v54 = vpop.f32.mrf.mxu3  ;;  %v830_v57 = vadd.f32 %v765_v53, %v572_v36  ;;  %v573_v59 = vpop.f32.mrf.mxu1 }
  0xb5   : > { %v574_v60 = vadd.f32 %v573_v59, %v451_v58  ;;  %v5268_v59 = vld [vmem:[%s7047_s1 + $0x100] sm:$0xff] }
  0xb6   : > { %v5939_v0 = vadd.f32 %v1001_v54, %v830_v57  ;;  %v918_v57 = vrot.slane %v359_v40, 2  ;;  %1262 = vmatpush.bf16.msrb.mxu0 %v5268_v59 }
  0xbb   : > { %v767_v18 = vpop.f32.mrf.mxu2  ;;  %v454_v29 = vpop.f32.mrf.mxu0 }
  0xbc   : > { %v1003_v26 = vpop.f32.mrf.mxu3  ;;  %v831_v27 = vadd.f32 %v767_v18, %v574_v60  ;;  %v576_v33 = vpop.f32.mrf.mxu1  ;;  %v5292_v60 = vld [vmem:[%s7047_s1 + $0x1c0] sm:$0xff]  ;;  %v919_v18 = vor.u32 %v918_v57, %v917_v24 }
  0xbd   : > { %v577_v36 = vadd.f32 %v576_v33, %v454_v29  ;;  %2060 = vmatpush.bf16.msrb.mxu3 %v5292_v60 }
  0xbe   : > { %v5952_v21 = vadd.f32 %v1003_v26, %v831_v27  ;;  %493 = vmatmul.bf16.gmra.mxu0 %v354_v34  ;;  %v220_v26 = vld [vmem:[%s5619_s28 + $0xc0] sm:$0xff]  ;;  %v221_v27 = vld [vmem:[%s5619_s28 + $0xc8] sm:$0xff]  ;;  %v920_v7 = vsel %vm873_vm2, %v915_v10, %v919_v18 }
  0xbf   : > { %615 = vmatmul.bf16.gmra.mxu1 %v232_v13  ;;  %v5284_v13 = vld [vmem:[%s7047_s1 + $0x180] sm:$0xff]  ;;  %v5976_v40 = vpack.c.bf16 %v221_v27, %v220_v26  ;;  %v222_v27 = vld [vmem:[%s5619_s28 + $0xd0] sm:$0xff] }
  0xc0   : > { %809 = vmatmul.bf16.gmra.mxu2 %v688_v37 }
  0xc1   : > { %1045 = vmatmul.bf16.gmra.mxu3 %v916_v38  ;;  %1773 = vmatpush.bf16.msrb.mxu2 %v5284_v13  ;;  %v362_v38 = vsel %vm270_vm0, %v357_v63, %v361_v4  ;;  %v5307_v4 = vld [vmem:[%s7047_s1 + $0x238] sm:$0xff] }
  0xc2   : > { %2316 = vmatpush.bf16.msra.mxu0 %v5307_v4 }
  0xc3   : > { %v770_v44 = vpop.f32.mrf.mxu2  ;;  %v456_v53 = vpop.f32.mrf.mxu0 }
  0xc4   : > { %v1006_v48 = vpop.f32.mrf.mxu3  ;;  %v832_v51 = vadd.f32 %v770_v44, %v577_v36  ;;  %v578_v22 = vpop.f32.mrf.mxu1 }
  0xc5   : > { %v579_v54 = vadd.f32 %v578_v22, %v456_v53  ;;  %v371_v53 = vshrl.u32 %v5976_v40, 16  ;;  %2825 = vmatpush.bf16.msra.mxu2 %v5323_v42 }
  0xc6   : > { %v5956_v58 = vadd.f32 %v1006_v48, %v832_v51  ;;  %v367_v51 = vshll.u32 %v5976_v40, 16 }
  0xc7   : > { %v921_v13 = vrot.slane %v371_v53, 1 }
  0xc8   : > { %v922_v59 = vrot.slane %v367_v51, 2  ;;  %v369_v63 = vrot.slane %v367_v51, 1 }
  0xca   : > { %v923_v26 = vor.u32 %v922_v59, %v921_v13 }
  0xcb   : > { %v772_v29 = vpop.f32.mrf.mxu2  ;;  %v459_v36 = vpop.f32.mrf.mxu0 }
  0xcc   : > { %v1008_v33 = vpop.f32.mrf.mxu3  ;;  %v833_v34 = vadd.f32 %v772_v29, %v579_v54  ;;  %v581_v37 = vpop.f32.mrf.mxu1 }
  0xcd   : > { %v582_v44 = vadd.f32 %v581_v37, %v459_v36 }
  0xce   : > { %v5978_v48 = vadd.f32 %v1008_v33, %v833_v34  ;;  %498 = vmatmul.bf16.gmra.mxu0 %v362_v38  ;;  %v370_v38 = vsel %vm270_vm0, %v365_v61, %v369_v63 }
  0xcf   : > { %620 = vmatmul.bf16.gmra.mxu1 %v5922_v39  ;;  %v691_v39 = vrot.slane %v5976_v40, 1 }
  0xd0   : > { %814 = vmatmul.bf16.gmra.mxu2 %v690_v52 }
  0xd1   : > { %1050 = vmatmul.bf16.gmra.mxu3 %v920_v7  ;;  %v692_v52 = vsel %vm667_vm1, %v689_v17, %v691_v39  ;;  %v924_v7 = vsel %vm873_vm2, %v919_v18, %v923_v26  ;;  %v5331_v17 = vld [vmem:[%s7047_s1 + $0x2f8] sm:$0xff] }
  0xd2   : > { %3058 = vmatpush.bf16.msra.mxu3 %v5331_v17 }
  0xd3   : > { %v775_v22 = vpop.f32.mrf.mxu2  ;;  %v461_v9 = vpop.f32.mrf.mxu0 }
  0xd4   : > { %v1011_v54 = vpop.f32.mrf.mxu3  ;;  %v834_v24 = vadd.f32 %v775_v22, %v582_v44  ;;  %v583_v57 = vpop.f32.mrf.mxu1  ;;  %v252_v22 = vpack.c.bf16 %v222_v27, %v222_v27 }
  0xd5   : > { %v584_v10 = vadd.f32 %v583_v57, %v461_v9 }
  0xd6   : > { %v5983_v60 = vadd.f32 %v1011_v54, %v834_v24  ;;  %v375_v18 = vshll.u32 %v252_v22, 16  ;;  %v925_v51 = vshrl.u32 %v252_v22, 16 }
  0xd8   : > { %v927_v59 = vrot.slane %v925_v51, 1  ;;  %v928_v61 = vrot.slane %v375_v18, 2  ;;  %v6012_v51 = vpack.c.bf16 %v5744_v11, %v5710_v56 }
  0xdb   : > { %v777_v29 = vpop.f32.mrf.mxu2  ;;  %v464_v36 = vpop.f32.mrf.mxu0 }
  0xdc   : > { %v1013_v33 = vpop.f32.mrf.mxu3  ;;  %v835_v34 = vadd.f32 %v777_v29, %v584_v10  ;;  %v586_v37 = vpop.f32.mrf.mxu1  ;;  %v5315_v29 = vld [vmem:[%s7047_s1 + $0x278] sm:$0xff] }
  0xdd   : > { %v587_v44 = vadd.f32 %v586_v37, %v464_v36  ;;  %2620 = vmatpush.bf16.msra.mxu1 %v5315_v29  ;;  %v693_v36 = vrot.slane %v252_v22, 1  ;;  %v929_v37 = vor.u32 %v928_v61, %v927_v59 }
  0xde   : > { %v5990_v54 = vadd.f32 %v1013_v33, %v835_v34  ;;  %503 = vmatmul.bf16.gmra.mxu0 %v370_v38  ;;  %v373_v33 = vor.u32 %v371_v53, %v369_v63  ;;  %v377_v34 = vrot.slane %v375_v18, 1  ;;  %v1382_v18 = vshrl.u32 %v6012_v51, 16 }
  0xdf   : > { %625 = vmatmul.bf16.gmra.mxu1 %v5950_v15  ;;  %v694_v53 = vsel %vm667_vm1, %v691_v39, %v693_v36  ;;  %v930_v63 = vsel %vm873_vm2, %v923_v26, %v929_v37 }
  0xe0   : > { %819 = vmatmul.bf16.gmra.mxu2 %v692_v52  ;;  %v378_v17 = vsel %vm270_vm0, %v373_v33, %v377_v34  ;;  %v1168_v34 = vrot.slane %v6012_v51, 3 }
  0xe1   : > { %1055 = vmatmul.bf16.gmra.mxu3 %v924_v7 }
  0xe3   : > { %v780_v24 = vpop.f32.mrf.mxu2  ;;  %v466_v57 = vpop.f32.mrf.mxu0 }
  0xe4   : > { %v1016_v15 = vpop.f32.mrf.mxu3  ;;  %v836_v9 = vadd.f32 %v780_v24, %v587_v44  ;;  %v588_v10 = vpop.f32.mrf.mxu1  ;;  %v1121_v44 = vpack.c.bf16 %v5707_v55, %v5637_v19 }
  0xe5   : > { %v589_v13 = vadd.f32 %v588_v10, %v466_v57 }
  0xe6   : > { %v6002_v27 = vadd.f32 %v1016_v15, %v836_v9  ;;  %v1374_v19 = vshrl.u32 %v1121_v44, 16  ;;  %v1377_v55 = vshll.u32 %v1121_v44, 16  ;;  %v1385_v15 = vshll.u32 %v6012_v51, 16 }
  0xe7   : > { %v1167_v33 = vrot.slane %v1121_v44, 3 }
  0xe8   : > { %v1376_v9 = vrot.slane %v1374_v19, 3  ;;  %v1379_v26 = vrot.slane %v1377_v55, 4  ;;  %v1387_v59 = vrot.slane %v1385_v15, 4  ;;  %v5330_v19 = vld [vmem:[%s7047_s1 + $0x2f0] sm:$0xff] }
  0xe9   : > { %v5314_v55 = vld [vmem:[%s7047_s1 + $0x270] sm:$0xff]  ;;  %3059 = vmatpush.bf16.msra.mxu3 %v5330_v19 }
  0xea   : > { %v1380_v36 = vor.u32 %v1379_v26, %v1376_v9  ;;  %2621 = vmatpush.bf16.msra.mxu1 %v5314_v55 }
  0xeb   : > { %v782_v38 = vpop.f32.mrf.mxu2  ;;  %v469_v42 = vpop.f32.mrf.mxu0 }
  0xec   : > { %v1018_v52 = vpop.f32.mrf.mxu3  ;;  %v837_v7 = vadd.f32 %v782_v38, %v589_v13  ;;  %v591_v4 = vpop.f32.mrf.mxu1  ;;  %v1384_v13 = vrot.slane %v1382_v18, 3 }
  0xed   : > { %v592_v24 = vadd.f32 %v591_v4, %v469_v42 }
  0xee   : > { %v6016_v22 = vadd.f32 %v1018_v52, %v837_v7  ;;  %508 = vmatmul.bf16.gmra.mxu0 %v378_v17  ;;  %v1388_v37 = vor.u32 %v1387_v59, %v1384_v13  ;;  %v1169_v17 = vsel %vm1166_vm3, %v1167_v33, %v1168_v34 }
  0xef   : > { %630 = vmatmul.bf16.gmra.mxu1 %v5976_v40  ;;  %v5322_v40 = vld [vmem:[%s7047_s1 + $0x2b0] sm:$0xff] }
  0xf0   : > { %824 = vmatmul.bf16.gmra.mxu2 %v694_v53  ;;  %v6031_v53 = vpack.c.bf16 %v5773_v30, %v5747_v12 }
  0xf1   : > { %1060 = vmatmul.bf16.gmra.mxu3 %v930_v63  ;;  %2826 = vmatpush.bf16.msra.mxu2 %v5322_v40  ;;  %v5306_v63 = vld [vmem:[%s7047_s1 + $0x230] sm:$0xff] }
  0xf2   : > { %v1391_v12 = vshrl.u32 %v6031_v53, 16  ;;  %v1394_v30 = vshll.u32 %v6031_v53, 16  ;;  %2317 = vmatpush.bf16.msra.mxu0 %v5306_v63 }
  0xf3   : > { %v785_v56 = vpop.f32.mrf.mxu2  ;;  %v471_v39 = vpop.f32.mrf.mxu0 }
  0xf4   : > { %v1021_v11 = vpop.f32.mrf.mxu3  ;;  %v838_v57 = vadd.f32 %v785_v56, %v592_v24  ;;  %v593_v10 = vpop.f32.mrf.mxu1  ;;  %v1389_v24 = vsel %vm1372_vm4, %v1380_v36, %v1388_v37 }
  0xf5   : > { %v594_v61 = vadd.f32 %v593_v10, %v471_v39  ;;  %v1396_v39 = vrot.slane %v1394_v30, 4 }
  0xf6   : > { %v6021_v29 = vadd.f32 %v1021_v11, %v838_v57  ;;  %v1393_v57 = vrot.slane %v1391_v12, 3  ;;  %v5313_v12 = vld [vmem:[%s7047_s1 + $0x268] sm:$0xff] }
  0xf7   : > { %2622 = vmatpush.bf16.msra.mxu1 %v5313_v12 }
  0xfb   : > { %v787_v38 = vpop.f32.mrf.mxu2  ;;  %v474_v42 = vpop.f32.mrf.mxu0 }
  0xfc   : > { %v1023_v52 = vpop.f32.mrf.mxu3  ;;  %v839_v7 = vadd.f32 %v787_v38, %v594_v61  ;;  %v596_v4 = vpop.f32.mrf.mxu1 }
  0xfd   : > { %v597_v44 = vadd.f32 %v596_v4, %v474_v42 }
  0xfe   : > { %v6033_v51 = vadd.f32 %v1023_v52, %v839_v7  ;;  %1263 = vmatmul.bf16.vlgmr.msrb.gmra.mxu0 %v1169_v17  ;;  %v1124_v52 = vpack.c.bf16 %v5796_v45, %v5776_v31  ;;  %v5321_v45 = vld [vmem:[%s7047_s1 + $0x2a8] sm:$0xff] }
  0xff   : > { %1567 = vmatmul.bf16.vlgmr.msrb.gmra.mxu1 %v1389_v24  ;;  %2827 = vmatpush.bf16.msra.mxu2 %v5321_v45 }
 0x100   : > { %1774 = vmatmul.bf16.vlgmr.msrb.gmra.mxu2 %v5723_v62  ;;  %v1170_v62 = vrot.slane %v6031_v53, 3  ;;  %v1400_v4 = vshrl.u32 %v1124_v52, 16  ;;  %v1403_v17 = vshll.u32 %v1124_v52, 16  ;;  %v1172_v30 = vrot.slane %v1124_v52, 3 }
 0x101   : > { %2061 = vmatmul.bf16.vlgmr.msrb.gmra.mxu3 %v5779_v32  ;;  %v1397_v32 = vor.u32 %v1396_v39, %v1393_v57 }
 0x102   : > { %v1171_v36 = vsel %vm1166_vm3, %v1168_v34, %v1170_v62  ;;  %v1405_v19 = vrot.slane %v1403_v17, 4  ;;  %v1173_v39 = vsel %vm1166_vm3, %v1170_v62, %v1172_v30 }
 0x103   : > { %v790_v18 = vpop.f32.mrf.mxu2  ;;  %v476_v11 = vpop.f32.mrf.mxu0  ;;  %v1398_v38 = vsel %vm1372_vm4, %v1388_v37, %v1397_v32  ;;  %v1402_v37 = vrot.slane %v1400_v4, 3 }
 0x104   : > { %v1026_v15 = vpop.f32.mrf.mxu3  ;;  %v840_v56 = vadd.f32 %v790_v18, %v597_v44  ;;  %v598_v9 = vpop.f32.mrf.mxu1 }
 0x105   : > { %v599_v10 = vadd.f32 %v598_v9, %v476_v11  ;;  %v1406_v18 = vor.u32 %v1405_v19, %v1402_v37  ;;  %v6092_v19 = vpack.c.bf16 %v5857_v23, %v5828_v2  ;;  %v5304_v2 = vld [vmem:[%s7047_s1 + $0x220] sm:$0xff] }
 0x106   : > { %v6048_v26 = vadd.f32 %v1026_v15, %v840_v56  ;;  %v5328_v23 = vld [vmem:[%s7047_s1 + $0x2e0] sm:$0xff] }
 0x107   : > { %v1421_v12 = vshll.u32 %v6092_v19, 16 }
 0x10b   : > { %v792_v13 = vpop.f32.mrf.mxu2  ;;  %v479_v40 = vpop.f32.mrf.mxu0 }
 0x10c   : > { %v1028_v59 = vpop.f32.mrf.mxu3  ;;  %v841_v61 = vadd.f32 %v792_v13, %v599_v10  ;;  %v601_v33 = vpop.f32.mrf.mxu1  ;;  %v1407_v10 = vsel %vm1372_vm4, %v1397_v32, %v1406_v18  ;;  %v6077_v13 = vpack.c.bf16 %v5825_v1, %v5799_v46 }
 0x10d   : > { %v602_v7 = vadd.f32 %v601_v33, %v479_v40 }
 0x10e   : > { %v6055_v42 = vadd.f32 %v1028_v59, %v841_v61  ;;  %1268 = vmatmul.bf16.gmra.mxu0 %v1171_v36  ;;  %v1409_v40 = vshrl.u32 %v6077_v13, 16  ;;  %v1412_v33 = vshll.u32 %v6077_v13, 16  ;;  %v1174_v17 = vrot.slane %v6077_v13, 3 }
 0x10f   : > { %1572 = vmatmul.bf16.gmra.mxu1 %v1398_v38 }
 0x110   : > { %1779 = vmatmul.bf16.gmra.mxu2 %v5754_v16  ;;  %v5305_v16 = vld [vmem:[%s7047_s1 + $0x228] sm:$0xff]  ;;  %v1411_v46 = vrot.slane %v1409_v40, 3  ;;  %v1414_v1 = vrot.slane %v1412_v33, 4 }
 0x111   : > { %2066 = vmatmul.bf16.gmra.mxu3 %v5802_v47  ;;  %v5329_v47 = vld [vmem:[%s7047_s1 + $0x2e8] sm:$0xff]  ;;  %2318 = vmatpush.bf16.msra.mxu0 %v5305_v16  ;;  %v5320_v16 = vld [vmem:[%s7047_s1 + $0x2a0] sm:$0xff] }
 0x112   : > { %3060 = vmatpush.bf16.msra.mxu3 %v5329_v47  ;;  %v1418_v47 = vshrl.u32 %v6092_v19, 16  ;;  %2828 = vmatpush.bf16.msra.mxu2 %v5320_v16 }
 0x113   : > { %v795_v24 = vpop.f32.mrf.mxu2  ;;  %v481_v34 = vpop.f32.mrf.mxu0 }
 0x114   : > { %v1031_v53 = vpop.f32.mrf.mxu3  ;;  %v842_v44 = vadd.f32 %v795_v24, %v602_v7  ;;  %v603_v63 = vpop.f32.mrf.mxu1  ;;  %v1415_v24 = vor.u32 %v1414_v1, %v1411_v46 }
 0x115   : > { %v604_v55 = vadd.f32 %v603_v63, %v481_v34  ;;  %v1175_v63 = vsel %vm1166_vm3, %v1172_v30, %v1174_v17  ;;  %v5312_v30 = vld [vmem:[%s7047_s1 + $0x260] sm:$0xff]  ;;  %2319 = vmatpush.bf16.msra.mxu0 %v5304_v2 }
 0x116   : > { %v6059_v31 = vadd.f32 %v1031_v53, %v842_v44  ;;  %v1416_v37 = vsel %vm1372_vm4, %v1406_v18, %v1415_v24  ;;  %3061 = vmatpush.bf16.msra.mxu3 %v5328_v23  ;;  %2623 = vmatpush.bf16.msra.mxu1 %v5312_v30 }
 0x11b   : > { %v797_v15 = vpop.f32.mrf.mxu2  ;;  %v484_v9 = vpop.f32.mrf.mxu0 }
 0x11c   : > { %v1033_v56 = vpop.f32.mrf.mxu3  ;;  %v843_v11 = vadd.f32 %v797_v15, %v604_v55  ;;  %v606_v57 = vpop.f32.mrf.mxu1 }
 0x11d   : > { %v607_v59 = vadd.f32 %v606_v57, %v484_v9  ;;  %v1423_v9 = vrot.slane %v1421_v12, 4  ;;  %v4564_v12 = vld [vmem:[%s5619_s28 + $0x88] sm:$0xff] }
 0x11e   : > { %v6079_v61 = vadd.f32 %v1033_v56, %v843_v11  ;;  %1273 = vmatmul.bf16.gmra.mxu0 %v1173_v39  ;;  %v1420_v11 = vrot.slane %v1418_v47, 3 }
 0x11f   : > { %1577 = vmatmul.bf16.gmra.mxu1 %v1407_v10  ;;  %v1176_v10 = vrot.slane %v6092_v19, 3 }
 0x120   : > { %1784 = vmatmul.bf16.gmra.mxu2 %v5785_v35  ;;  %v1424_v13 = vor.u32 %v1423_v9, %v1420_v11 }
 0x121   : > { %2071 = vmatmul.bf16.gmra.mxu3 %v5831_v3 }
 0x123   : > { %v800_v62 = vpop.f32.mrf.mxu2  ;;  %v486_v38 = vpop.f32.mrf.mxu0 }
 0x124   : > { %v1036_v36 = vpop.f32.mrf.mxu3  ;;  %v844_v32 = vadd.f32 %v800_v62, %v607_v59  ;;  %v608_v52 = vpop.f32.mrf.mxu1  ;;  %v4562_v59 = vld [vmem:[%s5619_s28 + $0x78] sm:$0xff] }
 0x125   : > { %v609_v7 = vadd.f32 %v608_v52, %v486_v38  ;;  %v1177_v38 = vsel %vm1166_vm3, %v1174_v17, %v1176_v10  ;;  %v1425_v52 = vsel %vm1372_vm4, %v1415_v24, %v1424_v13  ;;  %v6119_v46 = vpack.c.bf16 %v5874_v41, %v4562_v59  ;;  %v4688_v59 = vld [vmem:[%s5619_s28 + $0x98] sm:$0xff] }
 0x126   : > { %v6085_v4 = vadd.f32 %v1036_v36, %v844_v32 }
 0x127   : > { %v1178_v16 = vrot.slane %v6119_v46, 3 }
 0x12b   : > { %v802_v35 = vpop.f32.mrf.mxu2  ;;  %v489_v44 = vpop.f32.mrf.mxu0 }
 0x12c   : > { %v1038_v53 = vpop.f32.mrf.mxu3  ;;  %v845_v3 = vadd.f32 %v802_v35, %v609_v7  ;;  %v611_v34 = vpop.f32.mrf.mxu1  ;;  %v1427_v35 = vshrl.u32 %v6119_v46, 16 }
 0x12d   : > { %v612_v55 = vadd.f32 %v611_v34, %v489_v44 }
 0x12e   : > { %v6094_v45 = vadd.f32 %v1038_v53, %v845_v3  ;;  %1278 = vmatmul.bf16.gmra.mxu0 %v1175_v63  ;;  %v1430_v53 = vshll.u32 %v6119_v46, 16  ;;  %v1429_v34 = vrot.slane %v1427_v35, 3 }
 0x12f   : > { %1582 = vmatmul.bf16.gmra.mxu1 %v1416_v37 }
 0x130   : > { %1789 = vmatmul.bf16.gmra.mxu2 %v5808_v50  ;;  %v1432_v63 = vrot.slane %v1430_v53, 4 }
 0x131   : > { %2076 = vmatmul.bf16.gmra.mxu3 %v5861_v25 }
 0x132   : > { %v1433_v47 = vor.u32 %v1432_v63, %v1429_v34 }
 0x133   : > { %v805_v50 = vpop.f32.mrf.mxu2  ;;  %v491_v15 = vpop.f32.mrf.mxu0 }
 0x134   : > { %v1041_v25 = vpop.f32.mrf.mxu3  ;;  %v846_v18 = vadd.f32 %v805_v50, %v612_v55  ;;  %v613_v56 = vpop.f32.mrf.mxu1  ;;  %v5327_v55 = vld [vmem:[%s7047_s1 + $0x2d8] sm:$0xff] }
 0x135   : > { %v614_v57 = vadd.f32 %v613_v56, %v491_v15  ;;  %3062 = vmatpush.bf16.msra.mxu3 %v5327_v55  ;;  %v1434_v15 = vsel %vm1372_vm4, %v1424_v13, %v1433_v47  ;;  %v6143_v56 = vpack.c.bf16 %v5903_v5, %v4564_v12 }
 0x136   : > { %v6112_v39 = vadd.f32 %v1041_v25, %v846_v18  ;;  %v1179_v18 = vsel %vm1166_vm3, %v1176_v10, %v1178_v16 }
 0x137   : > { %v1436_v10 = vshrl.u32 %v6143_v56, 16  ;;  %v1439_v5 = vshll.u32 %v6143_v56, 16 }
 0x139   : > { %v1441_v46 = vrot.slane %v1439_v5, 4  ;;  %v5302_v5 = vld [vmem:[%s7047_s1 + $0x210] sm:$0xff] }
 0x13b   : > { %v807_v40 = vpop.f32.mrf.mxu2  ;;  %v494_v36 = vpop.f32.mrf.mxu0 }
 0x13c   : > { %v1043_v33 = vpop.f32.mrf.mxu3  ;;  %v847_v62 = vadd.f32 %v807_v40, %v614_v57  ;;  %v616_v32 = vpop.f32.mrf.mxu1  ;;  %v4687_v57 = vld [vmem:[%s5619_s28 + $0x90] sm:$0xff]  ;;  %v5311_v40 = vld [vmem:[%s7047_s1 + $0x258] sm:$0xff] }
 0x13d   : > { %v617_v1 = vadd.f32 %v616_v32, %v494_v36  ;;  %v6156_v13 = vpack.c.bf16 %v4688_v59, %v4687_v57  ;;  %2624 = vmatpush.bf16.msra.mxu1 %v5311_v40 }
 0x13e   : > { %v6121_v7 = vadd.f32 %v1043_v33, %v847_v62  ;;  %1283 = vmatmul.bf16.gmra.mxu0 %v1177_v38 }
 0x13f   : > { %1587 = vmatmul.bf16.gmra.mxu1 %v1425_v52  ;;  %v1438_v52 = vrot.slane %v1436_v10, 3 }
 0x140   : > { %1794 = vmatmul.bf16.gmra.mxu2 %v5837_v6  ;;  %v5319_v6 = vld [vmem:[%s7047_s1 + $0x298] sm:$0xff] }
 0x141   : > { %2081 = vmatmul.bf16.gmra.mxu3 %v5878_v43  ;;  %v5303_v43 = vld [vmem:[%s7047_s1 + $0x218] sm:$0xff]  ;;  %2829 = vmatpush.bf16.msra.mxu2 %v5319_v6  ;;  %v1442_v53 = vor.u32 %v1441_v46, %v1438_v52 }
 0x142   : > { %2320 = vmatpush.bf16.msra.mxu0 %v5303_v43 }
 0x143   : > { %v810_v3 = vpop.f32.mrf.mxu2  ;;  %v496_v44 = vpop.f32.mrf.mxu0  ;;  %v1443_v6 = vsel %vm1372_vm4, %v1433_v47, %v1442_v53  ;;  %v5318_v47 = vld [vmem:[%s7047_s1 + $0x290] sm:$0xff] }
 0x144   : > { %v1046_v17 = vpop.f32.mrf.mxu3  ;;  %v848_v24 = vadd.f32 %v810_v3, %v617_v1  ;;  %v618_v41 = vpop.f32.mrf.mxu1 }
 0x145   : > { %v619_v37 = vadd.f32 %v618_v41, %v496_v44  ;;  %2830 = vmatpush.bf16.msra.mxu2 %v5318_v47 }
 0x146   : > { %v6127_v19 = vadd.f32 %v1046_v17, %v848_v24  ;;  %v4567_v17 = vld [vmem:[%s5619_s28 + $0xa0] sm:$0xff]  ;;  %2321 = vmatpush.bf16.msra.mxu0 %v5302_v5 }
 0x147   : > { %v6165_v43 = vpack.c.bf16 %v4567_v17, %v4688_v59  ;;  %v1944_v59 = vshrl.u32 %v6156_v13, 16 }
 0x14b   : > { %v812_v2 = vpop.f32.mrf.mxu2  ;;  %v499_v50 = vpop.f32.mrf.mxu0 }
 0x14c   : > { %v1048_v23 = vpop.f32.mrf.mxu3  ;;  %v849_v30 = vadd.f32 %v812_v2, %v619_v37  ;;  %v621_v25 = vpop.f32.mrf.mxu1 }
 0x14d   : > { %v622_v11 = vadd.f32 %v621_v25, %v499_v50 }
 0x14e   : > { %v6145_v9 = vadd.f32 %v1048_v23, %v849_v30  ;;  %1288 = vmatmul.bf16.gmra.mxu0 %v1179_v18  ;;  %v4690_v23 = vld [vmem:[%s5619_s28 + $0xa8] sm:$0xff]  ;;  %v1445_v30 = vshrl.u32 %v6165_v43, 16 }
 0x14f   : > { %1592 = vmatmul.bf16.gmra.mxu1 %v1434_v15  ;;  %v6178_v50 = vpack.c.bf16 %v4690_v23, %v4567_v17 }
 0x150   : > { %1799 = vmatmul.bf16.gmra.mxu2 %v5866_v28  ;;  %v1940_v28 = vshll.u32 %v6156_v13, 16 }
 0x151   : > { %2086 = vmatmul.bf16.gmra.mxu3 %v5907_v8  ;;  %v1180_v8 = vrot.slane %v6143_v56, 3  ;;  %v1948_v40 = vshll.u32 %v6178_v50, 16 }
 0x152   : > { %v1942_v3 = vrot.slane %v1940_v28, 1 }
 0x153   : > { %v815_v33 = vpop.f32.mrf.mxu2  ;;  %v501_v32 = vpop.f32.mrf.mxu0  ;;  %v1181_v37 = vsel %vm1166_vm3, %v1178_v16, %v1180_v8  ;;  %v1448_v16 = vshll.u32 %v6165_v43, 16  ;;  %v1950_v52 = vrot.slane %v1948_v40, 1 }
 0x154   : > { %v1051_v62 = vpop.f32.mrf.mxu3  ;;  %v850_v36 = vadd.f32 %v815_v33, %v622_v11  ;;  %v623_v38 = vpop.f32.mrf.mxu1  ;;  %v1943_v12 = vsel %vm270_vm0, %v5914_v20, %v1942_v3  ;;  %v1447_v11 = vrot.slane %v1445_v30, 3  ;;  %v5326_v33 = vld [vmem:[%s7047_s1 + $0x2d0] sm:$0xff] }
 0x155   : > { %v624_v1 = vadd.f32 %v623_v38, %v501_v32  ;;  %v1450_v57 = vrot.slane %v1448_v16, 4  ;;  %3063 = vmatpush.bf16.msra.mxu3 %v5326_v33  ;;  %v1946_v38 = vor.u32 %v1944_v59, %v1942_v3  ;;  %v4691_v3 = vld [vmem:[%s5619_s28 + $0xb0] sm:$0xff]  ;;  %v4571_v59 = vld [vmem:[%s5619_s28 + $0xc0] sm:$0xff] }
 0x156   : > { %v6159_v35 = vadd.f32 %v1051_v62, %v850_v36  ;;  %v5310_v62 = vld [vmem:[%s7047_s1 + $0x250] sm:$0xff]  ;;  %v1182_v36 = vrot.slane %v6165_v43, 3  ;;  %v4692_v43 = vld [vmem:[%s5619_s28 + $0xb8] sm:$0xff] }
 0x157   : > { %v1451_v32 = vor.u32 %v1450_v57, %v1447_v11  ;;  %2625 = vmatpush.bf16.msra.mxu1 %v5310_v62 }
 0x15b   : > { %v817_v24 = vpop.f32.mrf.mxu2  ;;  %v504_v34 = vpop.f32.mrf.mxu0 }
 0x15c   : > { %v1053_v44 = vpop.f32.mrf.mxu3  ;;  %v851_v41 = vadd.f32 %v817_v24, %v624_v1  ;;  %v626_v63 = vpop.f32.mrf.mxu1 }
 0x15d   : > { %v627_v55 = vadd.f32 %v626_v63, %v504_v34  ;;  %v6197_v34 = vpack.c.bf16 %v5943_v14, %v4690_v23 }
 0x15e   : > { %v6169_v2 = vadd.f32 %v1053_v44, %v851_v41  ;;  %1293 = vmatmul.bf16.gmra.mxu0 %v1181_v37  ;;  %v1183_v44 = vsel %vm1166_vm3, %v1180_v8, %v1182_v36  ;;  %v1452_v41 = vsel %vm1372_vm4, %v1442_v53, %v1451_v32  ;;  %v1951_v37 = vsel %vm270_vm0, %v1946_v38, %v1950_v52 }
 0x15f   : > { %1597 = vmatmul.bf16.gmra.mxu1 %v1443_v6  ;;  %v1457_v8 = vshll.u32 %v6197_v34, 16  ;;  %v6207_v53 = vpack.c.bf16 %v4692_v43, %v4691_v3 }
 0x160   : > { %1804 = vmatmul.bf16.gmra.mxu2 %v5883_v49 }
 0x161   : > { %2091 = vmatmul.bf16.gmra.mxu3 %v1943_v12 }
 0x163   : > { %v820_v20 = vpop.f32.mrf.mxu2  ;;  %v506_v15 = vpop.f32.mrf.mxu0 }
 0x164   : > { %v1056_v25 = vpop.f32.mrf.mxu3  ;;  %v852_v18 = vadd.f32 %v820_v20, %v627_v55  ;;  %v628_v56 = vpop.f32.mrf.mxu1  ;;  %v1454_v55 = vshrl.u32 %v6197_v34, 16  ;;  %v1459_v20 = vrot.slane %v1457_v8, 4 }
 0x165   : > { %v629_v49 = vadd.f32 %v628_v56, %v506_v15  ;;  %v1184_v56 = vrot.slane %v6197_v34, 3 }
 0x166   : > { %v6182_v10 = vadd.f32 %v1056_v25, %v852_v18  ;;  %v1456_v47 = vrot.slane %v1454_v55, 3  ;;  %v1952_v18 = vshrl.u32 %v6178_v50, 16 }
 0x168   : > { %v1460_v11 = vor.u32 %v1459_v20, %v1456_v47  ;;  %v1954_v57 = vor.u32 %v1952_v18, %v1950_v52  ;;  %v4694_v52 = vld [vmem:[%s5619_s28 + $0xc8] sm:$0xff] }
 0x169   : > { %v6239_v3 = vpack.c.bf16 %v4694_v52, %v4571_v59 }
 0x16b   : > { %v822_v46 = vpop.f32.mrf.mxu2  ;;  %v509_v17 = vpop.f32.mrf.mxu0  ;;  %v1964_v47 = vshll.u32 %v6239_v3, 16 }
 0x16c   : > { %v1058_v1 = vpop.f32.mrf.mxu3  ;;  %v853_v28 = vadd.f32 %v822_v46, %v629_v49  ;;  %v631_v24 = vpop.f32.mrf.mxu1  ;;  %v1185_v46 = vsel %vm1166_vm3, %v1182_v36, %v1184_v56  ;;  %v5301_v36 = vld [vmem:[%s7047_s1 + $0x208] sm:$0xff] }
 0x16d   : > { %v632_v63 = vadd.f32 %v631_v24, %v509_v17  ;;  %2322 = vmatpush.bf16.msra.mxu0 %v5301_v36 }
 0x16e   : > { %v6200_v6 = vadd.f32 %v1058_v1, %v853_v28  ;;  %1298 = vmatmul.bf16.gmra.mxu0 %v1183_v44  ;;  %v1461_v1 = vsel %vm1372_vm4, %v1451_v32, %v1460_v11  ;;  %v6217_v28 = vpack.c.bf16 %v4571_v59, %v4692_v43  ;;  %v1966_v59 = vrot.slane %v1964_v47, 1  ;;  %v5308_v47 = vld [vmem:[%s7047_s1 + $0x240] sm:$0xff] }
 0x16f   : > { %1602 = vmatmul.bf16.gmra.mxu1 %v1452_v41  ;;  %v5317_v41 = vld [vmem:[%s7047_s1 + $0x288] sm:$0xff] }
 0x170   : > { %1809 = vmatmul.bf16.gmra.mxu2 %v6156_v13  ;;  %v1956_v13 = vshll.u32 %v6207_v53, 16  ;;  %v1463_v32 = vshrl.u32 %v6217_v28, 16  ;;  %v1186_v18 = vrot.slane %v6217_v28, 3 }
 0x171   : > { %2096 = vmatmul.bf16.gmra.mxu3 %v1951_v37  ;;  %v5309_v37 = vld [vmem:[%s7047_s1 + $0x248] sm:$0xff]  ;;  %2831 = vmatpush.bf16.msra.mxu2 %v5317_v41 }
 0x172   : > { %v1958_v49 = vrot.slane %v1956_v13, 1  ;;  %2626 = vmatpush.bf16.msra.mxu1 %v5309_v37 }
 0x173   : > { %v825_v14 = vpop.f32.mrf.mxu2  ;;  %v511_v30 = vpop.f32.mrf.mxu0 }
 0x174   : > { %v1061_v12 = vpop.f32.mrf.mxu3  ;;  %v854_v23 = vadd.f32 %v825_v14, %v632_v63  ;;  %v633_v16 = vpop.f32.mrf.mxu1  ;;  %v1959_v24 = vsel %vm270_vm0, %v1954_v57, %v1958_v49  ;;  %v1466_v63 = vshll.u32 %v6217_v28, 16 }
 0x175   : > { %v634_v25 = vadd.f32 %v633_v16, %v511_v30  ;;  %v1960_v16 = vshrl.u32 %v6207_v53, 16 }
 0x176   : > { %v6211_v15 = vadd.f32 %v1061_v12, %v854_v23  ;;  %v1465_v12 = vrot.slane %v1463_v32, 3  ;;  %v1468_v23 = vrot.slane %v1466_v63, 4  ;;  %2627 = vmatpush.bf16.msra.mxu1 %v5308_v47 }
 0x177   : > { %v1962_v57 = vor.u32 %v1960_v16, %v1958_v49  ;;  %v4696_v49 = vld [vmem:[%s5619_s28 + $0xd8] sm:$0xff] }
 0x178   : > { %v1469_v13 = vor.u32 %v1468_v23, %v1465_v12  ;;  %v5316_v12 = vld [vmem:[%s7047_s1 + $0x280] sm:$0xff] }
 0x179   : > { %v1967_v28 = vsel %vm270_vm0, %v1962_v57, %v1966_v59  ;;  %v5300_v23 = vld [vmem:[%s7047_s1 + $0x200] sm:$0xff]  ;;  %2832 = vmatpush.bf16.msra.mxu2 %v5316_v12 }
 0x17a   : > { %2323 = vmatpush.bf16.msra.mxu0 %v5300_v23 }
 0x17b   : > { %v827_v40 = vpop.f32.mrf.mxu2  ;;  %v1264_v62 = vpop.f32.mrf.mxu0 }
 0x17c   : > { %v1063_v5 = vpop.f32.mrf.mxu3  ;;  %v855_v33 = vadd.f32 %v827_v40, %v634_v25  ;;  %v1568_v38 = vpop.f32.mrf.mxu1  ;;  %v1329_v17 = vadd.f32 %v1264_v62, %v5939_v0  ;;  %v5325_v0 = vld [vmem:[%s7047_s1 + $0x2c8] sm:$0xff]  ;;  %v4573_v40 = vld [vmem:[%s5619_s28 + $0xd0] sm:$0xff] }
 0x17d   : > { %3064 = vmatpush.bf16.msra.mxu3 %v5325_v0 }
 0x17e   : > { %v6221_v44 = vadd.f32 %v1063_v5, %v855_v33  ;;  %v1633_v34 = vadd.f32 %v1568_v38, %v1329_v17  ;;  %1303 = vmatmul.bf16.gmra.mxu0 %v1185_v46  ;;  %v6250_v17 = vpack.c.bf16 %v4573_v40, %v4694_v52 }
 0x17f   : > { %1607 = vmatmul.bf16.gmra.mxu1 %v1461_v1  ;;  %v1470_v1 = vsel %vm1372_vm4, %v1460_v11, %v1469_v13  ;;  %v6260_v11 = vpack.c.bf16 %v4696_v49, %v4573_v40  ;;  %v4575_v40 = vld [vmem:[%s5619_s28 + $0xe0] sm:$0xff] }
 0x180   : > { %1814 = vmatmul.bf16.gmra.mxu2 %v6178_v50  ;;  %v1472_v36 = vshrl.u32 %v6250_v17, 16 }
 0x181   : > { %2101 = vmatmul.bf16.gmra.mxu3 %v1959_v24 }
 0x182   : > { %v1474_v37 = vrot.slane %v1472_v36, 3 }
 0x183   : > { %v1775_v43 = vpop.f32.mrf.mxu2  ;;  %v1266_v50 = vpop.f32.mrf.mxu0 }
 0x184   : > { %v2062_v55 = vpop.f32.mrf.mxu3  ;;  %v1840_v8 = vadd.f32 %v1775_v43, %v1633_v34  ;;  %v1570_v14 = vpop.f32.mrf.mxu1  ;;  %v1330_v30 = vadd.f32 %v1266_v50, %v5952_v21  ;;  %v1187_v21 = vsel %vm1166_vm3, %v1184_v56, %v1186_v18  ;;  %v1475_v56 = vshll.u32 %v6250_v17, 16 }
 0x186   : > { %v6244_v20 = vadd.f32 %v2062_v55, %v1840_v8  ;;  %v1634_v25 = vadd.f32 %v1570_v14, %v1330_v30  ;;  %v1477_v43 = vrot.slane %v1475_v56, 4  ;;  %v1968_v8 = vshrl.u32 %v6239_v3, 16  ;;  %v5324_v30 = vld [vmem:[%s7047_s1 + $0x2c0] sm:$0xff] }
 0x187   : > { %3065 = vmatpush.bf16.msra.mxu3 %v5324_v30 }
 0x188   : > { %v1478_v16 = vor.u32 %v1477_v43, %v1474_v37  ;;  %v1976_v43 = vshrl.u32 %v6260_v11, 16 }
 0x18b   : > { %v1777_v5 = vpop.f32.mrf.mxu2  ;;  %v1269_v38 = vpop.f32.mrf.mxu0 }
 0x18c   : > { %v2064_v33 = vpop.f32.mrf.mxu3  ;;  %v1841_v62 = vadd.f32 %v1777_v5, %v1634_v25  ;;  %v1573_v46 = vpop.f32.mrf.mxu1  ;;  %v1331_v24 = vadd.f32 %v1269_v38, %v5956_v58  ;;  %v1970_v25 = vor.u32 %v1968_v8, %v1966_v59 }
 0x18e   : > { %v6254_v41 = vadd.f32 %v2064_v33, %v1841_v62  ;;  %v1635_v34 = vadd.f32 %v1573_v46, %v1331_v24  ;;  %1308 = vmatmul.bf16.gmra.mxu0 %v1187_v21 }
 0x18f   : > { %1612 = vmatmul.bf16.gmra.mxu1 %v1470_v1  ;;  %v1479_v1 = vsel %vm1372_vm4, %v1469_v13, %v1478_v16 }
 0x190   : > { %1819 = vmatmul.bf16.gmra.mxu2 %v6207_v53  ;;  %v1972_v53 = vshll.u32 %v6260_v11, 16 }
 0x191   : > { %2106 = vmatmul.bf16.gmra.mxu3 %v1967_v28 }
 0x192   : > { %v1974_v57 = vrot.slane %v1972_v53, 1 }
 0x193   : > { %v1780_v52 = vpop.f32.mrf.mxu2  ;;  %v1271_v32 = vpop.f32.mrf.mxu0 }
 0x194   : > { %v2067_v0 = vpop.f32.mrf.mxu3  ;;  %v1842_v58 = vadd.f32 %v1780_v52, %v1635_v34  ;;  %v1575_v63 = vpop.f32.mrf.mxu1  ;;  %v1332_v55 = vadd.f32 %v1271_v32, %v5978_v48  ;;  %v1188_v48 = vrot.slane %v6250_v17, 3  ;;  %v6283_v17 = vpack.c.bf16 %v4575_v40, %v4696_v49  ;;  %v4698_v34 = vld [vmem:[%s5619_s28 + $0xe8] sm:$0xff] }
 0x195   : > { %v1975_v24 = vsel %vm270_vm0, %v1970_v25, %v1974_v57  ;;  %v6293_v13 = vpack.c.bf16 %v4698_v34, %v4575_v40  ;;  %v1978_v12 = vor.u32 %v1976_v43, %v1974_v57 }
 0x196   : > { %v6265_v50 = vadd.f32 %v2067_v0, %v1842_v58  ;;  %v1636_v14 = vadd.f32 %v1575_v63, %v1332_v55  ;;  %v1189_v21 = vsel %vm1166_vm3, %v1186_v18, %v1188_v48  ;;  %v1481_v56 = vshrl.u32 %v6283_v17, 16 }
 0x197   : > { %v1484_v18 = vshll.u32 %v6283_v17, 16  ;;  %v1190_v53 = vrot.slane %v6283_v17, 3 }
 0x198   : > { %v1483_v32 = vrot.slane %v1481_v56, 3 }
 0x199   : > { %v1486_v63 = vrot.slane %v1484_v18, 4 }
 0x19b   : > { %v1782_v5 = vpop.f32.mrf.mxu2  ;;  %v1274_v38 = vpop.f32.mrf.mxu0 }
 0x19c   : > { %v2069_v33 = vpop.f32.mrf.mxu3  ;;  %v1843_v62 = vadd.f32 %v1782_v5, %v1636_v14  ;;  %v1578_v46 = vpop.f32.mrf.mxu1  ;;  %v1333_v59 = vadd.f32 %v1274_v38, %v5983_v60  ;;  %v1487_v14 = vor.u32 %v1486_v63, %v1483_v32  ;;  %v5347_v63 = vld [vmem:[%s7047_s1 + $0x378] sm:$0xff] }
 0x19d   : > { %3623 = vmatpush.bf16.msrb.mxu1 %v5347_v63 }
 0x19e   : > { %v6287_v28 = vadd.f32 %v2069_v33, %v1843_v62  ;;  %v1637_v36 = vadd.f32 %v1578_v46, %v1333_v59  ;;  %1313 = vmatmul.bf16.gmra.mxu0 %v1189_v21  ;;  %v1488_v33 = vsel %vm1372_vm4, %v1478_v16, %v1487_v14  ;;  %v1134_v62 = vpack.c.bf16 %v4698_v34, %v4698_v34  ;;  %v5363_v16 = vld [vmem:[%s7047_s1 + $0x3f8] sm:$0xff] }
 0x19f   : > { %1617 = vmatmul.bf16.gmra.mxu1 %v1479_v1  ;;  %v4699_v1 = vld [vmem:[%s5619_s28 + $0xf0] sm:$0xff]  ;;  %4061 = vmatpush.bf16.msrb.mxu3 %v5363_v16 }
 0x1a0   : > { %1824 = vmatmul.bf16.gmra.mxu2 %v6239_v3  ;;  %v1980_v3 = vshll.u32 %v6293_v13, 16  ;;  %v1490_v57 = vshrl.u32 %v1134_v62, 16  ;;  %v1493_v59 = vshll.u32 %v1134_v62, 16  ;;  %v1192_v43 = vrot.slane %v1134_v62, 3 }
 0x1a1   : > { %2111 = vmatmul.bf16.gmra.mxu3 %v1975_v24  ;;  %v1866_v24 = vpack.c.bf16 %v4699_v1, %v4699_v1 }
 0x1a2   : > { %v1982_v23 = vrot.slane %v1980_v3, 1  ;;  %v1193_v1 = vsel %vm1166_vm3, %v1190_v53, %v1192_v43 }
 0x1a3   : > { %v1785_v49 = vpop.f32.mrf.mxu2  ;;  %v1276_v0 = vpop.f32.mrf.mxu0 }
 0x1a4   : > { %v2072_v52 = vpop.f32.mrf.mxu3  ;;  %v1844_v60 = vadd.f32 %v1785_v49, %v1637_v36  ;;  %v1580_v58 = vpop.f32.mrf.mxu1  ;;  %v1334_v37 = vadd.f32 %v1276_v0, %v5990_v54  ;;  %v1191_v54 = vsel %vm1166_vm3, %v1188_v48, %v1190_v53  ;;  %v1983_v46 = vsel %vm270_vm0, %v1978_v12, %v1982_v23  ;;  %v5355_v48 = vld [vmem:[%s7047_s1 + $0x3b8] sm:$0xff]  ;;  %v4797_v12 = vld [vmem:[%s5619_s28 + $0x40] sm:$0xff] }
 0x1a5   : > { %3828 = vmatpush.bf16.msrb.mxu2 %v5355_v48  ;;  %v1492_v49 = vrot.slane %v1490_v57, 3  ;;  %v1984_v0 = vshrl.u32 %v6293_v13, 16 }
 0x1a6   : > { %v6298_v55 = vadd.f32 %v2072_v52, %v1844_v60  ;;  %v1638_v8 = vadd.f32 %v1580_v58, %v1334_v37  ;;  %v1495_v52 = vrot.slane %v1493_v59, 4  ;;  %v1988_v58 = vshll.u32 %v1866_v24, 16 }
 0x1a8   : > { %v1496_v3 = vor.u32 %v1495_v52, %v1492_v49 }
 0x1ab   : > { %v1787_v30 = vpop.f32.mrf.mxu2  ;;  %v1279_v40 = vpop.f32.mrf.mxu0 }
 0x1ac   : > { %v2074_v47 = vpop.f32.mrf.mxu3  ;;  %v1845_v25 = vadd.f32 %v1787_v30, %v1638_v8  ;;  %v1583_v5 = vpop.f32.mrf.mxu1  ;;  %v1335_v38 = vadd.f32 %v1279_v40, %v6002_v27  ;;  %v5339_v27 = vld [vmem:[%s7047_s1 + $0x338] sm:$0xff]  ;;  %v1986_v30 = vor.u32 %v1984_v0, %v1982_v23  ;;  %v4799_v40 = vld [vmem:[%s5619_s28 + $0x50] sm:$0xff] }
 0x1ad   : > { %3320 = vmatpush.bf16.msrb.mxu0 %v5339_v27  ;;  %v4796_v8 = vld [vmem:[%s5619_s28 + $0x38] sm:$0xff] }
 0x1ae   : > { %v6305_v21 = vadd.f32 %v2074_v47, %v1845_v25  ;;  %v1639_v17 = vadd.f32 %v1583_v5, %v1335_v38  ;;  %1318 = vmatmul.bf16.gmra.mxu0 %v1191_v54  ;;  %v1990_v47 = vrot.slane %v1988_v58, 1  ;;  %v4798_v25 = vld [vmem:[%s5619_s28 + $0x48] sm:$0xff]  ;;  %v2182_v54 = vpack.c.bf16 %v4797_v12, %v4796_v8  ;;  %v5354_v12 = vld [vmem:[%s7047_s1 + $0x3b0] sm:$0xff] }
 0x1af   : > { %1622 = vmatmul.bf16.gmra.mxu1 %v1488_v33  ;;  %v6331_v57 = vpack.c.bf16 %v4799_v40, %v4798_v25  ;;  %3829 = vmatpush.bf16.msrb.mxu2 %v5354_v12 }
 0x1b0   : > { %1829 = vmatmul.bf16.gmra.mxu2 %v6260_v11  ;;  %v1991_v59 = vsel %vm270_vm0, %v1986_v30, %v1990_v47  ;;  %v2435_v27 = vshrl.u32 %v2182_v54, 16  ;;  %v2438_v16 = vshll.u32 %v2182_v54, 16 }
 0x1b1   : > { %2116 = vmatmul.bf16.gmra.mxu3 %v1983_v46  ;;  %v2443_v53 = vshrl.u32 %v6331_v57, 16  ;;  %v2229_v8 = vrot.slane %v6331_v57, 2  ;;  %v2738_v25 = vrot.slane %v6331_v57, 3 }
 0x1b2   : > { %v2943_v58 = vrot.slane %v2438_v16, 4 }
 0x1b3   : > { %v1790_v34 = vpop.f32.mrf.mxu2  ;;  %v1281_v56 = vpop.f32.mrf.mxu0  ;;  %v2445_v49 = vrot.slane %v2443_v53, 2 }
 0x1b4   : > { %v2077_v11 = vpop.f32.mrf.mxu3  ;;  %v1846_v36 = vadd.f32 %v1790_v34, %v1639_v17  ;;  %v1585_v18 = vpop.f32.mrf.mxu1  ;;  %v1336_v60 = vadd.f32 %v1281_v56, %v6016_v22  ;;  %v1497_v17 = vsel %vm1372_vm4, %v1487_v14, %v1496_v3  ;;  %v2446_v14 = vshll.u32 %v6331_v57, 16 }
 0x1b5   : > { %v2228_v3 = vrot.slane %v2182_v54, 2 }
 0x1b6   : > { %v6320_v32 = vadd.f32 %v2077_v11, %v1846_v36  ;;  %v1640_v37 = vadd.f32 %v1585_v18, %v1336_v60  ;;  %v2437_v11 = vrot.slane %v2435_v27, 2  ;;  %v2448_v52 = vrot.slane %v2446_v14, 3 }
 0x1b7   : > { %v2942_v60 = vrot.slane %v2435_v27, 3  ;;  %v2946_v63 = vrot.slane %v2446_v14, 4  ;;  %v5338_v14 = vld [vmem:[%s7047_s1 + $0x330] sm:$0xff] }
 0x1b8   : > { %v2449_v47 = vor.u32 %v2448_v52, %v2445_v49  ;;  %3321 = vmatpush.bf16.msrb.mxu0 %v5338_v14 }
 0x1b9   : > { %v2944_v40 = vor.u32 %v2943_v58, %v2942_v60 }
 0x1bb   : > { %v1792_v22 = vpop.f32.mrf.mxu2  ;;  %v1284_v38 = vpop.f32.mrf.mxu0 }
 0x1bc   : > { %v2079_v5 = vpop.f32.mrf.mxu3  ;;  %v1847_v33 = vadd.f32 %v1792_v22, %v1640_v37  ;;  %v1588_v46 = vpop.f32.mrf.mxu1  ;;  %v1337_v62 = vadd.f32 %v1284_v38, %v6021_v29  ;;  %v2440_v29 = vrot.slane %v2438_v16, 3 }
 0x1be   : > { %v6335_v23 = vadd.f32 %v2079_v5, %v1847_v33  ;;  %v1641_v48 = vadd.f32 %v1588_v46, %v1337_v62  ;;  %1323 = vmatmul.bf16.gmra.mxu0 %v1193_v1  ;;  %v2441_v30 = vor.u32 %v2440_v29, %v2437_v11  ;;  %v4800_v5 = vld [vmem:[%s5619_s28 + $0x58] sm:$0xff]  ;;  %v4801_v33 = vld [vmem:[%s5619_s28 + $0x60] sm:$0xff] }
 0x1bf   : > { %1627 = vmatmul.bf16.gmra.mxu1 %v1497_v17  ;;  %v6352_v27 = vpack.c.bf16 %v4801_v33, %v4800_v5  ;;  %v4802_v5 = vld [vmem:[%s5619_s28 + $0x68] sm:$0xff]  ;;  %v4803_v33 = vld [vmem:[%s5619_s28 + $0x70] sm:$0xff] }
 0x1c0   : > { %1834 = vmatmul.bf16.gmra.mxu2 %v6293_v13  ;;  %v2945_v13 = vrot.slane %v2443_v53, 3 }
 0x1c1   : > { %2121 = vmatmul.bf16.gmra.mxu3 %v1991_v59  ;;  %v2230_v59 = vsel %vm2227_vm5, %v2228_v3, %v2229_v8  ;;  %v2452_v11 = vshrl.u32 %v6352_v27, 16  ;;  %v2455_v29 = vshll.u32 %v6352_v27, 16  ;;  %v2231_v12 = vrot.slane %v6352_v27, 2 }
 0x1c2   : > { %v2947_v22 = vor.u32 %v2946_v63, %v2945_v13 }
 0x1c3   : > { %v1795_v24 = vpop.f32.mrf.mxu2  ;;  %v1286_v56 = vpop.f32.mrf.mxu0  ;;  %v2454_v60 = vrot.slane %v2452_v11, 2  ;;  %v2949_v13 = vrot.slane %v2452_v11, 3  ;;  %v2950_v63 = vrot.slane %v2455_v29, 4 }
 0x1c4   : > { %v2082_v34 = vpop.f32.mrf.mxu3  ;;  %v1848_v36 = vadd.f32 %v1795_v24, %v1641_v48  ;;  %v1590_v18 = vpop.f32.mrf.mxu1  ;;  %v1338_v0 = vadd.f32 %v1286_v56, %v6033_v51  ;;  %v2737_v51 = vrot.slane %v2182_v54, 3  ;;  %v2450_v48 = vsel %vm2433_vm6, %v2441_v30, %v2449_v47  ;;  %v5362_v24 = vld [vmem:[%s7047_s1 + $0x3f0] sm:$0xff] }
 0x1c5   : > { %v2948_v16 = vsel %vm1372_vm4, %v2944_v40, %v2947_v22  ;;  %4062 = vmatpush.bf16.msrb.mxu3 %v5362_v24  ;;  %v2951_v40 = vor.u32 %v2950_v63, %v2949_v13 }
 0x1c6   : > { %v6341_v37 = vadd.f32 %v2082_v34, %v1848_v36  ;;  %v1642_v43 = vadd.f32 %v1590_v18, %v1338_v0  ;;  %v2739_v57 = vsel %vm1166_vm3, %v2737_v51, %v2738_v25  ;;  %v2457_v0 = vrot.slane %v2455_v29, 3 }
 0x1c7   : > { %v2740_v51 = vrot.slane %v6352_v27, 3  ;;  %v2952_v27 = vsel %vm1372_vm4, %v2947_v22, %v2951_v40 }
 0x1c8   : > { %v2458_v30 = vor.u32 %v2457_v0, %v2454_v60  ;;  %v5337_v60 = vld [vmem:[%s7047_s1 + $0x328] sm:$0xff] }
 0x1c9   : > { %v5361_v0 = vld [vmem:[%s7047_s1 + $0x3e8] sm:$0xff]  ;;  %3322 = vmatpush.bf16.msrb.mxu0 %v5337_v60 }
 0x1ca   : > { %4063 = vmatpush.bf16.msrb.mxu3 %v5361_v0 }
 0x1cb   : > { %v1797_v38 = vpop.f32.mrf.mxu2  ;;  %v1289_v17 = vpop.f32.mrf.mxu0 }
 0x1cc   : > { %v2084_v46 = vpop.f32.mrf.mxu3  ;;  %v1849_v1 = vadd.f32 %v1797_v38, %v1642_v43  ;;  %v1593_v62 = vpop.f32.mrf.mxu1  ;;  %v1339_v54 = vadd.f32 %v1289_v17, %v6048_v26  ;;  %v5346_v26 = vld [vmem:[%s7047_s1 + $0x370] sm:$0xff] }
 0x1cd   : > { %3624 = vmatpush.bf16.msrb.mxu1 %v5346_v26 }
 0x1ce   : > { %v6357_v53 = vadd.f32 %v2084_v46, %v1849_v1  ;;  %v1643_v34 = vadd.f32 %v1593_v62, %v1339_v54  ;;  %2324 = vmatmul.bf16.vlgmr.msra.gmra.mxu0 %v2230_v59  ;;  %v2459_v59 = vsel %vm2433_vm6, %v2449_v47, %v2458_v30 }
 0x1cf   : > { %2628 = vmatmul.bf16.vlgmr.msra.gmra.mxu1 %v2450_v48  ;;  %v6379_v48 = vpack.c.bf16 %v4803_v33, %v4802_v5  ;;  %v4804_v5 = vld [vmem:[%s5619_s28 + $0x78] sm:$0xff]  ;;  %v4805_v33 = vld [vmem:[%s5619_s28 + $0x80] sm:$0xff] }
 0x1d0   : > { %2833 = vmatmul.bf16.vlgmr.msra.gmra.mxu2 %v2739_v57  ;;  %v2741_v57 = vsel %vm1166_vm3, %v2738_v25, %v2740_v51 }
 0x1d1   : > { %3066 = vmatmul.bf16.vlgmr.msra.gmra.mxu3 %v2948_v16  ;;  %v6387_v24 = vshrl.u32 %v6379_v48, 16  ;;  %v2742_v63 = vrot.slane %v6379_v48, 3 }
 0x1d3   : > { %v1800_v36 = vpop.f32.mrf.mxu2  ;;  %v1291_v49 = vpop.f32.mrf.mxu0  ;;  %v2463_v22 = vrot.slane %v6387_v24, 2 }
 0x1d4   : > { %v2087_v56 = vpop.f32.mrf.mxu3  ;;  %v1850_v18 = vadd.f32 %v1800_v36, %v1643_v34  ;;  %v1595_v52 = vpop.f32.mrf.mxu1  ;;  %v1340_v58 = vadd.f32 %v1291_v49, %v6055_v42  ;;  %v2232_v42 = vsel %vm2227_vm5, %v2229_v8, %v2231_v12  ;;  %v6390_v8 = vshll.u32 %v6379_v48, 16  ;;  %v5353_v49 = vld [vmem:[%s7047_s1 + $0x3a8] sm:$0xff] }
 0x1d5   : > { %v2953_v36 = vrot.slane %v6387_v24, 3  ;;  %3830 = vmatpush.bf16.msrb.mxu2 %v5353_v49 }
 0x1d6   : > { %v6371_v43 = vadd.f32 %v2087_v56, %v1850_v18  ;;  %v1644_v3 = vadd.f32 %v1595_v52, %v1340_v58  ;;  %v2466_v11 = vrot.slane %v6390_v8, 3  ;;  %v2954_v56 = vrot.slane %v6390_v8, 4 }
 0x1d7   : > { %v6412_v58 = vrot.slane %v6379_v48, 2 }
 0x1d8   : > { %v6414_v13 = vor.u32 %v2466_v11, %v2463_v22 }
 0x1db   : > { %v1802_v38 = vpop.f32.mrf.mxu2  ;;  %v1294_v17 = vpop.f32.mrf.mxu0 }
 0x1dc   : > { %v2089_v46 = vpop.f32.mrf.mxu3  ;;  %v1851_v1 = vadd.f32 %v1802_v38, %v1644_v3  ;;  %v1598_v62 = vpop.f32.mrf.mxu1  ;;  %v1341_v54 = vadd.f32 %v1294_v17, %v6059_v31  ;;  %v2955_v3 = vor.u32 %v2954_v56, %v2953_v36 }
 0x1de   : > { %v6384_v16 = vadd.f32 %v2089_v46, %v1851_v1  ;;  %v1645_v14 = vadd.f32 %v1598_v62, %v1341_v54  ;;  %2329 = vmatmul.bf16.gmra.mxu0 %v2232_v42  ;;  %v2234_v42 = vsel %vm2227_vm5, %v2231_v12, %v6412_v58  ;;  %v6423_v54 = vpack.c.bf16 %v4805_v33, %v4804_v5  ;;  %v4806_v5 = vld [vmem:[%s5619_s28 + $0x88] sm:$0xff]  ;;  %v4807_v33 = vld [vmem:[%s5619_s28 + $0x90] sm:$0xff] }
 0x1df   : > { %2633 = vmatmul.bf16.gmra.mxu1 %v2459_v59  ;;  %v2468_v59 = vsel %vm2433_vm6, %v2458_v30, %v6414_v13 }
 0x1e0   : > { %2838 = vmatmul.bf16.gmra.mxu2 %v2741_v57  ;;  %v2470_v12 = vshrl.u32 %v6423_v54, 16  ;;  %v2744_v0 = vrot.slane %v6423_v54, 3 }
 0x1e1   : > { %3071 = vmatmul.bf16.gmra.mxu3 %v2952_v27  ;;  %v2743_v27 = vsel %vm1166_vm3, %v2740_v51, %v2742_v63 }
 0x1e2   : > { %v2472_v22 = vrot.slane %v2470_v12, 2 }
 0x1e3   : > { %v1805_v47 = vpop.f32.mrf.mxu2  ;;  %v1296_v26 = vpop.f32.mrf.mxu0 }
 0x1e4   : > { %v2092_v34 = vpop.f32.mrf.mxu3  ;;  %v1852_v31 = vadd.f32 %v1805_v47, %v1645_v14  ;;  %v1600_v25 = vpop.f32.mrf.mxu1  ;;  %v1342_v29 = vadd.f32 %v1296_v26, %v6079_v61  ;;  %v5345_v61 = vld [vmem:[%s7047_s1 + $0x368] sm:$0xff]  ;;  %v2956_v14 = vsel %vm1372_vm4, %v2951_v40, %v2955_v3 }
 0x1e5   : > { %3625 = vmatpush.bf16.msrb.mxu1 %v5345_v61 }
 0x1e6   : > { %v6397_v18 = vadd.f32 %v2092_v34, %v1852_v31  ;;  %v1646_v52 = vadd.f32 %v1600_v25, %v1342_v29  ;;  %v2473_v31 = vshll.u32 %v6423_v54, 16  ;;  %v2957_v29 = vrot.slane %v2470_v12, 3  ;;  %v5352_v12 = vld [vmem:[%s7047_s1 + $0x3a0] sm:$0xff] }
 0x1e7   : > { %3831 = vmatpush.bf16.msrb.mxu2 %v5352_v12 }
 0x1e8   : > { %v2475_v40 = vrot.slane %v2473_v31, 3  ;;  %v2958_v36 = vrot.slane %v2473_v31, 4 }
 0x1ea   : > { %v2476_v60 = vor.u32 %v2475_v40, %v2472_v22  ;;  %v2959_v61 = vor.u32 %v2958_v36, %v2957_v29 }
 0x1eb   : > { %v1807_v38 = vpop.f32.mrf.mxu2  ;;  %v1299_v17 = vpop.f32.mrf.mxu0 }
 0x1ec   : > { %v2094_v46 = vpop.f32.mrf.mxu3  ;;  %v1853_v1 = vadd.f32 %v1807_v38, %v1646_v52  ;;  %v1603_v62 = vpop.f32.mrf.mxu1  ;;  %v1343_v57 = vadd.f32 %v1299_v17, %v6085_v4  ;;  %v2235_v52 = vrot.slane %v6423_v54, 2  ;;  %v2745_v54 = vsel %vm1166_vm3, %v2742_v63, %v2744_v0  ;;  %v5336_v63 = vld [vmem:[%s7047_s1 + $0x320] sm:$0xff] }
 0x1ed   : > { %3323 = vmatpush.bf16.msrb.mxu0 %v5336_v63 }
 0x1ee   : > { %v6428_v47 = vadd.f32 %v2094_v46, %v1853_v1  ;;  %v1647_v34 = vadd.f32 %v1603_v62, %v1343_v57  ;;  %2334 = vmatmul.bf16.gmra.mxu0 %v2234_v42  ;;  %v2477_v42 = vsel %vm2433_vm6, %v6414_v13, %v2476_v60 }
 0x1ef   : > { %2638 = vmatmul.bf16.gmra.mxu1 %v2468_v59  ;;  %v6443_v59 = vpack.c.bf16 %v4807_v33, %v4806_v5 }
 0x1f0   : > { %2843 = vmatmul.bf16.gmra.mxu2 %v2743_v27  ;;  %v2960_v27 = vsel %vm1372_vm4, %v2955_v3, %v2959_v61  ;;  %v5360_v3 = vld [vmem:[%s7047_s1 + $0x3e0] sm:$0xff] }
 0x1f1   : > { %3076 = vmatmul.bf16.gmra.mxu3 %v2956_v14  ;;  %v6454_v31 = vshrl.u32 %v6443_v59, 16 }
 0x1f2   : > { %4064 = vmatpush.bf16.msrb.mxu3 %v5360_v3 }
 0x1f3   : > { %v1810_v30 = vpop.f32.mrf.mxu2  ;;  %v1301_v25 = vpop.f32.mrf.mxu0  ;;  %v2481_v40 = vrot.slane %v6454_v31, 2  ;;  %v2961_v36 = vrot.slane %v6454_v31, 3 }
 0x1f4   : > { %v2097_v26 = vpop.f32.mrf.mxu3  ;;  %v1854_v4 = vadd.f32 %v1810_v30, %v1647_v34  ;;  %v1605_v51 = vpop.f32.mrf.mxu1  ;;  %v1344_v11 = vadd.f32 %v1301_v25, %v6094_v45  ;;  %v2236_v45 = vsel %vm2227_vm5, %v6412_v58, %v2235_v52  ;;  %v5344_v30 = vld [vmem:[%s7047_s1 + $0x360] sm:$0xff] }
 0x1f5   : > { %3626 = vmatpush.bf16.msrb.mxu1 %v5344_v30 }
 0x1f6   : > { %v6433_v56 = vadd.f32 %v2097_v26, %v1854_v4  ;;  %v1648_v49 = vadd.f32 %v1605_v51, %v1344_v11 }
 0x1fb   : > { %v1812_v38 = vpop.f32.mrf.mxu2  ;;  %v1304_v17 = vpop.f32.mrf.mxu0 }
 0x1fc   : > { %v2099_v46 = vpop.f32.mrf.mxu3  ;;  %v1855_v1 = vadd.f32 %v1812_v38, %v1648_v49  ;;  %v1608_v62 = vpop.f32.mrf.mxu1  ;;  %v1345_v57 = vadd.f32 %v1304_v17, %v6112_v39  ;;  %v6457_v39 = vshll.u32 %v6443_v59, 16  ;;  %v6476_v38 = vrot.slane %v6443_v59, 2 }
 0x1fe   : > { %v6448_v14 = vadd.f32 %v2099_v46, %v1855_v1  ;;  %v1649_v34 = vadd.f32 %v1608_v62, %v1345_v57  ;;  %2339 = vmatmul.bf16.gmra.mxu0 %v2236_v45  ;;  %v2484_v11 = vrot.slane %v6457_v39, 3  ;;  %v2962_v49 = vrot.slane %v6457_v39, 4  ;;  %v4808_v62 = vld [vmem:[%s5619_s28 + $0x98] sm:$0xff]  ;;  %v4809_v45 = vld [vmem:[%s5619_s28 + $0xa0] sm:$0xff] }
 0x1ff   : > { %2643 = vmatmul.bf16.gmra.mxu1 %v2477_v42  ;;  %v2746_v1 = vrot.slane %v6443_v59, 3  ;;  %v6487_v63 = vpack.c.bf16 %v4809_v45, %v4808_v62  ;;  %v5351_v45 = vld [vmem:[%s7047_s1 + $0x398] sm:$0xff] }
 0x200   : > { %2848 = vmatmul.bf16.gmra.mxu2 %v2745_v54  ;;  %v6478_v46 = vor.u32 %v2484_v11, %v2481_v40  ;;  %v2963_v17 = vor.u32 %v2962_v49, %v2961_v36 }
 0x201   : > { %3081 = vmatmul.bf16.gmra.mxu3 %v2960_v27  ;;  %v2747_v30 = vsel %vm1166_vm3, %v2744_v0, %v2746_v1  ;;  %3832 = vmatpush.bf16.msrb.mxu2 %v5351_v45 }
 0x202   : > { %v2486_v12 = vsel %vm2433_vm6, %v2476_v60, %v6478_v46  ;;  %v6498_v60 = vshll.u32 %v6487_v63, 16 }
 0x203   : > { %v1815_v26 = vpop.f32.mrf.mxu2  ;;  %v1306_v51 = vpop.f32.mrf.mxu0 }
 0x204   : > { %v2102_v4 = vpop.f32.mrf.mxu3  ;;  %v1856_v25 = vadd.f32 %v1815_v26, %v1649_v34  ;;  %v1610_v22 = vpop.f32.mrf.mxu1  ;;  %v1346_v29 = vadd.f32 %v1306_v51, %v6121_v7  ;;  %v2238_v34 = vsel %vm2227_vm5, %v2235_v52, %v6476_v38  ;;  %v2964_v26 = vsel %vm1372_vm4, %v2959_v61, %v2963_v17 }
 0x205   : > { %v6495_v52 = vshrl.u32 %v6487_v63, 16  ;;  %v2493_v11 = vrot.slane %v6498_v60, 3  ;;  %v2966_v49 = vrot.slane %v6498_v60, 4 }
 0x206   : > { %v6473_v5 = vadd.f32 %v2102_v4, %v1856_v25  ;;  %v1650_v33 = vadd.f32 %v1610_v22, %v1346_v29 }
 0x207   : > { %v2490_v61 = vrot.slane %v6495_v52, 2  ;;  %v2965_v36 = vrot.slane %v6495_v52, 3 }
 0x20b   : > { %v1817_v42 = vpop.f32.mrf.mxu2  ;;  %v1309_v54 = vpop.f32.mrf.mxu0 }
 0x20c   : > { %v2104_v57 = vpop.f32.mrf.mxu3  ;;  %v1857_v7 = vadd.f32 %v1817_v42, %v1650_v33  ;;  %v1613_v27 = vpop.f32.mrf.mxu1  ;;  %v1347_v3 = vadd.f32 %v1309_v54, %v6127_v19  ;;  %v5335_v42 = vld [vmem:[%s7047_s1 + $0x318] sm:$0xff]  ;;  %v2748_v54 = vrot.slane %v6487_v63, 3 }
 0x20d   : > { %3324 = vmatpush.bf16.msrb.mxu0 %v5335_v42 }
 0x20e   : > { %v6492_v4 = vadd.f32 %v2104_v57, %v1857_v7  ;;  %v1651_v25 = vadd.f32 %v1613_v27, %v1347_v3  ;;  %2344 = vmatmul.bf16.gmra.mxu0 %v2238_v34  ;;  %v5359_v57 = vld [vmem:[%s7047_s1 + $0x3d8] sm:$0xff]  ;;  %v2494_v7 = vor.u32 %v2493_v11, %v2490_v61  ;;  %v2967_v27 = vor.u32 %v2966_v49, %v2965_v36  ;;  %v4810_v34 = vld [vmem:[%s5619_s28 + $0xa8] sm:$0xff] }
 0x20f   : > { %2648 = vmatmul.bf16.gmra.mxu1 %v2486_v12  ;;  %v4811_v12 = vld [vmem:[%s5619_s28 + $0xb0] sm:$0xff]  ;;  %4065 = vmatpush.bf16.msrb.mxu3 %v5359_v57  ;;  %v2749_v61 = vsel %vm1166_vm3, %v2746_v1, %v2748_v54  ;;  %v5343_v36 = vld [vmem:[%s7047_s1 + $0x358] sm:$0xff] }
 0x210   : > { %7072 = vst [vmem:[#allocation2_spill] sm:$0xff] %v6492_v4  ;;  %2853 = vmatmul.bf16.gmra.mxu2 %v2747_v30  ;;  %v2968_v11 = vsel %vm1372_vm4, %v2963_v17, %v2967_v27  ;;  %3627 = vmatpush.bf16.msrb.mxu1 %v5343_v36 }
 0x211   : > { %3086 = vmatmul.bf16.gmra.mxu3 %v2964_v26 }
 0x213   : > { %v1820_v51 = vpop.f32.mrf.mxu2  ;;  %v1311_v40 = vpop.f32.mrf.mxu0 }
 0x214   : > { %v2107_v22 = vpop.f32.mrf.mxu3  ;;  %v1858_v19 = vadd.f32 %v1820_v51, %v1651_v25  ;;  %v1615_v0 = vpop.f32.mrf.mxu1  ;;  %v1348_v29 = vadd.f32 %v1311_v40, %v6145_v9  ;;  %v2239_v9 = vrot.slane %v6487_v63, 2  ;;  %v6528_v40 = vpack.c.bf16 %v4811_v12, %v4810_v34 }
 0x216   : > { %v6505_v33 = vadd.f32 %v2107_v22, %v1858_v19  ;;  %v1652_v62 = vadd.f32 %v1615_v0, %v1348_v29  ;;  %v6522_v22 = vsel %vm2227_vm5, %v6476_v38, %v2239_v9  ;;  %v6526_v19 = vsel %vm2433_vm6, %v6478_v46, %v2494_v7 }
 0x217   : > { %7074 = vst [vmem:[#allocation4_spill] sm:$0xff] %v6526_v19 }
 0x218   : > { %7073 = vst [vmem:[#allocation3_spill] sm:$0xff] %v6505_v33 }
 0x21b   : > { %v1822_v3 = vpop.f32.mrf.mxu2  ;;  %v1314_v25 = vpop.f32.mrf.mxu0 }
 0x21c   : > { %v2109_v30 = vpop.f32.mrf.mxu3  ;;  %v1859_v26 = vadd.f32 %v1822_v3, %v1652_v62  ;;  %v1618_v51 = vpop.f32.mrf.mxu1  ;;  %v1349_v0 = vadd.f32 %v1314_v25, %v6159_v35  ;;  %v6541_v62 = vshrl.u32 %v6528_v40, 16  ;;  %v6544_v35 = vshll.u32 %v6528_v40, 16 }
 0x21e   : > { %v6533_v29 = vadd.f32 %v2109_v30, %v1859_v26  ;;  %v1653_v49 = vadd.f32 %v1618_v51, %v1349_v0  ;;  %2349 = vmatmul.bf16.gmra.mxu0 %v6522_v22  ;;  %v2499_v34 = vrot.slane %v6541_v62, 2  ;;  %v2502_v12 = vrot.slane %v6544_v35, 3 }
 0x21f   : > { %2653 = vmatmul.bf16.gmra.mxu1 %v6526_v19  ;;  %v2969_v30 = vrot.slane %v6541_v62, 3  ;;  %v2970_v26 = vrot.slane %v6544_v35, 4  ;;  %v2241_v0 = vrot.slane %v6528_v40, 2 }
 0x220   : > { %7075 = vst [vmem:[#allocation5_spill] sm:$0xff] %v6533_v29  ;;  %2858 = vmatmul.bf16.gmra.mxu2 %v2749_v61  ;;  %v2503_v61 = vor.u32 %v2502_v12, %v2499_v34 }
 0x221   : > { %3091 = vmatmul.bf16.gmra.mxu3 %v2968_v11  ;;  %v2750_v11 = vrot.slane %v6528_v40, 3  ;;  %v2971_v36 = vor.u32 %v2970_v26, %v2969_v30 }
 0x223   : > { %v1825_v1 = vpop.f32.mrf.mxu2  ;;  %v1316_v42 = vpop.f32.mrf.mxu0  ;;  %v2751_v34 = vsel %vm1166_vm3, %v2748_v54, %v2750_v11  ;;  %v2972_v12 = vsel %vm1372_vm4, %v2967_v27, %v2971_v36 }
 0x224   : > { %v2112_v17 = vpop.f32.mrf.mxu3  ;;  %v1860_v45 = vadd.f32 %v1825_v1, %v1653_v49  ;;  %v1620_v57 = vpop.f32.mrf.mxu1  ;;  %v1350_v3 = vadd.f32 %v1316_v42, %v6169_v2  ;;  %v4812_v49 = vld [vmem:[%s5619_s28 + $0xb8] sm:$0xff]  ;;  %v4813_v1 = vld [vmem:[%s5619_s28 + $0xc0] sm:$0xff]  ;;  %v6558_v42 = vsel %vm2227_vm5, %v2239_v9, %v2241_v0 }
 0x226   : > { %v6551_v25 = vadd.f32 %v2112_v17, %v1860_v45  ;;  %v1654_v51 = vadd.f32 %v1620_v57, %v1350_v3  ;;  %v6561_v17 = vsel %vm2433_vm6, %v2494_v7, %v2503_v61  ;;  %v6563_v45 = vpack.c.bf16 %v4813_v1, %v4812_v49 }
 0x227   : > { %7077 = vst [vmem:[#allocation7_spill] sm:$0xff] %v6561_v17 }
 0x228   : > { %7076 = vst [vmem:[#allocation6_spill] sm:$0xff] %v6551_v25  ;;  %v6573_v9 = vshrl.u32 %v6563_v45, 16  ;;  %v6576_v7 = vshll.u32 %v6563_v45, 16 }
 0x229   : > { %7078 = vst [vmem:[#allocation8_spill] sm:$0xff] %v6563_v45 }
 0x22a   : > { %7080 = vst [vmem:[#allocation10_spill] sm:$0xff] %v6573_v9  ;;  %v2511_v26 = vrot.slane %v6576_v7, 3  ;;  %v2973_v49 = vrot.slane %v6573_v9, 3  ;;  %v2974_v1 = vrot.slane %v6576_v7, 4 }
 0x22b   : > { %v1827_v29 = vpop.f32.mrf.mxu2  ;;  %v1319_v19 = vpop.f32.mrf.mxu0  ;;  %7081 = vst [vmem:[#allocation11_spill] sm:$0xff] %v6576_v7 }
 0x22c   : > { %v2114_v33 = vpop.f32.mrf.mxu3  ;;  %v1861_v4 = vadd.f32 %v1827_v29, %v1654_v51  ;;  %v1623_v2 = vpop.f32.mrf.mxu1  ;;  %v1351_v57 = vadd.f32 %v1319_v19, %v6182_v10  ;;  %v5350_v10 = vld [vmem:[%s7047_s1 + $0x390] sm:$0xff]  ;;  %v2508_v29 = vrot.slane %v6573_v9, 2 }
 0x22d   : > { %3833 = vmatpush.bf16.msrb.mxu2 %v5350_v10 }
 0x22e   : > { %v6568_v3 = vadd.f32 %v2114_v33, %v1861_v4  ;;  %v1655_v30 = vadd.f32 %v1623_v2, %v1351_v57  ;;  %2354 = vmatmul.bf16.gmra.mxu0 %v6558_v42  ;;  %v5334_v57 = vld [vmem:[%s7047_s1 + $0x310] sm:$0xff]  ;;  %v2512_v10 = vor.u32 %v2511_v26, %v2508_v29 }
 0x22f   : > { %2658 = vmatmul.bf16.gmra.mxu1 %v6561_v17  ;;  %3325 = vmatpush.bf16.msrb.mxu0 %v5334_v57 }
 0x230   : > { %7079 = vst [vmem:[#allocation9_spill] sm:$0xff] %v6568_v3  ;;  %2863 = vmatmul.bf16.gmra.mxu2 %v2751_v34  ;;  %v5358_v34 = vld [vmem:[%s7047_s1 + $0x3d0] sm:$0xff]  ;;  %v6605_v9 = vsel %vm2433_vm6, %v2503_v61, %v2512_v10 }
 0x231   : > { %3096 = vmatmul.bf16.gmra.mxu3 %v2972_v12  ;;  %7084 = vst [vmem:[#allocation14_spill] sm:$0xff] %v6605_v9 }
 0x232   : > { %4066 = vmatpush.bf16.msrb.mxu3 %v5358_v34 }
 0x233   : > { %v1830_v4 = vpop.f32.mrf.mxu2  ;;  %v1321_v27 = vpop.f32.mrf.mxu0 }
 0x234   : > { %v2117_v33 = vpop.f32.mrf.mxu3  ;;  %v1862_v54 = vadd.f32 %v1830_v4, %v1655_v30  ;;  %v1625_v19 = vpop.f32.mrf.mxu1  ;;  %v1352_v51 = vadd.f32 %v1321_v27, %v6200_v6  ;;  %v5342_v30 = vld [vmem:[%s7047_s1 + $0x350] sm:$0xff]  ;;  %v2243_v6 = vrot.slane %v6563_v45, 2  ;;  %v2752_v4 = vrot.slane %v6563_v45, 3 }
 0x235   : > { %v4815_v27 = vld [vmem:[%s5619_s28 + $0xd0] sm:$0xff]  ;;  %3628 = vmatpush.bf16.msrb.mxu1 %v5342_v30 }
 0x236   : > { %v6586_v2 = vadd.f32 %v2117_v33, %v1862_v54  ;;  %v1656_v12 = vadd.f32 %v1625_v19, %v1352_v51  ;;  %v2975_v33 = vor.u32 %v2974_v1, %v2973_v49  ;;  %v4814_v54 = vld [vmem:[%s5619_s28 + $0xc8] sm:$0xff]  ;;  %v6602_v51 = vsel %vm2227_vm5, %v2241_v0, %v2243_v6 }
 0x237   : > { %7083 = vst [vmem:[#allocation13_spill] sm:$0xff] %v6602_v51  ;;  %v6607_v29 = vpack.c.bf16 %v4815_v27, %v4814_v54  ;;  %v2753_v49 = vsel %vm1166_vm3, %v2750_v11, %v2752_v4 }
 0x238   : > { %7082 = vst [vmem:[#allocation12_spill] sm:$0xff] %v6586_v2  ;;  %v2976_v1 = vsel %vm1372_vm4, %v2971_v36, %v2975_v33 }
 0x239   : > { %7085 = vst [vmem:[#allocation15_spill] sm:$0xff] %v6607_v29  ;;  %v6617_v0 = vshrl.u32 %v6607_v29, 16  ;;  %v6620_v61 = vshll.u32 %v6607_v29, 16 }
 0x23b   : > { %v1832_v2 = vpop.f32.mrf.mxu2  ;;  %v1324_v7 = vpop.f32.mrf.mxu0  ;;  %v2977_v30 = vrot.slane %v6617_v0, 3  ;;  %v2978_v54 = vrot.slane %v6620_v61, 4 }
 0x23c   : > { %v2119_v3 = vpop.f32.mrf.mxu3  ;;  %v1863_v25 = vadd.f32 %v1832_v2, %v1656_v12  ;;  %v1628_v19 = vpop.f32.mrf.mxu1  ;;  %v1353_v26 = vadd.f32 %v1324_v7, %v6211_v15  ;;  %v2517_v7 = vrot.slane %v6617_v0, 2  ;;  %v2520_v2 = vrot.slane %v6620_v61, 3 }
 0x23e   : > { %v6612_v57 = vadd.f32 %v2119_v3, %v1863_v25  ;;  %v1657_v34 = vadd.f32 %v1628_v19, %v1353_v26  ;;  %2359 = vmatmul.bf16.gmra.mxu0 %v6602_v51  ;;  %v2245_v26 = vrot.slane %v6607_v29, 2 }
 0x23f   : > { %2663 = vmatmul.bf16.gmra.mxu1 %v6605_v9 }
 0x240   : > { %7086 = vst [vmem:[#allocation16_spill] sm:$0xff] %v6612_v57  ;;  %2868 = vmatmul.bf16.gmra.mxu2 %v2753_v49  ;;  %v2521_v49 = vor.u32 %v2520_v2, %v2517_v7  ;;  %v4817_v57 = vld [vmem:[%s5619_s28 + $0xe0] sm:$0xff] }
 0x241   : > { %3101 = vmatmul.bf16.gmra.mxu3 %v2976_v1  ;;  %v2754_v1 = vrot.slane %v6607_v29, 3 }
 0x243   : > { %v1835_v15 = vpop.f32.mrf.mxu2  ;;  %v1326_v25 = vpop.f32.mrf.mxu0  ;;  %v2755_v7 = vsel %vm1166_vm3, %v2752_v4, %v2754_v1 }
 0x244   : > { %v2122_v11 = vpop.f32.mrf.mxu3  ;;  %v1864_v36 = vadd.f32 %v1835_v15, %v1657_v34  ;;  %v1630_v3 = vpop.f32.mrf.mxu1  ;;  %v1354_v12 = vadd.f32 %v1326_v25, %v6221_v44  ;;  %v2979_v34 = vor.u32 %v2978_v54, %v2977_v30  ;;  %v4816_v15 = vld [vmem:[%s5619_s28 + $0xd8] sm:$0xff]  ;;  %v6634_v25 = vsel %vm2227_vm5, %v2243_v6, %v2245_v26  ;;  %v5333_v6 = vld [vmem:[%s7047_s1 + $0x308] sm:$0xff] }
 0x245   : > { %7088 = vst [vmem:[#allocation18_spill] sm:$0xff] %v6634_v25  ;;  %3326 = vmatpush.bf16.msrb.mxu0 %v5333_v6 }
 0x246   : > { %v6627_v27 = vadd.f32 %v2122_v11, %v1864_v36  ;;  %v1658_v19 = vadd.f32 %v1630_v3, %v1354_v12  ;;  %v6637_v11 = vsel %vm2433_vm6, %v2512_v10, %v2521_v49  ;;  %v6639_v36 = vpack.c.bf16 %v4817_v57, %v4816_v15  ;;  %v5341_v10 = vld [vmem:[%s7047_s1 + $0x348] sm:$0xff] }
 0x247   : > { %7089 = vst [vmem:[#allocation19_spill] sm:$0xff] %v6637_v11  ;;  %v2980_v2 = vsel %vm1372_vm4, %v2975_v33, %v2979_v34  ;;  %3629 = vmatpush.bf16.msrb.mxu1 %v5341_v10 }
 0x248   : > { %7087 = vst [vmem:[#allocation17_spill] sm:$0xff] %v6627_v27  ;;  %v2247_v6 = vrot.slane %v6639_v36, 2 }
 0x24b   : > { %v1837_v9 = vpop.f32.mrf.mxu2  ;;  %v2325_v17 = vpop.f32.mrf.mxu0 }
 0x24c   : > { %v2124_v51 = vpop.f32.mrf.mxu3  ;;  %v1865_v45 = vadd.f32 %v1837_v9, %v1658_v19  ;;  %v2629_v44 = vpop.f32.mrf.mxu1  ;;  %v2390_v3 = vadd.f32 %v2325_v17, %v6244_v20  ;;  %v5349_v9 = vld [vmem:[%s7047_s1 + $0x388] sm:$0xff]  ;;  %v6658_v17 = vshrl.u32 %v6639_v36, 16 }
 0x24d   : > { %v5357_v20 = vld [vmem:[%s7047_s1 + $0x3c8] sm:$0xff]  ;;  %3834 = vmatpush.bf16.msrb.mxu2 %v5349_v9 }
 0x24e   : > { %v6644_v12 = vadd.f32 %v2124_v51, %v1865_v45  ;;  %v2694_v30 = vadd.f32 %v2629_v44, %v2390_v3  ;;  %2364 = vmatmul.bf16.gmra.mxu0 %v6634_v25  ;;  %v6661_v45 = vshll.u32 %v6639_v36, 16  ;;  %4067 = vmatpush.bf16.msrb.mxu3 %v5357_v20  ;;  %v2526_v19 = vrot.slane %v6658_v17, 2 }
 0x24f   : > { %2668 = vmatmul.bf16.gmra.mxu1 %v6637_v11  ;;  %v2981_v3 = vrot.slane %v6658_v17, 3 }
 0x250   : > { %7090 = vst [vmem:[#allocation20_spill] sm:$0xff] %v6644_v12  ;;  %2873 = vmatmul.bf16.gmra.mxu2 %v2755_v7  ;;  %v2529_v15 = vrot.slane %v6661_v45, 3  ;;  %v2982_v7 = vrot.slane %v6661_v45, 4  ;;  %v4819_v12 = vld [vmem:[%s5619_s28 + $0xf0] sm:$0xff] }
 0x251   : > { %3106 = vmatmul.bf16.gmra.mxu3 %v2980_v2 }
 0x252   : > { %v2530_v20 = vor.u32 %v2529_v15, %v2526_v19  ;;  %v2983_v10 = vor.u32 %v2982_v7, %v2981_v3 }
 0x253   : > { %v2834_v4 = vpop.f32.mrf.mxu2  ;;  %v2327_v57 = vpop.f32.mrf.mxu0 }
 0x254   : > { %v3067_v33 = vpop.f32.mrf.mxu3  ;;  %v2899_v51 = vadd.f32 %v2834_v4, %v2694_v30  ;;  %v2631_v54 = vpop.f32.mrf.mxu1  ;;  %v2391_v44 = vadd.f32 %v2327_v57, %v6254_v41  ;;  %v2756_v30 = vrot.slane %v6639_v36, 3  ;;  %v4818_v4 = vld [vmem:[%s5619_s28 + $0xe8] sm:$0xff]  ;;  %v6678_v57 = vsel %vm2227_vm5, %v2245_v26, %v2247_v6 }
 0x255   : > { %v2984_v15 = vsel %vm1372_vm4, %v2979_v34, %v2983_v10 }
 0x256   : > { %v6671_v2 = vadd.f32 %v3067_v33, %v2899_v51  ;;  %v2695_v9 = vadd.f32 %v2631_v54, %v2391_v44  ;;  %v6681_v33 = vsel %vm2433_vm6, %v2521_v49, %v2530_v20  ;;  %v6683_v51 = vpack.c.bf16 %v4819_v12, %v4818_v4 }
 0x257   : > { %7092 = vst [vmem:[#allocation22_spill] sm:$0xff] %v6681_v33  ;;  %v2757_v19 = vsel %vm1166_vm3, %v2754_v1, %v2756_v30 }
 0x258   : > { %7091 = vst [vmem:[#allocation21_spill] sm:$0xff] %v6671_v2  ;;  %v6696_v26 = vshll.u32 %v6683_v51, 16 }
 0x259   : > { %7093 = vst [vmem:[#allocation23_spill] sm:$0xff] %v6683_v51 }
 0x25a   : > { %7096 = vst [vmem:[#allocation26_spill] sm:$0xff] %v6696_v26 }
 0x25b   : > { %v2836_v27 = vpop.f32.mrf.mxu2  ;;  %v2330_v29 = vpop.f32.mrf.mxu0 }
 0x25c   : > { %v3069_v11 = vpop.f32.mrf.mxu3  ;;  %v2900_v25 = vadd.f32 %v2836_v27, %v2695_v9  ;;  %v2634_v41 = vpop.f32.mrf.mxu1  ;;  %v2392_v54 = vadd.f32 %v2330_v29, %v6265_v50  ;;  %v6693_v27 = vshrl.u32 %v6683_v51, 16  ;;  %v2986_v9 = vrot.slane %v6696_v26, 4 }
 0x25e   : > { %v6688_v44 = vadd.f32 %v3069_v11, %v2900_v25  ;;  %v2696_v3 = vadd.f32 %v2634_v41, %v2392_v54  ;;  %2369 = vmatmul.bf16.gmra.mxu0 %v6678_v57  ;;  %7095 = vst [vmem:[#allocation25_spill] sm:$0xff] %v6693_v27  ;;  %v2535_v25 = vrot.slane %v6693_v27, 2  ;;  %v2538_v11 = vrot.slane %v6696_v26, 3  ;;  %v5348_v54 = vld [vmem:[%s7047_s1 + $0x380] sm:$0xff] }
 0x25f   : > { %2673 = vmatmul.bf16.gmra.mxu1 %v6681_v33  ;;  %v2985_v7 = vrot.slane %v6693_v27, 3  ;;  %3835 = vmatpush.bf16.msrb.mxu2 %v5348_v54 }
 0x260   : > { %7094 = vst [vmem:[#allocation24_spill] sm:$0xff] %v6688_v44  ;;  %2878 = vmatmul.bf16.gmra.mxu2 %v2757_v19  ;;  %v5332_v19 = vld [vmem:[%s7047_s1 + $0x300] sm:$0xff] }
 0x261   : > { %3111 = vmatmul.bf16.gmra.mxu3 %v2984_v15  ;;  %v5356_v15 = vld [vmem:[%s7047_s1 + $0x3c0] sm:$0xff]  ;;  %3327 = vmatpush.bf16.msrb.mxu0 %v5332_v19 }
 0x262   : > { %4068 = vmatpush.bf16.msrb.mxu3 %v5356_v15 }
 0x263   : > { %v2839_v50 = vpop.f32.mrf.mxu2  ;;  %v2332_v1 = vpop.f32.mrf.mxu0 }
 0x264   : > { %v3072_v29 = vpop.f32.mrf.mxu3  ;;  %v2901_v49 = vadd.f32 %v2839_v50, %v2696_v3  ;;  %v2636_v34 = vpop.f32.mrf.mxu1  ;;  %v2393_v12 = vadd.f32 %v2332_v1, %v6287_v28  ;;  %v2249_v28 = vrot.slane %v6683_v51, 2  ;;  %v2539_v3 = vor.u32 %v2538_v11, %v2535_v25  ;;  %v5340_v50 = vld [vmem:[%s7047_s1 + $0x340] sm:$0xff]  ;;  %v4820_v1 = vld [vmem:[%s5619_s28 + $0xf8] sm:$0xff] }
 0x265   : > { %3630 = vmatpush.bf16.msrb.mxu1 %v5340_v50 }
 0x266   : > { %v6703_v4 = vadd.f32 %v3072_v29, %v2901_v49  ;;  %v2697_v41 = vadd.f32 %v2636_v34, %v2393_v12  ;;  %v2758_v29 = vrot.slane %v6683_v51, 3  ;;  %v2987_v49 = vor.u32 %v2986_v9, %v2985_v7  ;;  %v4821_v34 = vld [vmem:[%s5619_s28 + $0x100] sm:$0xff] }
 0x267   : > { %v6722_v25 = vsel %vm2227_vm5, %v2247_v6, %v2249_v28  ;;  %v6725_v11 = vsel %vm2433_vm6, %v2530_v20, %v2539_v3  ;;  %v6727_v27 = vpack.c.bf16 %v4821_v34, %v4820_v1 }
 0x268   : > { %7097 = vst [vmem:[#allocation27_spill] sm:$0xff] %v6703_v4  ;;  %v2759_v9 = vsel %vm1166_vm3, %v2756_v30, %v2758_v29  ;;  %v2988_v54 = vsel %vm1372_vm4, %v2983_v10, %v2987_v49 }
 0x269   : > { %7098 = vst [vmem:[#allocation28_spill] sm:$0xff] %v6722_v25  ;;  %v6737_v6 = vshrl.u32 %v6727_v27, 16  ;;  %v6740_v20 = vshll.u32 %v6727_v27, 16 }
 0x26a   : > { %7099 = vst [vmem:[#allocation29_spill] sm:$0xff] %v6725_v11 }
 0x26b   : > { %v2841_v12 = vpop.f32.mrf.mxu2  ;;  %v2335_v2 = vpop.f32.mrf.mxu0  ;;  %7100 = vst [vmem:[#allocation30_spill] sm:$0xff] %v6727_v27  ;;  %v2989_v50 = vrot.slane %v6737_v6, 3  ;;  %v2990_v1 = vrot.slane %v6740_v20, 4 }
 0x26c   : > { %v3074_v4 = vpop.f32.mrf.mxu3  ;;  %v2902_v44 = vadd.f32 %v2841_v12, %v2697_v41  ;;  %v2639_v26 = vpop.f32.mrf.mxu1  ;;  %v2394_v7 = vadd.f32 %v2335_v2, %v6298_v55  ;;  %7102 = vst [vmem:[#allocation32_spill] sm:$0xff] %v6737_v6 }
 0x26d   : > { %7103 = vst [vmem:[#allocation33_spill] sm:$0xff] %v6740_v20 }
 0x26e   : > { %v6732_v19 = vadd.f32 %v3074_v4, %v2902_v44  ;;  %v2698_v15 = vadd.f32 %v2639_v26, %v2394_v7  ;;  %2374 = vmatmul.bf16.gmra.mxu0 %v6722_v25  ;;  %v2544_v26 = vrot.slane %v6737_v6, 2  ;;  %v2547_v4 = vrot.slane %v6740_v20, 3 }
 0x26f   : > { %2678 = vmatmul.bf16.gmra.mxu1 %v6725_v11  ;;  %v6750_v7 = vrot.slane %v6727_v27, 2 }
 0x270   : > { %7101 = vst [vmem:[#allocation31_spill] sm:$0xff] %v6732_v19  ;;  %2883 = vmatmul.bf16.gmra.mxu2 %v2759_v9  ;;  %v6752_v9 = vor.u32 %v2547_v4, %v2544_v26 }
 0x271   : > { %3116 = vmatmul.bf16.gmra.mxu3 %v2988_v54  ;;  %v2760_v54 = vrot.slane %v6727_v27, 3 }
 0x273   : > { %v2844_v55 = vpop.f32.mrf.mxu2  ;;  %v2337_v10 = vpop.f32.mrf.mxu0  ;;  %v2761_v4 = vsel %vm1166_vm3, %v2758_v29, %v2760_v54 }
 0x274   : > { %v3077_v2 = vpop.f32.mrf.mxu3  ;;  %v2903_v30 = vadd.f32 %v2844_v55, %v2698_v15  ;;  %v2641_v44 = vpop.f32.mrf.mxu1  ;;  %v2395_v41 = vadd.f32 %v2337_v10, %v6305_v21  ;;  %v2991_v15 = vor.u32 %v2990_v1, %v2989_v50  ;;  %v6756_v55 = vld [vmem:[%s5619_s28 + $0x108] sm:$0xff] }
 0x275   : > { %7105 = vst [vmem:[#allocation35_spill] sm:$0xff] %v6756_v55 }
 0x276   : > { %v6747_v34 = vadd.f32 %v3077_v2, %v2903_v30  ;;  %v2699_v12 = vadd.f32 %v2641_v44, %v2395_v41  ;;  %v6760_v2 = vsel %vm2227_vm5, %v2249_v28, %v6750_v7  ;;  %v6764_v30 = vsel %vm2433_vm6, %v2539_v3, %v6752_v9 }
 0x277   : > { %7106 = vst [vmem:[#allocation36_spill] sm:$0xff] %v6760_v2  ;;  %v2195_v44 = vpack.c.bf16 %v6756_v55, %v6756_v55  ;;  %v2992_v41 = vsel %vm1372_vm4, %v2987_v49, %v2991_v15 }
 0x278   : > { %7104 = vst [vmem:[#allocation34_spill] sm:$0xff] %v6747_v34 }
 0x279   : > { %7107 = vst [vmem:[#allocation37_spill] sm:$0xff] %v6764_v30  ;;  %v2551_v28 = vshrl.u32 %v2195_v44, 16  ;;  %v2554_v3 = vshll.u32 %v2195_v44, 16  ;;  %v2762_v55 = vrot.slane %v2195_v44, 3 }
 0x27b   : > { %v2846_v19 = vpop.f32.mrf.mxu2  ;;  %v2340_v10 = vpop.f32.mrf.mxu0  ;;  %v2553_v34 = vrot.slane %v2551_v28, 2  ;;  %v2556_v49 = vrot.slane %v2554_v3, 3 }
 0x27c   : > { %v3079_v11 = vpop.f32.mrf.mxu3  ;;  %v2904_v21 = vadd.f32 %v2846_v19, %v2699_v12  ;;  %v2644_v6 = vpop.f32.mrf.mxu1  ;;  %v2396_v26 = vadd.f32 %v2340_v10, %v6320_v32 }
 0x27e   : > { %v6771_v19 = vadd.f32 %v3079_v11, %v2904_v21  ;;  %v2700_v50 = vadd.f32 %v2644_v6, %v2396_v26  ;;  %2379 = vmatmul.bf16.gmra.mxu0 %v6760_v2  ;;  %v2993_v6 = vrot.slane %v2551_v28, 3  ;;  %v2994_v21 = vrot.slane %v2554_v3, 4  ;;  %v5016_v2 = vld [vmem:[%s5619_s28 + $0x60] sm:$0xff] }
 0x27f   : > { %2683 = vmatmul.bf16.gmra.mxu1 %v6764_v30  ;;  %v5015_v30 = vld [vmem:[%s5619_s28 + $0x58] sm:$0xff] }
 0x280   : > { %7108 = vst [vmem:[#allocation38_spill] sm:$0xff] %v6771_v19  ;;  %2888 = vmatmul.bf16.gmra.mxu2 %v2761_v4  ;;  %v2253_v4 = vrot.slane %v2195_v44, 2  ;;  %v2995_v27 = vor.u32 %v2994_v21, %v2993_v6  ;;  %v3233_v21 = vrot.slane %v6379_v48, 1 }
 0x281   : > { %3121 = vmatmul.bf16.gmra.mxu3 %v2992_v41  ;;  %v2557_v41 = vor.u32 %v2556_v49, %v2553_v34  ;;  %v2763_v34 = vsel %vm1166_vm3, %v2760_v54, %v2762_v55 }
 0x283   : > { %v2849_v1 = vpop.f32.mrf.mxu2  ;;  %v2342_v10 = vpop.f32.mrf.mxu0  ;;  %v2558_v28 = vsel %vm2433_vm6, %v6752_v9, %v2557_v41 }
 0x284   : > { %v3082_v12 = vpop.f32.mrf.mxu3  ;;  %v2905_v32 = vadd.f32 %v2849_v1, %v2700_v50  ;;  %v2646_v29 = vpop.f32.mrf.mxu1  ;;  %v2397_v11 = vadd.f32 %v2342_v10, %v6335_v23  ;;  %v3187_v50 = vpack.c.bf16 %v5016_v2, %v5015_v30  ;;  %v2254_v23 = vsel %vm2227_vm5, %v6750_v7, %v2253_v4 }
 0x286   : > { %v6776_v26 = vadd.f32 %v3082_v12, %v2905_v32  ;;  %v2701_v19 = vadd.f32 %v2646_v29, %v2397_v11  ;;  %v2996_v12 = vsel %vm1372_vm4, %v2991_v15, %v2995_v27  ;;  %v3441_v2 = vshll.u32 %v3187_v50, 16 }
 0x287   : > { %v3448_v27 = vrot.slane %v6387_v24, 1  ;;  %v3232_v6 = vrot.slane %v3187_v50, 1 }
 0x288   : > { %v3443_v29 = vrot.slane %v3441_v2, 2  ;;  %v3946_v15 = vrot.slane %v3441_v2, 3 }
 0x28b   : > { %v2851_v20 = vpop.f32.mrf.mxu2  ;;  %v2345_v51 = vpop.f32.mrf.mxu0 }
 0x28c   : > { %v3084_v25 = vpop.f32.mrf.mxu3  ;;  %v2906_v1 = vadd.f32 %v2851_v20, %v2701_v19  ;;  %v2649_v33 = vpop.f32.mrf.mxu1  ;;  %v2398_v3 = vadd.f32 %v2345_v51, %v6341_v37  ;;  %v3438_v20 = vshrl.u32 %v3187_v50, 16 }
 0x28e   : > { %v6787_v44 = vadd.f32 %v3084_v25, %v2906_v1  ;;  %v2702_v32 = vadd.f32 %v2649_v33, %v2398_v3  ;;  %2384 = vmatmul.bf16.gmra.mxu0 %v2254_v23  ;;  %v3440_v10 = vrot.slane %v3438_v20, 1  ;;  %v3451_v25 = vrot.slane %v6390_v8, 2  ;;  %v5020_v3 = vld [vmem:[%s5619_s28 + $0x80] sm:$0xff] }
 0x28f   : > { %2688 = vmatmul.bf16.gmra.mxu1 %v2558_v28  ;;  %v3945_v33 = vrot.slane %v3438_v20, 2  ;;  %v3740_v1 = vrot.slane %v3187_v50, 2  ;;  %v5019_v28 = vld [vmem:[%s5619_s28 + $0x78] sm:$0xff] }
 0x290   : > { %2893 = vmatmul.bf16.gmra.mxu2 %v2763_v34  ;;  %v3444_v4 = vor.u32 %v3443_v29, %v3440_v10  ;;  %v3452_v41 = vor.u32 %v3451_v25, %v3448_v27  ;;  %v6799_v2 = vpack.c.bf16 %v5020_v3, %v5019_v28 }
 0x291   : > { %3126 = vmatmul.bf16.gmra.mxu3 %v2996_v12  ;;  %v3947_v23 = vor.u32 %v3946_v15, %v3945_v33  ;;  %v3742_v48 = vsel %vm2227_vm5, %v3740_v1, %v6412_v58 }
 0x292   : > { %v3453_v20 = vsel %vm873_vm2, %v3444_v4, %v3452_v41  ;;  %v3455_v29 = vshrl.u32 %v6799_v2, 16  ;;  %v3743_v3 = vrot.slane %v6799_v2, 2 }
 0x293   : > { %v2854_v30 = vpop.f32.mrf.mxu2  ;;  %v2347_v37 = vpop.f32.mrf.mxu0  ;;  %v3951_v50 = vsel %vm2433_vm6, %v3947_v23, %v6414_v13  ;;  %v3235_v23 = vrot.slane %v6799_v2, 1 }
 0x294   : > { %v3087_v19 = vpop.f32.mrf.mxu3  ;;  %v2907_v49 = vadd.f32 %v2854_v30, %v2702_v32  ;;  %v2651_v51 = vpop.f32.mrf.mxu1  ;;  %v2399_v54 = vadd.f32 %v2347_v37, %v6357_v53  ;;  %v3234_v53 = vsel %vm667_vm1, %v3232_v6, %v3233_v21  ;;  %v3457_v33 = vrot.slane %v3455_v29, 1 }
 0x296   : > { %v6792_v55 = vadd.f32 %v3087_v19, %v2907_v49  ;;  %v2703_v11 = vadd.f32 %v2651_v51, %v2399_v54  ;;  %v3458_v49 = vshll.u32 %v6799_v2, 16 }
 0x298   : > { %v3460_v54 = vrot.slane %v3458_v49, 2  ;;  %v3953_v6 = vrot.slane %v3458_v49, 3 }
 0x29a   : > { %v3461_v28 = vor.u32 %v3460_v54, %v3457_v33 }
 0x29b   : > { %v2856_v34 = vpop.f32.mrf.mxu2  ;;  %v2350_v8 = vpop.f32.mrf.mxu0 }
 0x29c   : > { %v3089_v24 = vpop.f32.mrf.mxu3  ;;  %v2908_v12 = vadd.f32 %v2856_v34, %v2703_v11  ;;  %v2654_v32 = vpop.f32.mrf.mxu1  ;;  %v2400_v30 = vadd.f32 %v2350_v8, %v6371_v43  ;;  %v3952_v11 = vrot.slane %v3455_v29, 2 }
 0x29e   : > { %v6806_v19 = vadd.f32 %v3089_v24, %v2908_v12  ;;  %v2704_v10 = vadd.f32 %v2654_v32, %v2400_v30  ;;  %3328 = vmatmul.bf16.vlgmr.msrb.gmra.mxu0 %v3234_v53  ;;  %v3954_v34 = vor.u32 %v3953_v6, %v3952_v11 }
 0x29f   : > { %3631 = vmatmul.bf16.vlgmr.msrb.gmra.mxu1 %v3453_v20  ;;  %v3236_v20 = vsel %vm667_vm1, %v3233_v21, %v3235_v23 }
 0x2a0   : > { %3836 = vmatmul.bf16.vlgmr.msrb.gmra.mxu2 %v3742_v48  ;;  %v3744_v48 = vsel %vm2227_vm5, %v6412_v58, %v3743_v3 }
 0x2a1   : > { %4069 = vmatmul.bf16.vlgmr.msrb.gmra.mxu3 %v3951_v50  ;;  %v3955_v50 = vsel %vm2433_vm6, %v6414_v13, %v3954_v34 }
 0x2a3   : > { %v2859_v37 = vpop.f32.mrf.mxu2  ;;  %v2352_v27 = vpop.f32.mrf.mxu0 }
 0x2a4   : > { %v3092_v51 = vpop.f32.mrf.mxu3  ;;  %v2909_v43 = vadd.f32 %v2859_v37, %v2704_v10  ;;  %v2656_v25 = vpop.f32.mrf.mxu1  ;;  %v2401_v15 = vadd.f32 %v2352_v27, %v6384_v16  ;;  %v3462_v16 = vsel %vm873_vm2, %v3452_v41, %v3461_v28  ;;  %v3237_v27 = vrot.slane %v6443_v59, 1 }
 0x2a6   : > { %v6811_v4 = vadd.f32 %v3092_v51, %v2909_v43  ;;  %v2705_v1 = vadd.f32 %v2656_v25, %v2401_v15  ;;  %v3469_v51 = vrot.slane %v6457_v39, 2  ;;  %v3959_v39 = vsel %vm2433_vm6, %v3954_v34, %v6478_v46 }
 0x2a7   : > { %v3239_v34 = vrot.slane %v6487_v63, 1  ;;  %v7109_v63 = vld [vmem:[#allocation4_spill] sm:$0xff] }
 0x2ab   : > { %v2861_v24 = vpop.f32.mrf.mxu2  ;;  %v2355_v32 = vpop.f32.mrf.mxu0 }
 0x2ac   : > { %v3094_v12 = vpop.f32.mrf.mxu3  ;;  %v2910_v8 = vadd.f32 %v2861_v24, %v2705_v1  ;;  %v2659_v53 = vpop.f32.mrf.mxu1  ;;  %v2402_v30 = vadd.f32 %v2355_v32, %v6397_v18  ;;  %v3466_v18 = vrot.slane %v6454_v31, 1  ;;  %v3238_v1 = vsel %vm667_vm1, %v3235_v23, %v3237_v27 }
 0x2ae   : > { %v6822_v10 = vadd.f32 %v3094_v12, %v2910_v8  ;;  %v2706_v2 = vadd.f32 %v2659_v53, %v2402_v30  ;;  %3333 = vmatmul.bf16.gmra.mxu0 %v3236_v20  ;;  %v3470_v25 = vor.u32 %v3469_v51, %v3466_v18  ;;  %v3478_v20 = vrot.slane %v6498_v60, 2 }
 0x2af   : > { %3636 = vmatmul.bf16.gmra.mxu1 %v3462_v16 }
 0x2b0   : > { %3841 = vmatmul.bf16.gmra.mxu2 %v3744_v48  ;;  %v3471_v24 = vsel %vm873_vm2, %v3461_v28, %v3470_v25 }
 0x2b1   : > { %4074 = vmatmul.bf16.gmra.mxu3 %v3955_v50 }
 0x2b3   : > { %v2864_v29 = vpop.f32.mrf.mxu2  ;;  %v2357_v37 = vpop.f32.mrf.mxu0 }
 0x2b4   : > { %v3097_v49 = vpop.f32.mrf.mxu3  ;;  %v2911_v21 = vadd.f32 %v2864_v29, %v2706_v2  ;;  %v2661_v41 = vpop.f32.mrf.mxu1  ;;  %v2403_v58 = vadd.f32 %v2357_v37, %v6428_v47  ;;  %v3746_v47 = vsel %vm2227_vm5, %v3743_v3, %v6476_v38 }
 0x2b6   : > { %v6827_v43 = vadd.f32 %v3097_v49, %v2911_v21  ;;  %v2707_v13 = vadd.f32 %v2661_v41, %v2403_v58  ;;  %v3240_v49 = vsel %vm667_vm1, %v3237_v27, %v3239_v34  ;;  %v3487_v27 = vrot.slane %v6544_v35, 2 }
 0x2bb   : > { %v2866_v33 = vpop.f32.mrf.mxu2  ;;  %v2360_v11 = vpop.f32.mrf.mxu0 }
 0x2bc   : > { %v3099_v54 = vpop.f32.mrf.mxu3  ;;  %v2912_v15 = vadd.f32 %v2866_v33, %v2707_v13  ;;  %v2664_v6 = vpop.f32.mrf.mxu1  ;;  %v2404_v31 = vadd.f32 %v2360_v11, %v6433_v56  ;;  %v3475_v56 = vrot.slane %v6495_v52, 1  ;;  %v3484_v13 = vrot.slane %v6541_v62, 1  ;;  %v7111_v62 = vld [vmem:[#allocation3_spill] sm:$0xff] }
 0x2be   : > { %v6837_v12 = vadd.f32 %v3099_v54, %v2912_v15  ;;  %v2708_v59 = vadd.f32 %v2664_v6, %v2404_v31  ;;  %3338 = vmatmul.bf16.gmra.mxu0 %v3238_v1  ;;  %v3479_v16 = vor.u32 %v3478_v20, %v3475_v56  ;;  %v3241_v15 = vrot.slane %v6528_v40, 1  ;;  %v7112_v40 = vld [vmem:[#allocation7_spill] sm:$0xff]  ;;  %v7113_v20 = vld [vmem:[#allocation10_spill] sm:$0xff] }
 0x2bf   : > { %3641 = vmatmul.bf16.gmra.mxu1 %v3471_v24  ;;  %v3488_v11 = vor.u32 %v3487_v27, %v3484_v13  ;;  %v7118_v27 = vld [vmem:[#allocation13_spill] sm:$0xff] }
 0x2c0   : > { %3846 = vmatmul.bf16.gmra.mxu2 %v3746_v47  ;;  %v3480_v21 = vsel %vm873_vm2, %v3470_v25, %v3479_v16  ;;  %v7110_v25 = vld [vmem:[#allocation2_spill] sm:$0xff]  ;;  %v3242_v47 = vsel %vm667_vm1, %v3239_v34, %v3241_v15 }
 0x2c1   : > { %4079 = vmatmul.bf16.gmra.mxu3 %v3959_v39  ;;  %v3489_v39 = vsel %vm873_vm2, %v3479_v16, %v3488_v11  ;;  %v7115_v16 = vld [vmem:[#allocation5_spill] sm:$0xff] }
 0x2c3   : > { %v2869_v8 = vpop.f32.mrf.mxu2  ;;  %v2362_v53 = vpop.f32.mrf.mxu0 }
 0x2c4   : > { %v3102_v32 = vpop.f32.mrf.mxu3  ;;  %v2913_v23 = vadd.f32 %v2869_v8, %v2708_v59  ;;  %v2666_v28 = vpop.f32.mrf.mxu1  ;;  %v2405_v38 = vadd.f32 %v2362_v53, %v6448_v14 }
 0x2c6   : > { %v6842_v3 = vadd.f32 %v3102_v32, %v2913_v23  ;;  %v2709_v46 = vadd.f32 %v2666_v28, %v2405_v38  ;;  %v3493_v38 = vrot.slane %v7113_v20, 1 }
 0x2cb   : > { %v2871_v30 = vpop.f32.mrf.mxu2  ;;  %v2365_v2 = vpop.f32.mrf.mxu0 }
 0x2cc   : > { %v3104_v48 = vpop.f32.mrf.mxu3  ;;  %v2914_v50 = vadd.f32 %v2871_v30, %v2709_v46  ;;  %v2669_v29 = vpop.f32.mrf.mxu1  ;;  %v2406_v52 = vadd.f32 %v2365_v2, %v6473_v5  ;;  %v7114_v46 = vld [vmem:[#allocation11_spill] sm:$0xff]  ;;  %v7116_v2 = vld [vmem:[#allocation8_spill] sm:$0xff] }
 0x2cd   : > { %v3496_v34 = vrot.slane %v7114_v46, 2 }
 0x2ce   : > { %v6848_v60 = vadd.f32 %v3104_v48, %v2914_v50  ;;  %v2710_v14 = vadd.f32 %v2669_v29, %v2406_v52  ;;  %3343 = vmatmul.bf16.gmra.mxu0 %v3240_v49  ;;  %v3243_v29 = vrot.slane %v7116_v2, 1 }
 0x2cf   : > { %3646 = vmatmul.bf16.gmra.mxu1 %v3480_v21  ;;  %v3497_v49 = vor.u32 %v3496_v34, %v3493_v38  ;;  %v7123_v34 = vld [vmem:[#allocation18_spill] sm:$0xff] }
 0x2d0   : > { %3851 = vmatmul.bf16.gmra.mxu2 %v6522_v22 }
 0x2d1   : > { %4084 = vmatmul.bf16.gmra.mxu3 %v7109_v63 }
 0x2d3   : > { %v2874_v37 = vpop.f32.mrf.mxu2  ;;  %v2367_v51 = vpop.f32.mrf.mxu0 }
 0x2d4   : > { %v3107_v41 = vpop.f32.mrf.mxu3  ;;  %v2915_v18 = vadd.f32 %v2874_v37, %v2710_v14  ;;  %v2671_v58 = vpop.f32.mrf.mxu1  ;;  %v2407_v5 = vadd.f32 %v2367_v51, %v7110_v25  ;;  %v3244_v37 = vsel %vm667_vm1, %v3241_v15, %v3243_v29  ;;  %v7119_v25 = vld [vmem:[#allocation14_spill] sm:$0xff]  ;;  %v3502_v15 = vrot.slane %v6617_v0, 1  ;;  %v7122_v0 = vld [vmem:[#allocation12_spill] sm:$0xff] }
 0x2d6   : > { %v6855_v33 = vadd.f32 %v3107_v41, %v2915_v18  ;;  %v2711_v54 = vadd.f32 %v2671_v58, %v2407_v5  ;;  %v3498_v41 = vsel %vm873_vm2, %v3488_v11, %v3497_v49  ;;  %v7117_v18 = vld [vmem:[#allocation6_spill] sm:$0xff]  ;;  %v3505_v11 = vrot.slane %v6620_v61, 2 }
 0x2db   : > { %v2876_v22 = vpop.f32.mrf.mxu2  ;;  %v2370_v24 = vpop.f32.mrf.mxu0 }
 0x2dc   : > { %v3109_v6 = vpop.f32.mrf.mxu3  ;;  %v2916_v1 = vadd.f32 %v2876_v22, %v2711_v54  ;;  %v2674_v31 = vpop.f32.mrf.mxu1  ;;  %v2408_v59 = vadd.f32 %v2370_v24, %v7111_v62  ;;  %v7120_v24 = vld [vmem:[#allocation9_spill] sm:$0xff]  ;;  %v7121_v62 = vld [vmem:[#allocation15_spill] sm:$0xff] }
 0x2de   : > { %v6861_v35 = vadd.f32 %v3109_v6, %v2916_v1  ;;  %v2712_v8 = vadd.f32 %v2674_v31, %v2408_v59  ;;  %3348 = vmatmul.bf16.gmra.mxu0 %v3242_v47  ;;  %v3245_v59 = vrot.slane %v7121_v62, 1  ;;  %v7128_v62 = vld [vmem:[#allocation25_spill] sm:$0xff] }
 0x2df   : > { %3651 = vmatmul.bf16.gmra.mxu1 %v3489_v39 }
 0x2e0   : > { %3856 = vmatmul.bf16.gmra.mxu2 %v6558_v42 }
 0x2e1   : > { %4089 = vmatmul.bf16.gmra.mxu3 %v7112_v40 }
 0x2e3   : > { %v2879_v32 = vpop.f32.mrf.mxu2  ;;  %v2372_v28 = vpop.f32.mrf.mxu0 }
 0x2e4   : > { %v3112_v23 = vpop.f32.mrf.mxu3  ;;  %v2917_v53 = vadd.f32 %v2879_v32, %v2712_v8  ;;  %v2676_v56 = vpop.f32.mrf.mxu1  ;;  %v2409_v30 = vadd.f32 %v2372_v28, %v7115_v16  ;;  %v3506_v8 = vor.u32 %v3505_v11, %v3502_v15  ;;  %v7124_v16 = vld [vmem:[#allocation19_spill] sm:$0xff] }
 0x2e6   : > { %v6868_v48 = vadd.f32 %v3112_v23, %v2917_v53  ;;  %v2713_v50 = vadd.f32 %v2676_v56, %v2409_v30  ;;  %v3246_v56 = vsel %vm667_vm1, %v3243_v29, %v3245_v59  ;;  %v3507_v20 = vsel %vm873_vm2, %v3497_v49, %v3506_v8 }
 0x2e7   : > { %v3511_v29 = vrot.slane %v6658_v17, 1  ;;  %v3514_v49 = vrot.slane %v6661_v45, 2  ;;  %v7126_v17 = vld [vmem:[#allocation17_spill] sm:$0xff] }
 0x2eb   : > { %v2881_v42 = vpop.f32.mrf.mxu2  ;;  %v2375_v14 = vpop.f32.mrf.mxu0 }
 0x2ec   : > { %v3114_v21 = vpop.f32.mrf.mxu3  ;;  %v2918_v52 = vadd.f32 %v2881_v42, %v2713_v50  ;;  %v2679_v63 = vpop.f32.mrf.mxu1  ;;  %v2410_v51 = vadd.f32 %v2375_v14, %v7117_v18  ;;  %v3515_v18 = vor.u32 %v3514_v49, %v3511_v29  ;;  %v7133_v29 = vld [vmem:[#allocation28_spill] sm:$0xff]  ;;  %v7134_v49 = vld [vmem:[#allocation29_spill] sm:$0xff] }
 0x2ee   : > { %v6874_v58 = vadd.f32 %v3114_v21, %v2918_v52  ;;  %v2714_v13 = vadd.f32 %v2679_v63, %v2410_v51  ;;  %3353 = vmatmul.bf16.gmra.mxu0 %v3244_v37  ;;  %v7125_v52 = vld [vmem:[#allocation16_spill] sm:$0xff] }
 0x2ef   : > { %3656 = vmatmul.bf16.gmra.mxu1 %v3498_v41  ;;  %v3247_v41 = vrot.slane %v6639_v36, 1  ;;  %v7127_v36 = vld [vmem:[#allocation22_spill] sm:$0xff] }
 0x2f0   : > { %3861 = vmatmul.bf16.gmra.mxu2 %v7118_v27 }
 0x2f1   : > { %4094 = vmatmul.bf16.gmra.mxu3 %v7119_v25 }
 0x2f3   : > { %v2884_v5 = vpop.f32.mrf.mxu2  ;;  %v2377_v6 = vpop.f32.mrf.mxu0 }
 0x2f4   : > { %v3117_v54 = vpop.f32.mrf.mxu3  ;;  %v2919_v22 = vadd.f32 %v2884_v5, %v2714_v13  ;;  %v2681_v1 = vpop.f32.mrf.mxu1  ;;  %v2411_v31 = vadd.f32 %v2377_v6, %v7120_v24 }
 0x2f6   : > { %v6881_v47 = vadd.f32 %v3117_v54, %v2919_v22  ;;  %v2715_v39 = vadd.f32 %v2681_v1, %v2411_v31  ;;  %v3248_v54 = vsel %vm667_vm1, %v3245_v59, %v3247_v41  ;;  %v3516_v22 = vsel %vm873_vm2, %v3506_v8, %v3515_v18 }
 0x2f7   : > { %v3520_v59 = vrot.slane %v7128_v62, 1 }
 0x2fb   : > { %v2886_v40 = vpop.f32.mrf.mxu2  ;;  %v2380_v53 = vpop.f32.mrf.mxu0 }
 0x2fc   : > { %v3119_v32 = vpop.f32.mrf.mxu3  ;;  %v2920_v23 = vadd.f32 %v2886_v40, %v2715_v39  ;;  %v2684_v28 = vpop.f32.mrf.mxu1  ;;  %v2412_v38 = vadd.f32 %v2380_v53, %v7122_v0  ;;  %v7129_v40 = vld [vmem:[#allocation26_spill] sm:$0xff] }
 0x2fd   : > { %v3523_v8 = vrot.slane %v7129_v40, 2 }
 0x2fe   : > { %v6887_v61 = vadd.f32 %v3119_v32, %v2920_v23  ;;  %v2716_v46 = vadd.f32 %v2684_v28, %v2412_v38  ;;  %3358 = vmatmul.bf16.gmra.mxu0 %v3246_v56  ;;  %v7130_v32 = vld [vmem:[#allocation20_spill] sm:$0xff]  ;;  %v7131_v56 = vld [vmem:[#allocation23_spill] sm:$0xff] }
 0x2ff   : > { %3661 = vmatmul.bf16.gmra.mxu1 %v3507_v20  ;;  %v3249_v20 = vrot.slane %v7131_v56, 1 }
 0x300   : > { %3866 = vmatmul.bf16.gmra.mxu2 %v7123_v34 }
 0x301   : > { %4099 = vmatmul.bf16.gmra.mxu3 %v7124_v16 }
 0x303   : > { %v2889_v30 = vpop.f32.mrf.mxu2  ;;  %v2382_v42 = vpop.f32.mrf.mxu0 }
 0x304   : > { %v3122_v50 = vpop.f32.mrf.mxu3  ;;  %v2921_v2 = vadd.f32 %v2889_v30, %v2716_v46  ;;  %v2686_v21 = vpop.f32.mrf.mxu1  ;;  %v2413_v14 = vadd.f32 %v2382_v42, %v7125_v52  ;;  %v3250_v30 = vsel %vm667_vm1, %v3247_v41, %v3249_v20  ;;  %v7132_v42 = vld [vmem:[#allocation21_spill] sm:$0xff] }
 0x306   : > { %v6894_v63 = vadd.f32 %v3122_v50, %v2921_v2  ;;  %v2717_v37 = vadd.f32 %v2686_v21, %v2413_v14 }
 0x30b   : > { %v2891_v51 = vpop.f32.mrf.mxu2  ;;  %v2385_v25 = vpop.f32.mrf.mxu0 }
 0x30c   : > { %v3124_v13 = vpop.f32.mrf.mxu3  ;;  %v2922_v27 = vadd.f32 %v2891_v51, %v2717_v37  ;;  %v2689_v5 = vpop.f32.mrf.mxu1  ;;  %v2414_v6 = vadd.f32 %v2385_v25, %v7126_v17  ;;  %v7138_v17 = vld [vmem:[#allocation30_spill] sm:$0xff] }
 0x30e   : > { %v6900_v45 = vadd.f32 %v3124_v13, %v2922_v27  ;;  %v2718_v1 = vadd.f32 %v2689_v5, %v2414_v6  ;;  %3363 = vmatmul.bf16.gmra.mxu0 %v3248_v54  ;;  %v7135_v13 = vld [vmem:[#allocation32_spill] sm:$0xff]  ;;  %v7136_v27 = vld [vmem:[#allocation33_spill] sm:$0xff]  ;;  %v3251_v6 = vrot.slane %v7138_v17, 1 }
 0x30f   : > { %3666 = vmatmul.bf16.gmra.mxu1 %v3516_v22  ;;  %v3532_v25 = vrot.slane %v7136_v27, 2  ;;  %v7137_v54 = vld [vmem:[#allocation24_spill] sm:$0xff] }
 0x310   : > { %3871 = vmatmul.bf16.gmra.mxu2 %v6678_v57  ;;  %v3524_v57 = vor.u32 %v3523_v8, %v3520_v59  ;;  %v3252_v8 = vsel %vm667_vm1, %v3249_v20, %v3251_v6 }
 0x311   : > { %4104 = vmatmul.bf16.gmra.mxu3 %v7127_v36  ;;  %v5038_v36 = vld [vmem:[%s5619_s28 + $0x110] sm:$0xff] }
 0x312   : > { %v3525_v50 = vsel %vm873_vm2, %v3515_v18, %v3524_v57  ;;  %v3529_v18 = vrot.slane %v7135_v13, 1 }
 0x313   : > { %v2894_v15 = vpop.f32.mrf.mxu2  ;;  %v2387_v31 = vpop.f32.mrf.mxu0 }
 0x314   : > { %v3127_v11 = vpop.f32.mrf.mxu3  ;;  %v2923_v24 = vadd.f32 %v2894_v15, %v2718_v1  ;;  %v2691_v39 = vpop.f32.mrf.mxu1  ;;  %v2415_v23 = vadd.f32 %v2387_v31, %v7130_v32  ;;  %v3533_v1 = vor.u32 %v3532_v25, %v3529_v18  ;;  %v7143_v25 = vld [vmem:[#allocation31_spill] sm:$0xff] }
 0x316   : > { %v6907_v53 = vadd.f32 %v3127_v11, %v2923_v24  ;;  %v2719_v28 = vadd.f32 %v2691_v39, %v2415_v23  ;;  %v6927_v11 = vld [vmem:[%s7048_s2] ss:$0 sm:$0xff]  ;;  %v3534_v32 = vsel %vm873_vm2, %v3524_v57, %v3533_v1  ;;  %v7139_v23 = vld [vmem:[#allocation35_spill] sm:$0xff] }
 0x31b   : > { %v2896_v0 = vpop.f32.mrf.mxu2  ;;  %v3329_v34 = vpop.f32.mrf.mxu0 }
 0x31c   : > { %v3129_v38 = vpop.f32.mrf.mxu3  ;;  %v2924_v46 = vadd.f32 %v2896_v0, %v2719_v28  ;;  %v3632_v16 = vpop.f32.mrf.mxu1  ;;  %v3394_v21 = vadd.f32 %v3329_v34, %v7132_v42  ;;  %v6932_v28 = vpack.c.bf16 %v5038_v36, %v7139_v23 }
 0x31e   : > { %v6912_v2 = vadd.f32 %v3129_v38, %v2924_v46  ;;  %3368 = vmatmul.bf16.gmra.mxu0 %v3250_v30  ;;  %v3697_v37 = vadd.f32 %v3632_v16, %v3394_v21  ;;  %v7140_v46 = vld [vmem:[#allocation27_spill] sm:$0xff]  ;;  %v7141_v16 = vld [vmem:[#allocation36_spill] sm:$0xff]  ;;  %v7142_v30 = vld [vmem:[#allocation37_spill] sm:$0xff]  ;;  %v3536_v20 = vshrl.u32 %v6932_v28, 16  ;;  %v3539_v57 = vshll.u32 %v6932_v28, 16 }
 0x31f   : > { %3671 = vmatmul.bf16.gmra.mxu1 %v3525_v50  ;;  %v3761_v17 = vrot.slane %v6932_v28, 2 }
 0x320   : > { %3876 = vmatmul.bf16.gmra.mxu2 %v7133_v29  ;;  %v3988_v13 = vrot.slane %v3536_v20, 2  ;;  %v3989_v18 = vrot.slane %v3539_v57, 3 }
 0x321   : > { %4109 = vmatmul.bf16.gmra.mxu3 %v7134_v49 }
 0x322   : > { %v3990_v36 = vor.u32 %v3989_v18, %v3988_v13  ;;  %v7145_v13 = vld [vmem:[#allocation38_spill] sm:$0xff] }
 0x323   : > { %v3837_v52 = vpop.f32.mrf.mxu2  ;;  %v3331_v51 = vpop.f32.mrf.mxu0 }
 0x324   : > { %v4070_v14 = vpop.f32.mrf.mxu3  ;;  %v3634_v41 = vpop.f32.mrf.mxu1  ;;  %v3902_v5 = vadd.f32 %v3837_v52, %v3697_v37  ;;  %v3395_v22 = vadd.f32 %v3331_v51, %v7137_v54  ;;  %v3538_v51 = vrot.slane %v3536_v20, 1  ;;  %v3253_v54 = vrot.slane %v6932_v28, 1 }
 0x325   : > { %v3991_v28 = vsel %vm2433_vm6, %v6752_v9, %v3990_v36 }
 0x326   : > { %v4135_v15 = vadd.f32 %v4070_v14, %v3902_v5  ;;  %v3698_v24 = vadd.f32 %v3634_v41, %v3395_v22  ;;  %v3541_v41 = vrot.slane %v3539_v57, 2  ;;  %v3254_v23 = vsel %vm667_vm1, %v3251_v6, %v3253_v54 }
 0x328   : > { %v4165_v56 = vadd.f32 %v6927_v11, %v4135_v15  ;;  %v3542_v22 = vor.u32 %v3541_v41, %v3538_v51  ;;  %v5039_v15 = vld [vmem:[%s5619_s28 + $0x118] sm:$0xff] }
 0x32a   : > { %v4191_v50 = vmax.f32 %v4165_v56, 0.0  ;;  %v3543_v56 = vsel %vm873_vm2, %v3533_v1, %v3542_v22 }
 0x32b   : > { %v3839_v31 = vpop.f32.mrf.mxu2  ;;  %v3334_v59 = vpop.f32.mrf.mxu0 }
 0x32c   : > { %v4072_v39 = vpop.f32.mrf.mxu3  ;;  %v3903_v62 = vadd.f32 %v3839_v31, %v3698_v24  ;;  %v3637_v40 = vpop.f32.mrf.mxu1  ;;  %v3396_v34 = vadd.f32 %v3334_v59, %v7140_v46  ;;  %v5040_v24 = vld [vmem:[%s5619_s28 + $0x120] sm:$0xff] }
 0x32e   : > { %v4136_v0 = vadd.f32 %v4072_v39, %v3903_v62  ;;  %3373 = vmatmul.bf16.gmra.mxu0 %v3252_v8  ;;  %v3699_v52 = vadd.f32 %v3637_v40, %v3396_v34 }
 0x32f   : > { %3676 = vmatmul.bf16.gmra.mxu1 %v3534_v32 }
 0x330   : > { %v4166_v38 = vadd.f32 %v6927_v11, %v4136_v0  ;;  %3881 = vmatmul.bf16.gmra.mxu2 %v7141_v16  ;;  %v6954_v0 = vpack.c.bf16 %v5040_v24, %v5039_v15  ;;  %v5041_v24 = vld [vmem:[%s5619_s28 + $0x128] sm:$0xff] }
 0x331   : > { %4114 = vmatmul.bf16.gmra.mxu3 %v7142_v30  ;;  %v7144_v30 = vld [vmem:[#allocation34_spill] sm:$0xff] }
 0x332   : > { %v4192_v42 = vmax.f32 %v4166_v38, 0.0  ;;  %v3762_v38 = vsel %vm2227_vm5, %v6750_v7, %v3761_v17  ;;  %v3545_v6 = vshrl.u32 %v6954_v0, 16  ;;  %v3548_v1 = vshll.u32 %v6954_v0, 16 }
 0x333   : > { %v3842_v21 = vpop.f32.mrf.mxu2  ;;  %v3336_v14 = vpop.f32.mrf.mxu0 }
 0x334   : > { %v4075_v29 = vpop.f32.mrf.mxu3  ;;  %v5367_v49 = vpack.c.bf16 %v4192_v42, %v4191_v50  ;;  %v3639_v37 = vpop.f32.mrf.mxu1  ;;  %v3904_v27 = vadd.f32 %v3842_v21, %v3699_v52  ;;  %v3397_v5 = vadd.f32 %v3336_v14, %v7143_v25  ;;  %v3547_v52 = vrot.slane %v3545_v6, 1 }
 0x335   : > { %v3550_v14 = vrot.slane %v3548_v1, 2  ;;  %v3993_v51 = vrot.slane %v3548_v1, 3 }
 0x336   : > { %5368 = vst [vmem:[%s6944_s19] sm:$0xff] %v5367_v49   ;;  %v4137_v31 = vadd.f32 %v4075_v29, %v3904_v27  ;;  %v3700_v39 = vadd.f32 %v3639_v37, %v3397_v5  ;;  %v3992_v37 = vrot.slane %v3545_v6, 2  ;;  %v3255_v27 = vrot.slane %v6954_v0, 1 }
 0x337   : > { %v3551_v25 = vor.u32 %v3550_v14, %v3547_v52  ;;  %v3763_v5 = vrot.slane %v6954_v0, 2 }
 0x338   : > { %v4167_v46 = vadd.f32 %v6927_v11, %v4137_v31  ;;  %v3994_v15 = vor.u32 %v3993_v51, %v3992_v37 }
 0x33a   : > { %v4193_v7 = vmax.f32 %v4167_v46, 0.0  ;;  %v3995_v46 = vsel %vm2433_vm6, %v3990_v36, %v3994_v15 }
 0x33b   : > { %v3844_v62 = vpop.f32.mrf.mxu2  ;;  %v3339_v8 = vpop.f32.mrf.mxu0 }
 0x33c   : > { %v4077_v59 = vpop.f32.mrf.mxu3  ;;  %v3905_v40 = vadd.f32 %v3844_v62, %v3700_v39  ;;  %v3642_v32 = vpop.f32.mrf.mxu1  ;;  %v3398_v20 = vadd.f32 %v3339_v8, %v7144_v30 }
 0x33e   : > { %v4138_v34 = vadd.f32 %v4077_v59, %v3905_v40  ;;  %3378 = vmatmul.bf16.gmra.mxu0 %v3254_v23  ;;  %v3701_v21 = vadd.f32 %v3642_v32, %v3398_v20  ;;  %v3256_v23 = vsel %vm667_vm1, %v3253_v54, %v3255_v27 }
 0x33f   : > { %3681 = vmatmul.bf16.gmra.mxu1 %v3543_v56  ;;  %v3552_v56 = vsel %vm873_vm2, %v3542_v22, %v3551_v25 }
 0x340   : > { %v4168_v16 = vadd.f32 %v6927_v11, %v4138_v34  ;;  %3886 = vmatmul.bf16.gmra.mxu2 %v3762_v38  ;;  %v3200_v38 = vpack.c.bf16 %v5041_v24, %v5041_v24 }
 0x341   : > { %4119 = vmatmul.bf16.gmra.mxu3 %v3991_v28  ;;  %v3764_v28 = vsel %vm2227_vm5, %v3761_v17, %v3763_v5 }
 0x342   : > { %v4194_v57 = vmax.f32 %v4168_v16, 0.0  ;;  %v3554_v54 = vshrl.u32 %v3200_v38, 16  ;;  %v3557_v20 = vshll.u32 %v3200_v38, 16  ;;  %v3257_v52 = vrot.slane %v3200_v38, 1 }
 0x343   : > { %v3847_v50 = vpop.f32.mrf.mxu2  ;;  %v3341_v29 = vpop.f32.mrf.mxu0  ;;  %v3765_v37 = vrot.slane %v3200_v38, 2 }
 0x344   : > { %v4080_v9 = vpop.f32.mrf.mxu3  ;;  %v5372_v42 = vpack.c.bf16 %v4194_v57, %v4193_v7  ;;  %v3644_v49 = vpop.f32.mrf.mxu1  ;;  %v3906_v41 = vadd.f32 %v3847_v50, %v3701_v21  ;;  %v3399_v18 = vadd.f32 %v3341_v29, %v7145_v13  ;;  %v3996_v21 = vrot.slane %v3554_v54, 2 }
 0x345   : > { %v3997_v29 = vrot.slane %v3557_v20, 3 }
 0x346   : > { %5429 = vst [vmem:[%s6944_s19 + $0x8] sm:$0xff] %v5372_v42   ;;  %v4139_v31 = vadd.f32 %v4080_v9, %v3906_v41  ;;  %v3702_v39 = vadd.f32 %v3644_v49, %v3399_v18  ;;  %v3556_v9 = vrot.slane %v3554_v54, 1  ;;  %v3559_v42 = vrot.slane %v3557_v20, 2 }
 0x347   : > { %v3998_v51 = vor.u32 %v3997_v29, %v3996_v21 }
 0x348   : > { %v4169_v0 = vadd.f32 %v6927_v11, %v4139_v31  ;;  %v3560_v14 = vor.u32 %v3559_v42, %v3556_v9 }
 0x34a   : > { %v4195_v22 = vmax.f32 %v4169_v0, 0.0 }
 0x34b   : > { %v3849_v62 = vpop.f32.mrf.mxu2  ;;  %v3344_v8 = vpop.f32.mrf.mxu0 }
 0x34c   : > { %v4082_v59 = vpop.f32.mrf.mxu3  ;;  %v3907_v40 = vadd.f32 %v3849_v62, %v3702_v39  ;;  %v3647_v32 = vpop.f32.mrf.mxu1  ;;  %v3400_v30 = vadd.f32 %v3344_v8, %v6776_v26  ;;  %v3766_v8 = vsel %vm2227_vm5, %v3763_v5, %v3765_v37 }
 0x34e   : > { %v4140_v34 = vadd.f32 %v4082_v59, %v3907_v40  ;;  %3383 = vmatmul.bf16.gmra.mxu0 %v3256_v23  ;;  %v3703_v36 = vadd.f32 %v3647_v32, %v3400_v30  ;;  %v3258_v59 = vsel %vm667_vm1, %v3255_v27, %v3257_v52  ;;  %v3561_v40 = vsel %vm873_vm2, %v3551_v25, %v3560_v14 }
 0x34f   : > { %3686 = vmatmul.bf16.gmra.mxu1 %v3552_v56  ;;  %v3999_v32 = vsel %vm2433_vm6, %v3994_v15, %v3998_v51 }
 0x350   : > { %v4170_v16 = vadd.f32 %v6927_v11, %v4140_v34  ;;  %3891 = vmatmul.bf16.gmra.mxu2 %v3764_v28 }
 0x351   : > { %4124 = vmatmul.bf16.gmra.mxu3 %v3995_v46 }
 0x352   : > { %v4196_v6 = vmax.f32 %v4170_v16, 0.0 }
 0x353   : > { %v3852_v1 = vpop.f32.mrf.mxu2  ;;  %v3346_v57 = vpop.f32.mrf.mxu0 }
 0x354   : > { %v4085_v17 = vpop.f32.mrf.mxu3  ;;  %v5377_v7 = vpack.c.bf16 %v4196_v6, %v4195_v22  ;;  %v3649_v50 = vpop.f32.mrf.mxu1  ;;  %v3908_v49 = vadd.f32 %v3852_v1, %v3703_v36  ;;  %v3401_v26 = vadd.f32 %v3346_v57, %v6787_v44 }
 0x356   : > { %5430 = vst [vmem:[%s6944_s19 + $0x10] sm:$0xff] %v5377_v7   ;;  %v4141_v41 = vadd.f32 %v4085_v17, %v3908_v49  ;;  %v3704_v13 = vadd.f32 %v3649_v50, %v3401_v26 }
 0x358   : > { %v4171_v44 = vadd.f32 %v6927_v11, %v4141_v41 }
 0x35a   : > { %v4197_v28 = vmax.f32 %v4171_v44, 0.0 }
 0x35b   : > { %v3854_v18 = vpop.f32.mrf.mxu2  ;;  %v3349_v39 = vpop.f32.mrf.mxu0 }
 0x35c   : > { %v4087_v24 = vpop.f32.mrf.mxu3  ;;  %v3909_v31 = vadd.f32 %v3854_v18, %v3704_v13  ;;  %v3652_v62 = vpop.f32.mrf.mxu1  ;;  %v3402_v38 = vadd.f32 %v3349_v39, %v6792_v55 }
 0x35e   : > { %v4142_v23 = vadd.f32 %v4087_v24, %v3909_v31  ;;  %3388 = vmatmul.bf16.gmra.mxu0 %v3258_v59  ;;  %v3705_v5 = vadd.f32 %v3652_v62, %v3402_v38 }
 0x35f   : > { %3691 = vmatmul.bf16.gmra.mxu1 %v3561_v40 }
 0x360   : > { %v4172_v56 = vadd.f32 %v6927_v11, %v4142_v23  ;;  %3896 = vmatmul.bf16.gmra.mxu2 %v3766_v8 }
 0x361   : > { %4129 = vmatmul.bf16.gmra.mxu3 %v3999_v32 }
 0x362   : > { %v4198_v27 = vmax.f32 %v4172_v56, 0.0 }
 0x363   : > { %v3857_v46 = vpop.f32.mrf.mxu2  ;;  %v3351_v34 = vpop.f32.mrf.mxu0 }
 0x364   : > { %v4090_v25 = vpop.f32.mrf.mxu3  ;;  %v5382_v0 = vpack.c.bf16 %v4198_v27, %v4197_v28  ;;  %v3654_v15 = vpop.f32.mrf.mxu1  ;;  %v3910_v16 = vadd.f32 %v3857_v46, %v3705_v5  ;;  %v3403_v30 = vadd.f32 %v3351_v34, %v6806_v19 }
 0x366   : > { %5431 = vst [vmem:[%s6944_s19 + $0x18] sm:$0xff] %v5382_v0   ;;  %v4143_v54 = vadd.f32 %v4090_v25, %v3910_v16  ;;  %v3706_v20 = vadd.f32 %v3654_v15, %v3403_v30 }
 0x368   : > { %v4173_v7 = vadd.f32 %v6927_v11, %v4143_v54 }
 0x36a   : > { %v4199_v9 = vmax.f32 %v4173_v7, 0.0 }
 0x36b   : > { %v3859_v22 = vpop.f32.mrf.mxu2  ;;  %v3354_v1 = vpop.f32.mrf.mxu0 }
 0x36c   : > { %v4092_v6 = vpop.f32.mrf.mxu3  ;;  %v3911_v55 = vadd.f32 %v3859_v22, %v3706_v20  ;;  %v3657_v17 = vpop.f32.mrf.mxu1  ;;  %v3404_v50 = vadd.f32 %v3354_v1, %v6811_v4 }
 0x36e   : > { %v4144_v36 = vadd.f32 %v4092_v6, %v3911_v55  ;;  %v3707_v49 = vadd.f32 %v3657_v17, %v3404_v50 }
 0x370   : > { %v4174_v57 = vadd.f32 %v6927_v11, %v4144_v36 }
 0x372   : > { %v4200_v42 = vmax.f32 %v4174_v57, 0.0 }
 0x373   : > { %v3862_v21 = vpop.f32.mrf.mxu2  ;;  %v3356_v26 = vpop.f32.mrf.mxu0 }
 0x374   : > { %v4095_v29 = vpop.f32.mrf.mxu3  ;;  %v5387_v19 = vpack.c.bf16 %v4200_v42, %v4199_v9  ;;  %v3659_v52 = vpop.f32.mrf.mxu1  ;;  %v3912_v14 = vadd.f32 %v3862_v21, %v3707_v49  ;;  %v3405_v37 = vadd.f32 %v3356_v26, %v6822_v10 }
 0x376   : > { %5432 = vst [vmem:[%s6944_s19 + $0x20] sm:$0xff] %v5387_v19   ;;  %v4145_v51 = vadd.f32 %v4095_v29, %v3912_v14  ;;  %v3708_v41 = vadd.f32 %v3659_v52, %v3405_v37 }
 0x378   : > { %v4175_v39 = vadd.f32 %v6927_v11, %v4145_v51 }
 0x37a   : > { %v4201_v8 = vmax.f32 %v4175_v39, 0.0 }
 0x37b   : > { %v3864_v13 = vpop.f32.mrf.mxu2  ;;  %v3359_v31 = vpop.f32.mrf.mxu0 }
 0x37c   : > { %v4097_v18 = vpop.f32.mrf.mxu3  ;;  %v3913_v24 = vadd.f32 %v3864_v13, %v3708_v41  ;;  %v3662_v4 = vpop.f32.mrf.mxu1  ;;  %v3406_v40 = vadd.f32 %v3359_v31, %v6827_v43 }
 0x37e   : > { %v4146_v62 = vadd.f32 %v4097_v18, %v3913_v24  ;;  %v3709_v56 = vadd.f32 %v3662_v4, %v3406_v40 }
 0x380   : > { %v4176_v59 = vadd.f32 %v6927_v11, %v4146_v62 }
 0x382   : > { %v4202_v32 = vmax.f32 %v4176_v59, 0.0 }
 0x383   : > { %v3867_v44 = vpop.f32.mrf.mxu2  ;;  %v3361_v38 = vpop.f32.mrf.mxu0 }
 0x384   : > { %v4100_v23 = vpop.f32.mrf.mxu3  ;;  %v5392_v10 = vpack.c.bf16 %v4202_v32, %v4201_v8  ;;  %v3664_v28 = vpop.f32.mrf.mxu1  ;;  %v3914_v27 = vadd.f32 %v3867_v44, %v3709_v56  ;;  %v3407_v46 = vadd.f32 %v3361_v38, %v6837_v12 }
 0x386   : > { %5433 = vst [vmem:[%s6944_s19 + $0x28] sm:$0xff] %v5392_v10   ;;  %v4147_v25 = vadd.f32 %v4100_v23, %v3914_v27  ;;  %v3710_v0 = vadd.f32 %v3664_v28, %v3407_v46 }
 0x388   : > { %v4177_v30 = vadd.f32 %v6927_v11, %v4147_v25 }
 0x38a   : > { %v4203_v6 = vmax.f32 %v4177_v30, 0.0 }
 0x38b   : > { %v3869_v5 = vpop.f32.mrf.mxu2  ;;  %v3364_v16 = vpop.f32.mrf.mxu0 }
 0x38c   : > { %v4102_v34 = vpop.f32.mrf.mxu3  ;;  %v3915_v15 = vadd.f32 %v3869_v5, %v3710_v0  ;;  %v3667_v43 = vpop.f32.mrf.mxu1  ;;  %v3408_v22 = vadd.f32 %v3364_v16, %v6842_v3 }
 0x38e   : > { %v4148_v54 = vadd.f32 %v4102_v34, %v3915_v15  ;;  %v3711_v7 = vadd.f32 %v3667_v43, %v3408_v22 }
 0x390   : > { %v4178_v20 = vadd.f32 %v6927_v11, %v4148_v54 }
 0x392   : > { %v4204_v55 = vmax.f32 %v4178_v20, 0.0 }
 0x393   : > { %v3872_v1 = vpop.f32.mrf.mxu2  ;;  %v3366_v36 = vpop.f32.mrf.mxu0 }
 0x394   : > { %v4105_v17 = vpop.f32.mrf.mxu3  ;;  %v5397_v12 = vpack.c.bf16 %v4204_v55, %v4203_v6  ;;  %v3669_v57 = vpop.f32.mrf.mxu1  ;;  %v3916_v50 = vadd.f32 %v3872_v1, %v3711_v7  ;;  %v3409_v9 = vadd.f32 %v3366_v36, %v6848_v60 }
 0x396   : > { %5434 = vst [vmem:[%s6944_s19 + $0x30] sm:$0xff] %v5397_v12   ;;  %v4149_v42 = vadd.f32 %v4105_v17, %v3916_v50  ;;  %v3712_v21 = vadd.f32 %v3669_v57, %v3409_v9 }
 0x398   : > { %v4179_v52 = vadd.f32 %v6927_v11, %v4149_v42 }
 0x39a   : > { %v4205_v41 = vmax.f32 %v4179_v52, 0.0 }
 0x39b   : > { %v3874_v29 = vpop.f32.mrf.mxu2  ;;  %v3369_v26 = vpop.f32.mrf.mxu0 }
 0x39c   : > { %v4107_v19 = vpop.f32.mrf.mxu3  ;;  %v3917_v49 = vadd.f32 %v3874_v29, %v3712_v21  ;;  %v3672_v3 = vpop.f32.mrf.mxu1  ;;  %v3410_v51 = vadd.f32 %v3369_v26, %v6855_v33 }
 0x39e   : > { %v4150_v14 = vadd.f32 %v4107_v19, %v3917_v49  ;;  %v3713_v31 = vadd.f32 %v3672_v3, %v3410_v51 }
 0x3a0   : > { %v4180_v37 = vadd.f32 %v6927_v11, %v4150_v14 }
 0x3a2   : > { %v4206_v13 = vmax.f32 %v4180_v37, 0.0 }
 0x3a3   : > { %v3877_v18 = vpop.f32.mrf.mxu2  ;;  %v3371_v4 = vpop.f32.mrf.mxu0 }
 0x3a4   : > { %v4110_v24 = vpop.f32.mrf.mxu3  ;;  %v5402_v60 = vpack.c.bf16 %v4206_v13, %v4205_v41  ;;  %v3674_v39 = vpop.f32.mrf.mxu1  ;;  %v3918_v62 = vadd.f32 %v3877_v18, %v3713_v31  ;;  %v3411_v59 = vadd.f32 %v3371_v4, %v6861_v35 }
 0x3a6   : > { %5435 = vst [vmem:[%s6944_s19 + $0x38] sm:$0xff] %v5402_v60   ;;  %v4151_v40 = vadd.f32 %v4110_v24, %v3918_v62  ;;  %v3714_v8 = vadd.f32 %v3674_v39, %v3411_v59 }
 0x3a8   : > { %v4181_v56 = vadd.f32 %v6927_v11, %v4151_v40 }
 0x3aa   : > { %v4207_v46 = vmax.f32 %v4181_v56, 0.0 }
 0x3ab   : > { %v3879_v32 = vpop.f32.mrf.mxu2  ;;  %v3374_v10 = vpop.f32.mrf.mxu0 }
 0x3ac   : > { %v4112_v44 = vpop.f32.mrf.mxu3  ;;  %v3919_v23 = vadd.f32 %v3879_v32, %v3714_v8  ;;  %v3677_v33 = vpop.f32.mrf.mxu1  ;;  %v3412_v27 = vadd.f32 %v3374_v10, %v6868_v48 }
 0x3ae   : > { %v4152_v38 = vadd.f32 %v4112_v44, %v3919_v23  ;;  %v3715_v34 = vadd.f32 %v3677_v33, %v3412_v27 }
 0x3b0   : > { %v4182_v28 = vadd.f32 %v6927_v11, %v4152_v38 }
 0x3b2   : > { %v4208_v25 = vmax.f32 %v4182_v28, 0.0 }
 0x3b3   : > { %v3882_v0 = vpop.f32.mrf.mxu2  ;;  %v3376_v15 = vpop.f32.mrf.mxu0 }
 0x3b4   : > { %v4115_v5 = vpop.f32.mrf.mxu3  ;;  %v5407_v35 = vpack.c.bf16 %v4208_v25, %v4207_v46  ;;  %v3679_v16 = vpop.f32.mrf.mxu1  ;;  %v3920_v43 = vadd.f32 %v3882_v0, %v3715_v34  ;;  %v3413_v30 = vadd.f32 %v3376_v15, %v6874_v58 }
 0x3b6   : > { %5436 = vst [vmem:[%s6944_s19 + $0x40] sm:$0xff] %v5407_v35   ;;  %v4153_v54 = vadd.f32 %v4115_v5, %v3920_v43  ;;  %v3716_v20 = vadd.f32 %v3679_v16, %v3413_v30 }
 0x3b8   : > { %v4183_v17 = vadd.f32 %v6927_v11, %v4153_v54 }
 0x3ba   : > { %v4209_v57 = vmax.f32 %v4183_v17, 0.0 }
 0x3bb   : > { %v3884_v22 = vpop.f32.mrf.mxu2  ;;  %v3379_v1 = vpop.f32.mrf.mxu0 }
 0x3bc   : > { %v4117_v6 = vpop.f32.mrf.mxu3  ;;  %v3921_v55 = vadd.f32 %v3884_v22, %v3716_v20  ;;  %v3682_v48 = vpop.f32.mrf.mxu1  ;;  %v3414_v36 = vadd.f32 %v3379_v1, %v6881_v47 }
 0x3be   : > { %v4154_v12 = vadd.f32 %v4117_v6, %v3921_v55  ;;  %v3717_v21 = vadd.f32 %v3682_v48, %v3414_v36 }
 0x3c0   : > { %v4184_v7 = vadd.f32 %v6927_v11, %v4154_v12 }
 0x3c2   : > { %v4210_v50 = vmax.f32 %v4184_v7, 0.0 }
 0x3c3   : > { %v3887_v9 = vpop.f32.mrf.mxu2  ;;  %v3381_v29 = vpop.f32.mrf.mxu0 }
 0x3c4   : > { %v4120_v42 = vpop.f32.mrf.mxu3  ;;  %v5412_v58 = vpack.c.bf16 %v4210_v50, %v4209_v57  ;;  %v3684_v19 = vpop.f32.mrf.mxu1  ;;  %v3922_v49 = vadd.f32 %v3887_v9, %v3717_v21  ;;  %v3415_v26 = vadd.f32 %v3381_v29, %v6887_v61 }
 0x3c6   : > { %5437 = vst [vmem:[%s6944_s19 + $0x48] sm:$0xff] %v5412_v58   ;;  %v4155_v3 = vadd.f32 %v4120_v42, %v3922_v49  ;;  %v3718_v52 = vadd.f32 %v3684_v19, %v3415_v26 }
 0x3c8   : > { %v4185_v13 = vadd.f32 %v6927_v11, %v4155_v3 }
 0x3ca   : > { %v4211_v31 = vmax.f32 %v4185_v13, 0.0 }
 0x3cb   : > { %v3889_v14 = vpop.f32.mrf.mxu2  ;;  %v3384_v41 = vpop.f32.mrf.mxu0 }
 0x3cc   : > { %v4122_v37 = vpop.f32.mrf.mxu3  ;;  %v3923_v51 = vadd.f32 %v3889_v14, %v3718_v52  ;;  %v3687_v47 = vpop.f32.mrf.mxu1  ;;  %v3416_v60 = vadd.f32 %v3384_v41, %v6894_v63 }
 0x3ce   : > { %v4156_v18 = vadd.f32 %v4122_v37, %v3923_v51  ;;  %v3719_v59 = vadd.f32 %v3687_v47, %v3416_v60 }
 0x3d0   : > { %v4186_v24 = vadd.f32 %v6927_v11, %v4156_v18 }
 0x3d2   : > { %v4212_v4 = vmax.f32 %v4186_v24, 0.0 }
 0x3d3   : > { %v3892_v39 = vpop.f32.mrf.mxu2  ;;  %v3386_v40 = vpop.f32.mrf.mxu0 }
 0x3d4   : > { %v4125_v62 = vpop.f32.mrf.mxu3  ;;  %v5417_v61 = vpack.c.bf16 %v4212_v4, %v4211_v31  ;;  %v3689_v8 = vpop.f32.mrf.mxu1  ;;  %v3924_v32 = vadd.f32 %v3892_v39, %v3719_v59  ;;  %v3417_v44 = vadd.f32 %v3386_v40, %v6900_v45 }
 0x3d6   : > { %5438 = vst [vmem:[%s6944_s19 + $0x50] sm:$0xff] %v5417_v61   ;;  %v4157_v23 = vadd.f32 %v4125_v62, %v3924_v32  ;;  %v3720_v10 = vadd.f32 %v3689_v8, %v3417_v44 }
 0x3d8   : > { %v4187_v63 = vadd.f32 %v6927_v11, %v4157_v23 }
 0x3da   : > { %v4213_v5 = vmax.f32 %v4187_v63, 0.0 }
 0x3db   : > { %v3894_v33 = vpop.f32.mrf.mxu2  ;;  %v3389_v28 = vpop.f32.mrf.mxu0 }
 0x3dc   : > { %v4127_v56 = vpop.f32.mrf.mxu3  ;;  %v3925_v38 = vadd.f32 %v3894_v33, %v3720_v10  ;;  %v3692_v46 = vpop.f32.mrf.mxu1  ;;  %v3418_v0 = vadd.f32 %v3389_v28, %v6907_v53 }
 0x3de   : > { %v4158_v27 = vadd.f32 %v4127_v56, %v3925_v38  ;;  %v3721_v16 = vadd.f32 %v3692_v46, %v3418_v0 }
 0x3e0   : > { %v4188_v25 = vadd.f32 %v6927_v11, %v4158_v27 }
 0x3e2   : > { %v4214_v35 = vmax.f32 %v4188_v25, 0.0 }
 0x3e3   : > { %v3897_v34 = vpop.f32.mrf.mxu2  ;;  %v3391_v43 = vpop.f32.mrf.mxu0 }
 0x3e4   : > { %v4130_v15 = vpop.f32.mrf.mxu3  ;;  %v5422_v45 = vpack.c.bf16 %v4214_v35, %v4213_v5  ;;  %v3926_v30 = vadd.f32 %v3897_v34, %v3721_v16  ;;  %v3419_v54 = vadd.f32 %v3391_v43, %v6912_v2  ;;  %v3694_v20 = vpop.f32.mrf.mxu1 }
 0x3e6   : > { %5439 = vst [vmem:[%s6944_s19 + $0x58] sm:$0xff] %v5422_v45   ;;  %v4159_v22 = vadd.f32 %v4130_v15, %v3926_v30  ;;  %v3722_v6 = vadd.f32 %v3694_v20, %v3419_v54 }
 0x3e8   : > { %v4189_v53 = vadd.f32 %v6927_v11, %v4159_v22 }
 0x3ea   : > { %v4215_v7 = vmax.f32 %v4189_v53, 0.0 }
 0x3eb   : > { %v3899_v55 = vpop.f32.mrf.mxu2 }
 0x3ec   : > { %v3927_v1 = vadd.f32 %v3899_v55, %v3722_v6  ;;  %v4132_v48 = vpop.f32.mrf.mxu3 }
 0x3ee   : > { %v4160_v17 = vadd.f32 %v4132_v48, %v3927_v1 }
 0x3f0   : > { %v4190_v12 = vadd.f32 %v6927_v11, %v4160_v17 }
 0x3f2   : > { %v4216_v36 = vmax.f32 %v4190_v12, 0.0 }
 0x3f4   : > { %v5427_v57 = vpack.c.bf16 %v4216_v36, %v4215_v7 }
 0x3f6   : > { %5440 = vst [vmem:[%s6944_s19 + $0x60] sm:$0xff] %v5427_v57  }
 0x3f7 PF: > { %s13_s16 = sadd.s32 1, %s5522_s16   ;;  %s7146_s12 = smov %s5514_s14 }
 0x3f8   : > { %p10_p7 = scmp.ge.s32.totalorder %s13_s16, 10   ;;  %s7147_s13 = smov %s5518_s15 }
 0x3f9   : > { %s7148_s14 = smov %s7151_s17  ;;  %s7149_s15 = smov %s7155_s18 }
 0x3fa   :  { %12 = sbr.rel (!%p10_p7) target bundleno = 3 (0x3), region = 82 }

// kernel: pdn_m_multi_forward.9
= control target key start
LH: loop header
LB: loop body
LE: loop exit
PB: predicated region body
PF: predicated region fallthrough
CT: control target
= control target key end

     0   :  { %s1025_s1 = inlined_call_operand.vmem [shape: bf16[128,128], index: 1, kind: input, shape index: {}]   ;;  %s1026_s2 = inlined_call_operand.vmem [shape: f32[1,128], index: 2, kind: input, shape index: {}]   ;;  %s1027_s0 = inlined_call_operand.vmem [shape: bf16[344,128], index: 0, kind: input, shape index: {}]   ;;  %s1028_s3 = inlined_call_operand.vmem [shape: bf16[344,128], index: 3, kind: output, shape index: {}]  }
   0x1   :  { %v650_v0 = vld [vmem:[%s1025_s1 + $0x38] sm:$0xff]  ;;  %v649_v1 = vld [vmem:[%s1025_s1 + $0x30] sm:$0xff]  ;;  %v648_v2 = vld [vmem:[%s1025_s1 + $0x28] sm:$0xff] }
   0x2   :  { %777 = vmatpush.bf16.msra.mxu2 %v650_v0  ;;  %778 = vmatpush.bf16.msra.mxu3 %v650_v0  ;;  %v647_v3 = vld [vmem:[%s1025_s1 + $0x20] sm:$0xff]  ;;  %v646_v4 = vld [vmem:[%s1025_s1 + $0x18] sm:$0xff]  ;;  %v645_v5 = vld [vmem:[%s1025_s1 + $0x10] sm:$0xff] }
   0x3   :  { %255 = vmatpush.bf16.msra.mxu0 %v650_v0  ;;  %776 = vmatpush.bf16.msra.mxu1 %v650_v0  ;;  %v644_v6 = vld [vmem:[%s1025_s1 + $0x8] sm:$0xff]  ;;  %v643_v7 = vld [vmem:[%s1025_s1] sm:$0xff]  ;;  %v632_v8 = vld [vmem:[%s1027_s0 + $0x50] sm:$0xff] }
   0x4   :  { %v638_v9 = vld [vmem:[%s1027_s0 + $0x80] sm:$0xff]  ;;  %v627_v11 = vld [vmem:[%s1027_s0 + $0x28] sm:$0xff]  ;;  %v633_v12 = vld [vmem:[%s1027_s0 + $0x58] sm:$0xff] }
   0x5   :  { %v622_v10 = vld [vmem:[%s1027_s0] sm:$0xff]  ;;  %v639_v13 = vld [vmem:[%s1027_s0 + $0x88] sm:$0xff]  ;;  %v628_v15 = vld [vmem:[%s1027_s0 + $0x30] sm:$0xff] }
   0x6   :  { %780 = vmatpush.bf16.msra.mxu2 %v649_v1  ;;  %781 = vmatpush.bf16.msra.mxu3 %v649_v1  ;;  %v623_v14 = vld [vmem:[%s1027_s0 + $0x8] sm:$0xff]  ;;  %v634_v16 = vld [vmem:[%s1027_s0 + $0x60] sm:$0xff]  ;;  %v640_v17 = vld [vmem:[%s1027_s0 + $0x90] sm:$0xff] }
   0x7   :  { %256 = vmatpush.bf16.msra.mxu0 %v649_v1  ;;  %779 = vmatpush.bf16.msra.mxu1 %v649_v1  ;;  %v624_v18 = vld [vmem:[%s1027_s0 + $0x10] sm:$0xff]  ;;  %v629_v19 = vld [vmem:[%s1027_s0 + $0x38] sm:$0xff]  ;;  %v635_v20 = vld [vmem:[%s1027_s0 + $0x68] sm:$0xff] }
   0x8   :  { %v641_v21 = vld [vmem:[%s1027_s0 + $0x98] sm:$0xff]  ;;  %v630_v23 = vld [vmem:[%s1027_s0 + $0x40] sm:$0xff]  ;;  %v636_v24 = vld [vmem:[%s1027_s0 + $0x70] sm:$0xff] }
   0x9   :  { %v625_v22 = vld [vmem:[%s1027_s0 + $0x18] sm:$0xff]  ;;  %v642_v25 = vld [vmem:[%s1027_s0 + $0xa0] sm:$0xff]  ;;  %v631_v27 = vld [vmem:[%s1027_s0 + $0x48] sm:$0xff] }
   0xa   :  { %783 = vmatpush.bf16.msra.mxu2 %v648_v2  ;;  %784 = vmatpush.bf16.msra.mxu3 %v648_v2  ;;  %v626_v26 = vld [vmem:[%s1027_s0 + $0x20] sm:$0xff]  ;;  %v56_v28 = vld [vmem:[%s1027_s0 + $0xa8] sm:$0xf]  ;;  %v637_v30 = vld [vmem:[%s1027_s0 + $0x78] sm:$0xff] }
   0xb   :  { %257 = vmatpush.bf16.msra.mxu0 %v648_v2  ;;  %782 = vmatpush.bf16.msra.mxu1 %v648_v2  ;;  %v162_v29 = vunpack.c.l.b16 %v56_v28  ;;  %v914_v34 = vld [vmem:[%s1026_s2] ss:$0 sm:$0xff] }
   0xd   :  { %v184_v31 = vpack.c.b16 %v162_v29, %v162_v29 }
   0xe   :  { %786 = vmatpush.bf16.msra.mxu2 %v647_v3  ;;  %787 = vmatpush.bf16.msra.mxu3 %v647_v3 }
   0xf   :  { %258 = vmatpush.bf16.msra.mxu0 %v647_v3  ;;  %785 = vmatpush.bf16.msra.mxu1 %v647_v3 }
  0x12   :  { %789 = vmatpush.bf16.msra.mxu2 %v646_v4  ;;  %790 = vmatpush.bf16.msra.mxu3 %v646_v4 }
  0x13   :  { %259 = vmatpush.bf16.msra.mxu0 %v646_v4  ;;  %788 = vmatpush.bf16.msra.mxu1 %v646_v4 }
  0x16   :  { %792 = vmatpush.bf16.msra.mxu2 %v645_v5  ;;  %793 = vmatpush.bf16.msra.mxu3 %v645_v5 }
  0x17   :  { %260 = vmatpush.bf16.msra.mxu0 %v645_v5  ;;  %791 = vmatpush.bf16.msra.mxu1 %v645_v5 }
  0x1a   :  { %795 = vmatpush.bf16.msra.mxu2 %v644_v6  ;;  %796 = vmatpush.bf16.msra.mxu3 %v644_v6 }
  0x1b   :  { %261 = vmatpush.bf16.msra.mxu0 %v644_v6  ;;  %794 = vmatpush.bf16.msra.mxu1 %v644_v6 }
  0x1e   :  { %798 = vmatpush.bf16.msra.mxu2 %v643_v7  ;;  %799 = vmatpush.bf16.msra.mxu3 %v643_v7 }
  0x1f   :  { %262 = vmatpush.bf16.msra.mxu0 %v643_v7  ;;  %797 = vmatpush.bf16.msra.mxu1 %v643_v7 }
  0x21   :  { %313 = vmatmul.bf16.vlgmr.msra.gmra.mxu2 %v632_v8  ;;  %343 = vmatmul.bf16.vlgmr.msra.gmra.mxu3 %v638_v9 }
  0x22   :  { %263 = vmatmul.bf16.vlgmr.msra.gmra.mxu0 %v622_v10  ;;  %288 = vmatmul.bf16.vlgmr.msra.gmra.mxu1 %v627_v11 }
  0x31   :  { %318 = vmatmul.bf16.gmra.mxu2 %v633_v12  ;;  %348 = vmatmul.bf16.gmra.mxu3 %v639_v13 }
  0x32   :  { %268 = vmatmul.bf16.gmra.mxu0 %v623_v14  ;;  %293 = vmatmul.bf16.gmra.mxu1 %v628_v15 }
  0x41   :  { %323 = vmatmul.bf16.gmra.mxu2 %v634_v16  ;;  %353 = vmatmul.bf16.gmra.mxu3 %v640_v17 }
  0x42   :  { %273 = vmatmul.bf16.gmra.mxu0 %v624_v18  ;;  %298 = vmatmul.bf16.gmra.mxu1 %v629_v19 }
  0x51   :  { %328 = vmatmul.bf16.gmra.mxu2 %v635_v20  ;;  %358 = vmatmul.bf16.gmra.mxu3 %v641_v21 }
  0x52   :  { %278 = vmatmul.bf16.gmra.mxu0 %v625_v22  ;;  %303 = vmatmul.bf16.gmra.mxu1 %v630_v23 }
  0x61   :  { %333 = vmatmul.bf16.gmra.mxu2 %v636_v24  ;;  %363 = vmatmul.bf16.gmra.mxu3 %v642_v25 }
  0x62   :  { %283 = vmatmul.bf16.gmra.mxu0 %v626_v26  ;;  %308 = vmatmul.bf16.gmra.mxu1 %v631_v27 }
  0x71   :  { %338 = vmatmul.bf16.gmra.mxu2 %v637_v30  ;;  %368 = vmatmul.bf16.gmra.mxu3 %v184_v31 }
  0x9f   :  { %v264_v32 = vpop.f32.mrf.mxu0  ;;  %v289_v33 = vpop.f32.mrf.mxu1 }
  0xa0   :  { %v265_v37 = vadd.f32 %v914_v34, %v264_v32  ;;  %v290_v38 = vadd.f32 %v914_v34, %v289_v33 }
  0xa2   :  { %v373_v41 = vmax.f32 %v265_v37, 0.0  ;;  %v383_v42 = vmax.f32 %v290_v38, 0.0 }
  0xa4   :  { %v314_v35 = vpop.f32.mrf.mxu2  ;;  %v344_v36 = vpop.f32.mrf.mxu3 }
  0xa5   :  { %v345_v45 = vadd.f32 %v914_v34, %v344_v36  ;;  %v315_v48 = vadd.f32 %v914_v34, %v314_v35 }
  0xa7   :  { %v266_v39 = vpop.f32.mrf.mxu0  ;;  %v291_v40 = vpop.f32.mrf.mxu1  ;;  %v405_v53 = vmax.f32 %v345_v45, 0.0  ;;  %v393_v56 = vmax.f32 %v315_v48, 0.0 }
  0xa8   :  { %v267_v43 = vadd.f32 %v914_v34, %v266_v39  ;;  %v292_v44 = vadd.f32 %v914_v34, %v291_v40 }
  0xaa   :  { %v374_v46 = vmax.f32 %v267_v43, 0.0  ;;  %v384_v47 = vmax.f32 %v292_v44, 0.0 }
  0xac   :  { %v316_v49 = vpop.f32.mrf.mxu2  ;;  %v346_v50 = vpop.f32.mrf.mxu3  ;;  %v654_v51 = vpack.c.bf16 %v374_v46, %v373_v41  ;;  %v679_v52 = vpack.c.bf16 %v384_v47, %v383_v42 }
  0xad   :  { %v317_v54 = vadd.f32 %v914_v34, %v316_v49  ;;  %v347_v55 = vadd.f32 %v914_v34, %v346_v50 }
  0xae   :  { %655 = vst [vmem:[%s1028_s3] sm:$0xff] %v654_v51  }
  0xaf   :  { %v394_v57 = vmax.f32 %v317_v54, 0.0  ;;  %v406_v58 = vmax.f32 %v347_v55, 0.0  ;;  %760 = vst [vmem:[%s1028_s3 + $0x28] sm:$0xff] %v679_v52   ;;  %v269_v59 = vpop.f32.mrf.mxu0  ;;  %v294_v60 = vpop.f32.mrf.mxu1 }
  0xb0   :  { %v270_v1 = vadd.f32 %v914_v34, %v269_v59  ;;  %v295_v2 = vadd.f32 %v914_v34, %v294_v60 }
  0xb1   :  { %v704_v61 = vpack.c.bf16 %v394_v57, %v393_v56  ;;  %v734_v62 = vpack.c.bf16 %v406_v58, %v405_v53 }
  0xb2   :  { %v375_v5 = vmax.f32 %v270_v1, 0.0  ;;  %v385_v6 = vmax.f32 %v295_v2, 0.0 }
  0xb3   :  { %765 = vst [vmem:[%s1028_s3 + $0x50] sm:$0xff] %v704_v61  }
  0xb4   :  { %771 = vst [vmem:[%s1028_s3 + $0x80] sm:$0xff] %v734_v62   ;;  %v319_v63 = vpop.f32.mrf.mxu2  ;;  %v349_v0 = vpop.f32.mrf.mxu3 }
  0xb5   :  { %v350_v9 = vadd.f32 %v914_v34, %v349_v0  ;;  %v320_v12 = vadd.f32 %v914_v34, %v319_v63 }
  0xb7   :  { %v271_v3 = vpop.f32.mrf.mxu0  ;;  %v296_v4 = vpop.f32.mrf.mxu1  ;;  %v407_v17 = vmax.f32 %v350_v9, 0.0  ;;  %v395_v20 = vmax.f32 %v320_v12, 0.0 }
  0xb8   :  { %v272_v7 = vadd.f32 %v914_v34, %v271_v3  ;;  %v297_v8 = vadd.f32 %v914_v34, %v296_v4 }
  0xba   :  { %v376_v10 = vmax.f32 %v272_v7, 0.0  ;;  %v386_v11 = vmax.f32 %v297_v8, 0.0 }
  0xbc   :  { %v321_v13 = vpop.f32.mrf.mxu2  ;;  %v351_v14 = vpop.f32.mrf.mxu3  ;;  %v659_v15 = vpack.c.bf16 %v376_v10, %v375_v5  ;;  %v684_v16 = vpack.c.bf16 %v386_v11, %v385_v6 }
  0xbd   :  { %v322_v18 = vadd.f32 %v914_v34, %v321_v13  ;;  %v352_v19 = vadd.f32 %v914_v34, %v351_v14 }
  0xbe   :  { %756 = vst [vmem:[%s1028_s3 + $0x8] sm:$0xff] %v659_v15  }
  0xbf   :  { %v396_v21 = vmax.f32 %v322_v18, 0.0  ;;  %v408_v22 = vmax.f32 %v352_v19, 0.0  ;;  %761 = vst [vmem:[%s1028_s3 + $0x30] sm:$0xff] %v684_v16   ;;  %v274_v23 = vpop.f32.mrf.mxu0  ;;  %v299_v24 = vpop.f32.mrf.mxu1 }
  0xc0   :  { %v275_v29 = vadd.f32 %v914_v34, %v274_v23  ;;  %v300_v30 = vadd.f32 %v914_v34, %v299_v24 }
  0xc1   :  { %v709_v25 = vpack.c.bf16 %v396_v21, %v395_v20  ;;  %v739_v26 = vpack.c.bf16 %v408_v22, %v407_v17 }
  0xc2   :  { %v377_v33 = vmax.f32 %v275_v29, 0.0  ;;  %v387_v35 = vmax.f32 %v300_v30, 0.0 }
  0xc3   :  { %766 = vst [vmem:[%s1028_s3 + $0x58] sm:$0xff] %v709_v25  }
  0xc4   :  { %772 = vst [vmem:[%s1028_s3 + $0x88] sm:$0xff] %v739_v26   ;;  %v324_v27 = vpop.f32.mrf.mxu2  ;;  %v354_v28 = vpop.f32.mrf.mxu3 }
  0xc5   :  { %v355_v38 = vadd.f32 %v914_v34, %v354_v28  ;;  %v325_v41 = vadd.f32 %v914_v34, %v324_v27 }
  0xc7   :  { %v276_v31 = vpop.f32.mrf.mxu0  ;;  %v301_v32 = vpop.f32.mrf.mxu1  ;;  %v409_v46 = vmax.f32 %v355_v38, 0.0  ;;  %v397_v49 = vmax.f32 %v325_v41, 0.0 }
  0xc8   :  { %v277_v36 = vadd.f32 %v914_v34, %v276_v31  ;;  %v302_v37 = vadd.f32 %v914_v34, %v301_v32 }
  0xca   :  { %v378_v39 = vmax.f32 %v277_v36, 0.0  ;;  %v388_v40 = vmax.f32 %v302_v37, 0.0 }
  0xcc   :  { %v326_v42 = vpop.f32.mrf.mxu2  ;;  %v356_v43 = vpop.f32.mrf.mxu3  ;;  %v664_v44 = vpack.c.bf16 %v378_v39, %v377_v33  ;;  %v689_v45 = vpack.c.bf16 %v388_v40, %v387_v35 }
  0xcd   :  { %v327_v47 = vadd.f32 %v914_v34, %v326_v42  ;;  %v357_v48 = vadd.f32 %v914_v34, %v356_v43 }
  0xce   :  { %757 = vst [vmem:[%s1028_s3 + $0x10] sm:$0xff] %v664_v44  }
  0xcf   :  { %v398_v50 = vmax.f32 %v327_v47, 0.0  ;;  %v410_v51 = vmax.f32 %v357_v48, 0.0  ;;  %762 = vst [vmem:[%s1028_s3 + $0x38] sm:$0xff] %v689_v45   ;;  %v279_v52 = vpop.f32.mrf.mxu0  ;;  %v304_v53 = vpop.f32.mrf.mxu1 }
  0xd0   :  { %v280_v58 = vadd.f32 %v914_v34, %v279_v52  ;;  %v305_v59 = vadd.f32 %v914_v34, %v304_v53 }
  0xd1   :  { %v714_v54 = vpack.c.bf16 %v398_v50, %v397_v49  ;;  %v744_v55 = vpack.c.bf16 %v410_v51, %v409_v46 }
  0xd2   :  { %v379_v62 = vmax.f32 %v280_v58, 0.0  ;;  %v389_v63 = vmax.f32 %v305_v59, 0.0 }
  0xd3   :  { %767 = vst [vmem:[%s1028_s3 + $0x60] sm:$0xff] %v714_v54  }
  0xd4   :  { %773 = vst [vmem:[%s1028_s3 + $0x90] sm:$0xff] %v744_v55   ;;  %v329_v56 = vpop.f32.mrf.mxu2  ;;  %v359_v57 = vpop.f32.mrf.mxu3 }
  0xd5   :  { %v360_v2 = vadd.f32 %v914_v34, %v359_v57  ;;  %v330_v5 = vadd.f32 %v914_v34, %v329_v56 }
  0xd7   :  { %v281_v60 = vpop.f32.mrf.mxu0  ;;  %v306_v61 = vpop.f32.mrf.mxu1  ;;  %v411_v10 = vmax.f32 %v360_v2, 0.0  ;;  %v399_v13 = vmax.f32 %v330_v5, 0.0 }
  0xd8   :  { %v282_v0 = vadd.f32 %v914_v34, %v281_v60  ;;  %v307_v1 = vadd.f32 %v914_v34, %v306_v61 }
  0xda   :  { %v380_v3 = vmax.f32 %v282_v0, 0.0  ;;  %v390_v4 = vmax.f32 %v307_v1, 0.0 }
  0xdc   :  { %v331_v6 = vpop.f32.mrf.mxu2  ;;  %v361_v7 = vpop.f32.mrf.mxu3  ;;  %v669_v8 = vpack.c.bf16 %v380_v3, %v379_v62  ;;  %v694_v9 = vpack.c.bf16 %v390_v4, %v389_v63 }
  0xdd   :  { %v332_v11 = vadd.f32 %v914_v34, %v331_v6  ;;  %v362_v12 = vadd.f32 %v914_v34, %v361_v7 }
  0xde   :  { %758 = vst [vmem:[%s1028_s3 + $0x18] sm:$0xff] %v669_v8  }
  0xdf   :  { %v400_v14 = vmax.f32 %v332_v11, 0.0  ;;  %v412_v15 = vmax.f32 %v362_v12, 0.0  ;;  %763 = vst [vmem:[%s1028_s3 + $0x40] sm:$0xff] %v694_v9   ;;  %v284_v16 = vpop.f32.mrf.mxu0  ;;  %v309_v17 = vpop.f32.mrf.mxu1 }
  0xe0   :  { %v285_v22 = vadd.f32 %v914_v34, %v284_v16  ;;  %v310_v23 = vadd.f32 %v914_v34, %v309_v17 }
  0xe1   :  { %v719_v18 = vpack.c.bf16 %v400_v14, %v399_v13  ;;  %v749_v19 = vpack.c.bf16 %v412_v15, %v411_v10 }
  0xe2   :  { %v381_v26 = vmax.f32 %v285_v22, 0.0  ;;  %v391_v27 = vmax.f32 %v310_v23, 0.0 }
  0xe3   :  { %768 = vst [vmem:[%s1028_s3 + $0x68] sm:$0xff] %v719_v18  }
  0xe4   :  { %774 = vst [vmem:[%s1028_s3 + $0x98] sm:$0xff] %v749_v19   ;;  %v334_v20 = vpop.f32.mrf.mxu2  ;;  %v364_v21 = vpop.f32.mrf.mxu3 }
  0xe5   :  { %v365_v30 = vadd.f32 %v914_v34, %v364_v21  ;;  %v335_v33 = vadd.f32 %v914_v34, %v334_v20 }
  0xe7   :  { %v286_v24 = vpop.f32.mrf.mxu0  ;;  %v311_v25 = vpop.f32.mrf.mxu1  ;;  %v413_v39 = vmax.f32 %v365_v30, 0.0  ;;  %v401_v42 = vmax.f32 %v335_v33, 0.0 }
  0xe8   :  { %v287_v28 = vadd.f32 %v914_v34, %v286_v24  ;;  %v312_v29 = vadd.f32 %v914_v34, %v311_v25 }
  0xea   :  { %v382_v31 = vmax.f32 %v287_v28, 0.0  ;;  %v392_v32 = vmax.f32 %v312_v29, 0.0 }
  0xec   :  { %v336_v35 = vpop.f32.mrf.mxu2  ;;  %v366_v36 = vpop.f32.mrf.mxu3  ;;  %v674_v37 = vpack.c.bf16 %v382_v31, %v381_v26  ;;  %v699_v38 = vpack.c.bf16 %v392_v32, %v391_v27 }
  0xed   :  { %v337_v40 = vadd.f32 %v914_v34, %v336_v35  ;;  %v367_v41 = vadd.f32 %v914_v34, %v366_v36 }
  0xee   :  { %759 = vst [vmem:[%s1028_s3 + $0x20] sm:$0xff] %v674_v37  }
  0xef   :  { %v402_v43 = vmax.f32 %v337_v40, 0.0  ;;  %v414_v44 = vmax.f32 %v367_v41, 0.0  ;;  %764 = vst [vmem:[%s1028_s3 + $0x48] sm:$0xff] %v699_v38  }
  0xf1   :  { %v724_v45 = vpack.c.bf16 %v402_v43, %v401_v42  ;;  %v754_v46 = vpack.c.bf16 %v414_v44, %v413_v39 }
  0xf3   :  { %769 = vst [vmem:[%s1028_s3 + $0x70] sm:$0xff] %v724_v45  }
  0xf4   :  { %775 = vst [vmem:[%s1028_s3 + $0xa0] sm:$0xff] %v754_v46   ;;  %v339_v47 = vpop.f32.mrf.mxu2  ;;  %v369_v48 = vpop.f32.mrf.mxu3 }
  0xf5   :  { %v370_v49 = vadd.f32 %v914_v34, %v369_v48  ;;  %v340_v52 = vadd.f32 %v914_v34, %v339_v47 }
  0xf7   :  { %v415_v50 = vmax.f32 %v370_v49, 0.0  ;;  %v403_v56 = vmax.f32 %v340_v52, 0.0 }
  0xf9   :  { %v458_v51 = vpack.c.bf16 %v415_v50, %v415_v50 }
  0xfb   :  { %501 = vst [vmem:[%s1028_s3 + $0xa8] sm:$0xf] %v458_v51 }
  0xfc   :  { %v341_v53 = vpop.f32.mrf.mxu2  ;;  %v371_v54 = vpop.f32.mrf.mxu3 }
  0xfd   :  { %v342_v55 = vadd.f32 %v914_v34, %v341_v53 }
  0xff   :  { %v404_v57 = vmax.f32 %v342_v55, 0.0 }
 0x101   :  { %v729_v58 = vpack.c.bf16 %v404_v57, %v403_v56 }
 0x103   :  { %770 = vst [vmem:[%s1028_s3 + $0x78] sm:$0xff] %v729_v58  }

// kernel: pdn_m_multi_forward.10
= control target key start
LH: loop header
LB: loop body
LE: loop exit
PB: predicated region body
PF: predicated region fallthrough
CT: control target
= control target key end

     0   :  { %s2809_s12 = smov 0   ;;  %s2811_s13 = smov 0   ;;  %s3651_s0 = inlined_call_operand.vmem [shape: f32[2,192,128], index: 0, kind: input, shape index: {}]   ;;  %s3652_s1 = inlined_call_operand.vmem [shape: bf16[9,128,128], index: 1, kind: input, shape index: {}]   ;;  %s3653_s2 = inlined_call_operand.vmem [shape: f32[1,128], index: 2, kind: input, shape index: {}]   ;;  %s3654_s3 = inlined_call_operand.vmem [shape: bf16[2,144,128], index: 3, kind: output, shape index: {}]  }
   0x1   :  { %s2813_s14 = smov 0  }
   0x2 LB: > { %s25_s15 = sadd.s32 1, %s2783_s13  ;;  %p2130_p0 = scmp.ge.s32.totalorder %s2787_s14, 1  ;;  %s2787_s14 = sphi %s2813_s14, %s13_s14   ;;  %s2783_s13 = sphi %s2811_s13, %s3680_s13   ;;  %s2779_s12 = sphi %s2809_s12, %s3679_s12  }
   0x3   : > { %p27_p1 = scmp.ge.s32.totalorder %s25_s15, 2  ;;  %p151_p2 = scmp.lt.s32.totalorder %s2787_s14, 3 }
   0x5   : > { %s3682_s15 = smov (%p27_p1, %s25_s15), 0  ;;  %p152_p3 = pnand %p2130_p0, %p151_p2 }
   0x6   : > { %p179_p4 = scmp.lt.s32.totalorder (!%p152_p3), %s2779_s12, 1 }
   0x7   : > { %155 = sbr.rel (%p152_p3) target bundleno = 517 (0x205), region = 32 }
   0xc   : > { %v2604_v0 = vld [vmem:[%s3652_s1 + $0x78] sm:$0xff]  ;;  %v2603_v1 = vld [vmem:[%s3652_s1 + $0x70] sm:$0xff]  ;;  %s3684_s12 = smov (!%p179_p4, %s2779_s12), 1  ;;  %v2602_v2 = vld [vmem:[%s3652_s1 + $0x68] sm:$0xff]  ;;  %vm258_vm0 = vsmask.f32 7424 }
   0xd   : > { %2714 = vmatpush.bf16.msra.mxu1 %v2604_v0  ;;  %2715 = vmatpush.bf16.msra.mxu2 %v2604_v0  ;;  %s2738_s20 = smul.u32 192, %s3684_s12  ;;  %v2601_v3 = vld [vmem:[%s3652_s1 + $0x60] sm:$0xff]  ;;  %v2600_v8 = vld [vmem:[%s3652_s1 + $0x58] sm:$0xff]  ;;  %v2599_v21 = vld [vmem:[%s3652_s1 + $0x50] sm:$0xff]  ;;  %vm772_vm1 = vsmask.f32 5376 }
   0xe   : > { %2716 = vmatpush.bf16.msra.mxu3 %v2604_v0  ;;  %392 = vmatpush.bf16.msra.mxu0 %v2604_v0  ;;  %v2598_v34 = vld [vmem:[%s3652_s1 + $0x48] sm:$0xff]  ;;  %v2597_v46 = vld [vmem:[%s3652_s1 + $0x40] sm:$0xff]  ;;  %v2612_v51 = vld [vmem:[%s3652_s1 + $0xb8] sm:$0xff]  ;;  %vm1018_vm2 = vcmask 1044480   ;;  %vm575_vm3 = vcmask 1046528   ;;  %vm1812_vm5 = vcmask 1045504  }
   0xf   : > { %s2842_s25 = scalar_lea.vmem %s3651_s0, %s2738_s20  ;;  %v2596_v52 = vld [vmem:[%s3652_s1 + $0x38] sm:$0xff]  ;;  %v2611_v53 = vld [vmem:[%s3652_s1 + $0xb0] sm:$0xff]  ;;  %vm1576_vm4 = vsmask.f32 6400  ;;  %vm1184_vm6 = vsmask.f32 4352 }
  0x10   : > { %v2848_v4 = vld [vmem:[%s2842_s25 + $0x20] sm:$0xff]  ;;  %v2851_v5 = vld [vmem:[%s2842_s25 + $0x28] sm:$0xff]  ;;  %v2854_v6 = vld [vmem:[%s2842_s25 + $0x50] sm:$0xff]  ;;  %s2739_s6 = smul.u32 72, %s3684_s12 }
  0x11   : > { %2717 = vmatpush.bf16.msra.mxu1 %v2603_v1  ;;  %2718 = vmatpush.bf16.msra.mxu2 %v2603_v1  ;;  %v2857_v7 = vld [vmem:[%s2842_s25 + $0x58] sm:$0xff]  ;;  %v2863_v9 = vld [vmem:[%s2842_s25 + $0x30] sm:$0xff]  ;;  %v2870_v11 = vpack.c.bf16 %v2851_v5, %v2848_v4  ;;  %v196_v13 = vld [vmem:[%s2842_s25] sm:$0xff] }
  0x12   : > { %2719 = vmatpush.bf16.msra.mxu3 %v2603_v1  ;;  %393 = vmatpush.bf16.msra.mxu0 %v2603_v1  ;;  %v2866_v10 = vld [vmem:[%s2842_s25 + $0x38] sm:$0xff]  ;;  %v2874_v12 = vpack.c.bf16 %v2857_v7, %v2854_v6  ;;  %v2878_v14 = vld [vmem:[%s2842_s25 + $0x8] sm:$0xff]  ;;  %v2881_v15 = vld [vmem:[%s2842_s25 + $0x60] sm:$0xff]  ;;  %s3600_s9 = scalar_lea.vmem %s3654_s3, %s2739_s6 }
  0x13   : > { %v2884_v16 = vld [vmem:[%s2842_s25 + $0x68] sm:$0xff]  ;;  %v2888_v17 = vpack.c.bf16 %v2866_v10, %v2863_v9  ;;  %v2891_v18 = vld [vmem:[%s2842_s25 + $0x10] sm:$0xff]  ;;  %v2894_v19 = vld [vmem:[%s2842_s25 + $0x18] sm:$0xff]  ;;  %v2897_v20 = vpack.c.bf16 %v2878_v14, %v196_v13  ;;  %v275_v22 = vshll.u32 %v2870_v11, 16  ;;  %v279_v26 = vshrl.u32 %v2870_v11, 16 }
  0x14   : > { %v2905_v23 = vpack.c.bf16 %v2884_v16, %v2881_v15  ;;  %v299_v24 = vshll.u32 %v2874_v12, 16  ;;  %v2909_v25 = vld [vmem:[%s2842_s25 + $0x80] sm:$0xff]  ;;  %v2914_v27 = vpack.c.bf16 %v2894_v19, %v2891_v18  ;;  %v2917_v28 = vld [vmem:[%s2842_s25 + $0x88] sm:$0xff]  ;;  %v2920_v29 = vld [vmem:[%s2842_s25 + $0x90] sm:$0xff]  ;;  %v303_v37 = vshrl.u32 %v2874_v12, 16 }
  0x15   : > { %2720 = vmatpush.bf16.msra.mxu1 %v2602_v2  ;;  %2721 = vmatpush.bf16.msra.mxu2 %v2602_v2  ;;  %v283_v30 = vshll.u32 %v2888_v17, 16  ;;  %v262_v31 = vshll.u32 %v2897_v20, 16  ;;  %v2926_v32 = vpack.c.bf16 %v2917_v28, %v2909_v25  ;;  %v2930_v33 = vpack.c.bf16 %v2920_v29, %v2920_v29  ;;  %v2595_v54 = vld [vmem:[%s3652_s1 + $0x30] sm:$0xff]  ;;  %v2620_v61 = vld [vmem:[%s3652_s1 + $0xf8] sm:$0xff]  ;;  %v2972_v62 = vld [vmem:[%s2842_s25 + $0x40] sm:$0xff] }
  0x16   : > { %2722 = vmatpush.bf16.msra.mxu3 %v2602_v2  ;;  %394 = vmatpush.bf16.msra.mxu0 %v2602_v2  ;;  %v2935_v35 = vrot.slane %v275_v22, 1  ;;  %v2937_v36 = vrot.slane %v299_v24, 1  ;;  %v307_v38 = vshll.u32 %v2905_v23, 16  ;;  %v260_v40 = vshrl.u32 %v2897_v20, 16  ;;  %v2628_v63 = vld [vmem:[%s3652_s1 + $0x138] sm:$0xff]  ;;  %v2978_v0 = vld [vmem:[%s2842_s25 + $0x48] sm:$0xff] }
  0x17   : > { %v323_v39 = vshll.u32 %v2926_v32, 16  ;;  %v267_v41 = vshll.u32 %v2914_v27, 16  ;;  %v264_v42 = vrot.slane %v262_v31, 1  ;;  %v327_v44 = vshrl.u32 %v2926_v32, 16  ;;  %v2981_v1 = vld [vmem:[%s2842_s25 + $0x70] sm:$0xff]  ;;  %v2984_v2 = vld [vmem:[%s2842_s25 + $0x78] sm:$0xff] }
  0x18   : > { %v331_v45 = vshll.u32 %v2930_v33, 16  ;;  %v281_v47 = vor.u32 %v279_v26, %v2935_v35  ;;  %v285_v48 = vrot.slane %v283_v30, 1  ;;  %v305_v49 = vor.u32 %v303_v37, %v2937_v36  ;;  %v2619_v13 = vld [vmem:[%s3652_s1 + $0xf0] sm:$0xff]  ;;  %v2610_v26 = vld [vmem:[%s3652_s1 + $0xa8] sm:$0xff] }
  0x19   : > { %2723 = vmatpush.bf16.msra.mxu1 %v2601_v3  ;;  %2724 = vmatpush.bf16.msra.mxu2 %v2601_v3  ;;  %v2944_v43 = vrot.slane %v323_v39, 1  ;;  %v309_v50 = vrot.slane %v307_v38, 1  ;;  %v265_v55 = vor.u32 %v264_v42, %v260_v40  ;;  %v269_v56 = vrot.slane %v267_v41, 1  ;;  %v2627_v24 = vld [vmem:[%s3652_s1 + $0x130] sm:$0xff]  ;;  %v2594_v30 = vld [vmem:[%s3652_s1 + $0x28] sm:$0xff]  ;;  %v2609_v41 = vld [vmem:[%s3652_s1 + $0xa0] sm:$0xff] }
  0x1a   : > { %2725 = vmatpush.bf16.msra.mxu3 %v2601_v3  ;;  %395 = vmatpush.bf16.msra.mxu0 %v2601_v3  ;;  %v333_v58 = vrot.slane %v331_v45, 1  ;;  %v286_v59 = vsel %vm258_vm0, %v281_v47, %v285_v48  ;;  %v2997_v22 = vpack.c.bf16 %v2984_v2, %v2981_v1  ;;  %v287_v31 = vshrl.u32 %v2888_v17, 16  ;;  %v2618_v39 = vld [vmem:[%s3652_s1 + $0xe8] sm:$0xff]  ;;  %v2593_v42 = vld [vmem:[%s3652_s1 + $0x20] sm:$0xff] }
  0x1b   : > { %v329_v57 = vor.u32 %v327_v44, %v2944_v43  ;;  %v310_v60 = vsel %vm258_vm0, %v305_v49, %v309_v50  ;;  %v270_v3 = vsel %vm258_vm0, %v265_v55, %v269_v56  ;;  %v311_v37 = vshrl.u32 %v2905_v23, 16  ;;  %v2626_v40 = vld [vmem:[%s3652_s1 + $0x128] sm:$0xff] }
  0x1c   : > { %v315_v38 = vshll.u32 %v2997_v22, 16  ;;  %v271_v44 = vshrl.u32 %v2914_v27, 16  ;;  %v289_v45 = vor.u32 %v287_v31, %v285_v48  ;;  %v2592_v48 = vld [vmem:[%s3652_s1 + $0x18] sm:$0xff]  ;;  %v2614_v31 = vld [vmem:[%s3652_s1 + $0xc8] sm:$0xff] }
  0x1d   : > { %2726 = vmatpush.bf16.msra.mxu1 %v2600_v8  ;;  %2727 = vmatpush.bf16.msra.mxu2 %v2600_v8  ;;  %v313_v47 = vor.u32 %v311_v37, %v309_v50  ;;  %v2605_v37 = vld [vmem:[%s3652_s1 + $0x80] sm:$0xff] }
  0x1e   : > { %2728 = vmatpush.bf16.msra.mxu3 %v2600_v8  ;;  %396 = vmatpush.bf16.msra.mxu0 %v2600_v8  ;;  %v334_v8 = vsel %vm258_vm0, %v329_v57, %v333_v58  ;;  %v317_v49 = vrot.slane %v315_v38, 1  ;;  %v273_v50 = vor.u32 %v271_v44, %v269_v56  ;;  %v2616_v57 = vld [vmem:[%s3652_s1 + $0xd8] sm:$0xff]  ;;  %v2607_v56 = vld [vmem:[%s3652_s1 + $0x90] sm:$0xff] }
  0x1f   : > { %v2624_v58 = vld [vmem:[%s3652_s1 + $0x118] sm:$0xff] }
  0x20   : > { %v318_v55 = vsel %vm258_vm0, %v313_v47, %v317_v49  ;;  %v2644_v44 = vld [vmem:[%s3652_s1 + $0x1b8] sm:$0xff] }
  0x21   : > { %2729 = vmatpush.bf16.msra.mxu1 %v2599_v21  ;;  %2730 = vmatpush.bf16.msra.mxu2 %v2599_v21 }
  0x22   : > { %2731 = vmatpush.bf16.msra.mxu3 %v2599_v21  ;;  %397 = vmatpush.bf16.msra.mxu0 %v2599_v21  ;;  %v2993_v21 = vpack.c.bf16 %v2978_v0, %v2972_v62 }
  0x25   : > { %2732 = vmatpush.bf16.msra.mxu1 %v2598_v34  ;;  %2733 = vmatpush.bf16.msra.mxu2 %v2598_v34 }
  0x26   : > { %2734 = vmatpush.bf16.msra.mxu3 %v2598_v34  ;;  %398 = vmatpush.bf16.msra.mxu0 %v2598_v34  ;;  %v291_v34 = vshll.u32 %v2993_v21, 16 }
  0x29   : > { %2735 = vmatpush.bf16.msra.mxu1 %v2597_v46  ;;  %2736 = vmatpush.bf16.msra.mxu2 %v2597_v46 }
  0x2a   : > { %2737 = vmatpush.bf16.msra.mxu3 %v2597_v46  ;;  %399 = vmatpush.bf16.msra.mxu0 %v2597_v46  ;;  %v293_v46 = vrot.slane %v291_v34, 1  ;;  %v2622_v34 = vld [vmem:[%s3652_s1 + $0x108] sm:$0xff] }
  0x2c   : > { %410 = vmatmul.bf16.vlgmr.msra.gmra.mxu1 %v286_v59  ;;  %425 = vmatmul.bf16.vlgmr.msra.gmra.mxu2 %v310_v60  ;;  %v2591_v59 = vld [vmem:[%s3652_s1 + $0x10] sm:$0xff]  ;;  %v3053_v60 = vpack.c.bf16 %v2891_v18, %v2878_v14  ;;  %v2590_v18 = vld [vmem:[%s3652_s1 + $0x8] sm:$0xff] }
  0x2d   : > { %652 = vmatpush.bf16.msrb.mxu2 %v2612_v51  ;;  %494 = vmatpush.bf16.msrb.mxu1 %v2596_v52  ;;  %v2617_v51 = vld [vmem:[%s3652_s1 + $0xe0] sm:$0xff]  ;;  %v2623_v14 = vld [vmem:[%s3652_s1 + $0x110] sm:$0xff] }
  0x2e   : > { %919 = vmatpush.bf16.msrb.mxu3 %v2620_v61  ;;  %1095 = vmatpush.bf16.msrb.mxu0 %v2628_v63  ;;  %v2625_v52 = vld [vmem:[%s3652_s1 + $0x120] sm:$0xff]  ;;  %v3057_v61 = vpack.c.bf16 %v2848_v4, %v2894_v19  ;;  %v278_v63 = vsel %vm258_vm0, %v273_v50, %v2935_v35  ;;  %v2606_v4 = vld [vmem:[%s3652_s1 + $0x88] sm:$0xff]  ;;  %v774_v35 = vshrl.u32 %v3053_v60, 16 }
  0x2f   : > { %400 = vmatmul.bf16.vlgmr.msra.gmra.mxu0 %v270_v3  ;;  %440 = vmatmul.bf16.vlgmr.msra.gmra.mxu3 %v334_v8  ;;  %v2615_v3 = vld [vmem:[%s3652_s1 + $0xd0] sm:$0xff]  ;;  %v777_v8 = vshll.u32 %v3053_v60, 16 }
  0x30   : > { %v776_v38 = vrot.slane %v774_v35, 2 }
  0x31   : > { %653 = vmatpush.bf16.msrb.mxu2 %v2611_v53  ;;  %495 = vmatpush.bf16.msrb.mxu1 %v2595_v54  ;;  %v2608_v53 = vld [vmem:[%s3652_s1 + $0x98] sm:$0xff]  ;;  %v294_v54 = vsel %vm258_vm0, %v289_v45, %v293_v46 }
  0x32   : > { %920 = vmatpush.bf16.msrb.mxu3 %v2619_v13  ;;  %1096 = vmatpush.bf16.msrb.mxu0 %v2627_v24  ;;  %v782_v13 = vshrl.u32 %v3057_v61, 16  ;;  %v785_v24 = vshll.u32 %v3057_v61, 16  ;;  %v2636_v45 = vld [vmem:[%s3652_s1 + $0x178] sm:$0xff] }
  0x35   : > { %654 = vmatpush.bf16.msrb.mxu2 %v2610_v26  ;;  %496 = vmatpush.bf16.msrb.mxu1 %v2594_v30  ;;  %v295_v26 = vshrl.u32 %v2993_v21, 16  ;;  %v319_v30 = vshrl.u32 %v2997_v22, 16 }
  0x36   : > { %921 = vmatpush.bf16.msrb.mxu3 %v2618_v39  ;;  %1097 = vmatpush.bf16.msrb.mxu0 %v2626_v40  ;;  %v779_v39 = vrot.slane %v777_v8, 3  ;;  %v784_v40 = vrot.slane %v782_v13, 2 }
  0x37   : > { %v297_v47 = vor.u32 %v295_v26, %v293_v46  ;;  %v2660_v46 = vld [vmem:[%s3652_s1 + $0x238] sm:$0xff]  ;;  %v576_v26 = vrot.slane %v2897_v20, 1 }
  0x39   : > { %655 = vmatpush.bf16.msrb.mxu2 %v2609_v41  ;;  %497 = vmatpush.bf16.msrb.mxu1 %v2593_v42  ;;  %v787_v41 = vrot.slane %v785_v24, 3  ;;  %v2589_v42 = vld [vmem:[%s3652_s1] sm:$0xff] }
  0x3a   : > { %922 = vmatpush.bf16.msrb.mxu3 %v2617_v51  ;;  %1098 = vmatpush.bf16.msrb.mxu0 %v2625_v52  ;;  %v321_v51 = vor.u32 %v319_v30, %v317_v49  ;;  %v2613_v52 = vld [vmem:[%s3652_s1 + $0xc0] sm:$0xff]  ;;  %v1019_v49 = vrot.slane %v3053_v60, 3  ;;  %v577_v30 = vrot.slane %v2914_v27, 1 }
  0x3b   : > { %v788_v50 = vor.u32 %v787_v41, %v784_v40  ;;  %v2642_v41 = vld [vmem:[%s3652_s1 + $0x1a8] sm:$0xff] }
  0x3c   : > { %415 = vmatmul.bf16.gmra.mxu1 %v294_v54  ;;  %430 = vmatmul.bf16.gmra.mxu2 %v318_v55  ;;  %v2652_v54 = vld [vmem:[%s3652_s1 + $0x1f8] sm:$0xff]  ;;  %v1020_v55 = vrot.slane %v3057_v61, 3  ;;  %v2430_v61 = vld [vmem:[%s2842_s25 + $0x48] sm:$0xff] }
  0x3d   : > { %656 = vmatpush.bf16.msrb.mxu2 %v2608_v53  ;;  %498 = vmatpush.bf16.msrb.mxu1 %v2592_v48  ;;  %v2621_v53 = vld [vmem:[%s3652_s1 + $0x100] sm:$0xff]  ;;  %v780_v48 = vor.u32 %v779_v39, %v776_v38  ;;  %v3154_v39 = vpack.c.bf16 %v2972_v62, %v2866_v10  ;;  %v2658_v10 = vld [vmem:[%s3652_s1 + $0x228] sm:$0xff] }
  0x3e   : > { %923 = vmatpush.bf16.msrb.mxu3 %v2616_v57  ;;  %1099 = vmatpush.bf16.msrb.mxu0 %v2624_v58  ;;  %v302_v57 = vsel %vm258_vm0, %v297_v47, %v2937_v36  ;;  %v326_v58 = vsel %vm258_vm0, %v321_v51, %v2944_v43  ;;  %v2643_v36 = vld [vmem:[%s3652_s1 + $0x1b0] sm:$0xff]  ;;  %v579_v51 = vrot.slane %v2870_v11, 1 }
  0x3f   : > { %405 = vmatmul.bf16.gmra.mxu0 %v278_v63  ;;  %v1021_v63 = vsel %vm1018_vm2, %v1019_v49, %v1020_v55  ;;  %v2651_v43 = vld [vmem:[%s3652_s1 + $0x1f0] sm:$0xff]  ;;  %v803_v62 = vshll.u32 %v3154_v39, 16  ;;  %v2641_v49 = vld [vmem:[%s3652_s1 + $0x1a0] sm:$0xff] }
  0x41   : > { %657 = vmatpush.bf16.msrb.mxu2 %v2607_v56  ;;  %499 = vmatpush.bf16.msrb.mxu1 %v2591_v59  ;;  %v789_v56 = vsel %vm772_vm1, %v780_v48, %v788_v50  ;;  %v3126_v59 = vpack.c.bf16 %v2863_v9, %v2851_v5  ;;  %v2659_v5 = vld [vmem:[%s3652_s1 + $0x230] sm:$0xff]  ;;  %v805_v47 = vrot.slane %v803_v62, 3  ;;  %v580_v48 = vsel %vm575_vm3, %v577_v30, %v579_v51 }
  0x42   : > { %924 = vmatpush.bf16.msrb.mxu3 %v2615_v3  ;;  %1100 = vmatpush.bf16.msrb.mxu0 %v2623_v14  ;;  %v2635_v3 = vld [vmem:[%s3652_s1 + $0x170] sm:$0xff] }
  0x43   : > { %v791_v9 = vshrl.u32 %v3126_v59, 16  ;;  %v794_v14 = vshll.u32 %v3126_v59, 16 }
  0x45   : > { %658 = vmatpush.bf16.msrb.mxu2 %v2606_v4  ;;  %500 = vmatpush.bf16.msrb.mxu1 %v2590_v18  ;;  %v793_v4 = vrot.slane %v791_v9, 2  ;;  %v796_v18 = vrot.slane %v794_v14, 3 }
  0x46   : > { %925 = vmatpush.bf16.msrb.mxu3 %v2614_v31  ;;  %1101 = vmatpush.bf16.msrb.mxu0 %v2622_v34  ;;  %v1022_v34 = vrot.slane %v3126_v59, 3 }
  0x47   : > { %v797_v31 = vor.u32 %v796_v18, %v793_v4  ;;  %v2657_v18 = vld [vmem:[%s3652_s1 + $0x220] sm:$0xff] }
  0x48   : > { %v1023_v40 = vsel %vm1018_vm2, %v1020_v55, %v1022_v34  ;;  %v2649_v55 = vld [vmem:[%s3652_s1 + $0x1e0] sm:$0xff] }
  0x49   : > { %659 = vmatpush.bf16.msrb.mxu2 %v2605_v37  ;;  %501 = vmatpush.bf16.msrb.mxu1 %v2589_v42  ;;  %v578_v37 = vsel %vm575_vm3, %v576_v26, %v577_v30  ;;  %v798_v38 = vsel %vm772_vm1, %v788_v50, %v797_v31  ;;  %v2650_v42 = vld [vmem:[%s3652_s1 + $0x1e8] sm:$0xff]  ;;  %v2640_v26 = vld [vmem:[%s3652_s1 + $0x198] sm:$0xff] }
  0x4a   : > { %926 = vmatpush.bf16.msrb.mxu3 %v2613_v52  ;;  %1102 = vmatpush.bf16.msrb.mxu0 %v2621_v53  ;;  %v1024_v53 = vrot.slane %v3154_v39, 3  ;;  %v2648_v30 = vld [vmem:[%s3652_s1 + $0x1d8] sm:$0xff] }
  0x4c   : > { %420 = vmatmul.bf16.gmra.mxu1 %v302_v57  ;;  %435 = vmatmul.bf16.gmra.mxu2 %v326_v58  ;;  %v2633_v57 = vld [vmem:[%s3652_s1 + $0x160] sm:$0xff] }
  0x4d   : > { %1487 = vmatpush.bf16.msra.mxu2 %v2644_v44  ;;  %1281 = vmatpush.bf16.msra.mxu1 %v2636_v45  ;;  %v2634_v44 = vld [vmem:[%s3652_s1 + $0x168] sm:$0xff] }
  0x4e   : > { %1723 = vmatpush.bf16.msra.mxu3 %v2652_v54  ;;  %1889 = vmatpush.bf16.msra.mxu0 %v2660_v46  ;;  %v3182_v54 = vpack.c.bf16 %v2854_v6, %v2978_v0  ;;  %v1025_v46 = vsel %vm1018_vm2, %v1022_v34, %v1024_v53 }
  0x4f   : > { %927 = vmatmul.bf16.vlgmr.msrb.gmra.mxu3 %v789_v56  ;;  %1103 = vmatmul.bf16.vlgmr.msrb.gmra.mxu0 %v1021_v63  ;;  %v581_v56 = vrot.slane %v2888_v17, 1 }
  0x50   : > { %v3666_v6 = vshrl.u32 %v3182_v54, 16 }
  0x51   : > { %1488 = vmatpush.bf16.msra.mxu2 %v2643_v36  ;;  %1282 = vmatpush.bf16.msra.mxu1 %v2635_v3  ;;  %v1026_v36 = vrot.slane %v3182_v54, 3 }
  0x52   : > { %1724 = vmatpush.bf16.msra.mxu3 %v2651_v43  ;;  %1890 = vmatpush.bf16.msra.mxu0 %v2659_v5  ;;  %v811_v0 = vrot.slane %v3666_v6, 2  ;;  %v582_v43 = vsel %vm575_vm3, %v579_v51, %v581_v56  ;;  %v3207_v5 = vpack.c.bf16 %v2881_v15, %v2857_v7  ;;  %v2632_v7 = vld [vmem:[%s3652_s1 + $0x158] sm:$0xff]  ;;  %v2431_v6 = vld [vmem:[%s2842_s25 + $0x50] sm:$0xff] }
  0x53   : > { %v1027_v4 = vsel %vm1018_vm2, %v1024_v53, %v1026_v36 }
  0x54   : > { %v3663_v15 = vshll.u32 %v3207_v5, 16 }
  0x55   : > { %1489 = vmatpush.bf16.msra.mxu2 %v2642_v41  ;;  %1283 = vmatpush.bf16.msra.mxu1 %v2634_v44  ;;  %v3235_v44 = vpack.c.bf16 %v2981_v1, %v2884_v16  ;;  %v2639_v16 = vld [vmem:[%s3652_s1 + $0x190] sm:$0xff] }
  0x56   : > { %1725 = vmatpush.bf16.msra.mxu3 %v2650_v42  ;;  %1891 = vmatpush.bf16.msra.mxu0 %v2658_v10  ;;  %v823_v34 = vrot.slane %v3663_v15, 3 }
  0x57   : > { %v3661_v51 = vshll.u32 %v3235_v44, 16 }
  0x59   : > { %1490 = vmatpush.bf16.msra.mxu2 %v2641_v49  ;;  %1284 = vmatpush.bf16.msra.mxu1 %v2633_v57  ;;  %v832_v1 = vrot.slane %v3661_v51, 3  ;;  %v2631_v49 = vld [vmem:[%s3652_s1 + $0x150] sm:$0xff]  ;;  %v3263_v57 = vpack.c.bf16 %v2909_v25, %v2984_v2  ;;  %v2429_v51 = vld [vmem:[%s2842_s25 + $0x40] sm:$0xff] }
  0x5a   : > { %1726 = vmatpush.bf16.msra.mxu3 %v2649_v55  ;;  %1892 = vmatpush.bf16.msra.mxu0 %v2657_v18 }
  0x5c   : > { %502 = vmatmul.bf16.vlgmr.msrb.gmra.mxu1 %v2897_v20  ;;  %660 = vmatmul.bf16.vlgmr.msrb.gmra.mxu2 %v578_v37  ;;  %v800_v20 = vshrl.u32 %v3154_v39, 16  ;;  %v583_v37 = vrot.slane %v2993_v21, 1 }
  0x5d   : > { %1491 = vmatpush.bf16.msra.mxu2 %v2640_v26  ;;  %1285 = vmatpush.bf16.msra.mxu1 %v2632_v7  ;;  %v2646_v26 = vld [vmem:[%s3652_s1 + $0x1c8] sm:$0xff]  ;;  %v3290_v7 = vpack.c.bf16 %v2920_v29, %v2917_v28 }
  0x5e   : > { %v802_v45 = vrot.slane %v800_v20, 2  ;;  %1727 = vmatpush.bf16.msra.mxu3 %v2648_v30  ;;  %v584_v41 = vsel %vm575_vm3, %v581_v56, %v583_v37  ;;  %v3659_v56 = vshll.u32 %v3263_v57, 16  ;;  %v2654_v29 = vld [vmem:[%s3652_s1 + $0x208] sm:$0xff] }
  0x5f   : > { %932 = vmatmul.bf16.gmra.mxu3 %v798_v38  ;;  %1108 = vmatmul.bf16.gmra.mxu0 %v1023_v40  ;;  %v1028_v40 = vrot.slane %v3207_v5, 3 }
  0x60   : > { %v806_v52 = vor.u32 %v805_v47, %v802_v45  ;;  %v2656_v45 = vld [vmem:[%s3652_s1 + $0x218] sm:$0xff]  ;;  %v3662_v47 = vshrl.u32 %v3235_v44, 16  ;;  %v841_v2 = vrot.slane %v3659_v56, 3 }
  0x61   : > { %v1029_v10 = vsel %vm1018_vm2, %v1026_v36, %v1028_v40  ;;  %1893 = vmatpush.bf16.msra.mxu0 %v2656_v45  ;;  %1492 = vmatpush.bf16.msra.mxu2 %v2639_v16  ;;  %v589_v45 = vrot.slane %v2997_v22, 1 }
  0x62   : > { %v807_v50 = vsel %vm772_vm1, %v797_v31, %v806_v52  ;;  %1286 = vmatpush.bf16.msra.mxu1 %v2631_v49  ;;  %v2637_v49 = vld [vmem:[%s3652_s1 + $0x180] sm:$0xff] }
  0x6c   : > { %507 = vmatmul.bf16.gmra.mxu1 %v2914_v27  ;;  %665 = vmatmul.bf16.gmra.mxu2 %v580_v48  ;;  %v3665_v27 = vshll.u32 %v3182_v54, 16  ;;  %v2647_v48 = vld [vmem:[%s3652_s1 + $0x1d0] sm:$0xff] }
  0x6d   : > { %1728 = vmatpush.bf16.msra.mxu3 %v2647_v48 }
  0x6e   : > { %v814_v58 = vrot.slane %v3665_v27, 3 }
  0x6f   : > { %937 = vmatmul.bf16.gmra.mxu3 %v807_v50  ;;  %1113 = vmatmul.bf16.gmra.mxu0 %v1025_v46  ;;  %v1030_v50 = vrot.slane %v3235_v44, 3 }
  0x70   : > { %v815_v63 = vor.u32 %v814_v58, %v811_v0  ;;  %v3660_v58 = vshrl.u32 %v3263_v57, 16 }
  0x71   : > { %v1031_v0 = vsel %vm1018_vm2, %v1028_v40, %v1030_v50  ;;  %1729 = vmatpush.bf16.msra.mxu3 %v2646_v26  ;;  %v3657_v40 = vshll.u32 %v3290_v7, 16  ;;  %v2653_v26 = vld [vmem:[%s3652_s1 + $0x200] sm:$0xff] }
  0x72   : > { %v816_v3 = vsel %vm772_vm1, %v806_v52, %v815_v63  ;;  %v585_v52 = vrot.slane %v2874_v12, 1  ;;  %v838_v25 = vrot.slane %v3660_v58, 2  ;;  %v2428_v58 = vld [vmem:[%s2842_s25 + $0x38] sm:$0xff] }
  0x74   : > { %v586_v46 = vsel %vm575_vm3, %v583_v37, %v585_v52  ;;  %v842_v36 = vor.u32 %v841_v2, %v838_v25  ;;  %v2630_v37 = vld [vmem:[%s3652_s1 + $0x148] sm:$0xff]  ;;  %v2645_v25 = vld [vmem:[%s3652_s1 + $0x1c0] sm:$0xff] }
  0x75   : > { %1287 = vmatpush.bf16.msra.mxu1 %v2630_v37  ;;  %v2629_v2 = vld [vmem:[%s3652_s1 + $0x140] sm:$0xff]  ;;  %1730 = vmatpush.bf16.msra.mxu3 %v2645_v25 }
  0x79   : > { %1288 = vmatpush.bf16.msra.mxu1 %v2629_v2 }
  0x7c   : > { %512 = vmatmul.bf16.gmra.mxu1 %v2870_v11  ;;  %670 = vmatmul.bf16.gmra.mxu2 %v582_v43  ;;  %v3664_v11 = vshrl.u32 %v3207_v5, 16  ;;  %v2638_v43 = vld [vmem:[%s3652_s1 + $0x188] sm:$0xff] }
  0x7d   : > { %1493 = vmatpush.bf16.msra.mxu2 %v2638_v43 }
  0x7e   : > { %v820_v31 = vrot.slane %v3664_v11, 2 }
  0x7f   : > { %942 = vmatmul.bf16.gmra.mxu3 %v816_v3  ;;  %1118 = vmatmul.bf16.gmra.mxu0 %v1027_v4  ;;  %v1032_v3 = vrot.slane %v3263_v57, 3 }
  0x80   : > { %v824_v38 = vor.u32 %v823_v34, %v820_v31 }
  0x81   : > { %v1033_v34 = vsel %vm1018_vm2, %v1030_v50, %v1032_v3  ;;  %1494 = vmatpush.bf16.msra.mxu2 %v2637_v49 }
  0x82   : > { %v825_v42 = vsel %vm772_vm1, %v815_v63, %v824_v38  ;;  %v2655_v63 = vld [vmem:[%s3652_s1 + $0x210] sm:$0xff] }
  0x83   : > { %1894 = vmatpush.bf16.msra.mxu0 %v2655_v63 }
  0x87   : > { %1895 = vmatpush.bf16.msra.mxu0 %v2654_v29 }
  0x8b   : > { %1896 = vmatpush.bf16.msra.mxu0 %v2653_v26 }
  0x8c   : > { %517 = vmatmul.bf16.gmra.mxu1 %v2888_v17  ;;  %675 = vmatmul.bf16.gmra.mxu2 %v584_v41  ;;  %v829_v17 = vrot.slane %v3662_v47, 2 }
  0x8e   : > { %v833_v53 = vor.u32 %v832_v1, %v829_v17  ;;  %v3318_v1 = vld [vmem:[%s2842_s25 + $0x98] sm:$0xff] }
  0x8f   : > { %947 = vmatmul.bf16.gmra.mxu3 %v825_v42  ;;  %1123 = vmatmul.bf16.gmra.mxu0 %v1029_v10  ;;  %v850_v42 = vrot.slane %v3657_v40, 3 }
  0x90   : > { %v834_v55 = vsel %vm772_vm1, %v824_v38, %v833_v53  ;;  %v843_v30 = vsel %vm772_vm1, %v833_v53, %v842_v36  ;;  %v3658_v38 = vshrl.u32 %v3290_v7, 16 }
  0x92   : > { %v847_v41 = vrot.slane %v3658_v38, 2 }
  0x94   : > { %v851_v16 = vor.u32 %v850_v42, %v847_v41  ;;  %v2425_v42 = vld [vmem:[%s2842_s25 + $0x20] sm:$0xff] }
  0x95   : > { %v3373_v26 = vpack.c.bf16 %v2425_v42, %v2894_v19 }
  0x96   : > { %v852_v50 = vsel %vm772_vm1, %v842_v36, %v851_v16 }
  0x97   : > { %v1581_v40 = vshll.u32 %v3373_v26, 16  ;;  %v1411_v60 = vrot.slane %v3373_v26, 1 }
  0x9c   : > { %522 = vmatmul.bf16.gmra.mxu1 %v2993_v21  ;;  %680 = vmatmul.bf16.gmra.mxu2 %v586_v46  ;;  %v587_v21 = vrot.slane %v2905_v23, 1  ;;  %v3327_v46 = vpack.c.bf16 %v3318_v1, %v3318_v1 }
  0x9e   : > { %v588_v18 = vsel %vm575_vm3, %v585_v52, %v587_v21  ;;  %v1034_v52 = vrot.slane %v3290_v7, 3  ;;  %v590_v48 = vsel %vm575_vm3, %v587_v21, %v589_v45  ;;  %v3656_v21 = vshrl.u32 %v3327_v46, 16 }
  0x9f   : > { %952 = vmatmul.bf16.gmra.mxu3 %v834_v55  ;;  %1128 = vmatmul.bf16.gmra.mxu0 %v1031_v0  ;;  %v1036_v49 = vrot.slane %v3327_v46, 3 }
  0xa0   : > { %v1035_v63 = vsel %vm1018_vm2, %v1032_v3, %v1034_v52  ;;  %v856_v3 = vrot.slane %v3656_v21, 2  ;;  %v1578_v21 = vshrl.u32 %v3373_v26, 16 }
  0xa2   : > { %v1580_v42 = vrot.slane %v1578_v21, 1 }
  0xa9   : > { %v3281_v4 = vpop.f32.mrf.mxu1 }
  0xac   : > { %527 = vmatmul.bf16.gmra.mxu1 %v2874_v12  ;;  %685 = vmatmul.bf16.gmra.mxu2 %v588_v18  ;;  %v3293_v31 = vpop.f32.mrf.mxu0 }
  0xaf   : > { %957 = vmatmul.bf16.gmra.mxu3 %v843_v30  ;;  %v3301_v28 = vpop.f32.mrf.mxu2  ;;  %1133 = vmatmul.bf16.gmra.mxu0 %v1033_v34  ;;  %v591_v34 = vrot.slane %v2926_v32, 1 }
  0xb1   : > { %v3303_v12 = vpop.f32.mrf.mxu1  ;;  %v592_v25 = vsel %vm575_vm3, %v589_v45, %v591_v34 }
  0xb2   : > { %v3333_v55 = vpop.f32.mrf.mxu3 }
  0xb4   : > { %v3312_v10 = vpop.f32.mrf.mxu0 }
  0xb7   : > { %v3315_v17 = vpop.f32.mrf.mxu2 }
  0xb9   : > { %v3321_v53 = vpop.f32.mrf.mxu1 }
  0xba   : > { %v3360_v37 = vpop.f32.mrf.mxu3 }
  0xbc   : > { %532 = vmatmul.bf16.gmra.mxu1 %v2905_v23  ;;  %690 = vmatmul.bf16.gmra.mxu2 %v590_v48  ;;  %v3335_v0 = vpop.f32.mrf.mxu0  ;;  %v3655_v23 = vshll.u32 %v3327_v46, 16  ;;  %v2426_v48 = vld [vmem:[%s2842_s25 + $0x28] sm:$0xff] }
  0xbe   : > { %v859_v18 = vrot.slane %v3655_v23, 3 }
  0xbf   : > { %962 = vmatmul.bf16.gmra.mxu3 %v852_v50  ;;  %v3346_v36 = vpop.f32.mrf.mxu2  ;;  %1138 = vmatmul.bf16.gmra.mxu0 %v1035_v63  ;;  %v2427_v50 = vld [vmem:[%s2842_s25 + $0x30] sm:$0xff] }
  0xc0   : > { %v860_v29 = vor.u32 %v859_v18, %v856_v3  ;;  %v3375_v23 = vpack.c.bf16 %v2427_v50, %v2426_v48  ;;  %v1037_v18 = vsel %vm1018_vm2, %v1034_v52, %v1036_v49  ;;  %v1583_v48 = vrot.slane %v1581_v40, 2 }
  0xc1   : > { %v3348_v43 = vpop.f32.mrf.mxu1 }
  0xc2   : > { %v861_v2 = vsel %vm772_vm1, %v851_v16, %v860_v29  ;;  %v1586_v45 = vshrl.u32 %v3375_v23, 16  ;;  %v1589_v16 = vshll.u32 %v3375_v23, 16  ;;  %v1814_v15 = vrot.slane %v3375_v23, 2 }
  0xc4   : > { %v3357_v30 = vpop.f32.mrf.mxu0  ;;  %v1588_v52 = vrot.slane %v1586_v45, 1  ;;  %v1591_v50 = vrot.slane %v1589_v16, 2  ;;  %v3399_v16 = vpack.c.bf16 %v2429_v51, %v2428_v58  ;;  %v1185_v51 = vrot.slane %v774_v35, 3 }
  0xc5   : > { %v1188_v58 = vrot.slane %v782_v13, 3 }
  0xc6   : > { %v1592_v38 = vor.u32 %v1591_v50, %v1588_v52  ;;  %v1595_v52 = vshrl.u32 %v3399_v16, 16  ;;  %v1598_v50 = vshll.u32 %v3399_v16, 16 }
  0xc7   : > { %v3362_v41 = vpop.f32.mrf.mxu2 }
  0xc9   : > { %v3368_v63 = vpop.f32.mrf.mxu1 }
  0xcc   : > { %537 = vmatmul.bf16.gmra.mxu1 %v2997_v22  ;;  %695 = vmatmul.bf16.gmra.mxu2 %v592_v25  ;;  %v1104_v3 = vpop.f32.mrf.mxu0  ;;  %v593_v25 = vrot.slane %v2930_v33, 1 }
  0xce   : > { %v594_v40 = vsel %vm575_vm3, %v591_v34, %v593_v25 }
  0xcf   : > { %967 = vmatmul.bf16.gmra.mxu3 %v861_v2  ;;  %v3383_v19 = vpop.f32.mrf.mxu2  ;;  %1143 = vmatmul.bf16.gmra.mxu0 %v1037_v18  ;;  %v1584_v2 = vor.u32 %v1583_v48, %v1580_v42  ;;  %v1813_v18 = vrot.slane %v3373_v26, 2 }
  0xd1   : > { %v3385_v22 = vpop.f32.mrf.mxu1  ;;  %v1593_v33 = vsel %vm1576_vm4, %v1584_v2, %v1592_v38  ;;  %v1815_v48 = vsel %vm1812_vm5, %v1813_v18, %v1814_v15  ;;  %v1189_v2 = vrot.slane %v785_v24, 4 }
  0xd2   : > { %v928_v29 = vpop.f32.mrf.mxu3 }
  0xd4   : > { %v3387_v49 = vpop.f32.mrf.mxu0 }
  0xd7   : > { %v3390_v56 = vpop.f32.mrf.mxu2 }
  0xd9   : > { %v503_v21 = vpop.f32.mrf.mxu1 }
  0xda   : > { %v930_v47 = vpop.f32.mrf.mxu3  ;;  %v504_v45 = vadd.f32 %v503_v21, %v3293_v31 }
  0xdc   : > { %542 = vmatmul.bf16.gmra.mxu1 %v2926_v32  ;;  %700 = vmatmul.bf16.gmra.mxu2 %v594_v40  ;;  %v1109_v42 = vpop.f32.mrf.mxu0  ;;  %v1186_v32 = vrot.slane %v777_v8, 4  ;;  %v1600_v40 = vrot.slane %v1598_v50, 2  ;;  %v1412_v8 = vrot.slane %v3375_v23, 1  ;;  %v3425_v23 = vpack.c.bf16 %v2431_v6, %v2430_v61 }
  0xde   : > { %v1187_v35 = vor.u32 %v1186_v32, %v1185_v51  ;;  %v1818_v59 = vrot.slane %v3425_v23, 2 }
  0xdf   : > { %1731 = vmatmul.bf16.vlgmr.msra.gmra.mxu3 %v1593_v33  ;;  %v661_v11 = vpop.f32.mrf.mxu2  ;;  %1897 = vmatmul.bf16.vlgmr.msra.gmra.mxu0 %v1815_v48  ;;  %v1190_v48 = vor.u32 %v1189_v2, %v1188_v58  ;;  %v1604_v58 = vshrl.u32 %v3425_v23, 16  ;;  %v1607_v2 = vshll.u32 %v3425_v23, 16 }
  0xe0   : > { %v706_v34 = vadd.f32 %v661_v11, %v504_v45  ;;  %v1597_v11 = vrot.slane %v1595_v52, 1 }
  0xe1   : > { %v505_v31 = vpop.f32.mrf.mxu1  ;;  %v1191_v50 = vsel %vm1184_vm6, %v1187_v35, %v1190_v48 }
  0xe2   : > { %v933_v25 = vpop.f32.mrf.mxu3  ;;  %v973_v18 = vadd.f32 %v928_v29, %v706_v34  ;;  %v506_v21 = vadd.f32 %v505_v31, %v3312_v10  ;;  %v1601_v13 = vor.u32 %v1600_v40, %v1597_v11  ;;  %v1816_v10 = vrot.slane %v3399_v16, 2 }
  0xe3   : > { %v1606_v11 = vrot.slane %v1604_v58, 1  ;;  %v1609_v40 = vrot.slane %v1607_v2, 2 }
  0xe4   : > { %v1111_v45 = vpop.f32.mrf.mxu0  ;;  %v3414_v33 = vadd.f32 %v1104_v3, %v973_v18  ;;  %v1413_v3 = vsel %vm575_vm3, %v1411_v60, %v1412_v8  ;;  %v1602_v26 = vsel %vm1576_vm4, %v1592_v38, %v1601_v13  ;;  %v1192_v18 = vrot.slane %v791_v9, 3 }
  0xe5   : > { %v1819_v58 = vsel %vm1812_vm5, %v1816_v10, %v1818_v59 }
  0xe7   : > { %v663_v27 = vpop.f32.mrf.mxu2 }
  0xe8   : > { %v707_v24 = vadd.f32 %v663_v27, %v506_v21  ;;  %v1817_v27 = vsel %vm1812_vm5, %v1814_v15, %v1816_v10  ;;  %v1193_v15 = vrot.slane %v794_v14, 4 }
  0xe9   : > { %v508_v52 = vpop.f32.mrf.mxu1 }
  0xea   : > { %v935_v29 = vpop.f32.mrf.mxu3  ;;  %v974_v34 = vadd.f32 %v930_v47, %v707_v24  ;;  %v509_v31 = vadd.f32 %v508_v52, %v3335_v0  ;;  %v1194_v61 = vor.u32 %v1193_v15, %v1192_v18  ;;  %v1414_v24 = vrot.slane %v3399_v16, 1 }
  0xeb   : > { %v1610_v52 = vor.u32 %v1609_v40, %v1606_v11  ;;  %v1196_v18 = vrot.slane %v800_v20, 3  ;;  %v1416_v40 = vrot.slane %v3425_v23, 1 }
  0xec   : > { %1289 = vmatmul.bf16.vlgmr.msra.gmra.mxu1 %v1191_v50  ;;  %1495 = vmatmul.bf16.vlgmr.msra.gmra.mxu2 %v1413_v3  ;;  %v1114_v51 = vpop.f32.mrf.mxu0  ;;  %v3429_v32 = vadd.f32 %v3387_v49, %v974_v34  ;;  %v2432_v3 = vld [vmem:[%s2842_s25 + $0x58] sm:$0xff]  ;;  %v2433_v34 = vld [vmem:[%s2842_s25 + $0x60] sm:$0xff] }
  0xef   : > { %1736 = vmatmul.bf16.gmra.mxu3 %v1602_v26  ;;  %v666_v47 = vpop.f32.mrf.mxu2  ;;  %1902 = vmatmul.bf16.gmra.mxu0 %v1817_v27  ;;  %v3447_v27 = vpack.c.bf16 %v2433_v34, %v2432_v3 }
  0xf0   : > { %v708_v0 = vadd.f32 %v666_v47, %v509_v31 }
  0xf1   : > { %v510_v38 = vpop.f32.mrf.mxu1  ;;  %v1820_v39 = vrot.slane %v3447_v27, 2 }
  0xf2   : > { %v938_v6 = vpop.f32.mrf.mxu3  ;;  %v975_v49 = vadd.f32 %v933_v25, %v708_v0  ;;  %v511_v21 = vadd.f32 %v510_v38, %v3357_v30  ;;  %v1195_v25 = vsel %vm1184_vm6, %v1190_v48, %v1194_v61  ;;  %v1415_v30 = vsel %vm575_vm3, %v1412_v8, %v1414_v24 }
  0xf3   : > { %v1613_v0 = vshrl.u32 %v3447_v27, 16  ;;  %v1616_v48 = vshll.u32 %v3447_v27, 16  ;;  %v1821_v23 = vsel %vm1812_vm5, %v1818_v59, %v1820_v39 }
  0xf4   : > { %v1116_v35 = vpop.f32.mrf.mxu0  ;;  %v3438_v60 = vadd.f32 %v1109_v42, %v975_v49  ;;  %v1611_v42 = vsel %vm1576_vm4, %v1601_v13, %v1610_v52 }
  0xf5   : > { %v1615_v15 = vrot.slane %v1613_v0, 1 }
  0xf7   : > { %v668_v50 = vpop.f32.mrf.mxu2 }
  0xf8   : > { %v709_v31 = vadd.f32 %v668_v50, %v511_v21 }
  0xf9   : > { %v513_v14 = vpop.f32.mrf.mxu1 }
  0xfa   : > { %v940_v9 = vpop.f32.mrf.mxu3  ;;  %v976_v26 = vadd.f32 %v935_v29, %v709_v31  ;;  %v514_v47 = vadd.f32 %v513_v14, %v3281_v4  ;;  %v1618_v4 = vrot.slane %v1616_v48, 2  ;;  %v2434_v31 = vld [vmem:[%s2842_s25 + $0x68] sm:$0xff]  ;;  %v2435_v14 = vld [vmem:[%s2842_s25 + $0x70] sm:$0xff] }
  0xfc   : > { %1294 = vmatmul.bf16.gmra.mxu1 %v1195_v25  ;;  %1500 = vmatmul.bf16.gmra.mxu2 %v1415_v30  ;;  %v1119_v16 = vpop.f32.mrf.mxu0  ;;  %v3450_v2 = vadd.f32 %v1111_v45, %v976_v26  ;;  %v1197_v45 = vrot.slane %v803_v62, 4  ;;  %v1619_v3 = vor.u32 %v1618_v4, %v1615_v15  ;;  %v1417_v30 = vsel %vm575_vm3, %v1414_v24, %v1416_v40 }
  0xfd   : > { %v1418_v4 = vrot.slane %v3447_v27, 1 }
  0xfe   : > { %v1198_v11 = vor.u32 %v1197_v45, %v1196_v18  ;;  %v1620_v26 = vsel %vm1576_vm4, %v1610_v52, %v1619_v3 }
  0xff   : > { %1741 = vmatmul.bf16.gmra.mxu3 %v1611_v42  ;;  %v671_v8 = vpop.f32.mrf.mxu2  ;;  %1907 = vmatmul.bf16.gmra.mxu0 %v1819_v58  ;;  %v3469_v42 = vpack.c.bf16 %v2435_v14, %v2434_v31  ;;  %v2436_v14 = vld [vmem:[%s2842_s25 + $0x78] sm:$0xff] }
 0x100   : > { %v710_v13 = vadd.f32 %v671_v8, %v514_v47  ;;  %v3667_v8 = vshrl.u32 %v3182_v54, 16 }
 0x101   : > { %v515_v38 = vpop.f32.mrf.mxu1  ;;  %v1622_v0 = vshrl.u32 %v3469_v42, 16 }
 0x102   : > { %v943_v29 = vpop.f32.mrf.mxu3  ;;  %v977_v10 = vadd.f32 %v938_v6, %v710_v13  ;;  %v516_v50 = vadd.f32 %v515_v38, %v3303_v12  ;;  %v1199_v6 = vsel %vm1184_vm6, %v1194_v61, %v1198_v11  ;;  %v1625_v61 = vshll.u32 %v3469_v42, 16 }
 0x103   : > { %v1200_v13 = vrot.slane %v3667_v8, 3  ;;  %v1624_v18 = vrot.slane %v1622_v0, 1 }
 0x104   : > { %v1121_v49 = vpop.f32.mrf.mxu0  ;;  %v3459_v21 = vadd.f32 %v1114_v51, %v977_v10 }
 0x107   : > { %v673_v34 = vpop.f32.mrf.mxu2 }
 0x108   : > { %v711_v25 = vadd.f32 %v673_v34, %v516_v50 }
 0x109   : > { %v518_v62 = vpop.f32.mrf.mxu1 }
 0x10a   : > { %v945_v20 = vpop.f32.mrf.mxu3  ;;  %v978_v51 = vadd.f32 %v940_v9, %v711_v25  ;;  %v519_v47 = vadd.f32 %v518_v62, %v3321_v53  ;;  %v1627_v53 = vrot.slane %v1625_v61, 2  ;;  %v2437_v25 = vld [vmem:[%s2842_s25 + $0x80] sm:$0xff] }
 0x10c   : > { %1299 = vmatmul.bf16.gmra.mxu1 %v1199_v6  ;;  %1505 = vmatmul.bf16.gmra.mxu2 %v1417_v30  ;;  %v1124_v12 = vpop.f32.mrf.mxu0  ;;  %v3472_v58 = vadd.f32 %v1116_v35, %v978_v51  ;;  %v3668_v35 = vshll.u32 %v3182_v54, 16  ;;  %v1628_v34 = vor.u32 %v1627_v53, %v1624_v18  ;;  %v1822_v54 = vrot.slane %v3469_v42, 2 }
 0x10d   : > { %v1419_v51 = vsel %vm575_vm3, %v1416_v40, %v1418_v4  ;;  %v1420_v18 = vrot.slane %v3469_v42, 1 }
 0x10e   : > { %v1201_v59 = vrot.slane %v3668_v35, 4  ;;  %v1823_v27 = vsel %vm1812_vm5, %v1820_v39, %v1822_v54 }
 0x10f   : > { %1746 = vmatmul.bf16.gmra.mxu3 %v1620_v26  ;;  %v676_v24 = vpop.f32.mrf.mxu2  ;;  %1912 = vmatmul.bf16.gmra.mxu0 %v1821_v23  ;;  %v1629_v26 = vsel %vm1576_vm4, %v1619_v3, %v1628_v34  ;;  %v3491_v23 = vpack.c.bf16 %v2437_v25, %v2436_v14  ;;  %v2438_v14 = vld [vmem:[%s2842_s25 + $0x88] sm:$0xff]  ;;  %v2439_v25 = vld [vmem:[%s2842_s25 + $0x90] sm:$0xff] }
 0x110   : > { %v712_v52 = vadd.f32 %v676_v24, %v519_v47  ;;  %v1202_v15 = vor.u32 %v1201_v59, %v1200_v13 }
 0x111   : > { %v520_v48 = vpop.f32.mrf.mxu1  ;;  %v1631_v61 = vshrl.u32 %v3491_v23, 16 }
 0x112   : > { %v948_v9 = vpop.f32.mrf.mxu3  ;;  %v979_v38 = vadd.f32 %v943_v29, %v712_v52  ;;  %v521_v50 = vadd.f32 %v520_v48, %v3348_v43  ;;  %v1203_v29 = vsel %vm1184_vm6, %v1198_v11, %v1202_v15  ;;  %v1634_v11 = vshll.u32 %v3491_v23, 16 }
 0x113   : > { %v3669_v52 = vshrl.u32 %v3207_v5, 16  ;;  %v1633_v13 = vrot.slane %v1631_v61, 1 }
 0x114   : > { %v1126_v45 = vpop.f32.mrf.mxu0  ;;  %v3481_v10 = vadd.f32 %v1119_v16, %v979_v38 }
 0x115   : > { %v1204_v48 = vrot.slane %v3669_v52, 3 }
 0x117   : > { %v678_v31 = vpop.f32.mrf.mxu2 }
 0x118   : > { %v713_v62 = vadd.f32 %v678_v31, %v521_v50 }
 0x119   : > { %v523_v30 = vpop.f32.mrf.mxu1 }
 0x11a   : > { %v950_v6 = vpop.f32.mrf.mxu3  ;;  %v980_v16 = vadd.f32 %v945_v20, %v713_v62  ;;  %v524_v0 = vadd.f32 %v523_v30, %v3368_v63  ;;  %v1636_v63 = vrot.slane %v1634_v11, 2 }
 0x11c   : > { %1304 = vmatmul.bf16.gmra.mxu1 %v1203_v29  ;;  %1510 = vmatmul.bf16.gmra.mxu2 %v1419_v51  ;;  %v1129_v43 = vpop.f32.mrf.mxu0  ;;  %v3494_v47 = vadd.f32 %v1121_v49, %v980_v16  ;;  %v3670_v49 = vshll.u32 %v3207_v5, 16  ;;  %v1637_v50 = vor.u32 %v1636_v63, %v1633_v13  ;;  %v1824_v5 = vrot.slane %v3491_v23, 2 }
 0x11d   : > { %v1421_v51 = vsel %vm575_vm3, %v1418_v4, %v1420_v18 }
 0x11e   : > { %v1205_v39 = vrot.slane %v3670_v49, 4  ;;  %v1638_v16 = vsel %vm1576_vm4, %v1628_v34, %v1637_v50  ;;  %v1825_v42 = vsel %vm1812_vm5, %v1822_v54, %v1824_v5  ;;  %v3672_v54 = vshll.u32 %v3235_v44, 16 }
 0x11f   : > { %1751 = vmatmul.bf16.gmra.mxu3 %v1629_v26  ;;  %v681_v40 = vpop.f32.mrf.mxu2  ;;  %1917 = vmatmul.bf16.gmra.mxu0 %v1823_v27  ;;  %v3513_v26 = vpack.c.bf16 %v2439_v25, %v2438_v14 }
 0x120   : > { %v714_v3 = vadd.f32 %v681_v40, %v524_v0  ;;  %v1206_v38 = vor.u32 %v1205_v39, %v1204_v48  ;;  %v3671_v40 = vshrl.u32 %v3235_v44, 16 }
 0x121   : > { %v525_v24 = vpop.f32.mrf.mxu1  ;;  %v1640_v61 = vshrl.u32 %v3513_v26, 16 }
 0x122   : > { %v953_v20 = vpop.f32.mrf.mxu3  ;;  %v981_v8 = vadd.f32 %v948_v9, %v714_v3  ;;  %v526_v53 = vadd.f32 %v525_v24, %v3385_v22  ;;  %v1207_v9 = vsel %vm1184_vm6, %v1202_v15, %v1206_v38  ;;  %v1643_v15 = vshll.u32 %v3513_v26, 16 }
 0x123   : > { %v1208_v3 = vrot.slane %v3671_v40, 3  ;;  %v1642_v52 = vrot.slane %v1640_v61, 1 }
 0x124   : > { %v1131_v35 = vpop.f32.mrf.mxu0  ;;  %v3503_v59 = vadd.f32 %v1124_v12, %v981_v8  ;;  %v1645_v48 = vrot.slane %v1643_v15, 2  ;;  %v1422_v8 = vrot.slane %v3491_v23, 1 }
 0x126   : > { %v1646_v63 = vor.u32 %v1645_v48, %v1642_v52  ;;  %v2442_v52 = vld [vmem:[%s2842_s25 + $0xa8] sm:$0xff] }
 0x127   : > { %v683_v31 = vpop.f32.mrf.mxu2 }
 0x128   : > { %v715_v62 = vadd.f32 %v683_v31, %v526_v53  ;;  %v2441_v31 = vld [vmem:[%s2842_s25 + $0xa0] sm:$0xff] }
 0x129   : > { %v528_v29 = vpop.f32.mrf.mxu1 }
 0x12a   : > { %v955_v30 = vpop.f32.mrf.mxu3  ;;  %v982_v12 = vadd.f32 %v950_v6, %v715_v62  ;;  %v529_v0 = vadd.f32 %v528_v29, %v3301_v28  ;;  %v1826_v62 = vrot.slane %v3513_v26, 2  ;;  %v1423_v29 = vsel %vm575_vm3, %v1420_v18, %v1422_v8 }
 0x12c   : > { %1309 = vmatmul.bf16.gmra.mxu1 %v1207_v9  ;;  %1515 = vmatmul.bf16.gmra.mxu2 %v1421_v51  ;;  %v1134_v22 = vpop.f32.mrf.mxu0  ;;  %v3516_v27 = vadd.f32 %v1126_v45, %v982_v12  ;;  %v1209_v45 = vrot.slane %v3672_v54, 4  ;;  %v3535_v51 = vpack.c.bf16 %v2441_v31, %v3318_v1  ;;  %v1827_v23 = vsel %vm1812_vm5, %v1824_v5, %v1826_v62 }
 0x12d   : > { %v3674_v5 = vshll.u32 %v3263_v57, 16 }
 0x12e   : > { %v1210_v39 = vor.u32 %v1209_v45, %v1208_v3  ;;  %v1652_v18 = vshll.u32 %v3535_v51, 16  ;;  %v1424_v3 = vrot.slane %v3513_v26, 1 }
 0x12f   : > { %1756 = vmatmul.bf16.gmra.mxu3 %v1638_v16  ;;  %v686_v4 = vpop.f32.mrf.mxu2  ;;  %1922 = vmatmul.bf16.gmra.mxu0 %v1825_v42 }
 0x130   : > { %v716_v34 = vadd.f32 %v686_v4, %v529_v0  ;;  %v3673_v0 = vshrl.u32 %v3263_v57, 16  ;;  %v1425_v31 = vsel %vm575_vm3, %v1422_v8, %v1424_v3 }
 0x131   : > { %v530_v11 = vpop.f32.mrf.mxu1 }
 0x132   : > { %v958_v6 = vpop.f32.mrf.mxu3  ;;  %v983_v24 = vadd.f32 %v953_v20, %v716_v34  ;;  %v531_v13 = vadd.f32 %v530_v11, %v3315_v17  ;;  %v1211_v20 = vsel %vm1184_vm6, %v1206_v38, %v1210_v39  ;;  %v1649_v38 = vshrl.u32 %v3535_v51, 16 }
 0x133   : > { %v1212_v61 = vrot.slane %v3673_v0, 3  ;;  %v1654_v34 = vrot.slane %v1652_v18, 2  ;;  %v1426_v0 = vrot.slane %v3535_v51, 1 }
 0x134   : > { %v1136_v28 = vpop.f32.mrf.mxu0  ;;  %v3525_v49 = vadd.f32 %v1129_v43, %v983_v24  ;;  %v1647_v43 = vsel %vm1576_vm4, %v1637_v50, %v1646_v63  ;;  %v1651_v4 = vrot.slane %v1649_v38, 1  ;;  %v3676_v38 = vshll.u32 %v3290_v7, 16 }
 0x136   : > { %v1655_v45 = vor.u32 %v1654_v34, %v1651_v4  ;;  %v1217_v18 = vrot.slane %v3676_v38, 4 }
 0x137   : > { %v688_v53 = vpop.f32.mrf.mxu2 }
 0x138   : > { %v717_v14 = vadd.f32 %v688_v53, %v531_v13  ;;  %v1828_v53 = vrot.slane %v3535_v51, 2 }
 0x139   : > { %v533_v44 = vpop.f32.mrf.mxu1 }
 0x13a   : > { %v960_v25 = vpop.f32.mrf.mxu3  ;;  %v984_v9 = vadd.f32 %v955_v30, %v717_v14  ;;  %v534_v16 = vadd.f32 %v533_v44, %v3346_v36  ;;  %v1383_v44 = vpack.c.bf16 %v2442_v52, %v2442_v52 }
 0x13c   : > { %1314 = vmatmul.bf16.gmra.mxu1 %v1211_v20  ;;  %1520 = vmatmul.bf16.gmra.mxu2 %v1423_v29  ;;  %v1139_v17 = vpop.f32.mrf.mxu0  ;;  %v3538_v12 = vadd.f32 %v1131_v35, %v984_v9  ;;  %v1213_v35 = vrot.slane %v3674_v5, 4  ;;  %v1658_v9 = vshrl.u32 %v1383_v44, 16  ;;  %v1830_v34 = vrot.slane %v1383_v44, 2 }
 0x13e   : > { %v1214_v40 = vor.u32 %v1213_v35, %v1212_v61  ;;  %v1831_v51 = vsel %vm1812_vm5, %v1828_v53, %v1830_v34 }
 0x13f   : > { %1761 = vmatmul.bf16.gmra.mxu3 %v1647_v43  ;;  %v691_v30 = vpop.f32.mrf.mxu2  ;;  %1927 = vmatmul.bf16.gmra.mxu0 %v1827_v23  ;;  %v1661_v43 = vshll.u32 %v1383_v44, 16 }
 0x140   : > { %v718_v50 = vadd.f32 %v691_v30, %v534_v16 }
 0x141   : > { %v535_v42 = vpop.f32.mrf.mxu1 }
 0x142   : > { %v963_v1 = vpop.f32.mrf.mxu3  ;;  %v985_v15 = vadd.f32 %v958_v6, %v718_v50  ;;  %v536_v54 = vadd.f32 %v535_v42, %v3362_v41  ;;  %v1215_v6 = vsel %vm1184_vm6, %v1210_v39, %v1214_v40  ;;  %v1829_v41 = vsel %vm1812_vm5, %v1826_v62, %v1828_v53 }
 0x143   : > { %v1660_v62 = vrot.slane %v1658_v9, 1  ;;  %v1428_v53 = vrot.slane %v1383_v44, 1 }
 0x144   : > { %v1141_v36 = vpop.f32.mrf.mxu0  ;;  %v3547_v11 = vadd.f32 %v1134_v22, %v985_v15  ;;  %v1656_v22 = vsel %vm1576_vm4, %v1646_v63, %v1655_v45  ;;  %v3675_v63 = vshrl.u32 %v3290_v7, 16 }
 0x146   : > { %v1216_v16 = vrot.slane %v3675_v63, 3  ;;  %v1429_v63 = vsel %vm575_vm3, %v1426_v0, %v1428_v53 }
 0x147   : > { %v693_v24 = vpop.f32.mrf.mxu2 }
 0x148   : > { %v719_v48 = vadd.f32 %v693_v24, %v536_v54 }
 0x149   : > { %v538_v57 = vpop.f32.mrf.mxu1 }
 0x14a   : > { %v965_v13 = vpop.f32.mrf.mxu3  ;;  %v986_v14 = vadd.f32 %v960_v25, %v719_v48  ;;  %v539_v29 = vadd.f32 %v538_v57, %v3383_v19  ;;  %v1218_v19 = vor.u32 %v1217_v18, %v1216_v16 }
 0x14c   : > { %1319 = vmatmul.bf16.gmra.mxu1 %v1215_v6  ;;  %1525 = vmatmul.bf16.gmra.mxu2 %v1425_v31  ;;  %v1144_v26 = vpop.f32.mrf.mxu0  ;;  %v3557_v20 = vadd.f32 %v1136_v28, %v986_v14  ;;  %v1663_v28 = vrot.slane %v1661_v43, 2  ;;  %v1219_v7 = vsel %vm1184_vm6, %v1214_v40, %v1218_v19 }
 0x14e   : > { %v1664_v5 = vor.u32 %v1663_v28, %v1660_v62 }
 0x14f   : > { %1766 = vmatmul.bf16.gmra.mxu3 %v1656_v22  ;;  %v696_v23 = vpop.f32.mrf.mxu2  ;;  %1932 = vmatmul.bf16.gmra.mxu0 %v1829_v41 }
 0x150   : > { %v720_v39 = vadd.f32 %v696_v23, %v539_v29  ;;  %v1665_v52 = vsel %vm1576_vm4, %v1655_v45, %v1664_v5  ;;  %v3678_v45 = vshll.u32 %v3327_v46, 16 }
 0x151   : > { %v540_v25 = vpop.f32.mrf.mxu1 }
 0x152   : > { %v968_v8 = vpop.f32.mrf.mxu3  ;;  %v987_v30 = vadd.f32 %v963_v1, %v720_v39  ;;  %v541_v61 = vadd.f32 %v540_v25, %v3390_v56  ;;  %v1427_v1 = vsel %vm575_vm3, %v1424_v3, %v1426_v0  ;;  %v3677_v3 = vshrl.u32 %v3327_v46, 16  ;;  %v3591_v0 = vld [vmem:[%s3653_s2] ss:$0 sm:$0xff] }
 0x153   : > { %v1221_v14 = vrot.slane %v3678_v45, 4 }
 0x154   : > { %v1146_v50 = vpop.f32.mrf.mxu0  ;;  %v3564_v42 = vadd.f32 %v1139_v17, %v987_v30 }
 0x157   : > { %v698_v35 = vpop.f32.mrf.mxu2 }
 0x158   : > { %v721_v15 = vadd.f32 %v698_v35, %v541_v61 }
 0x159   : > { %v543_v54 = vpop.f32.mrf.mxu1 }
 0x15a   : > { %v970_v4 = vpop.f32.mrf.mxu3  ;;  %v988_v24 = vadd.f32 %v965_v13, %v721_v15  ;;  %v544_v56 = vadd.f32 %v543_v54, %v3333_v55  ;;  %v1220_v13 = vrot.slane %v3677_v3, 3 }
 0x15c   : > { %1324 = vmatmul.bf16.gmra.mxu1 %v1219_v7  ;;  %1530 = vmatmul.bf16.gmra.mxu2 %v1427_v1  ;;  %v1898_v17 = vpop.f32.mrf.mxu0  ;;  %v3572_v48 = vadd.f32 %v1141_v36, %v988_v24  ;;  %v1222_v36 = vor.u32 %v1221_v14, %v1220_v13 }
 0x15e   : > { %v1223_v25 = vsel %vm1184_vm6, %v1218_v19, %v1222_v36 }
 0x15f   : > { %1771 = vmatmul.bf16.gmra.mxu3 %v1665_v52  ;;  %v701_v57 = vpop.f32.mrf.mxu2  ;;  %1937 = vmatmul.bf16.gmra.mxu0 %v1831_v51 }
 0x160   : > { %v722_v6 = vadd.f32 %v701_v57, %v544_v56 }
 0x161   : > { %v545_v40 = vpop.f32.mrf.mxu1 }
 0x162   : > { %v1732_v31 = vpop.f32.mrf.mxu3  ;;  %v989_v22 = vadd.f32 %v968_v8, %v722_v6  ;;  %v546_v9 = vadd.f32 %v545_v40, %v3360_v37 }
 0x164   : > { %v1900_v41 = vpop.f32.mrf.mxu0  ;;  %v3579_v29 = vadd.f32 %v1144_v26, %v989_v22 }
 0x167   : > { %v703_v55 = vpop.f32.mrf.mxu2 }
 0x168   : > { %v723_v43 = vadd.f32 %v703_v55, %v546_v9 }
 0x169   : > { %v1290_v39 = vpop.f32.mrf.mxu1 }
 0x16a   : > { %v1734_v23 = vpop.f32.mrf.mxu3  ;;  %v990_v16 = vadd.f32 %v970_v4, %v723_v43  ;;  %v1335_v26 = vadd.f32 %v1290_v39, %v3414_v33 }
 0x16c   : > { %1329 = vmatmul.bf16.gmra.mxu1 %v1223_v25  ;;  %1535 = vmatmul.bf16.gmra.mxu2 %v1429_v63  ;;  %v1903_v46 = vpop.f32.mrf.mxu0  ;;  %v3584_v8 = vadd.f32 %v1146_v50, %v990_v16 }
 0x16f   : > { %v1496_v38 = vpop.f32.mrf.mxu2 }
 0x170   : > { %v1541_v44 = vadd.f32 %v1496_v38, %v1335_v26 }
 0x171   : > { %v1292_v18 = vpop.f32.mrf.mxu1 }
 0x172   : > { %v1737_v37 = vpop.f32.mrf.mxu3  ;;  %v1777_v30 = vadd.f32 %v1732_v31, %v1541_v44  ;;  %v1336_v28 = vadd.f32 %v1292_v18, %v3429_v32 }
 0x174   : > { %v1905_v62 = vpop.f32.mrf.mxu0  ;;  %v1943_v61 = vadd.f32 %v1898_v17, %v1777_v30 }
 0x176   : > { %v1965_v15 = vadd.f32 %v3591_v0, %v1943_v61 }
 0x177   : > { %v1498_v19 = vpop.f32.mrf.mxu2 }
 0x178   : > { %v1542_v50 = vadd.f32 %v1498_v19, %v1336_v28  ;;  %v1983_v1 = vmax.f32 %v1965_v15, 0.0 }
 0x179   : > { %v1295_v35 = vpop.f32.mrf.mxu1 }
 0x17a   : > { %v1739_v5 = vpop.f32.mrf.mxu3  ;;  %v1778_v33 = vadd.f32 %v1734_v23, %v1542_v50  ;;  %v1337_v32 = vadd.f32 %v1295_v35, %v3438_v60 }
 0x17c   : > { %v1944_v4 = vadd.f32 %v1900_v41, %v1778_v33  ;;  %v1908_v34 = vpop.f32.mrf.mxu0 }
 0x17e   : > { %v1966_v54 = vadd.f32 %v3591_v0, %v1944_v4 }
 0x17f   : > { %v1501_v7 = vpop.f32.mrf.mxu2 }
 0x180   : > { %v1984_v24 = vmax.f32 %v1966_v54, 0.0  ;;  %v1543_v52 = vadd.f32 %v1501_v7, %v1337_v32 }
 0x181   : > { %v1297_v51 = vpop.f32.mrf.mxu1 }
 0x182   : > { %v1742_v17 = vpop.f32.mrf.mxu3  ;;  %v2664_v56 = vpack.c.bf16 %v1984_v24, %v1983_v1  ;;  %v1779_v57 = vadd.f32 %v1737_v37, %v1543_v52  ;;  %v1338_v31 = vadd.f32 %v1297_v51, %v3450_v2 }
 0x184   : > { %2665 = vst [vmem:[%s3600_s9] sm:$0xff] %v2664_v56   ;;  %v1910_v6 = vpop.f32.mrf.mxu0  ;;  %v1945_v60 = vadd.f32 %v1903_v46, %v1779_v57 }
 0x186   : > { %v1967_v22 = vadd.f32 %v3591_v0, %v1945_v60 }
 0x187   : > { %v1503_v40 = vpop.f32.mrf.mxu2 }
 0x188   : > { %v1544_v3 = vadd.f32 %v1503_v40, %v1338_v31  ;;  %v1985_v43 = vmax.f32 %v1967_v22, 0.0 }
 0x189   : > { %v1300_v45 = vpop.f32.mrf.mxu1 }
 0x18a   : > { %v1744_v13 = vpop.f32.mrf.mxu3  ;;  %v1780_v14 = vadd.f32 %v1739_v5, %v1544_v3  ;;  %v1339_v9 = vadd.f32 %v1300_v45, %v3459_v21 }
 0x18c   : > { %v1946_v41 = vadd.f32 %v1905_v62, %v1780_v14  ;;  %v1913_v36 = vpop.f32.mrf.mxu0 }
 0x18e   : > { %v1968_v53 = vadd.f32 %v3591_v0, %v1946_v41 }
 0x18f   : > { %v1506_v55 = vpop.f32.mrf.mxu2 }
 0x190   : > { %v1986_v23 = vmax.f32 %v1968_v53, 0.0  ;;  %v1545_v39 = vadd.f32 %v1506_v55, %v1339_v9 }
 0x191   : > { %v1302_v25 = vpop.f32.mrf.mxu1 }
 0x192   : > { %v1747_v2 = vpop.f32.mrf.mxu3  ;;  %v2669_v63 = vpack.c.bf16 %v1986_v23, %v1985_v43  ;;  %v1781_v16 = vadd.f32 %v1742_v17, %v1545_v39  ;;  %v1340_v46 = vadd.f32 %v1302_v25, %v3472_v58 }
 0x194   : > { %2706 = vst [vmem:[%s3600_s9 + $0x8] sm:$0xff] %v2669_v63   ;;  %v1915_v38 = vpop.f32.mrf.mxu0  ;;  %v1947_v44 = vadd.f32 %v1908_v34, %v1781_v16 }
 0x196   : > { %v1969_v21 = vadd.f32 %v3591_v0, %v1947_v44 }
 0x197   : > { %v1508_v26 = vpop.f32.mrf.mxu2 }
 0x198   : > { %v1546_v37 = vadd.f32 %v1508_v26, %v1340_v46  ;;  %v1987_v5 = vmax.f32 %v1969_v21, 0.0 }
 0x199   : > { %v1305_v30 = vpop.f32.mrf.mxu1 }
 0x19a   : > { %v1749_v18 = vpop.f32.mrf.mxu3  ;;  %v1782_v62 = vadd.f32 %v1744_v13, %v1546_v37  ;;  %v1341_v61 = vadd.f32 %v1305_v30, %v3481_v10 }
 0x19c   : > { %v1948_v28 = vadd.f32 %v1910_v6, %v1782_v62  ;;  %v1918_v4 = vpop.f32.mrf.mxu0 }
 0x19e   : > { %v1970_v19 = vadd.f32 %v3591_v0, %v1948_v28 }
 0x19f   : > { %v1511_v50 = vpop.f32.mrf.mxu2 }
 0x1a0   : > { %v1988_v35 = vmax.f32 %v1970_v19, 0.0  ;;  %v1547_v33 = vadd.f32 %v1511_v50, %v1341_v61 }
 0x1a1   : > { %v1307_v15 = vpop.f32.mrf.mxu1 }
 0x1a2   : > { %v1752_v58 = vpop.f32.mrf.mxu3  ;;  %v2674_v34 = vpack.c.bf16 %v1988_v35, %v1987_v5  ;;  %v1783_v54 = vadd.f32 %v1747_v2, %v1547_v33  ;;  %v1342_v32 = vadd.f32 %v1307_v15, %v3494_v47 }
 0x1a4   : > { %2707 = vst [vmem:[%s3600_s9 + $0x10] sm:$0xff] %v2674_v34   ;;  %v1949_v1 = vadd.f32 %v1913_v36, %v1783_v54  ;;  %v1920_v10 = vpop.f32.mrf.mxu0 }
 0x1a6   : > { %v1971_v56 = vadd.f32 %v3591_v0, %v1949_v1 }
 0x1a7   : > { %v1513_v7 = vpop.f32.mrf.mxu2 }
 0x1a8   : > { %v1548_v24 = vadd.f32 %v1513_v7, %v1342_v32  ;;  %v1989_v60 = vmax.f32 %v1971_v56, 0.0 }
 0x1a9   : > { %v1310_v52 = vpop.f32.mrf.mxu1 }
 0x1aa   : > { %v1754_v17 = vpop.f32.mrf.mxu3  ;;  %v1784_v51 = vadd.f32 %v1749_v18, %v1548_v24  ;;  %v1343_v31 = vadd.f32 %v1310_v52, %v3503_v59 }
 0x1ac   : > { %v1950_v57 = vadd.f32 %v1915_v38, %v1784_v51  ;;  %v1923_v41 = vpop.f32.mrf.mxu0 }
 0x1ae   : > { %v1972_v6 = vadd.f32 %v3591_v0, %v1950_v57 }
 0x1af   : > { %v1516_v40 = vpop.f32.mrf.mxu2 }
 0x1b0   : > { %v1990_v3 = vmax.f32 %v1972_v6, 0.0  ;;  %v1549_v13 = vadd.f32 %v1516_v40, %v1343_v31 }
 0x1b1   : > { %v1312_v47 = vpop.f32.mrf.mxu1 }
 0x1b2   : > { %v2679_v45 = vpack.c.bf16 %v1990_v3, %v1989_v60  ;;  %v1757_v14 = vpop.f32.mrf.mxu3  ;;  %v1785_v22 = vadd.f32 %v1752_v58, %v1549_v13  ;;  %v1344_v36 = vadd.f32 %v1312_v47, %v3516_v27 }
 0x1b4   : > { %2708 = vst [vmem:[%s3600_s9 + $0x18] sm:$0xff] %v2679_v45   ;;  %v1951_v9 = vadd.f32 %v1918_v4, %v1785_v22  ;;  %v1925_v46 = vpop.f32.mrf.mxu0 }
 0x1b6   : > { %v1973_v59 = vadd.f32 %v3591_v0, %v1951_v9 }
 0x1b7   : > { %v1518_v53 = vpop.f32.mrf.mxu2 }
 0x1b8   : > { %v1550_v55 = vadd.f32 %v1518_v53, %v1344_v36  ;;  %v1991_v26 = vmax.f32 %v1973_v59, 0.0 }
 0x1b9   : > { %v1315_v43 = vpop.f32.mrf.mxu1 }
 0x1ba   : > { %v1786_v23 = vadd.f32 %v1754_v17, %v1550_v55  ;;  %v1759_v2 = vpop.f32.mrf.mxu3  ;;  %v1345_v63 = vadd.f32 %v1315_v43, %v3525_v49 }
 0x1bc   : > { %v1952_v39 = vadd.f32 %v1920_v10, %v1786_v23  ;;  %v1928_v50 = vpop.f32.mrf.mxu0 }
 0x1be   : > { %v1974_v25 = vadd.f32 %v3591_v0, %v1952_v39 }
 0x1bf   : > { %v1521_v16 = vpop.f32.mrf.mxu2 }
 0x1c0   : > { %v1992_v38 = vmax.f32 %v1974_v25, 0.0  ;;  %v1551_v44 = vadd.f32 %v1521_v16, %v1345_v63 }
 0x1c1   : > { %v1317_v27 = vpop.f32.mrf.mxu1 }
 0x1c2   : > { %v2684_v37 = vpack.c.bf16 %v1992_v38, %v1991_v26  ;;  %v1787_v18 = vadd.f32 %v1757_v14, %v1551_v44  ;;  %v1346_v30 = vadd.f32 %v1317_v27, %v3538_v12  ;;  %v1762_v21 = vpop.f32.mrf.mxu3 }
 0x1c4   : > { %2709 = vst [vmem:[%s3600_s9 + $0x20] sm:$0xff] %v2684_v37   ;;  %v1953_v28 = vadd.f32 %v1923_v41, %v1787_v18  ;;  %v1930_v1 = vpop.f32.mrf.mxu0 }
 0x1c6   : > { %v1975_v49 = vadd.f32 %v3591_v0, %v1953_v28 }
 0x1c7   : > { %v1523_v62 = vpop.f32.mrf.mxu2 }
 0x1c8   : > { %v1552_v19 = vadd.f32 %v1523_v62, %v1346_v30  ;;  %v1993_v4 = vmax.f32 %v1975_v49, 0.0 }
 0x1c9   : > { %v1320_v61 = vpop.f32.mrf.mxu1 }
 0x1ca   : > { %v1788_v5 = vadd.f32 %v1759_v2, %v1552_v19  ;;  %v1347_v58 = vadd.f32 %v1320_v61, %v3547_v11  ;;  %v1764_v32 = vpop.f32.mrf.mxu3 }
 0x1cc   : > { %v1954_v35 = vadd.f32 %v1925_v46, %v1788_v5  ;;  %v1933_v40 = vpop.f32.mrf.mxu0 }
 0x1ce   : > { %v1976_v33 = vadd.f32 %v3591_v0, %v1954_v35 }
 0x1cf   : > { %v1526_v15 = vpop.f32.mrf.mxu2 }
 0x1d0   : > { %v1994_v34 = vmax.f32 %v1976_v33, 0.0  ;;  %v1553_v54 = vadd.f32 %v1526_v15, %v1347_v58 }
 0x1d1   : > { %v1322_v12 = vpop.f32.mrf.mxu1 }
 0x1d2   : > { %v2689_v7 = vpack.c.bf16 %v1994_v34, %v1993_v4  ;;  %v1789_v24 = vadd.f32 %v1762_v21, %v1553_v54  ;;  %v1348_v52 = vadd.f32 %v1322_v12, %v3557_v20  ;;  %v1767_v6 = vpop.f32.mrf.mxu3 }
 0x1d4   : > { %2710 = vst [vmem:[%s3600_s9 + $0x28] sm:$0xff] %v2689_v7   ;;  %v1955_v51 = vadd.f32 %v1928_v50, %v1789_v24  ;;  %v1935_v9 = vpop.f32.mrf.mxu0 }
 0x1d6   : > { %v1977_v11 = vadd.f32 %v3591_v0, %v1955_v51 }
 0x1d7   : > { %v1528_v17 = vpop.f32.mrf.mxu2 }
 0x1d8   : > { %v1554_v10 = vadd.f32 %v1528_v17, %v1348_v52  ;;  %v1995_v47 = vmax.f32 %v1977_v11, 0.0 }
 0x1d9   : > { %v1325_v56 = vpop.f32.mrf.mxu1 }
 0x1da   : > { %v1790_v57 = vadd.f32 %v1764_v32, %v1554_v10  ;;  %v1349_v3 = vadd.f32 %v1325_v56, %v3564_v42  ;;  %v1769_v36 = vpop.f32.mrf.mxu3 }
 0x1dc   : > { %v1956_v31 = vadd.f32 %v1930_v1, %v1790_v57 }
 0x1de   : > { %v1978_v60 = vadd.f32 %v3591_v0, %v1956_v31 }
 0x1df   : > { %v1531_v13 = vpop.f32.mrf.mxu2 }
 0x1e0   : > { %v1996_v45 = vmax.f32 %v1978_v60, 0.0  ;;  %v1555_v14 = vadd.f32 %v1531_v13, %v1349_v3 }
 0x1e1   : > { %v1327_v20 = vpop.f32.mrf.mxu1 }
 0x1e2   : > { %v2694_v22 = vpack.c.bf16 %v1996_v45, %v1995_v47  ;;  %v1791_v41 = vadd.f32 %v1767_v6, %v1555_v14  ;;  %v1350_v53 = vadd.f32 %v1327_v20, %v3572_v48  ;;  %v1772_v16 = vpop.f32.mrf.mxu3  ;;  %v1938_v48 = vpop.f32.mrf.mxu0 }
 0x1e4   : > { %2711 = vst [vmem:[%s3600_s9 + $0x30] sm:$0xff] %v2694_v22   ;;  %v1957_v43 = vadd.f32 %v1933_v40, %v1791_v41 }
 0x1e6   : > { %v1979_v42 = vadd.f32 %v3591_v0, %v1957_v43 }
 0x1e7   : > { %v1533_v55 = vpop.f32.mrf.mxu2 }
 0x1e8   : > { %v1556_v23 = vadd.f32 %v1533_v55, %v1350_v53  ;;  %v1997_v26 = vmax.f32 %v1979_v42, 0.0 }
 0x1e9   : > { %v1330_v59 = vpop.f32.mrf.mxu1 }
 0x1ea   : > { %v1792_v39 = vadd.f32 %v1769_v36, %v1556_v23  ;;  %v1351_v63 = vadd.f32 %v1330_v59, %v3579_v29  ;;  %v1774_v19 = vpop.f32.mrf.mxu3  ;;  %v1940_v50 = vpop.f32.mrf.mxu0 }
 0x1ec   : > { %v1958_v2 = vadd.f32 %v1935_v9, %v1792_v39 }
 0x1ee   : > { %v1980_v25 = vadd.f32 %v3591_v0, %v1958_v2 }
 0x1ef   : > { %v1536_v46 = vpop.f32.mrf.mxu2 }
 0x1f0   : > { %v1998_v38 = vmax.f32 %v1980_v25, 0.0  ;;  %v1557_v44 = vadd.f32 %v1536_v46, %v1351_v63 }
 0x1f1   : > { %v1332_v37 = vpop.f32.mrf.mxu1 }
 0x1f2   : > { %v2699_v27 = vpack.c.bf16 %v1998_v38, %v1997_v26  ;;  %v1793_v18 = vadd.f32 %v1772_v16, %v1557_v44  ;;  %v1352_v30 = vadd.f32 %v1332_v37, %v3584_v8 }
 0x1f4   : > { %2712 = vst [vmem:[%s3600_s9 + $0x38] sm:$0xff] %v2699_v27   ;;  %v1959_v21 = vadd.f32 %v1938_v48, %v1793_v18 }
 0x1f6   : > { %v1981_v29 = vadd.f32 %v3591_v0, %v1959_v21 }
 0x1f7   : > { %v1538_v62 = vpop.f32.mrf.mxu2 }
 0x1f8   : > { %v1558_v28 = vadd.f32 %v1538_v62, %v1352_v30  ;;  %v1999_v35 = vmax.f32 %v1981_v29, 0.0 }
 0x1fa   : > { %v1794_v61 = vadd.f32 %v1774_v19, %v1558_v28 }
 0x1fc   : > { %v1960_v5 = vadd.f32 %v1940_v50, %v1794_v61 }
 0x1fe   : > { %v1982_v49 = vadd.f32 %v3591_v0, %v1960_v5 }
 0x200   : > { %v2000_v33 = vmax.f32 %v1982_v49, 0.0 }
 0x202   : > { %v2704_v58 = vpack.c.bf16 %v2000_v33, %v1999_v35 }
 0x204   : > { %2713 = vst [vmem:[%s3600_s9 + $0x40] sm:$0xff] %v2704_v58  }
 0x205 PF: > { %s13_s14 = sadd.s32 1, %s2787_s14   ;;  %s3679_s12 = smov %s2783_s13 }
 0x206   : > { %p10_p5 = scmp.ge.s32.totalorder %s13_s14, 4   ;;  %s3680_s13 = smov %s3682_s15 }
 0x208   :  { %12 = sbr.rel (!%p10_p5) target bundleno = 2 (0x2), region = 73 }

// kernel: pdn_m_multi_forward.13
= control target key start
LH: loop header
LB: loop body
LE: loop exit
PB: predicated region body
PF: predicated region fallthrough
CT: control target
= control target key end

     0   :  { %s478_s1 = inlined_call_operand.vmem [shape: bf16[128,128], index: 1, kind: input, shape index: {}]   ;;  %s479_s2 = inlined_call_operand.vmem [shape: f32[1,128], index: 2, kind: input, shape index: {}]   ;;  %s480_s0 = inlined_call_operand.vmem [shape: bf16[128,128], index: 0, kind: input, shape index: {}]   ;;  %s481_s3 = inlined_call_operand.vmem [shape: bf16[128,128], index: 3, kind: output, shape index: {}]  }
   0x1   :  { %v310_v0 = vld [vmem:[%s478_s1 + $0x38] sm:$0xff]  ;;  %v309_v1 = vld [vmem:[%s478_s1 + $0x30] sm:$0xff]  ;;  %v308_v2 = vld [vmem:[%s478_s1 + $0x28] sm:$0xff] }
   0x2   :  { %146 = vmatpush.bf16.msra.mxu0 %v310_v0  ;;  %358 = vmatpush.bf16.msra.mxu1 %v310_v0  ;;  %v307_v3 = vld [vmem:[%s478_s1 + $0x20] sm:$0xff]  ;;  %v306_v4 = vld [vmem:[%s478_s1 + $0x18] sm:$0xff]  ;;  %v305_v5 = vld [vmem:[%s478_s1 + $0x10] sm:$0xff] }
   0x3   :  { %359 = vmatpush.bf16.msra.mxu2 %v310_v0  ;;  %360 = vmatpush.bf16.msra.mxu3 %v310_v0  ;;  %v304_v6 = vld [vmem:[%s478_s1 + $0x8] sm:$0xff]  ;;  %v303_v7 = vld [vmem:[%s478_s1] sm:$0xff]  ;;  %v297_v9 = vld [vmem:[%s480_s0 + $0x10] sm:$0xff] }
   0x4   :  { %v295_v8 = vld [vmem:[%s480_s0] sm:$0xff]  ;;  %v301_v11 = vld [vmem:[%s480_s0 + $0x30] sm:$0xff]  ;;  %v296_v12 = vld [vmem:[%s480_s0 + $0x8] sm:$0xff] }
   0x5   :  { %v299_v10 = vld [vmem:[%s480_s0 + $0x20] sm:$0xff]  ;;  %v298_v13 = vld [vmem:[%s480_s0 + $0x18] sm:$0xff]  ;;  %v300_v14 = vld [vmem:[%s480_s0 + $0x28] sm:$0xff] }
   0x6   :  { %147 = vmatpush.bf16.msra.mxu0 %v309_v1  ;;  %361 = vmatpush.bf16.msra.mxu1 %v309_v1  ;;  %v302_v15 = vld [vmem:[%s480_s0 + $0x38] sm:$0xff]  ;;  %v382_v18 = vld [vmem:[%s479_s2] ss:$0 sm:$0xff] }
   0x7   :  { %362 = vmatpush.bf16.msra.mxu2 %v309_v1  ;;  %363 = vmatpush.bf16.msra.mxu3 %v309_v1 }
   0xa   :  { %148 = vmatpush.bf16.msra.mxu0 %v308_v2  ;;  %364 = vmatpush.bf16.msra.mxu1 %v308_v2 }
   0xb   :  { %365 = vmatpush.bf16.msra.mxu2 %v308_v2  ;;  %366 = vmatpush.bf16.msra.mxu3 %v308_v2 }
   0xe   :  { %149 = vmatpush.bf16.msra.mxu0 %v307_v3  ;;  %367 = vmatpush.bf16.msra.mxu1 %v307_v3 }
   0xf   :  { %368 = vmatpush.bf16.msra.mxu2 %v307_v3  ;;  %369 = vmatpush.bf16.msra.mxu3 %v307_v3 }
  0x12   :  { %150 = vmatpush.bf16.msra.mxu0 %v306_v4  ;;  %370 = vmatpush.bf16.msra.mxu1 %v306_v4 }
  0x13   :  { %371 = vmatpush.bf16.msra.mxu2 %v306_v4  ;;  %372 = vmatpush.bf16.msra.mxu3 %v306_v4 }
  0x16   :  { %151 = vmatpush.bf16.msra.mxu0 %v305_v5  ;;  %373 = vmatpush.bf16.msra.mxu1 %v305_v5 }
  0x17   :  { %374 = vmatpush.bf16.msra.mxu2 %v305_v5  ;;  %375 = vmatpush.bf16.msra.mxu3 %v305_v5 }
  0x1a   :  { %152 = vmatpush.bf16.msra.mxu0 %v304_v6  ;;  %376 = vmatpush.bf16.msra.mxu1 %v304_v6 }
  0x1b   :  { %377 = vmatpush.bf16.msra.mxu2 %v304_v6  ;;  %378 = vmatpush.bf16.msra.mxu3 %v304_v6 }
  0x1e   :  { %153 = vmatpush.bf16.msra.mxu0 %v303_v7  ;;  %379 = vmatpush.bf16.msra.mxu1 %v303_v7 }
  0x1f   :  { %380 = vmatpush.bf16.msra.mxu2 %v303_v7  ;;  %381 = vmatpush.bf16.msra.mxu3 %v303_v7 }
  0x21   :  { %154 = vmatmul.bf16.vlgmr.msra.gmra.mxu0 %v295_v8  ;;  %164 = vmatmul.bf16.vlgmr.msra.gmra.mxu1 %v297_v9 }
  0x22   :  { %174 = vmatmul.bf16.vlgmr.msra.gmra.mxu2 %v299_v10  ;;  %184 = vmatmul.bf16.vlgmr.msra.gmra.mxu3 %v301_v11 }
  0x31   :  { %159 = vmatmul.bf16.gmra.mxu0 %v296_v12  ;;  %169 = vmatmul.bf16.gmra.mxu1 %v298_v13 }
  0x32   :  { %179 = vmatmul.bf16.gmra.mxu2 %v300_v14  ;;  %189 = vmatmul.bf16.gmra.mxu3 %v302_v15 }
  0x9e   :  { %v155_v16 = vpop.f32.mrf.mxu0  ;;  %v165_v17 = vpop.f32.mrf.mxu1 }
  0x9f   :  { %v156_v23 = vadd.f32 %v382_v18, %v155_v16  ;;  %v166_v24 = vadd.f32 %v382_v18, %v165_v17 }
  0xa5   :  { %v175_v19 = vpop.f32.mrf.mxu2  ;;  %v185_v20 = vpop.f32.mrf.mxu3 }
  0xa6   :  { %v157_v21 = vpop.f32.mrf.mxu0  ;;  %v167_v22 = vpop.f32.mrf.mxu1  ;;  %v176_v31 = vadd.f32 %v382_v18, %v175_v19  ;;  %v186_v32 = vadd.f32 %v382_v18, %v185_v20 }
  0xa7   :  { %v158_v25 = vadd.f32 %v382_v18, %v157_v21  ;;  %v168_v26 = vadd.f32 %v382_v18, %v167_v22 }
  0xa9   :  { %v314_v27 = vpack.c.bf16 %v158_v25, %v156_v23  ;;  %v324_v28 = vpack.c.bf16 %v168_v26, %v166_v24 }
  0xab   :  { %315 = vst [vmem:[%s481_s3] sm:$0xff] %v314_v27  }
  0xac   :  { %352 = vst [vmem:[%s481_s3 + $0x10] sm:$0xff] %v324_v28  }
  0xad   :  { %v177_v29 = vpop.f32.mrf.mxu2  ;;  %v187_v30 = vpop.f32.mrf.mxu3 }
  0xae   :  { %v178_v33 = vadd.f32 %v382_v18, %v177_v29  ;;  %v188_v34 = vadd.f32 %v382_v18, %v187_v30  ;;  %v160_v35 = vpop.f32.mrf.mxu0  ;;  %v170_v36 = vpop.f32.mrf.mxu1 }
  0xaf   :  { %v161_v43 = vadd.f32 %v382_v18, %v160_v35  ;;  %v171_v44 = vadd.f32 %v382_v18, %v170_v36 }
  0xb0   :  { %v334_v37 = vpack.c.bf16 %v178_v33, %v176_v31  ;;  %v344_v38 = vpack.c.bf16 %v188_v34, %v186_v32 }
  0xb2   :  { %354 = vst [vmem:[%s481_s3 + $0x20] sm:$0xff] %v334_v37  }
  0xb3   :  { %356 = vst [vmem:[%s481_s3 + $0x30] sm:$0xff] %v344_v38  }
  0xb5   :  { %v180_v39 = vpop.f32.mrf.mxu2  ;;  %v190_v40 = vpop.f32.mrf.mxu3 }
  0xb6   :  { %v162_v41 = vpop.f32.mrf.mxu0  ;;  %v172_v42 = vpop.f32.mrf.mxu1  ;;  %v181_v51 = vadd.f32 %v382_v18, %v180_v39  ;;  %v191_v52 = vadd.f32 %v382_v18, %v190_v40 }
  0xb7   :  { %v163_v45 = vadd.f32 %v382_v18, %v162_v41  ;;  %v173_v46 = vadd.f32 %v382_v18, %v172_v42 }
  0xb9   :  { %v319_v47 = vpack.c.bf16 %v163_v45, %v161_v43  ;;  %v329_v48 = vpack.c.bf16 %v173_v46, %v171_v44 }
  0xbb   :  { %351 = vst [vmem:[%s481_s3 + $0x8] sm:$0xff] %v319_v47  }
  0xbc   :  { %353 = vst [vmem:[%s481_s3 + $0x18] sm:$0xff] %v329_v48  }
  0xbd   :  { %v182_v49 = vpop.f32.mrf.mxu2  ;;  %v192_v50 = vpop.f32.mrf.mxu3 }
  0xbe   :  { %v183_v53 = vadd.f32 %v382_v18, %v182_v49  ;;  %v193_v54 = vadd.f32 %v382_v18, %v192_v50 }
  0xc0   :  { %v339_v55 = vpack.c.bf16 %v183_v53, %v181_v51  ;;  %v349_v56 = vpack.c.bf16 %v193_v54, %v191_v52 }
  0xc2   :  { %355 = vst [vmem:[%s481_s3 + $0x28] sm:$0xff] %v339_v55  }
  0xc3   :  { %357 = vst [vmem:[%s481_s3 + $0x38] sm:$0xff] %v349_v56  }

// kernel: pdn_m_multi_forward.11
= control target key start
LH: loop header
LB: loop body
LE: loop exit
PB: predicated region body
PF: predicated region fallthrough
CT: control target
= control target key end

     0   :  { %s3774_s12 = smov 0   ;;  %s3776_s13 = smov 0   ;;  %s4638_s0 = inlined_call_operand.vmem [shape: f32[2,144,128], index: 0, kind: input, shape index: {}]   ;;  %s4639_s1 = inlined_call_operand.vmem [shape: bf16[16,128,128], index: 1, kind: input, shape index: {}]   ;;  %s4640_s2 = inlined_call_operand.vmem [shape: f32[1,128], index: 2, kind: input, shape index: {}]   ;;  %s4641_s3 = inlined_call_operand.vmem [shape: bf16[2,88,128], index: 3, kind: output, shape index: {}]  }
   0x1   :  { %s3778_s14 = smov 0  }
   0x2 LB: > { %s25_s15 = sadd.s32 1, %s3748_s13  ;;  %p2741_p0 = scmp.ge.s32.totalorder %s3752_s14, 1  ;;  %s3752_s14 = sphi %s3778_s14, %s13_s14   ;;  %s3748_s13 = sphi %s3776_s13, %s4643_s13   ;;  %s3744_s12 = sphi %s3774_s12, %s4642_s12  }
   0x3   : > { %p27_p1 = scmp.ge.s32.totalorder %s25_s15, 2  ;;  %p151_p2 = scmp.lt.s32.totalorder %s3752_s14, 3 }
   0x5   : > { %s4645_s15 = smov (%p27_p1, %s25_s15), 0  ;;  %p152_p3 = pnand %p2741_p0, %p151_p2 }
   0x6   : > { %p179_p4 = scmp.lt.s32.totalorder (!%p152_p3), %s3744_s12, 1 }
   0x7   : > { %155 = sbr.rel (%p152_p3) target bundleno = 557 (0x22d), region = 32 }
   0xc   : > { %v3561_v0 = vld [vmem:[%s4639_s1 + $0x78] sm:$0xff]  ;;  %v3560_v4 = vld [vmem:[%s4639_s1 + $0x70] sm:$0xff]  ;;  %s4647_s12 = smov (!%p179_p4, %s3744_s12), 1  ;;  %v3559_v8 = vld [vmem:[%s4639_s1 + $0x68] sm:$0xff]  ;;  %vm248_vm0 = vsmask.f32 7424 }
   0xd   : > { %v3553_v1 = vld [vmem:[%s4639_s1 + $0x38] sm:$0xff]  ;;  %350 = vmatpush.bf16.msra.mxu0 %v3561_v0  ;;  %v3552_v5 = vld [vmem:[%s4639_s1 + $0x30] sm:$0xff]  ;;  %s3703_s5 = smul.u32 144, %s4647_s12  ;;  %v3551_v9 = vld [vmem:[%s4639_s1 + $0x28] sm:$0xff]  ;;  %vm497_vm1 = vcmask 1046528   ;;  %vm972_vm3 = vcmask 1045504  }
   0xe   : > { %v3569_v2 = vld [vmem:[%s4639_s1 + $0xb8] sm:$0xff]  ;;  %436 = vmatpush.bf16.msra.mxu1 %v3553_v1  ;;  %v3568_v6 = vld [vmem:[%s4639_s1 + $0xb0] sm:$0xff]  ;;  %v3567_v10 = vld [vmem:[%s4639_s1 + $0xa8] sm:$0xff]  ;;  %vm629_vm2 = vsmask.f32 6400  ;;  %vm1248_vm5 = vcmask 1044480  }
   0xf   : > { %v3577_v3 = vld [vmem:[%s4639_s1 + $0xf8] sm:$0xff]  ;;  %563 = vmatpush.bf16.msra.mxu2 %v3569_v2  ;;  %v3576_v7 = vld [vmem:[%s4639_s1 + $0xf0] sm:$0xff]  ;;  %v3575_v11 = vld [vmem:[%s4639_s1 + $0xe8] sm:$0xff]  ;;  %s3834_s20 = scalar_lea.vmem %s4638_s0, %s3703_s5  ;;  %vm1104_vm4 = vsmask.f32 5376  ;;  %s3704_s7 = smul.u32 44, %s4647_s12 }
  0x10   : > { %707 = vmatpush.bf16.msra.mxu3 %v3577_v3  ;;  %v3558_v12 = vld [vmem:[%s4639_s1 + $0x60] sm:$0xff]  ;;  %v3850_v17 = vld [vmem:[%s3834_s20 + $0x8] sm:$0xff]  ;;  %v3853_v18 = vld [vmem:[%s3834_s20 + $0x10] sm:$0xff]  ;;  %vm1537_vm6 = vsmask.f32 4352 }
  0x11   : > { %351 = vmatpush.bf16.msra.mxu0 %v3560_v4  ;;  %v3550_v13 = vld [vmem:[%s4639_s1 + $0x20] sm:$0xff]  ;;  %v3856_v19 = vld [vmem:[%s3834_s20 + $0x18] sm:$0xff]  ;;  %v3556_v26 = vld [vmem:[%s4639_s1 + $0x50] sm:$0xff]  ;;  %s4604_s10 = scalar_lea.vmem %s4641_s3, %s3704_s7 }
  0x12   : > { %437 = vmatpush.bf16.msra.mxu1 %v3552_v5  ;;  %v3566_v14 = vld [vmem:[%s4639_s1 + $0xa0] sm:$0xff]  ;;  %v3557_v20 = vld [vmem:[%s4639_s1 + $0x58] sm:$0xff]  ;;  %v3875_v25 = vpack.c.bf16 %v3856_v19, %v3853_v18  ;;  %v3548_v27 = vld [vmem:[%s4639_s1 + $0x10] sm:$0xff] }
  0x13   : > { %564 = vmatpush.bf16.msra.mxu2 %v3568_v6  ;;  %v3574_v15 = vld [vmem:[%s4639_s1 + $0xe0] sm:$0xff]  ;;  %v3549_v21 = vld [vmem:[%s4639_s1 + $0x18] sm:$0xff]  ;;  %v3564_v29 = vld [vmem:[%s4639_s1 + $0x90] sm:$0xff] }
  0x14   : > { %708 = vmatpush.bf16.msra.mxu3 %v3576_v7  ;;  %v196_v16 = vld [vmem:[%s3834_s20] sm:$0xff]  ;;  %v3565_v23 = vld [vmem:[%s4639_s1 + $0x98] sm:$0xff]  ;;  %v3572_v30 = vld [vmem:[%s4639_s1 + $0xd0] sm:$0xff]  ;;  %v257_v32 = vshll.u32 %v3875_v25, 16  ;;  %v261_v33 = vshrl.u32 %v3875_v25, 16  ;;  %v499_v50 = vrot.slane %v3875_v25, 1 }
  0x15   : > { %352 = vmatpush.bf16.msra.mxu0 %v3559_v8  ;;  %v3865_v22 = vpack.c.bf16 %v3850_v17, %v196_v16  ;;  %v3573_v24 = vld [vmem:[%s4639_s1 + $0xd8] sm:$0xff]  ;;  %v3555_v34 = vld [vmem:[%s4639_s1 + $0x48] sm:$0xff]  ;;  %v3554_v43 = vld [vmem:[%s4639_s1 + $0x40] sm:$0xff] }
  0x16   : > { %438 = vmatpush.bf16.msra.mxu1 %v3551_v9  ;;  %v3547_v35 = vld [vmem:[%s4639_s1 + $0x8] sm:$0xff]  ;;  %v633_v41 = vrot.slane %v261_v33, 1  ;;  %v634_v42 = vrot.slane %v257_v32, 2  ;;  %v3546_v44 = vld [vmem:[%s4639_s1] sm:$0xff]  ;;  %v259_v46 = vrot.slane %v257_v32, 1  ;;  %v3601_v53 = vld [vmem:[%s4639_s1 + $0x1b8] sm:$0xff] }
  0x17   : > { %565 = vmatpush.bf16.msra.mxu2 %v3567_v10  ;;  %v252_v28 = vshll.u32 %v3865_v22, 16  ;;  %v250_v31 = vshrl.u32 %v3865_v22, 16  ;;  %v3563_v37 = vld [vmem:[%s4639_s1 + $0x88] sm:$0xff]  ;;  %v3562_v47 = vld [vmem:[%s4639_s1 + $0x80] sm:$0xff]  ;;  %v498_v49 = vrot.slane %v3865_v22, 1  ;;  %v3585_v54 = vld [vmem:[%s4639_s1 + $0x138] sm:$0xff] }
  0x18   : > { %709 = vmatpush.bf16.msra.mxu3 %v3575_v11  ;;  %v3571_v38 = vld [vmem:[%s4639_s1 + $0xc8] sm:$0xff]  ;;  %v3570_v48 = vld [vmem:[%s4639_s1 + $0xc0] sm:$0xff]  ;;  %v635_v52 = vor.u32 %v634_v42, %v633_v41  ;;  %v3609_v60 = vld [vmem:[%s4639_s1 + $0x1f8] sm:$0xff] }
  0x19   : > { %353 = vmatpush.bf16.msra.mxu0 %v3558_v12  ;;  %v254_v36 = vrot.slane %v252_v28, 1  ;;  %v630_v39 = vrot.slane %v250_v31, 1  ;;  %v631_v40 = vrot.slane %v252_v28, 2  ;;  %v3928_v55 = vld [vmem:[%s3834_s20 + $0x20] sm:$0xff]  ;;  %v3931_v56 = vld [vmem:[%s3834_s20 + $0x28] sm:$0xff]  ;;  %v500_v58 = vsel %vm497_vm1, %v498_v49, %v499_v50  ;;  %v3593_v61 = vld [vmem:[%s4639_s1 + $0x178] sm:$0xff] }
  0x1a   : > { %439 = vmatpush.bf16.msra.mxu1 %v3550_v13  ;;  %v3944_v62 = vpack.c.bf16 %v3931_v56, %v3928_v55  ;;  %v3600_v63 = vld [vmem:[%s4639_s1 + $0x1b0] sm:$0xff]  ;;  %v3599_v5 = vld [vmem:[%s4639_s1 + $0x1a8] sm:$0xff]  ;;  %v3598_v11 = vld [vmem:[%s4639_s1 + $0x1a0] sm:$0xff]  ;;  %v263_v13 = vor.u32 %v261_v33, %v259_v46 }
  0x1b   : > { %566 = vmatpush.bf16.msra.mxu2 %v3566_v14  ;;  %v255_v45 = vor.u32 %v254_v36, %v250_v31  ;;  %v632_v51 = vor.u32 %v631_v40, %v630_v39  ;;  %v3584_v0 = vld [vmem:[%s4639_s1 + $0x130] sm:$0xff]  ;;  %v3583_v6 = vld [vmem:[%s4639_s1 + $0x128] sm:$0xff]  ;;  %v3582_v12 = vld [vmem:[%s4639_s1 + $0x120] sm:$0xff] }
  0x1c   : > { %710 = vmatpush.bf16.msra.mxu3 %v3574_v15  ;;  %v3608_v1 = vld [vmem:[%s4639_s1 + $0x1f0] sm:$0xff]  ;;  %v3957_v2 = vshll.u32 %v3944_v62, 16  ;;  %v3960_v3 = vshrl.u32 %v3944_v62, 16  ;;  %v3607_v9 = vld [vmem:[%s4639_s1 + $0x1e8] sm:$0xff]  ;;  %v501_v15 = vrot.slane %v3944_v62, 1  ;;  %v3605_v31 = vld [vmem:[%s4639_s1 + $0x1d8] sm:$0xff] }
  0x1d   : > { %354 = vmatpush.bf16.msra.mxu0 %v3557_v20  ;;  %v260_v57 = vsel %vm248_vm0, %v255_v45, %v259_v46  ;;  %v636_v59 = vsel %vm629_vm2, %v632_v51, %v635_v52  ;;  %v3592_v4 = vld [vmem:[%s4639_s1 + $0x170] sm:$0xff]  ;;  %v3591_v10 = vld [vmem:[%s4639_s1 + $0x168] sm:$0xff]  ;;  %v3606_v20 = vld [vmem:[%s4639_s1 + $0x1e0] sm:$0xff] }
  0x1e   : > { %440 = vmatpush.bf16.msra.mxu1 %v3549_v21  ;;  %v637_v7 = vrot.slane %v3960_v3, 1  ;;  %v638_v8 = vrot.slane %v3957_v2, 2  ;;  %v267_v14 = vrot.slane %v3957_v2, 1  ;;  %v3590_v21 = vld [vmem:[%s4639_s1 + $0x160] sm:$0xff]  ;;  %v3604_v36 = vld [vmem:[%s4639_s1 + $0x1d0] sm:$0xff]  ;;  %v3579_v51 = vld [vmem:[%s4639_s1 + $0x108] sm:$0xff] }
  0x1f   : > { %567 = vmatpush.bf16.msra.mxu2 %v3565_v23  ;;  %v3999_v23 = vld [vmem:[%s3834_s20 + $0x38] sm:$0xff]  ;;  %v3588_v49 = vld [vmem:[%s4639_s1 + $0x150] sm:$0xff] }
  0x20   : > { %711 = vmatpush.bf16.msra.mxu3 %v3573_v24  ;;  %v639_v16 = vor.u32 %v638_v8, %v637_v7  ;;  %v268_v24 = vsel %vm248_vm0, %v263_v13, %v267_v14  ;;  %v271_v39 = vor.u32 %v3960_v3, %v267_v14  ;;  %v3586_v14 = vld [vmem:[%s4639_s1 + $0x140] sm:$0xff] }
  0x21   : > { %355 = vmatpush.bf16.msra.mxu0 %v3556_v26  ;;  %v502_v26 = vsel %vm497_vm1, %v499_v50, %v501_v15  ;;  %v3595_v50 = vld [vmem:[%s4639_s1 + $0x188] sm:$0xff] }
  0x22   : > { %441 = vmatpush.bf16.msra.mxu1 %v3548_v27  ;;  %v640_v27 = vsel %vm629_vm2, %v635_v52, %v639_v16 }
  0x23   : > { %568 = vmatpush.bf16.msra.mxu2 %v3564_v29  ;;  %v3597_v29 = vld [vmem:[%s4639_s1 + $0x198] sm:$0xff] }
  0x24   : > { %712 = vmatpush.bf16.msra.mxu3 %v3572_v30  ;;  %v3581_v30 = vld [vmem:[%s4639_s1 + $0x118] sm:$0xff] }
  0x25   : > { %356 = vmatpush.bf16.msra.mxu0 %v3555_v34  ;;  %v3596_v34 = vld [vmem:[%s4639_s1 + $0x190] sm:$0xff] }
  0x26   : > { %442 = vmatpush.bf16.msra.mxu1 %v3547_v35  ;;  %v3580_v35 = vld [vmem:[%s4639_s1 + $0x110] sm:$0xff] }
  0x27   : > { %569 = vmatpush.bf16.msra.mxu2 %v3563_v37 }
  0x28   : > { %713 = vmatpush.bf16.msra.mxu3 %v3571_v38 }
  0x29   : > { %357 = vmatpush.bf16.msra.mxu0 %v3554_v43  ;;  %v4035_v43 = vld [vmem:[%s3834_s20 + $0x40] sm:$0xff] }
  0x2a   : > { %443 = vmatpush.bf16.msra.mxu1 %v3546_v44  ;;  %v4038_v44 = vld [vmem:[%s3834_s20 + $0x48] sm:$0xff] }
  0x2b   : > { %570 = vmatpush.bf16.msra.mxu2 %v3562_v47 }
  0x2c   : > { %714 = vmatpush.bf16.msra.mxu3 %v3570_v48  ;;  %358 = vmatmul.bf16.vlgmr.msra.gmra.mxu0 %v260_v57  ;;  %v212_v48 = vpack.c.bf16 %v4038_v44, %v4035_v43  ;;  %v3587_v57 = vld [vmem:[%s4639_s1 + $0x148] sm:$0xff] }
  0x2d   : > { %900 = vmatpush.bf16.msrb.mxu0 %v3585_v54  ;;  %444 = vmatmul.bf16.vlgmr.msra.gmra.mxu1 %v3865_v22  ;;  %v3996_v22 = vld [vmem:[%s3834_s20 + $0x30] sm:$0xff]  ;;  %v3603_v54 = vld [vmem:[%s4639_s1 + $0x1c8] sm:$0xff] }
  0x2e   : > { %571 = vmatmul.bf16.vlgmr.msra.gmra.mxu2 %v500_v58  ;;  %1038 = vmatpush.bf16.msrb.mxu1 %v3593_v61  ;;  %v4006_v28 = vpack.c.bf16 %v3999_v23, %v3996_v22  ;;  %v281_v52 = vshll.u32 %v212_v48, 16 }
  0x2f   : > { %1182 = vmatpush.bf16.msrb.mxu2 %v3601_v53  ;;  %715 = vmatmul.bf16.vlgmr.msra.gmra.mxu3 %v636_v59  ;;  %v285_v53 = vshrl.u32 %v212_v48, 16 }
  0x30   : > { %1314 = vmatpush.bf16.msrb.mxu3 %v3609_v60  ;;  %v273_v32 = vshll.u32 %v4006_v28, 16  ;;  %v277_v33 = vshrl.u32 %v4006_v28, 16  ;;  %v503_v41 = vrot.slane %v4006_v28, 1  ;;  %v646_v59 = vrot.slane %v281_v52, 2 }
  0x31   : > { %901 = vmatpush.bf16.msrb.mxu0 %v3584_v0  ;;  %v645_v58 = vrot.slane %v285_v53, 1  ;;  %v283_v61 = vrot.slane %v281_v52, 1 }
  0x32   : > { %1039 = vmatpush.bf16.msrb.mxu1 %v3592_v4  ;;  %v641_v37 = vrot.slane %v277_v33, 1  ;;  %v642_v38 = vrot.slane %v273_v32, 2  ;;  %v275_v40 = vrot.slane %v273_v32, 1  ;;  %v504_v46 = vsel %vm497_vm1, %v501_v15, %v503_v41  ;;  %v4065_v4 = vld [vmem:[%s3834_s20 + $0x58] sm:$0xff] }
  0x33   : > { %1183 = vmatpush.bf16.msrb.mxu2 %v3600_v63  ;;  %v505_v63 = vrot.slane %v212_v48, 1  ;;  %v647_v0 = vor.u32 %v646_v59, %v645_v58  ;;  %v3641_v32 = vld [vmem:[%s4639_s1 + $0x2f8] sm:$0xff] }
  0x34   : > { %1315 = vmatpush.bf16.msrb.mxu3 %v3608_v1  ;;  %v643_v42 = vor.u32 %v642_v38, %v641_v37  ;;  %v276_v45 = vsel %vm248_vm0, %v271_v39, %v275_v40  ;;  %v279_v60 = vor.u32 %v277_v33, %v275_v40  ;;  %v4062_v1 = vld [vmem:[%s3834_s20 + $0x50] sm:$0xff]  ;;  %v3625_v33 = vld [vmem:[%s4639_s1 + $0x278] sm:$0xff]  ;;  %v770_v38 = vpack.c.bf16 %v3853_v18, %v3850_v17  ;;  %v3631_v17 = vld [vmem:[%s4639_s1 + $0x2a8] sm:$0xff] }
  0x35   : > { %902 = vmatpush.bf16.msrb.mxu0 %v3583_v6  ;;  %v506_v6 = vsel %vm497_vm1, %v503_v41, %v505_v63  ;;  %v230_v8 = vpack.c.bf16 %v4065_v4, %v4062_v1  ;;  %v213_v37 = vpack.c.bf16 %v4062_v1, %v4062_v1  ;;  %v4115_v39 = vpack.c.bf16 %v3928_v55, %v3856_v19  ;;  %v3615_v18 = vld [vmem:[%s4639_s1 + $0x228] sm:$0xff] }
  0x36   : > { %1040 = vmatpush.bf16.msrb.mxu1 %v3591_v10  ;;  %v644_v47 = vsel %vm629_vm2, %v639_v16, %v643_v42  ;;  %v648_v7 = vsel %vm629_vm2, %v643_v42, %v647_v0  ;;  %v3578_v10 = vld [vmem:[%s4639_s1 + $0x100] sm:$0xff]  ;;  %v794_v40 = vshrl.u32 %v770_v38, 16  ;;  %v797_v41 = vshll.u32 %v770_v38, 16  ;;  %v3639_v19 = vld [vmem:[%s4639_s1 + $0x2e8] sm:$0xff] }
  0x37   : > { %1184 = vmatpush.bf16.msrb.mxu2 %v3599_v5  ;;  %v284_v5 = vsel %vm248_vm0, %v279_v60, %v283_v61  ;;  %v293_v13 = vshrl.u32 %v230_v8, 16  ;;  %v802_v42 = vshrl.u32 %v4115_v39, 16  ;;  %v3623_v55 = vld [vmem:[%s4639_s1 + $0x268] sm:$0xff]  ;;  %v973_v59 = vrot.slane %v770_v38, 2 }
  0x38   : > { %1316 = vmatpush.bf16.msrb.mxu3 %v3607_v9  ;;  %v3594_v9 = vld [vmem:[%s4639_s1 + $0x180] sm:$0xff]  ;;  %v1106_v52 = vrot.slane %v797_v41, 3  ;;  %v974_v60 = vrot.slane %v4115_v39, 2 }
  0x39   : > { %903 = vmatpush.bf16.msrb.mxu0 %v3582_v12  ;;  %v289_v12 = vshll.u32 %v230_v8, 16  ;;  %v649_v15 = vrot.slane %v293_v13, 1 }
  0x3a   : > { %1041 = vmatpush.bf16.msrb.mxu1 %v3590_v21 }
  0x3b   : > { %1185 = vmatpush.bf16.msrb.mxu2 %v3598_v11  ;;  %v3602_v11 = vld [vmem:[%s4639_s1 + $0x1c0] sm:$0xff]  ;;  %v650_v16 = vrot.slane %v289_v12, 2  ;;  %v291_v21 = vrot.slane %v289_v12, 1 }
  0x3c   : > { %1317 = vmatpush.bf16.msrb.mxu3 %v3606_v20  ;;  %363 = vmatmul.bf16.gmra.mxu0 %v268_v24  ;;  %v287_v20 = vor.u32 %v285_v53, %v283_v61  ;;  %v507_v24 = vrot.slane %v230_v8, 1  ;;  %v1108_v53 = vrot.slane %v802_v42, 2  ;;  %v772_v8 = vpack.c.bf16 %v3996_v22, %v3931_v56  ;;  %v3614_v56 = vld [vmem:[%s4639_s1 + $0x220] sm:$0xff] }
  0x3d   : > { %449 = vmatmul.bf16.gmra.mxu1 %v3875_v25  ;;  %v3589_v25 = vld [vmem:[%s4639_s1 + $0x158] sm:$0xff]  ;;  %904 = vmatpush.bf16.msrb.mxu0 %v3581_v30 }
  0x3e   : > { %576 = vmatmul.bf16.gmra.mxu2 %v502_v26  ;;  %1042 = vmatpush.bf16.msrb.mxu1 %v3589_v25  ;;  %v651_v26 = vor.u32 %v650_v16, %v649_v15  ;;  %v3633_v30 = vld [vmem:[%s4639_s1 + $0x2b8] sm:$0xff]  ;;  %v3632_v25 = vld [vmem:[%s4639_s1 + $0x2b0] sm:$0xff]  ;;  %v814_v12 = vshll.u32 %v772_v8, 16 }
  0x3f   : > { %720 = vmatmul.bf16.gmra.mxu3 %v640_v27  ;;  %1186 = vmatpush.bf16.msrb.mxu2 %v3597_v29  ;;  %v292_v27 = vsel %vm248_vm0, %v287_v20, %v291_v21  ;;  %v3630_v20 = vld [vmem:[%s4639_s1 + $0x2a0] sm:$0xff] }
  0x40   : > { %1318 = vmatpush.bf16.msrb.mxu3 %v3605_v31  ;;  %v652_v29 = vsel %vm629_vm2, %v647_v0, %v651_v26  ;;  %v3617_v31 = vld [vmem:[%s4639_s1 + $0x238] sm:$0xff]  ;;  %v1249_v0 = vrot.slane %v770_v38, 3  ;;  %v1113_v16 = vrot.slane %v814_v12, 3 }
  0x41   : > { %905 = vmatpush.bf16.msrb.mxu0 %v3580_v35  ;;  %v3640_v35 = vld [vmem:[%s4639_s1 + $0x2f0] sm:$0xff] }
  0x42   : > { %1043 = vmatpush.bf16.msrb.mxu1 %v3588_v49  ;;  %v804_v49 = vrot.slane %v802_v42, 1 }
  0x43   : > { %1187 = vmatpush.bf16.msrb.mxu2 %v3596_v34  ;;  %v3616_v34 = vld [vmem:[%s4639_s1 + $0x230] sm:$0xff] }
  0x44   : > { %1319 = vmatpush.bf16.msrb.mxu3 %v3604_v36  ;;  %v295_v36 = vor.u32 %v293_v13, %v291_v21  ;;  %v3638_v21 = vld [vmem:[%s4639_s1 + $0x2e0] sm:$0xff] }
  0x45   : > { %906 = vmatpush.bf16.msrb.mxu0 %v3579_v51  ;;  %v1105_v51 = vrot.slane %v794_v40, 2 }
  0x46   : > { %1044 = vmatpush.bf16.msrb.mxu1 %v3587_v57 }
  0x47   : > { %1188 = vmatpush.bf16.msrb.mxu2 %v3595_v50  ;;  %v1107_v61 = vor.u32 %v1106_v52, %v1105_v51  ;;  %v3628_v52 = vld [vmem:[%s4639_s1 + $0x290] sm:$0xff] }
  0x48   : > { %1320 = vmatpush.bf16.msrb.mxu3 %v3603_v54 }
  0x49   : > { %907 = vmatpush.bf16.msrb.mxu0 %v3578_v10 }
  0x4a   : > { %1045 = vmatpush.bf16.msrb.mxu1 %v3586_v14  ;;  %v816_v14 = vrot.slane %v814_v12, 2  ;;  %v3635_v12 = vld [vmem:[%s4639_s1 + $0x2c8] sm:$0xff] }
  0x4b   : > { %1189 = vmatpush.bf16.msrb.mxu2 %v3594_v9 }
  0x4c   : > { %368 = vmatmul.bf16.gmra.mxu0 %v276_v45  ;;  %1321 = vmatpush.bf16.msrb.mxu3 %v3602_v11  ;;  %v805_v45 = vshll.u32 %v4115_v39, 16  ;;  %v811_v11 = vshrl.u32 %v772_v8, 16 }
  0x4d   : > { %454 = vmatmul.bf16.gmra.mxu1 %v3944_v62  ;;  %1471 = vmatpush.bf16.msra.mxu0 %v3617_v31 }
  0x4e   : > { %581 = vmatmul.bf16.gmra.mxu2 %v504_v46  ;;  %1645 = vmatpush.bf16.msra.mxu1 %v3625_v33  ;;  %v3624_v46 = vld [vmem:[%s4639_s1 + $0x270] sm:$0xff]  ;;  %v807_v50 = vrot.slane %v805_v45, 2  ;;  %v1109_v54 = vrot.slane %v805_v45, 3  ;;  %v813_v13 = vrot.slane %v811_v11, 1  ;;  %v1112_v15 = vrot.slane %v811_v11, 2  ;;  %v3611_v11 = vld [vmem:[%s4639_s1 + $0x208] sm:$0xff] }
  0x4f   : > { %725 = vmatmul.bf16.gmra.mxu3 %v644_v47  ;;  %1779 = vmatpush.bf16.msra.mxu2 %v3633_v30  ;;  %v796_v47 = vrot.slane %v794_v40, 1 }
  0x50   : > { %1947 = vmatpush.bf16.msra.mxu3 %v3641_v32  ;;  %v808_v58 = vor.u32 %v807_v50, %v804_v49  ;;  %v4158_v32 = vpack.c.bf16 %v4035_v43, %v3999_v23  ;;  %v3613_v23 = vld [vmem:[%s4639_s1 + $0x218] sm:$0xff] }
  0x51   : > { %1472 = vmatpush.bf16.msra.mxu0 %v3616_v34  ;;  %v3637_v43 = vld [vmem:[%s4639_s1 + $0x2d8] sm:$0xff] }
  0x52   : > { %1646 = vmatpush.bf16.msra.mxu1 %v3624_v46  ;;  %v820_v34 = vshrl.u32 %v4158_v32, 16  ;;  %v978_v45 = vrot.slane %v4158_v32, 2 }
  0x53   : > { %1780 = vmatpush.bf16.msra.mxu2 %v3632_v25 }
  0x54   : > { %1948 = vmatpush.bf16.msra.mxu3 %v3640_v35  ;;  %v823_v35 = vshll.u32 %v4158_v32, 16 }
  0x55   : > { %1473 = vmatpush.bf16.msra.mxu0 %v3615_v18 }
  0x56   : > { %1647 = vmatpush.bf16.msra.mxu1 %v3623_v55  ;;  %v825_v38 = vrot.slane %v823_v35, 2  ;;  %v1117_v40 = vrot.slane %v823_v35, 3 }
  0x57   : > { %1781 = vmatpush.bf16.msra.mxu2 %v3631_v17  ;;  %v1254_v17 = vrot.slane %v4158_v32, 3 }
  0x58   : > { %1949 = vmatpush.bf16.msra.mxu3 %v3639_v19 }
  0x59   : > { %1474 = vmatpush.bf16.msra.mxu0 %v3614_v56 }
  0x5b   : > { %1782 = vmatpush.bf16.msra.mxu2 %v3630_v20  ;;  %v4214_v20 = vld [vmem:[%s3834_s20 + $0x60] sm:$0xff] }
  0x5c   : > { %373 = vmatmul.bf16.gmra.mxu0 %v284_v5  ;;  %v1250_v5 = vrot.slane %v4115_v39, 3  ;;  %1950 = vmatpush.bf16.msra.mxu3 %v3638_v21  ;;  %v1116_v39 = vrot.slane %v820_v34, 2 }
  0x5d   : > { %459 = vmatmul.bf16.gmra.mxu1 %v4006_v28  ;;  %v508_v28 = vsel %vm497_vm1, %v505_v63, %v507_v24  ;;  %v1110_v63 = vor.u32 %v1109_v54, %v1108_v53  ;;  %1475 = vmatpush.bf16.msra.mxu0 %v3613_v23  ;;  %v3612_v53 = vld [vmem:[%s4639_s1 + $0x210] sm:$0xff] }
  0x5e   : > { %586 = vmatmul.bf16.gmra.mxu2 %v506_v6  ;;  %v1251_v10 = vsel %vm1248_vm5, %v1249_v0, %v1250_v5  ;;  %v1118_v46 = vor.u32 %v1117_v40, %v1116_v39  ;;  %v3636_v54 = vld [vmem:[%s4639_s1 + $0x2d0] sm:$0xff] }
  0x5f   : > { %730 = vmatmul.bf16.gmra.mxu3 %v648_v7  ;;  %v975_v7 = vsel %vm972_vm3, %v973_v59, %v974_v60  ;;  %v1111_v9 = vsel %vm1104_vm4, %v1107_v61, %v1110_v63 }
  0x60   : > { %1951 = vmatpush.bf16.msra.mxu3 %v3637_v43 }
  0x61   : > { %1476 = vmatpush.bf16.msra.mxu0 %v3612_v53 }
  0x64   : > { %1952 = vmatpush.bf16.msra.mxu3 %v3636_v54 }
  0x65   : > { %1477 = vmatpush.bf16.msra.mxu0 %v3611_v11 }
  0x68   : > { %1953 = vmatpush.bf16.msra.mxu3 %v3635_v12 }
  0x6c   : > { %378 = vmatmul.bf16.gmra.mxu0 %v292_v27  ;;  %v976_v27 = vrot.slane %v772_v8, 2 }
  0x6d   : > { %464 = vmatmul.bf16.gmra.mxu1 %v212_v48  ;;  %v799_v48 = vrot.slane %v797_v41, 2  ;;  %v3621_v41 = vld [vmem:[%s4639_s1 + $0x258] sm:$0xff] }
  0x6e   : > { %591 = vmatmul.bf16.gmra.mxu2 %v508_v28  ;;  %v1114_v28 = vor.u32 %v1113_v16, %v1112_v15  ;;  %v977_v31 = vsel %vm972_vm3, %v974_v60, %v976_v27 }
  0x6f   : > { %735 = vmatmul.bf16.gmra.mxu3 %v652_v29  ;;  %v800_v57 = vor.u32 %v799_v48, %v796_v47  ;;  %v1252_v29 = vrot.slane %v772_v8, 3  ;;  %v979_v47 = vsel %vm972_vm3, %v976_v27, %v978_v45  ;;  %v4182_v48 = vpack.c.bf16 %v4062_v1, %v4038_v44 }
  0x70   : > { %v1115_v33 = vsel %vm1104_vm4, %v1110_v63, %v1114_v28  ;;  %v1119_v50 = vsel %vm1104_vm4, %v1114_v28, %v1118_v46 }
  0x71   : > { %v809_v6 = vsel %vm629_vm2, %v800_v57, %v808_v58  ;;  %v1253_v25 = vsel %vm1248_vm5, %v1250_v5, %v1252_v29  ;;  %v1255_v51 = vsel %vm1248_vm5, %v1252_v29, %v1254_v17  ;;  %v829_v44 = vshrl.u32 %v4182_v48, 16  ;;  %v3620_v57 = vld [vmem:[%s4639_s1 + $0x250] sm:$0xff] }
  0x72   : > { %v832_v1 = vshll.u32 %v4182_v48, 16  ;;  %v1256_v16 = vrot.slane %v4182_v48, 3 }
  0x73   : > { %v831_v0 = vrot.slane %v829_v44, 1 }
  0x74   : > { %v834_v5 = vrot.slane %v832_v1, 2  ;;  %v1121_v8 = vrot.slane %v832_v1, 3 }
  0x7c   : > { %383 = vmatmul.bf16.gmra.mxu0 %v295_v36  ;;  %v3629_v36 = vld [vmem:[%s4639_s1 + $0x298] sm:$0xff] }
  0x7d   : > { %469 = vmatmul.bf16.gmra.mxu1 %v213_v37  ;;  %1783 = vmatpush.bf16.msra.mxu2 %v3629_v36  ;;  %v822_v37 = vrot.slane %v820_v34, 1  ;;  %v3619_v34 = vld [vmem:[%s4639_s1 + $0x248] sm:$0xff] }
  0x7e   : > { %596 = vmatmul.bf16.gmra.mxu2 %v507_v24  ;;  %v3622_v24 = vld [vmem:[%s4639_s1 + $0x260] sm:$0xff] }
  0x7f   : > { %740 = vmatmul.bf16.gmra.mxu3 %v651_v26  ;;  %v817_v26 = vor.u32 %v816_v14, %v813_v13  ;;  %1648 = vmatpush.bf16.msra.mxu1 %v3622_v24  ;;  %v826_v42 = vor.u32 %v825_v38, %v822_v37  ;;  %v835_v13 = vor.u32 %v834_v5, %v831_v0  ;;  %v980_v14 = vrot.slane %v4182_v48, 2  ;;  %v3649_v0 = vld [vmem:[%s4639_s1 + $0x338] sm:$0xff] }
  0x80   : > { %v3673_v5 = vld [vmem:[%s4639_s1 + $0x3f8] sm:$0xff] }
  0x81   : > { %v818_v30 = vsel %vm629_vm2, %v808_v58, %v817_v26  ;;  %v827_v55 = vsel %vm629_vm2, %v817_v26, %v826_v42  ;;  %1784 = vmatpush.bf16.msra.mxu2 %v3628_v52  ;;  %v836_v28 = vsel %vm629_vm2, %v826_v42, %v835_v13  ;;  %v981_v29 = vsel %vm972_vm3, %v978_v45, %v980_v14 }
  0x83   : > { %1649 = vmatpush.bf16.msra.mxu1 %v3621_v41 }
  0x87   : > { %1650 = vmatpush.bf16.msra.mxu1 %v3620_v57 }
  0x8b   : > { %1651 = vmatpush.bf16.msra.mxu1 %v3619_v34  ;;  %v3664_v34 = vld [vmem:[%s4639_s1 + $0x3b0] sm:$0xff] }
  0x8c   : > { %908 = vmatmul.bf16.vlgmr.msrb.gmra.mxu0 %v809_v6 }
  0x8d   : > { %1046 = vmatmul.bf16.vlgmr.msrb.gmra.mxu1 %v975_v7  ;;  %v1120_v7 = vrot.slane %v829_v44, 2 }
  0x8e   : > { %1190 = vmatmul.bf16.vlgmr.msrb.gmra.mxu2 %v1111_v9 }
  0x8f   : > { %1322 = vmatmul.bf16.vlgmr.msrb.gmra.mxu3 %v1251_v10  ;;  %v3627_v10 = vld [vmem:[%s4639_s1 + $0x288] sm:$0xff]  ;;  %v1122_v15 = vor.u32 %v1121_v8, %v1120_v7 }
  0x90   : > { %1785 = vmatpush.bf16.msra.mxu2 %v3627_v10 }
  0x91   : > { %v1123_v32 = vsel %vm1104_vm4, %v1118_v46, %v1122_v15 }
  0x9c   : > { %913 = vmatmul.bf16.gmra.mxu0 %v818_v30  ;;  %v4220_v30 = vpack.c.bf16 %v4214_v20, %v4065_v4 }
  0x9d   : > { %1051 = vmatmul.bf16.gmra.mxu1 %v977_v31 }
  0x9e   : > { %1195 = vmatmul.bf16.gmra.mxu2 %v1115_v33  ;;  %v1257_v33 = vsel %vm1248_vm5, %v1254_v17, %v1256_v16  ;;  %v838_v35 = vshrl.u32 %v4220_v30, 16  ;;  %v841_v4 = vshll.u32 %v4220_v30, 16  ;;  %v3626_v17 = vld [vmem:[%s4639_s1 + $0x280] sm:$0xff]  ;;  %v982_v48 = vrot.slane %v4220_v30, 2 }
  0x9f   : > { %1327 = vmatmul.bf16.gmra.mxu3 %v1253_v25  ;;  %1786 = vmatpush.bf16.msra.mxu2 %v3626_v17 }
  0xa0   : > { %v840_v39 = vrot.slane %v838_v35, 1  ;;  %v843_v40 = vrot.slane %v841_v4, 2  ;;  %v1124_v42 = vrot.slane %v838_v35, 2  ;;  %v1125_v45 = vrot.slane %v841_v4, 3  ;;  %v3648_v35 = vld [vmem:[%s4639_s1 + $0x330] sm:$0xff] }
  0xa1   : > { %v983_v57 = vsel %vm972_vm3, %v980_v14, %v982_v48  ;;  %v3657_v14 = vld [vmem:[%s4639_s1 + $0x378] sm:$0xff]  ;;  %v3672_v4 = vld [vmem:[%s4639_s1 + $0x3f0] sm:$0xff] }
  0xa9   : > { %v359_v18 = vpop.f32.mrf.mxu0 }
  0xaa   : > { %v445_v19 = vpop.f32.mrf.mxu1 }
  0xab   : > { %v446_v49 = vadd.f32 %v445_v19, %v359_v18  ;;  %v3610_v18 = vld [vmem:[%s4639_s1 + $0x200] sm:$0xff] }
  0xac   : > { %918 = vmatmul.bf16.gmra.mxu0 %v827_v55  ;;  %v3634_v19 = vld [vmem:[%s4639_s1 + $0x2c0] sm:$0xff] }
  0xad   : > { %1056 = vmatmul.bf16.gmra.mxu1 %v979_v47  ;;  %v3618_v55 = vld [vmem:[%s4639_s1 + $0x240] sm:$0xff]  ;;  %v844_v47 = vor.u32 %v843_v40, %v840_v39  ;;  %1478 = vmatpush.bf16.msra.mxu0 %v3610_v18 }
  0xae   : > { %1200 = vmatmul.bf16.gmra.mxu2 %v1119_v50  ;;  %v1258_v50 = vrot.slane %v4220_v30, 3  ;;  %1954 = vmatpush.bf16.msra.mxu3 %v3634_v19 }
  0xaf   : > { %1332 = vmatmul.bf16.gmra.mxu3 %v1255_v51  ;;  %1652 = vmatpush.bf16.msra.mxu1 %v3618_v55  ;;  %v845_v1 = vsel %vm629_vm2, %v835_v13, %v844_v47  ;;  %v1552_v55 = vrot.slane %v3957_v2, 4  ;;  %v3671_v2 = vld [vmem:[%s4639_s1 + $0x3e8] sm:$0xff] }
  0xb1   : > { %v572_v58 = vpop.f32.mrf.mxu2  ;;  %v361_v61 = vpop.f32.mrf.mxu0  ;;  %2134 = vmatpush.bf16.msrb.mxu0 %v3649_v0  ;;  %v3655_v0 = vld [vmem:[%s4639_s1 + $0x368] sm:$0xff] }
  0xb2   : > { %v716_v59 = vpop.f32.mrf.mxu3  ;;  %v601_v60 = vadd.f32 %v572_v58, %v446_v49  ;;  %v447_v63 = vpop.f32.mrf.mxu1  ;;  %v1126_v49 = vor.u32 %v1125_v45, %v1124_v42  ;;  %2545 = vmatpush.bf16.msrb.mxu3 %v3673_v5 }
  0xb3   : > { %v448_v6 = vadd.f32 %v447_v63, %v361_v61  ;;  %v3665_v63 = vld [vmem:[%s4639_s1 + $0x3b8] sm:$0xff]  ;;  %2271 = vmatpush.bf16.msrb.mxu1 %v3657_v14 }
  0xb4   : > { %v4200_v9 = vadd.f32 %v716_v59, %v601_v60  ;;  %v1127_v59 = vsel %vm1104_vm4, %v1122_v15, %v1126_v49  ;;  %v1259_v60 = vsel %vm1248_vm5, %v1256_v16, %v1258_v50  ;;  %2414 = vmatpush.bf16.msrb.mxu2 %v3665_v63  ;;  %v3124_v15 = vld [vmem:[%s3834_s20 + $0x10] sm:$0xff]  ;;  %v3125_v16 = vld [vmem:[%s3834_s20 + $0x18] sm:$0xff] }
  0xb5   : > { %2135 = vmatpush.bf16.msrb.mxu0 %v3648_v35 }
  0xb6   : > { %2546 = vmatpush.bf16.msrb.mxu3 %v3672_v4 }
  0xb8   : > { %2415 = vmatpush.bf16.msrb.mxu2 %v3664_v34 }
  0xb9   : > { %v574_v56 = vpop.f32.mrf.mxu2  ;;  %v364_v26 = vpop.f32.mrf.mxu0 }
  0xba   : > { %v718_v21 = vpop.f32.mrf.mxu3  ;;  %v602_v24 = vadd.f32 %v574_v56, %v448_v6  ;;  %v450_v27 = vpop.f32.mrf.mxu1  ;;  %v4270_v56 = vld [vmem:[%s3834_s20 + $0x20] sm:$0xff]  ;;  %2547 = vmatpush.bf16.msrb.mxu3 %v3671_v2 }
  0xbb   : > { %v451_v31 = vadd.f32 %v450_v27, %v364_v26 }
  0xbc   : > { %v4224_v25 = vadd.f32 %v718_v21, %v602_v24  ;;  %923 = vmatmul.bf16.gmra.mxu0 %v836_v28 }
  0xbd   : > { %1061 = vmatmul.bf16.gmra.mxu1 %v981_v29  ;;  %v1377_v29 = vpack.c.bf16 %v3125_v16, %v3124_v15  ;;  %v3237_v15 = vld [vmem:[%s3834_s20 + $0x40] sm:$0xff] }
  0xbe   : > { %1205 = vmatmul.bf16.gmra.mxu2 %v1123_v32  ;;  %v4276_v32 = vld [vmem:[%s3834_s20 + $0x28] sm:$0xff] }
  0xbf   : > { %1337 = vmatmul.bf16.gmra.mxu3 %v1257_v33 }
  0xc1   : > { %v577_v36 = vpop.f32.mrf.mxu2  ;;  %v366_v37 = vpop.f32.mrf.mxu0 }
  0xc2   : > { %v721_v23 = vpop.f32.mrf.mxu3  ;;  %v603_v43 = vadd.f32 %v577_v36, %v451_v31  ;;  %v452_v38 = vpop.f32.mrf.mxu1  ;;  %v4273_v31 = vpack.c.bf16 %v4270_v56, %v3125_v16  ;;  %v1539_v36 = vshrl.u32 %v1377_v29, 16 }
  0xc3   : > { %v453_v41 = vadd.f32 %v452_v38, %v366_v37  ;;  %v4294_v37 = vpack.c.bf16 %v3996_v22, %v4276_v32 }
  0xc4   : > { %v4231_v46 = vadd.f32 %v721_v23, %v603_v43  ;;  %v1542_v23 = vshll.u32 %v1377_v29, 16  ;;  %v3656_v43 = vld [vmem:[%s4639_s1 + $0x370] sm:$0xff]  ;;  %v1849_v38 = vshll.u32 %v4273_v31, 16  ;;  %v1541_v18 = vrot.slane %v1539_v36, 3 }
  0xc5   : > { %2272 = vmatpush.bf16.msrb.mxu1 %v3656_v43  ;;  %v1847_v22 = vshrl.u32 %v4273_v31, 16  ;;  %v1858_v4 = vshrl.u32 %v4294_v37, 16  ;;  %v3662_v43 = vld [vmem:[%s4639_s1 + $0x3a0] sm:$0xff] }
  0xc6   : > { %v1544_v19 = vrot.slane %v1542_v23, 4 }
  0xc9   : > { %v579_v51 = vpop.f32.mrf.mxu2  ;;  %v369_v54 = vpop.f32.mrf.mxu0  ;;  %2273 = vmatpush.bf16.msrb.mxu1 %v3655_v0 }
  0xca   : > { %v723_v52 = vpop.f32.mrf.mxu3  ;;  %v604_v53 = vadd.f32 %v579_v51, %v453_v41  ;;  %v455_v44 = vpop.f32.mrf.mxu1  ;;  %v1549_v41 = vrot.slane %v3960_v3, 3  ;;  %v3663_v3 = vld [vmem:[%s4639_s1 + $0x3a8] sm:$0xff] }
  0xcb   : > { %v456_v58 = vadd.f32 %v455_v44, %v369_v54  ;;  %v3647_v51 = vld [vmem:[%s4639_s1 + $0x328] sm:$0xff]  ;;  %v1545_v54 = vor.u32 %v1544_v19, %v1541_v18  ;;  %2416 = vmatpush.bf16.msrb.mxu2 %v3663_v3 }
  0xcc   : > { %v4251_v61 = vadd.f32 %v723_v52, %v604_v53  ;;  %928 = vmatmul.bf16.gmra.mxu0 %v845_v1  ;;  %v1406_v52 = vrot.slane %v1377_v29, 3  ;;  %v1407_v53 = vrot.slane %v3944_v62, 3  ;;  %v1553_v44 = vor.u32 %v1552_v55, %v1549_v41  ;;  %v3131_v18 = vld [vmem:[%s3834_s20 + $0x48] sm:$0xff] }
  0xcd   : > { %1066 = vmatmul.bf16.gmra.mxu1 %v983_v57  ;;  %2136 = vmatpush.bf16.msrb.mxu0 %v3647_v51  ;;  %v4357_v51 = vpack.c.bf16 %v3131_v18, %v3237_v15 }
  0xce   : > { %1210 = vmatmul.bf16.gmra.mxu2 %v1127_v59  ;;  %v3129_v59 = vld [vmem:[%s3834_s20 + $0x38] sm:$0xff] }
  0xcf   : > { %1342 = vmatmul.bf16.gmra.mxu3 %v1259_v60  ;;  %2417 = vmatpush.bf16.msrb.mxu2 %v3662_v43 }
  0xd1   : > { %v582_v6 = vpop.f32.mrf.mxu2  ;;  %v371_v10 = vpop.f32.mrf.mxu0 }
  0xd2   : > { %v726_v7 = vpop.f32.mrf.mxu3  ;;  %v605_v8 = vadd.f32 %v582_v6, %v456_v58  ;;  %v457_v11 = vpop.f32.mrf.mxu1  ;;  %v3128_v58 = vld [vmem:[%s3834_s20 + $0x30] sm:$0xff] }
  0xd3   : > { %v458_v12 = vadd.f32 %v457_v11, %v371_v10  ;;  %v4320_v10 = vpack.c.bf16 %v3129_v59, %v3128_v58  ;;  %v3645_v58 = vld [vmem:[%s4639_s1 + $0x318] sm:$0xff] }
  0xd4   : > { %v4262_v13 = vadd.f32 %v726_v7, %v605_v8  ;;  %v1408_v7 = vsel %vm1248_vm5, %v1406_v52, %v1407_v53  ;;  %v1554_v8 = vsel %vm1537_vm6, %v1545_v54, %v1553_v44 }
  0xd5   : > { %v4328_v16 = vshrl.u32 %v4320_v10, 16  ;;  %v1409_v41 = vrot.slane %v4320_v10, 3 }
  0xd7   : > { %v1558_v34 = vrot.slane %v4328_v16, 3 }
  0xd9   : > { %v584_v21 = vpop.f32.mrf.mxu2  ;;  %v374_v27 = vpop.f32.mrf.mxu0 }
  0xda   : > { %v728_v24 = vpop.f32.mrf.mxu3  ;;  %v606_v26 = vadd.f32 %v584_v21, %v458_v12  ;;  %v460_v28 = vpop.f32.mrf.mxu1  ;;  %v4331_v21 = vshll.u32 %v4320_v10, 16 }
  0xdb   : > { %v461_v30 = vadd.f32 %v460_v28, %v374_v27 }
  0xdc   : > { %v4278_v33 = vadd.f32 %v728_v24, %v606_v26  ;;  %933 = vmatmul.bf16.gmra.mxu0 %v844_v47  ;;  %v4333_v24 = vpack.c.bf16 %v3237_v15, %v3129_v59  ;;  %v1561_v35 = vrot.slane %v4331_v21, 4  ;;  %v3669_v59 = vld [vmem:[%s4639_s1 + $0x3d8] sm:$0xff] }
  0xdd   : > { %1071 = vmatmul.bf16.gmra.mxu1 %v982_v48  ;;  %v1851_v48 = vrot.slane %v1849_v38, 1  ;;  %v3646_v38 = vld [vmem:[%s4639_s1 + $0x320] sm:$0xff]  ;;  %v3653_v15 = vld [vmem:[%s4639_s1 + $0x358] sm:$0xff] }
  0xde   : > { %1215 = vmatmul.bf16.gmra.mxu2 %v1126_v49  ;;  %v1854_v49 = vshll.u32 %v4294_v37, 16  ;;  %v1862_v36 = vshll.u32 %v4333_v24, 16  ;;  %2137 = vmatpush.bf16.msrb.mxu0 %v3646_v38 }
  0xdf   : > { %1347 = vmatmul.bf16.gmra.mxu3 %v1258_v50  ;;  %v1852_v1 = vor.u32 %v1851_v48, %v1847_v22 }
  0xe0   : > { %v1856_v57 = vrot.slane %v1854_v49, 1  ;;  %v1410_v49 = vsel %vm1248_vm5, %v1407_v53, %v1409_v41  ;;  %v4368_v53 = vshll.u32 %v4357_v51, 16 }
  0xe1   : > { %v587_v39 = vpop.f32.mrf.mxu2  ;;  %v376_v45 = vpop.f32.mrf.mxu0 }
  0xe2   : > { %v731_v40 = vpop.f32.mrf.mxu3  ;;  %v607_v42 = vadd.f32 %v587_v39, %v461_v30  ;;  %v462_v17 = vpop.f32.mrf.mxu1  ;;  %v1857_v12 = vsel %vm248_vm0, %v1852_v1, %v1856_v57  ;;  %v3670_v39 = vld [vmem:[%s4639_s1 + $0x3e0] sm:$0xff]  ;;  %v3239_v1 = vld [vmem:[%s3834_s20 + $0x50] sm:$0xff]  ;;  %2138 = vmatpush.bf16.msrb.mxu0 %v3645_v58 }
  0xe3   : > { %v463_v47 = vadd.f32 %v462_v17, %v376_v45  ;;  %v1860_v45 = vor.u32 %v1858_v4, %v1856_v57  ;;  %v1864_v17 = vrot.slane %v1862_v36, 1  ;;  %2548 = vmatpush.bf16.msrb.mxu3 %v3670_v39  ;;  %v4365_v57 = vshrl.u32 %v4357_v51, 16 }
  0xe4   : > { %v4301_v50 = vadd.f32 %v731_v40, %v607_v42  ;;  %v3654_v40 = vld [vmem:[%s4639_s1 + $0x360] sm:$0xff]  ;;  %v1562_v42 = vor.u32 %v1561_v35, %v1558_v34 }
  0xe5   : > { %2274 = vmatpush.bf16.msrb.mxu1 %v3654_v40  ;;  %v1865_v52 = vsel %vm248_vm0, %v1860_v45, %v1864_v17  ;;  %v3660_v45 = vld [vmem:[%s4639_s1 + $0x390] sm:$0xff] }
  0xe6   : > { %v1563_v3 = vsel %vm1537_vm6, %v1553_v44, %v1562_v42  ;;  %v3661_v44 = vld [vmem:[%s4639_s1 + $0x398] sm:$0xff] }
  0xe7   : > { %2418 = vmatpush.bf16.msrb.mxu2 %v3661_v44  ;;  %2549 = vmatpush.bf16.msrb.mxu3 %v3669_v59 }
  0xe9   : > { %v589_v60 = vpop.f32.mrf.mxu2  ;;  %v379_v6 = vpop.f32.mrf.mxu0  ;;  %2275 = vmatpush.bf16.msrb.mxu1 %v3653_v15 }
  0xea   : > { %v733_v63 = vpop.f32.mrf.mxu3  ;;  %v608_v5 = vadd.f32 %v589_v60, %v463_v47  ;;  %v465_v62 = vpop.f32.mrf.mxu1 }
  0xeb   : > { %v466_v11 = vadd.f32 %v465_v62, %v379_v6  ;;  %v1567_v62 = vrot.slane %v4365_v57, 3  ;;  %2419 = vmatpush.bf16.msrb.mxu2 %v3660_v45 }
  0xec   : > { %v4323_v14 = vadd.f32 %v733_v63, %v608_v5  ;;  %1479 = vmatmul.bf16.vlgmr.msra.gmra.mxu0 %v1408_v7  ;;  %v1570_v7 = vrot.slane %v4368_v53, 4 }
  0xed   : > { %1653 = vmatmul.bf16.vlgmr.msra.gmra.mxu1 %v1554_v8  ;;  %v1866_v8 = vshrl.u32 %v4333_v24, 16 }
  0xee   : > { %1787 = vmatmul.bf16.vlgmr.msra.gmra.mxu2 %v4273_v31 }
  0xef   : > { %1955 = vmatmul.bf16.vlgmr.msra.gmra.mxu3 %v1857_v12 }
  0xf1   : > { %v592_v26 = vpop.f32.mrf.mxu2  ;;  %v381_v29 = vpop.f32.mrf.mxu0 }
  0xf2   : > { %v736_v27 = vpop.f32.mrf.mxu3  ;;  %v609_v28 = vadd.f32 %v592_v26, %v466_v11  ;;  %v467_v30 = vpop.f32.mrf.mxu1  ;;  %v1411_v26 = vrot.slane %v4357_v51, 3 }
  0xf3   : > { %v468_v31 = vadd.f32 %v467_v30, %v381_v29  ;;  %v3133_v30 = vld [vmem:[%s3834_s20 + $0x58] sm:$0xff] }
  0xf4   : > { %v4339_v23 = vadd.f32 %v736_v27, %v609_v28  ;;  %v1571_v27 = vor.u32 %v1570_v7, %v1567_v62  ;;  %v1868_v28 = vor.u32 %v1866_v8, %v1864_v17  ;;  %v1412_v36 = vsel %vm1248_vm5, %v1409_v41, %v1411_v26  ;;  %v3668_v41 = vld [vmem:[%s4639_s1 + $0x3d0] sm:$0xff]  ;;  %v4438_v7 = vld [vmem:[%s3834_s20 + $0x68] sm:$0xff] }
  0xf5   : > { %v4394_v38 = vpack.c.bf16 %v3133_v30, %v3239_v1  ;;  %2550 = vmatpush.bf16.msrb.mxu3 %v3668_v41 }
  0xf6   : > { %v1572_v43 = vsel %vm1537_vm6, %v1562_v42, %v1571_v27 }
  0xf7   : > { %v4412_v42 = vshll.u32 %v4394_v38, 16 }
  0xf9   : > { %v594_v19 = vpop.f32.mrf.mxu2  ;;  %v384_v22 = vpop.f32.mrf.mxu0 }
  0xfa   : > { %v738_v55 = vpop.f32.mrf.mxu3  ;;  %v610_v47 = vadd.f32 %v594_v19, %v468_v31  ;;  %v470_v48 = vpop.f32.mrf.mxu1  ;;  %v3652_v19 = vld [vmem:[%s4639_s1 + $0x350] sm:$0xff] }
  0xfb   : > { %v471_v2 = vadd.f32 %v470_v48, %v384_v22  ;;  %2276 = vmatpush.bf16.msrb.mxu1 %v3652_v19 }
  0xfc   : > { %v4360_v54 = vadd.f32 %v738_v55, %v610_v47  ;;  %1484 = vmatmul.bf16.gmra.mxu0 %v1410_v49  ;;  %v4418_v55 = vpack.c.bf16 %v4214_v20, %v3133_v30 }
  0xfd   : > { %1658 = vmatmul.bf16.gmra.mxu1 %v1563_v3 }
  0xfe   : > { %1792 = vmatmul.bf16.gmra.mxu2 %v4294_v37  ;;  %v4379_v37 = vpack.c.bf16 %v3239_v1, %v3131_v18  ;;  %v3644_v18 = vld [vmem:[%s4639_s1 + $0x310] sm:$0xff]  ;;  %v1878_v44 = vshll.u32 %v4418_v55, 16 }
  0xff   : > { %1960 = vmatmul.bf16.gmra.mxu3 %v1865_v52  ;;  %2139 = vmatpush.bf16.msrb.mxu0 %v3644_v18 }
 0x100   : > { %v1870_v11 = vshll.u32 %v4379_v37, 16  ;;  %v1874_v1 = vshrl.u32 %v4379_v37, 16  ;;  %v1880_v62 = vrot.slane %v1878_v44, 1 }
 0x101   : > { %v597_v60 = vpop.f32.mrf.mxu2  ;;  %v386_v5 = vpop.f32.mrf.mxu0 }
 0x102   : > { %v741_v63 = vpop.f32.mrf.mxu3  ;;  %v611_v0 = vadd.f32 %v597_v60, %v471_v2  ;;  %v472_v6 = vpop.f32.mrf.mxu1  ;;  %v1872_v29 = vrot.slane %v1870_v11, 1  ;;  %v1579_v2 = vrot.slane %v4412_v42, 4  ;;  %v3659_v60 = vld [vmem:[%s4639_s1 + $0x388] sm:$0xff] }
 0x103   : > { %2420 = vmatpush.bf16.msrb.mxu2 %v3659_v60 }
 0x104   : > { %v4385_v12 = vadd.f32 %v741_v63, %v611_v0  ;;  %v1873_v40 = vsel %vm248_vm0, %v1868_v28, %v1872_v29  ;;  %v3643_v63 = vld [vmem:[%s4639_s1 + $0x308] sm:$0xff]  ;;  %v1876_v6 = vor.u32 %v1874_v1, %v1872_v29 }
 0x105   : > { %v3667_v0 = vld [vmem:[%s4639_s1 + $0x3c8] sm:$0xff]  ;;  %2140 = vmatpush.bf16.msrb.mxu0 %v3643_v63 }
 0x106   : > { %2551 = vmatpush.bf16.msrb.mxu3 %v3667_v0 }
 0x109   : > { %v599_v34 = vpop.f32.mrf.mxu2  ;;  %v909_v31 = vpop.f32.mrf.mxu0 }
 0x10a   : > { %v743_v35 = vpop.f32.mrf.mxu3  ;;  %v1047_v4 = vpop.f32.mrf.mxu1  ;;  %v938_v39 = vadd.f32 %v909_v31, %v4200_v9  ;;  %v4409_v9 = vshrl.u32 %v4394_v38, 16  ;;  %v4444_v31 = vpack.c.bf16 %v4438_v7, %v4214_v20 }
 0x10c   : > { %v1076_v17 = vadd.f32 %v1047_v4, %v938_v39  ;;  %1489 = vmatmul.bf16.gmra.mxu0 %v1412_v36  ;;  %v1576_v3 = vrot.slane %v4409_v9, 3  ;;  %v1881_v4 = vsel %vm248_vm0, %v1876_v6, %v1880_v62  ;;  %v3651_v39 = vld [vmem:[%s4639_s1 + $0x348] sm:$0xff]  ;;  %v1583_v20 = vshrl.u32 %v4444_v31, 16 }
 0x10d   : > { %1663 = vmatmul.bf16.gmra.mxu1 %v1572_v43  ;;  %v4451_v43 = vld [vmem:[%s3834_s20 + $0x70] sm:$0xff]  ;;  %v1415_v1 = vrot.slane %v4444_v31, 3 }
 0x10e   : > { %1797 = vmatmul.bf16.gmra.mxu2 %v4333_v24  ;;  %v1580_v5 = vor.u32 %v1579_v2, %v1576_v3  ;;  %2277 = vmatpush.bf16.msrb.mxu1 %v3651_v39  ;;  %v1585_v19 = vrot.slane %v1583_v20, 3  ;;  %v3642_v2 = vld [vmem:[%s4639_s1 + $0x300] sm:$0xff] }
 0x10f   : > { %1965 = vmatmul.bf16.gmra.mxu3 %v1873_v40  ;;  %2141 = vmatpush.bf16.msrb.mxu0 %v3642_v2 }
 0x110   : > { %v1581_v35 = vsel %vm1537_vm6, %v1571_v27, %v1580_v5 }
 0x111   : > { %v1191_v47 = vpop.f32.mrf.mxu2  ;;  %v911_v48 = vpop.f32.mrf.mxu0 }
 0x112   : > { %v1323_v24 = vpop.f32.mrf.mxu3  ;;  %v1220_v22 = vadd.f32 %v1191_v47, %v1076_v17  ;;  %v1049_v49 = vpop.f32.mrf.mxu1  ;;  %v939_v52 = vadd.f32 %v911_v48, %v4224_v25  ;;  %v1413_v25 = vrot.slane %v4394_v38, 3 }
 0x114   : > { %v4425_v58 = vadd.f32 %v1323_v24, %v1220_v22  ;;  %v1077_v59 = vadd.f32 %v1049_v49, %v939_v52  ;;  %v1414_v34 = vsel %vm1248_vm5, %v1411_v26, %v1413_v25  ;;  %v1828_v26 = vpack.c.bf16 %v4451_v43, %v4438_v7  ;;  %v3658_v49 = vld [vmem:[%s4639_s1 + $0x380] sm:$0xff] }
 0x115   : > { %v3666_v52 = vld [vmem:[%s4639_s1 + $0x3c0] sm:$0xff]  ;;  %2421 = vmatpush.bf16.msrb.mxu2 %v3658_v49 }
 0x116   : > { %v1886_v22 = vshll.u32 %v1828_v26, 16  ;;  %2552 = vmatpush.bf16.msrb.mxu3 %v3666_v52  ;;  %v1890_v20 = vshrl.u32 %v1828_v26, 16 }
 0x118   : > { %v1888_v60 = vrot.slane %v1886_v22, 1 }
 0x119   : > { %v1193_v8 = vpop.f32.mrf.mxu2  ;;  %v914_v28 = vpop.f32.mrf.mxu0 }
 0x11a   : > { %v1325_v11 = vpop.f32.mrf.mxu3  ;;  %v1221_v15 = vadd.f32 %v1193_v8, %v1077_v59  ;;  %v1052_v30 = vpop.f32.mrf.mxu1  ;;  %v940_v29 = vadd.f32 %v914_v28, %v4231_v46  ;;  %v1586_v46 = vshll.u32 %v4444_v31, 16 }
 0x11c   : > { %v4448_v36 = vadd.f32 %v1325_v11, %v1221_v15  ;;  %v1078_v40 = vadd.f32 %v1052_v30, %v940_v29  ;;  %1494 = vmatmul.bf16.gmra.mxu0 %v1414_v34  ;;  %v1588_v47 = vrot.slane %v1586_v46, 4  ;;  %v1416_v15 = vsel %vm1248_vm5, %v1413_v25, %v1415_v1 }
 0x11d   : > { %1668 = vmatmul.bf16.gmra.mxu1 %v1581_v35 }
 0x11e   : > { %1802 = vmatmul.bf16.gmra.mxu2 %v4379_v37  ;;  %v1882_v37 = vshrl.u32 %v4418_v55, 16  ;;  %v1589_v44 = vor.u32 %v1588_v47, %v1585_v19  ;;  %v2010_v19 = vpack.c.bf16 %v4276_v32, %v4270_v56 }
 0x11f   : > { %1970 = vmatmul.bf16.gmra.mxu3 %v1881_v4 }
 0x120   : > { %v1884_v59 = vor.u32 %v1882_v37, %v1880_v62  ;;  %v1590_v28 = vsel %vm1537_vm6, %v1580_v5, %v1589_v44  ;;  %v2034_v26 = vshrl.u32 %v2010_v19, 16  ;;  %v2036_v37 = vshll.u32 %v2010_v19, 16 }
 0x121   : > { %v1196_v27 = vpop.f32.mrf.mxu2  ;;  %v916_v18 = vpop.f32.mrf.mxu0 }
 0x122   : > { %v1328_v45 = vpop.f32.mrf.mxu3  ;;  %v1222_v17 = vadd.f32 %v1196_v27, %v1078_v40  ;;  %v1054_v41 = vpop.f32.mrf.mxu1  ;;  %v941_v24 = vadd.f32 %v916_v18, %v4251_v61  ;;  %v3650_v61 = vld [vmem:[%s4639_s1 + $0x340] sm:$0xff]  ;;  %v1889_v34 = vsel %vm248_vm0, %v1884_v59, %v1888_v60  ;;  %v2337_v59 = vrot.slane %v2034_v26, 1 }
 0x123   : > { %2278 = vmatpush.bf16.msrb.mxu1 %v3650_v61  ;;  %v2038_v61 = vrot.slane %v2036_v37, 1  ;;  %v2338_v32 = vrot.slane %v2036_v37, 2 }
 0x124   : > { %v4463_v48 = vadd.f32 %v1328_v45, %v1222_v17  ;;  %v1079_v3 = vadd.f32 %v1054_v41, %v941_v24  ;;  %v1892_v41 = vor.u32 %v1890_v20, %v1888_v60  ;;  %v2341_v60 = vrot.slane %v4331_v21, 2 }
 0x129   : > { %v1198_v63 = vpop.f32.mrf.mxu2  ;;  %v919_v8 = vpop.f32.mrf.mxu0 }
 0x12a   : > { %v1330_v0 = vpop.f32.mrf.mxu3  ;;  %v1223_v6 = vadd.f32 %v1198_v63, %v1079_v3  ;;  %v1057_v11 = vpop.f32.mrf.mxu1  ;;  %v942_v30 = vadd.f32 %v919_v8, %v4262_v13  ;;  %v2039_v63 = vor.u32 %v2038_v61, %v2034_v26  ;;  %v2207_v8 = vrot.slane %v4320_v10, 1 }
 0x12b   : > { %v2209_v26 = vrot.slane %v4357_v51, 1 }
 0x12c   : > { %v4482_v35 = vadd.f32 %v1330_v0, %v1223_v6  ;;  %v1080_v62 = vadd.f32 %v1057_v11, %v942_v30  ;;  %1499 = vmatmul.bf16.gmra.mxu0 %v1416_v15  ;;  %v2043_v0 = vrot.slane %v4331_v21, 1  ;;  %v2206_v6 = vrot.slane %v2010_v19, 1 }
 0x12d   : > { %1673 = vmatmul.bf16.gmra.mxu1 %v1590_v28  ;;  %v2339_v11 = vor.u32 %v2338_v32, %v2337_v59  ;;  %v2480_v28 = vrot.slane %v2010_v19, 2  ;;  %v2481_v30 = vrot.slane %v4320_v10, 2  ;;  %v2210_v59 = vsel %vm497_vm1, %v2207_v8, %v2209_v26 }
 0x12e   : > { %1807 = vmatmul.bf16.gmra.mxu2 %v4418_v55  ;;  %v1713_v55 = vpack.c.bf16 %v4438_v7, %v4438_v7 }
 0x12f   : > { %1975 = vmatmul.bf16.gmra.mxu3 %v1889_v34 }
 0x131   : > { %v1201_v31 = vpop.f32.mrf.mxu2  ;;  %v921_v39 = vpop.f32.mrf.mxu0 }
 0x132   : > { %v1333_v29 = vpop.f32.mrf.mxu3  ;;  %v1224_v4 = vadd.f32 %v1201_v31, %v1080_v62  ;;  %v1059_v40 = vpop.f32.mrf.mxu1  ;;  %v943_v25 = vadd.f32 %v921_v39, %v4278_v33  ;;  %v2208_v39 = vsel %vm497_vm1, %v2206_v6, %v2207_v8  ;;  %v2348_v6 = vrot.slane %v4409_v9, 1 }
 0x134   : > { %v4486_v5 = vadd.f32 %v1333_v29, %v1224_v4  ;;  %v1081_v13 = vadd.f32 %v1059_v40, %v943_v25  ;;  %v2044_v4 = vsel %vm248_vm0, %v2039_v63, %v2043_v0  ;;  %v2482_v25 = vsel %vm972_vm3, %v2480_v28, %v2481_v30 }
 0x135   : > { %v2211_v28 = vrot.slane %v4394_v38, 1 }
 0x139   : > { %v1203_v46 = vpop.f32.mrf.mxu2  ;;  %v924_v17 = vpop.f32.mrf.mxu0 }
 0x13a   : > { %v1335_v27 = vpop.f32.mrf.mxu3  ;;  %v1225_v45 = vadd.f32 %v1203_v46, %v1081_v13  ;;  %v1062_v18 = vpop.f32.mrf.mxu1  ;;  %v944_v47 = vadd.f32 %v924_v17, %v4301_v50  ;;  %v2340_v50 = vrot.slane %v4328_v16, 1 }
 0x13c   : > { %v4493_v24 = vadd.f32 %v1335_v27, %v1225_v45  ;;  %v1082_v33 = vadd.f32 %v1062_v18, %v944_v47  ;;  %1504 = vmatmul.bf16.gmra.mxu0 %v1415_v1  ;;  %v2342_v15 = vor.u32 %v2341_v60, %v2340_v50  ;;  %v2047_v47 = vor.u32 %v2043_v0, %v4328_v16 }
 0x13d   : > { %1678 = vmatmul.bf16.gmra.mxu1 %v1589_v44 }
 0x13e   : > { %1812 = vmatmul.bf16.gmra.mxu2 %v1713_v55  ;;  %v2343_v21 = vsel %vm629_vm2, %v2339_v11, %v2342_v15  ;;  %v2345_v55 = vrot.slane %v4368_v53, 2 }
 0x13f   : > { %1980 = vmatmul.bf16.gmra.mxu3 %v1892_v41 }
 0x141   : > { %v1206_v22 = vpop.f32.mrf.mxu2  ;;  %v926_v2 = vpop.f32.mrf.mxu0 }
 0x142   : > { %v1338_v49 = vpop.f32.mrf.mxu3  ;;  %v1226_v3 = vadd.f32 %v1206_v22, %v1082_v33  ;;  %v1064_v52 = vpop.f32.mrf.mxu1  ;;  %v945_v56 = vadd.f32 %v926_v2, %v4323_v14  ;;  %v2051_v33 = vrot.slane %v4368_v53, 1  ;;  %v2483_v22 = vrot.slane %v4357_v51, 2 }
 0x144   : > { %v4498_v1 = vadd.f32 %v1338_v49, %v1226_v3  ;;  %v1083_v44 = vadd.f32 %v1064_v52, %v945_v56  ;;  %v2052_v61 = vsel %vm248_vm0, %v2047_v47, %v2051_v33  ;;  %v2484_v53 = vsel %vm972_vm3, %v2481_v30, %v2483_v22 }
 0x145   : > { %v2055_v11 = vor.u32 %v2051_v33, %v4365_v57 }
 0x149   : > { %v1208_v14 = vpop.f32.mrf.mxu2  ;;  %v929_v31 = vpop.f32.mrf.mxu0 }
 0x14a   : > { %v1340_v34 = vpop.f32.mrf.mxu3  ;;  %v1227_v62 = vadd.f32 %v1208_v14, %v1083_v44  ;;  %v1067_v29 = vpop.f32.mrf.mxu1  ;;  %v946_v40 = vadd.f32 %v929_v31, %v4339_v23  ;;  %v2344_v23 = vrot.slane %v4365_v57, 1  ;;  %v2485_v14 = vrot.slane %v4394_v38, 2 }
 0x14c   : > { %v4508_v13 = vadd.f32 %v1340_v34, %v1227_v62  ;;  %v1084_v20 = vadd.f32 %v1067_v29, %v946_v40  ;;  %2142 = vmatmul.bf16.vlgmr.msrb.gmra.mxu0 %v2044_v4  ;;  %v2346_v37 = vor.u32 %v2345_v55, %v2344_v23  ;;  %v3348_v34 = vld [vmem:[%s3834_s20 + $0x60] sm:$0xff]  ;;  %v2212_v40 = vsel %vm497_vm1, %v2209_v26, %v2211_v28 }
 0x14d   : > { %2279 = vmatmul.bf16.vlgmr.msrb.gmra.mxu1 %v2208_v39 }
 0x14e   : > { %2422 = vmatmul.bf16.vlgmr.msrb.gmra.mxu2 %v2343_v21  ;;  %v2347_v16 = vsel %vm629_vm2, %v2342_v15, %v2346_v37  ;;  %v2059_v15 = vrot.slane %v4412_v42, 1 }
 0x14f   : > { %2553 = vmatmul.bf16.vlgmr.msrb.gmra.mxu3 %v2482_v25  ;;  %v4541_v25 = vpack.c.bf16 %v4438_v7, %v3348_v34 }
 0x150   : > { %v2060_v39 = vsel %vm248_vm0, %v2055_v11, %v2059_v15  ;;  %v2063_v47 = vor.u32 %v2059_v15, %v4409_v9 }
 0x151   : > { %v1211_v10 = vpop.f32.mrf.mxu2  ;;  %v931_v45 = vpop.f32.mrf.mxu0  ;;  %v2065_v38 = vshll.u32 %v4541_v25, 16  ;;  %v2213_v26 = vrot.slane %v4541_v25, 1 }
 0x152   : > { %v1343_v46 = vpop.f32.mrf.mxu3  ;;  %v1228_v27 = vadd.f32 %v1211_v10, %v1084_v20  ;;  %v1069_v17 = vpop.f32.mrf.mxu1  ;;  %v947_v18 = vadd.f32 %v931_v45, %v4360_v54  ;;  %v2069_v10 = vshrl.u32 %v4541_v25, 16 }
 0x153   : > { %v2353_v7 = vrot.slane %v2065_v38, 2  ;;  %v2067_v33 = vrot.slane %v2065_v38, 1 }
 0x154   : > { %v4513_v41 = vadd.f32 %v1343_v46, %v1228_v27  ;;  %v1085_v19 = vadd.f32 %v1069_v17, %v947_v18  ;;  %v2352_v23 = vrot.slane %v2069_v10, 1 }
 0x159   : > { %v1213_v49 = vpop.f32.mrf.mxu2  ;;  %v934_v54 = vpop.f32.mrf.mxu0 }
 0x15a   : > { %v1345_v3 = vpop.f32.mrf.mxu3  ;;  %v1229_v2 = vadd.f32 %v1213_v49, %v1085_v19  ;;  %v1072_v52 = vpop.f32.mrf.mxu1  ;;  %v948_v56 = vadd.f32 %v934_v54, %v4385_v12  ;;  %v2349_v12 = vrot.slane %v4412_v42, 2  ;;  %v2486_v42 = vsel %vm972_vm3, %v2483_v22, %v2485_v14  ;;  %v3351_v49 = vld [vmem:[%s3834_s20 + $0x78] sm:$0xff] }
 0x15b   : > { %v2487_v22 = vrot.slane %v4541_v25, 2 }
 0x15c   : > { %v4524_v32 = vadd.f32 %v1345_v3, %v1229_v2  ;;  %v1086_v50 = vadd.f32 %v1072_v52, %v948_v56  ;;  %2147 = vmatmul.bf16.gmra.mxu0 %v2052_v61  ;;  %v2350_v30 = vor.u32 %v2349_v12, %v2348_v6 }
 0x15d   : > { %2284 = vmatmul.bf16.gmra.mxu1 %v2210_v59  ;;  %v2214_v59 = vsel %vm497_vm1, %v2211_v28, %v2213_v26 }
 0x15e   : > { %2427 = vmatmul.bf16.gmra.mxu2 %v2347_v16  ;;  %v2351_v57 = vsel %vm629_vm2, %v2346_v37, %v2350_v30  ;;  %v2354_v37 = vor.u32 %v2353_v7, %v2352_v23  ;;  %v2488_v16 = vsel %vm972_vm3, %v2485_v14, %v2487_v22  ;;  %v2071_v14 = vor.u32 %v2069_v10, %v2067_v33 }
 0x15f   : > { %2558 = vmatmul.bf16.gmra.mxu3 %v2484_v53  ;;  %v2015_v53 = vpack.c.bf16 %v3351_v49, %v4451_v43 }
 0x160   : > { %v2355_v9 = vsel %vm629_vm2, %v2350_v30, %v2354_v37 }
 0x161   : > { %v1216_v51 = vpop.f32.mrf.mxu2  ;;  %v936_v63 = vpop.f32.mrf.mxu0 }
 0x162   : > { %v1348_v60 = vpop.f32.mrf.mxu3  ;;  %v1230_v44 = vadd.f32 %v1216_v51, %v1086_v50  ;;  %v1074_v0 = vpop.f32.mrf.mxu1 }
 0x164   : > { %v4528_v8 = vadd.f32 %v1348_v60, %v1230_v44  ;;  %v2073_v60 = vshll.u32 %v2015_v53, 16  ;;  %v2077_v44 = vshrl.u32 %v2015_v53, 16 }
 0x166   : > { %v2356_v15 = vrot.slane %v2077_v44, 1  ;;  %v2357_v28 = vrot.slane %v2073_v60, 2  ;;  %v2075_v34 = vrot.slane %v2073_v60, 1 }
 0x169   : > { %v1218_v62 = vpop.f32.mrf.mxu2  ;;  %v1480_v29 = vpop.f32.mrf.mxu0 }
 0x16a   : > { %v1350_v31 = vpop.f32.mrf.mxu3  ;;  %v1654_v4 = vpop.f32.mrf.mxu1  ;;  %v1509_v21 = vadd.f32 %v1480_v29, %v4425_v58  ;;  %v2215_v62 = vrot.slane %v2015_v53, 1  ;;  %v2489_v29 = vrot.slane %v2015_v53, 2 }
 0x16b   : > { %v2358_v31 = vor.u32 %v2357_v28, %v2356_v15 }
 0x16c   : > { %v1683_v20 = vadd.f32 %v1654_v4, %v1509_v21  ;;  %2152 = vmatmul.bf16.gmra.mxu0 %v2060_v39  ;;  %v2216_v25 = vsel %vm497_vm1, %v2213_v26, %v2215_v62  ;;  %v2490_v38 = vsel %vm972_vm3, %v2487_v22, %v2489_v29 }
 0x16d   : > { %2289 = vmatmul.bf16.gmra.mxu1 %v2212_v40 }
 0x16e   : > { %2432 = vmatmul.bf16.gmra.mxu2 %v2351_v57 }
 0x16f   : > { %2563 = vmatmul.bf16.gmra.mxu3 %v2486_v42  ;;  %v2076_v42 = vsel %vm248_vm0, %v2071_v14, %v2075_v34 }
 0x171   : > { %v1788_v46 = vpop.f32.mrf.mxu2  ;;  %v1482_v45 = vpop.f32.mrf.mxu0 }
 0x172   : > { %v1956_v27 = vpop.f32.mrf.mxu3  ;;  %v1817_v58 = vadd.f32 %v1788_v46, %v1683_v20  ;;  %v1656_v17 = vpop.f32.mrf.mxu1  ;;  %v1510_v18 = vadd.f32 %v1482_v45, %v4448_v36  ;;  %v2068_v36 = vsel %vm248_vm0, %v2063_v47, %v2067_v33  ;;  %v2359_v20 = vsel %vm629_vm2, %v2354_v37, %v2358_v31 }
 0x173   : > { %v2079_v33 = vor.u32 %v2077_v44, %v2075_v34 }
 0x174   : > { %v4546_v55 = vadd.f32 %v1956_v27, %v1817_v58  ;;  %v1684_v19 = vadd.f32 %v1656_v17, %v1510_v18 }
 0x179   : > { %v1790_v3 = vpop.f32.mrf.mxu2  ;;  %v1485_v52 = vpop.f32.mrf.mxu0 }
 0x17a   : > { %v1958_v2 = vpop.f32.mrf.mxu3  ;;  %v1818_v54 = vadd.f32 %v1790_v3, %v1684_v19  ;;  %v1659_v61 = vpop.f32.mrf.mxu1  ;;  %v1511_v56 = vadd.f32 %v1485_v52, %v4463_v48 }
 0x17c   : > { %v4558_v50 = vadd.f32 %v1958_v2, %v1818_v54  ;;  %v1685_v51 = vadd.f32 %v1659_v61, %v1511_v56  ;;  %2157 = vmatmul.bf16.gmra.mxu0 %v2068_v36 }
 0x17d   : > { %2294 = vmatmul.bf16.gmra.mxu1 %v2214_v59 }
 0x17e   : > { %2437 = vmatmul.bf16.gmra.mxu2 %v2355_v9 }
 0x17f   : > { %2568 = vmatmul.bf16.gmra.mxu3 %v2488_v16 }
 0x181   : > { %v1793_v63 = vpop.f32.mrf.mxu2  ;;  %v1487_v12 = vpop.f32.mrf.mxu0 }
 0x182   : > { %v1961_v0 = vpop.f32.mrf.mxu3  ;;  %v1819_v6 = vadd.f32 %v1793_v63, %v1685_v51  ;;  %v1661_v48 = vpop.f32.mrf.mxu1  ;;  %v1512_v11 = vadd.f32 %v1487_v12, %v4482_v35 }
 0x184   : > { %v4561_v30 = vadd.f32 %v1961_v0, %v1819_v6  ;;  %v1686_v43 = vadd.f32 %v1661_v48, %v1512_v11 }
 0x189   : > { %v1795_v4 = vpop.f32.mrf.mxu2  ;;  %v1490_v21 = vpop.f32.mrf.mxu0 }
 0x18a   : > { %v1963_v39 = vpop.f32.mrf.mxu3  ;;  %v1820_v40 = vadd.f32 %v1795_v4, %v1686_v43  ;;  %v1664_v57 = vpop.f32.mrf.mxu1  ;;  %v1513_v35 = vadd.f32 %v1490_v21, %v4486_v5 }
 0x18c   : > { %v4568_v10 = vadd.f32 %v1963_v39, %v1820_v40  ;;  %v1687_v46 = vadd.f32 %v1664_v57, %v1513_v35  ;;  %2162 = vmatmul.bf16.gmra.mxu0 %v2076_v42 }
 0x18d   : > { %2299 = vmatmul.bf16.gmra.mxu1 %v2216_v25 }
 0x18e   : > { %2442 = vmatmul.bf16.gmra.mxu2 %v2359_v20 }
 0x18f   : > { %2573 = vmatmul.bf16.gmra.mxu3 %v2490_v38 }
 0x191   : > { %v1798_v27 = vpop.f32.mrf.mxu2  ;;  %v1492_v17 = vpop.f32.mrf.mxu0 }
 0x192   : > { %v1966_v58 = vpop.f32.mrf.mxu3  ;;  %v1821_v45 = vadd.f32 %v1798_v27, %v1687_v46  ;;  %v1666_v18 = vpop.f32.mrf.mxu1  ;;  %v1514_v23 = vadd.f32 %v1492_v17, %v4493_v24 }
 0x194   : > { %v4571_v7 = vadd.f32 %v1966_v58, %v1821_v45  ;;  %v1688_v5 = vadd.f32 %v1666_v18, %v1514_v23 }
 0x199   : > { %v1800_v19 = vpop.f32.mrf.mxu2  ;;  %v1495_v37 = vpop.f32.mrf.mxu0 }
 0x19a   : > { %v1968_v47 = vpop.f32.mrf.mxu3  ;;  %v1822_v26 = vadd.f32 %v1800_v19, %v1688_v5  ;;  %v1669_v22 = vpop.f32.mrf.mxu1  ;;  %v1515_v49 = vadd.f32 %v1495_v37, %v4498_v1 }
 0x19c   : > { %v4574_v3 = vadd.f32 %v1968_v47, %v1822_v26  ;;  %v1689_v2 = vadd.f32 %v1669_v22, %v1515_v49  ;;  %2167 = vmatmul.bf16.gmra.mxu0 %v2079_v33  ;;  %v4595_v47 = vld [vmem:[%s4640_s2] ss:$0 sm:$0xff] }
 0x19d   : > { %2304 = vmatmul.bf16.gmra.mxu1 %v2215_v62 }
 0x19e   : > { %2447 = vmatmul.bf16.gmra.mxu2 %v2358_v31 }
 0x19f   : > { %2578 = vmatmul.bf16.gmra.mxu3 %v2489_v29 }
 0x1a1   : > { %v1803_v54 = vpop.f32.mrf.mxu2  ;;  %v1497_v61 = vpop.f32.mrf.mxu0 }
 0x1a2   : > { %v1971_v24 = vpop.f32.mrf.mxu3  ;;  %v1823_v52 = vadd.f32 %v1803_v54, %v1689_v2  ;;  %v1671_v36 = vpop.f32.mrf.mxu1  ;;  %v1516_v59 = vadd.f32 %v1497_v61, %v4508_v13 }
 0x1a4   : > { %v4577_v56 = vadd.f32 %v1971_v24, %v1823_v52  ;;  %v1690_v9 = vadd.f32 %v1671_v36, %v1516_v59 }
 0x1a9   : > { %v1805_v16 = vpop.f32.mrf.mxu2  ;;  %v1500_v51 = vpop.f32.mrf.mxu0 }
 0x1aa   : > { %v1973_v53 = vpop.f32.mrf.mxu3  ;;  %v1824_v1 = vadd.f32 %v1805_v16, %v1690_v9  ;;  %v1674_v60 = vpop.f32.mrf.mxu1  ;;  %v1517_v44 = vadd.f32 %v1500_v51, %v4513_v41 }
 0x1ac   : > { %v4580_v63 = vadd.f32 %v1973_v53, %v1824_v1  ;;  %v1691_v0 = vadd.f32 %v1674_v60, %v1517_v44 }
 0x1b1   : > { %v1808_v6 = vpop.f32.mrf.mxu2  ;;  %v1502_v11 = vpop.f32.mrf.mxu0 }
 0x1b2   : > { %v1976_v12 = vpop.f32.mrf.mxu3  ;;  %v1825_v48 = vadd.f32 %v1808_v6, %v1691_v0  ;;  %v1676_v15 = vpop.f32.mrf.mxu1  ;;  %v1518_v13 = vadd.f32 %v1502_v11, %v4524_v32 }
 0x1b4   : > { %v4583_v28 = vadd.f32 %v1976_v12, %v1825_v48  ;;  %v1692_v43 = vadd.f32 %v1676_v15, %v1518_v13 }
 0x1b9   : > { %v1810_v14 = vpop.f32.mrf.mxu2  ;;  %v1505_v31 = vpop.f32.mrf.mxu0 }
 0x1ba   : > { %v1978_v34 = vpop.f32.mrf.mxu3  ;;  %v1826_v62 = vadd.f32 %v1810_v14, %v1692_v43  ;;  %v1679_v29 = vpop.f32.mrf.mxu1  ;;  %v1519_v41 = vadd.f32 %v1505_v31, %v4528_v8 }
 0x1bc   : > { %v4586_v4 = vadd.f32 %v1978_v34, %v1826_v62  ;;  %v1693_v39 = vadd.f32 %v1679_v29, %v1519_v41 }
 0x1c1   : > { %v1813_v40 = vpop.f32.mrf.mxu2  ;;  %v1507_v42 = vpop.f32.mrf.mxu0 }
 0x1c2   : > { %v1981_v21 = vpop.f32.mrf.mxu3  ;;  %v1827_v57 = vadd.f32 %v1813_v40, %v1693_v39  ;;  %v1681_v25 = vpop.f32.mrf.mxu1 }
 0x1c4   : > { %v4588_v35 = vadd.f32 %v1981_v21, %v1827_v57 }
 0x1c9   : > { %v1815_v32 = vpop.f32.mrf.mxu2  ;;  %v2143_v38 = vpop.f32.mrf.mxu0 }
 0x1ca   : > { %v1983_v20 = vpop.f32.mrf.mxu3  ;;  %v2280_v46 = vpop.f32.mrf.mxu1  ;;  %v2172_v27 = vadd.f32 %v2143_v38, %v4546_v55 }
 0x1cc   : > { %v2309_v8 = vadd.f32 %v2280_v46, %v2172_v27 }
 0x1d1   : > { %v2423_v58 = vpop.f32.mrf.mxu2  ;;  %v2145_v17 = vpop.f32.mrf.mxu0 }
 0x1d2   : > { %v2554_v45 = vpop.f32.mrf.mxu3  ;;  %v2282_v18 = vpop.f32.mrf.mxu1  ;;  %v2452_v23 = vadd.f32 %v2423_v58, %v2309_v8  ;;  %v2173_v5 = vadd.f32 %v2145_v17, %v4558_v50 }
 0x1d4   : > { %v2583_v19 = vadd.f32 %v2554_v45, %v2452_v23  ;;  %v2310_v33 = vadd.f32 %v2282_v18, %v2173_v5 }
 0x1d6   : > { %v2598_v2 = vadd.f32 %v4595_v47, %v2583_v19 }
 0x1d8   : > { %v2609_v52 = vmax.f32 %v2598_v2, 0.0 }
 0x1d9   : > { %v2425_v26 = vpop.f32.mrf.mxu2  ;;  %v2148_v55 = vpop.f32.mrf.mxu0 }
 0x1da   : > { %v2556_v37 = vpop.f32.mrf.mxu3  ;;  %v2453_v22 = vadd.f32 %v2425_v26, %v2310_v33  ;;  %v2285_v49 = vpop.f32.mrf.mxu1  ;;  %v2174_v50 = vadd.f32 %v2148_v55, %v4561_v30 }
 0x1dc   : > { %v2584_v54 = vadd.f32 %v2556_v37, %v2453_v22  ;;  %v2311_v16 = vadd.f32 %v2285_v49, %v2174_v50 }
 0x1de   : > { %v2599_v24 = vadd.f32 %v4595_v47, %v2584_v54 }
 0x1e0   : > { %v2610_v61 = vmax.f32 %v2599_v24, 0.0 }
 0x1e1   : > { %v2428_v36 = vpop.f32.mrf.mxu2  ;;  %v2150_v53 = vpop.f32.mrf.mxu0 }
 0x1e2   : > { %v2559_v59 = vpop.f32.mrf.mxu3  ;;  %v3677_v9 = vpack.c.bf16 %v2610_v61, %v2609_v52  ;;  %v2287_v1 = vpop.f32.mrf.mxu1  ;;  %v2454_v51 = vadd.f32 %v2428_v36, %v2311_v16  ;;  %v2175_v60 = vadd.f32 %v2150_v53, %v4568_v10 }
 0x1e4   : > { %3678 = vst [vmem:[%s4604_s10] sm:$0xff] %v3677_v9   ;;  %v2585_v44 = vadd.f32 %v2559_v59, %v2454_v51  ;;  %v2312_v30 = vadd.f32 %v2287_v1, %v2175_v60 }
 0x1e6   : > { %v2600_v15 = vadd.f32 %v4595_v47, %v2585_v44 }
 0x1e8   : > { %v2611_v34 = vmax.f32 %v2600_v15, 0.0 }
 0x1e9   : > { %v2430_v0 = vpop.f32.mrf.mxu2  ;;  %v2153_v48 = vpop.f32.mrf.mxu0 }
 0x1ea   : > { %v2561_v6 = vpop.f32.mrf.mxu3  ;;  %v2455_v12 = vadd.f32 %v2430_v0, %v2312_v30  ;;  %v2290_v11 = vpop.f32.mrf.mxu1  ;;  %v2176_v14 = vadd.f32 %v2153_v48, %v4571_v7 }
 0x1ec   : > { %v2586_v13 = vadd.f32 %v2561_v6, %v2455_v12  ;;  %v2313_v41 = vadd.f32 %v2290_v11, %v2176_v14 }
 0x1ee   : > { %v2601_v43 = vadd.f32 %v4595_v47, %v2586_v13 }
 0x1f0   : > { %v2612_v62 = vmax.f32 %v2601_v43, 0.0 }
 0x1f1   : > { %v2433_v31 = vpop.f32.mrf.mxu2  ;;  %v2155_v39 = vpop.f32.mrf.mxu0 }
 0x1f2   : > { %v2564_v29 = vpop.f32.mrf.mxu3  ;;  %v3682_v10 = vpack.c.bf16 %v2612_v62, %v2611_v34  ;;  %v2292_v40 = vpop.f32.mrf.mxu1  ;;  %v2456_v21 = vadd.f32 %v2433_v31, %v2313_v41  ;;  %v2177_v57 = vadd.f32 %v2155_v39, %v4574_v3 }
 0x1f4   : > { %3699 = vst [vmem:[%s4604_s10 + $0x8] sm:$0xff] %v3682_v10   ;;  %v2587_v42 = vadd.f32 %v2564_v29, %v2456_v21  ;;  %v2314_v25 = vadd.f32 %v2292_v40, %v2177_v57 }
 0x1f6   : > { %v2602_v27 = vadd.f32 %v4595_v47, %v2587_v42 }
 0x1f8   : > { %v2613_v17 = vmax.f32 %v2602_v27, 0.0 }
 0x1f9   : > { %v2435_v32 = vpop.f32.mrf.mxu2  ;;  %v2158_v46 = vpop.f32.mrf.mxu0 }
 0x1fa   : > { %v2566_v20 = vpop.f32.mrf.mxu3  ;;  %v2457_v38 = vadd.f32 %v2435_v32, %v2314_v25  ;;  %v2295_v7 = vpop.f32.mrf.mxu1  ;;  %v2178_v8 = vadd.f32 %v2158_v46, %v4577_v56 }
 0x1fc   : > { %v2588_v58 = vadd.f32 %v2566_v20, %v2457_v38  ;;  %v2315_v19 = vadd.f32 %v2295_v7, %v2178_v8 }
 0x1fe   : > { %v2603_v45 = vadd.f32 %v4595_v47, %v2588_v58 }
 0x200   : > { %v2614_v18 = vmax.f32 %v2603_v45, 0.0 }
 0x201   : > { %v2438_v23 = vpop.f32.mrf.mxu2  ;;  %v2160_v33 = vpop.f32.mrf.mxu0 }
 0x202   : > { %v2569_v5 = vpop.f32.mrf.mxu3  ;;  %v3687_v3 = vpack.c.bf16 %v2614_v18, %v2613_v17  ;;  %v2297_v26 = vpop.f32.mrf.mxu1  ;;  %v2458_v37 = vadd.f32 %v2438_v23, %v2315_v19  ;;  %v2179_v22 = vadd.f32 %v2160_v33, %v4580_v63 }
 0x204   : > { %3700 = vst [vmem:[%s4604_s10 + $0x10] sm:$0xff] %v3687_v3   ;;  %v2589_v55 = vadd.f32 %v2569_v5, %v2458_v37  ;;  %v2316_v49 = vadd.f32 %v2297_v26, %v2179_v22 }
 0x206   : > { %v2604_v52 = vadd.f32 %v4595_v47, %v2589_v55 }
 0x208   : > { %v2615_v9 = vmax.f32 %v2604_v52, 0.0 }
 0x209   : > { %v2440_v2 = vpop.f32.mrf.mxu2  ;;  %v2163_v50 = vpop.f32.mrf.mxu0 }
 0x20a   : > { %v2571_v54 = vpop.f32.mrf.mxu3  ;;  %v2459_v24 = vadd.f32 %v2440_v2, %v2316_v49  ;;  %v2300_v56 = vpop.f32.mrf.mxu1  ;;  %v2180_v59 = vadd.f32 %v2163_v50, %v4583_v28 }
 0x20c   : > { %v2590_v61 = vadd.f32 %v2571_v54, %v2459_v24  ;;  %v2317_v51 = vadd.f32 %v2300_v56, %v2180_v59 }
 0x20e   : > { %v2605_v36 = vadd.f32 %v4595_v47, %v2590_v61 }
 0x210   : > { %v2616_v16 = vmax.f32 %v2605_v36, 0.0 }
 0x211   : > { %v2443_v53 = vpop.f32.mrf.mxu2  ;;  %v2165_v60 = vpop.f32.mrf.mxu0 }
 0x212   : > { %v2574_v1 = vpop.f32.mrf.mxu3  ;;  %v3692_v63 = vpack.c.bf16 %v2616_v16, %v2615_v9  ;;  %v2302_v44 = vpop.f32.mrf.mxu1  ;;  %v2460_v30 = vadd.f32 %v2443_v53, %v2317_v51  ;;  %v2181_v0 = vadd.f32 %v2165_v60, %v4586_v4 }
 0x214   : > { %3701 = vst [vmem:[%s4604_s10 + $0x18] sm:$0xff] %v3692_v63   ;;  %v2591_v6 = vadd.f32 %v2574_v1, %v2460_v30  ;;  %v2318_v12 = vadd.f32 %v2302_v44, %v2181_v0 }
 0x216   : > { %v2606_v43 = vadd.f32 %v4595_v47, %v2591_v6 }
 0x218   : > { %v2617_v31 = vmax.f32 %v2606_v43, 0.0 }
 0x219   : > { %v2445_v48 = vpop.f32.mrf.mxu2  ;;  %v2168_v13 = vpop.f32.mrf.mxu0 }
 0x21a   : > { %v2576_v11 = vpop.f32.mrf.mxu3  ;;  %v2461_v15 = vadd.f32 %v2445_v48, %v2318_v12  ;;  %v2305_v28 = vpop.f32.mrf.mxu1  ;;  %v2182_v34 = vadd.f32 %v2168_v13, %v4588_v35 }
 0x21c   : > { %v2592_v14 = vadd.f32 %v2576_v11, %v2461_v15  ;;  %v2319_v10 = vadd.f32 %v2305_v28, %v2182_v34 }
 0x21e   : > { %v2607_v62 = vadd.f32 %v4595_v47, %v2592_v14 }
 0x220   : > { %v2618_v29 = vmax.f32 %v2607_v62, 0.0 }
 0x221   : > { %v2448_v4 = vpop.f32.mrf.mxu2  ;;  %v2170_v21 = vpop.f32.mrf.mxu0 }
 0x222   : > { %v2579_v41 = vpop.f32.mrf.mxu3  ;;  %v3697_v39 = vpack.c.bf16 %v2618_v29, %v2617_v31  ;;  %v2462_v40 = vadd.f32 %v2448_v4, %v2319_v10  ;;  %v2307_v57 = vpop.f32.mrf.mxu1 }
 0x224   : > { %3702 = vst [vmem:[%s4604_s10 + $0x20] sm:$0xff] %v3697_v39   ;;  %v2593_v42 = vadd.f32 %v2579_v41, %v2462_v40 }
 0x226   : > { %v2608_v25 = vadd.f32 %v4595_v47, %v2593_v42 }
 0x228   : > { %v2619_v32 = vmax.f32 %v2608_v25, 0.0 }
 0x229   : > { %v2450_v20 = vpop.f32.mrf.mxu2 }
 0x22a   : > { %v2581_v38 = vpop.f32.mrf.mxu3  ;;  %v2630_v35 = vpack.c.bf16 %v2619_v32, %v2619_v32 }
 0x22c   : > { %2641 = vst [vmem:[%s4604_s10 + $0x28] sm:$0xf] %v2630_v35 }
 0x22d PF: > { %s13_s14 = sadd.s32 1, %s3752_s14   ;;  %s4642_s12 = smov %s3748_s13 }
 0x22e   : > { %p10_p5 = scmp.ge.s32.totalorder %s13_s14, 4   ;;  %s4643_s13 = smov %s4645_s15 }
 0x230   :  { %12 = sbr.rel (!%p10_p5) target bundleno = 2 (0x2), region = 82 }

</bundles_post_ra>
